<compile_context>
chip_gen: v7x
topology: tpu7x:2x2x1
jax: 0.10.0
libtpu: 0.0.40
codegen_flags: <defaults>
</compile_context>

<pallas_src>
import math

import jax
import jax.numpy as jnp
from jax.experimental import pallas as pl
from jax.experimental.pallas import tpu as pltpu

NUM_CLASSES = 200
CLASSES_PAD = 256          # lane-dense padded class count for the fc2 store
CONV1_K_PAD = 32           # conv1 im2col K: 9*3 = 27 -> 32


# ----------------------------------------------------------------------------
# Pallas kernels
# ----------------------------------------------------------------------------
def _conv_mm_kernel(lhs_ref, w_ref, b_ref, o_ref):
    """Fused conv-as-matmul + folded-BN bias + (2x2 max-pool) + ReLU.

    lhs_ref : (bb, n_phase, P, K) bf16  im2col patches (pool phases stacked on M)
    w_ref   : (K, Cout)           bf16  BN scale folded into the weights
    b_ref   : (1, Cout)           f32   folded BN bias
    o_ref   : (bb, P, Cout)       bf16  (pooled) output block
    """
    bb, n_phase, p, k = lhs_ref.shape
    cout = w_ref.shape[1]
    lhs = lhs_ref[...].reshape(bb * n_phase * p, k)      # leading-dim merge
    acc = jnp.dot(lhs, w_ref[...], preferred_element_type=jnp.float32)
    acc = acc.reshape(bb, n_phase, p, cout)
    if n_phase > 1:                                       # fused MaxPool2d(2,2)
        acc = acc.max(axis=1)
    else:
        acc = acc.reshape(bb, p, cout)
    # bias is constant across pool phases and ReLU is monotone, so
    # ReLU(max(dot) + bias) == MaxPool(ReLU(BN(conv))).
    o_ref[...] = jnp.maximum(acc + b_ref[...], 0.0).astype(o_ref.dtype)


def _fc_kernel(x_ref, w1_ref, b1_ref, w2_ref, b2_ref, o_ref):
    """Fused Linear(2048,512)+ReLU [+Dropout(0.2)=identity at eval] + Linear(512,256pad)."""
    h = jnp.dot(x_ref[...], w1_ref[...], preferred_element_type=jnp.float32)
    h = jnp.maximum(h + b1_ref[...], 0.0)
    y = jnp.dot(h.astype(jnp.bfloat16), w2_ref[...],
                preferred_element_type=jnp.float32)
    o_ref[...] = (y + b2_ref[...]).astype(o_ref.dtype)


# ----------------------------------------------------------------------------
# Wrappers
# ----------------------------------------------------------------------------
def _pick_batch_block(batch, max_bb=4):
    """Largest bb <= max_bb dividing batch that leaves >= 2 grid steps
    (so v7x's two TensorCores both get work); otherwise a single step."""
    for bb in range(max_bb, 0, -1):
        if batch % bb == 0 and batch // bb >= 2:
            return bb
    return batch


def _pick_row_block(batch):
    if batch % 8 != 0 or batch < 16:
        return batch                          # single step (tiny batch)
    bm = 8
    while bm * 2 <= 128 and batch % (bm * 2) == 0 and batch // (bm * 2) >= 2:
        bm *= 2
    return bm


def _im2col(xp, out_hw, phase_offsets):
    """3x3 patch extraction on a zero-padded NHWC activation.

    For each pooling phase (a, b), output position (i, j) holds
    xp[2*i + a + dh, 2*j + b + dw, :] concatenated over the 9 taps (dh, dw).
    Returns (B, n_phase, out_hw*out_hw, 9*Cin) bf16.
    """
    b = xp.shape[0]
    cols = []
    for (a, bo) in phase_offsets:
        taps = [xp[:, a + dh: a + dh + 2 * out_hw: 2,
                   bo + dw: bo + dw + 2 * out_hw: 2, :]
                for dh in range(3) for dw in range(3)]
        col = jnp.concatenate(taps, axis=-1)              # (B, oh, ow, 9*Cin)
        cols.append(col.reshape(b, out_hw * out_hw, -1))
    return jnp.stack(cols, axis=1)                        # (B, n_phase, P, K)


def conv_block(x_nhwc, layer, *, stride, pool):
    """(B,H,W,Cin) bf16 -> (B,H/2,W/2,Cout) bf16 via one Pallas matmul kernel."""
    assert (stride, pool) in ((2, False), (1, True))
    w, bias = layer
    B, H, W, _ = x_nhwc.shape
    assert H == W and H % 2 == 0
    cout = w.shape[1]
    out_hw = H // 2                      # stride-2 conv, or stride-1 conv + pool
    phase_offsets = ([(a, b) for a in (0, 1) for b in (0, 1)]
                     if pool else [(0, 0)])

    xp = jnp.pad(x_nhwc, ((0, 0), (1, 1), (1, 1), (0, 0)))
    lhs = _im2col(xp, out_hw, phase_offsets)
    if lhs.shape[-1] != w.shape[0]:      # conv1: pad K 27 -> 32
        lhs = jnp.pad(lhs, ((0, 0), (0, 0), (0, 0),
                            (0, w.shape[0] - lhs.shape[-1])))

    n_phase = len(phase_offsets)
    p = out_hw * out_hw
    bb = _pick_batch_block(B)

    out = pl.pallas_call(
        _conv_mm_kernel,
        grid=(B // bb,),
        out_shape=jax.ShapeDtypeStruct((B, p, cout), jnp.bfloat16),
        in_specs=[
            pl.BlockSpec((bb, n_phase, p, w.shape[0]), lambda i: (i, 0, 0, 0)),
            pl.BlockSpec(w.shape, lambda i: (0, 0)),      # VMEM-resident weight
            pl.BlockSpec(bias.shape, lambda i: (0, 0)),
        ],
        out_specs=pl.BlockSpec((bb, p, cout), lambda i: (i, 0, 0)),
        compiler_params=pltpu.CompilerParams(
            dimension_semantics=("parallel",)),           # both TCs on v7x
    )(lhs, w, bias)
    return out.reshape(B, out_hw, out_hw, cout)


def fc_block(feats, w1, b1, w2, b2):
    """Fused fc1+ReLU+fc2, row-blocked grid; weights stay VMEM-resident."""
    B, F = feats.shape
    n = w2.shape[1]
    bm = _pick_row_block(B)
    return pl.pallas_call(
        _fc_kernel,
        grid=(B // bm,),
        out_shape=jax.ShapeDtypeStruct((B, n), jnp.float32),
        in_specs=[
            pl.BlockSpec((bm, F), lambda i: (i, 0)),
            pl.BlockSpec(w1.shape, lambda i: (0, 0)),
            pl.BlockSpec(b1.shape, lambda i: (0, 0)),
            pl.BlockSpec(w2.shape, lambda i: (0, 0)),
            pl.BlockSpec(b2.shape, lambda i: (0, 0)),
        ],
        out_specs=pl.BlockSpec((bm, n), lambda i: (i, 0)),
        compiler_params=pltpu.CompilerParams(
            dimension_semantics=("parallel",)),
    )(feats, w1, b1, w2, b2)


def tinynet_forward(x_nchw, packed):
    B = x_nchw.shape[0]
    x = jnp.transpose(x_nchw, (0, 2, 3, 1)).astype(jnp.bfloat16)        # NHWC
    x = conv_block(x, packed["conv1"], stride=2, pool=False)   # (B,32,32, 32)
    x = conv_block(x, packed["conv2"], stride=2, pool=False)   # (B,16,16, 64)
    x = conv_block(x, packed["conv3"], stride=1, pool=True)    # (B, 8, 8,128)
    x = conv_block(x, packed["conv4"], stride=1, pool=True)    # (B, 4, 4,128)
    feats = x.reshape(B, -1)     # NHWC flatten; NCHW perm folded into fc1 cols
    logits = fc_block(feats, *packed["fc"])                    # (B, 256) f32
    return logits[:, :NUM_CLASSES]


# ----------------------------------------------------------------------------
# One-time weight packing: BN fold (scale folded into bf16 weights), im2col
# weight layout, conv1 K pad, class pad, flatten permutation folded into fc1.
# ----------------------------------------------------------------------------
def pack_params(params):
    eps = 1e-5
    bf16 = jnp.bfloat16
    packed = {}

    def pack_conv(layer, k_pad=None):
        w, b, g, beta, mean, var = layer            # torch: w (Cout,Cin,3,3)
        cout, cin = w.shape[0], w.shape[1]
        scale = g / jnp.sqrt(var + eps)             # BN fold (eval mode)
        bias = (b - mean) * scale + beta
        # K ordering matches _im2col: tap (dh,dw) major, cin minor.
        wm = jnp.transpose(w, (2, 3, 1, 0)).reshape(9 * cin, cout)
        wm = wm * scale[None, :]                    # fold BN scale into weights
        if k_pad is not None and k_pad > 9 * cin:
            wm = jnp.pad(wm, ((0, k_pad - 9 * cin), (0, 0)))
        return (wm.astype(bf16), bias.reshape(1, cout).astype(jnp.float32))

    packed["conv1"] = pack_conv(params["conv1"], k_pad=CONV1_K_PAD)
    packed["conv2"] = pack_conv(params["conv2"])
    packed["conv3"] = pack_conv(params["conv3"])
    packed["conv4"] = pack_conv(params["conv4"])

    w1, b1 = params["fc1"]     # (512, 2048); torch feature idx = c*16 + h*4 + w
    # Fold the NHWC (h, w, c) flatten order into fc1's columns.
    w1_m = jnp.transpose(w1.reshape(512, 128, 4, 4),
                         (2, 3, 1, 0)).reshape(2048, 512)
    w2, b2 = params["fc2"]     # (200, 512)
    w2_m = jnp.pad(w2.T, ((0, 0), (0, CLASSES_PAD - NUM_CLASSES)))
    b2_m = jnp.pad(b2, (0, CLASSES_PAD - NUM_CLASSES))
    packed["fc"] = (w1_m.astype(bf16),
                    b1.reshape(1, -1).astype(jnp.float32),
                    w2_m.astype(bf16),
                    b2_m.reshape(1, -1).astype(jnp.float32))
    return packed


# ----------------------------------------------------------------------------
# Pure-JAX reference (NCHW, eval-mode semantics, mirroring the bf16 policy).
# ----------------------------------------------------------------------------
def reference_forward(x_nchw, params):
    eps = 1e-5
    bf16 = jnp.bfloat16

    def conv_bn_relu(x, w, b, g, bt, m, v, stride):
        y = jax.lax.conv_general_dilated(
            x.astype(bf16), w.astype(bf16), (stride, stride), [(1, 1), (1, 1)],
            dimension_numbers=("NCHW", "OIHW", "NCHW"),
            preferred_element_type=jnp.float32)
        y = y + b[None, :, None, None]
        y = ((y - m[None, :, None, None])
             / jnp.sqrt(v[None, :, None, None] + eps)
             * g[None, :, None, None] + bt[None, :, None, None])
        return jnp.maximum(y, 0.0).astype(bf16)

    def maxpool(x):
        B, C, H, W = x.shape
        return x.reshape(B, C, H // 2, 2, W // 2, 2).max(axis=(3, 5))

    x = conv_bn_relu(x_nchw, *params["conv1"], 2)
    x = conv_bn_relu(x, *params["conv2"], 2)
    x = maxpool(conv_bn_relu(x, *params["conv3"], 1))
    x = maxpool(conv_bn_relu(x, *params["conv4"], 1))
    x = x.reshape(x.shape[0], -1)
    w1, b1 = params["fc1"]
    w2, b2 = params["fc2"]
    h = jnp.dot(x.astype(bf16), w1.T.astype(bf16),
                preferred_element_type=jnp.float32) + b1
    h = jnp.maximum(h, 0.0)    # Dropout(0.2) is identity at inference
    return jnp.dot(h.astype(bf16), w2.T.astype(bf16),
                   preferred_element_type=jnp.float32) + b2


# ----------------------------------------------------------------------------
# Deterministic parameter init (torch layouts) + driver
# ----------------------------------------------------------------------------
def init_params(key, num_classes=NUM_CLASSES):
    params = {}

    def conv_layer(key, cin, cout):
        ks = jax.random.split(key, 6)
        fan_in = cin * 9
        w = jax.random.normal(ks[0], (cout, cin, 3, 3), jnp.float32) / math.sqrt(fan_in)
        b = 0.1 * jax.random.normal(ks[1], (cout,), jnp.float32)
        gamma = 1.0 + 0.1 * jax.random.normal(ks[2], (cout,), jnp.float32)
        beta = 0.1 * jax.random.normal(ks[3], (cout,), jnp.float32)
        mean = 0.1 * jax.random.normal(ks[4], (cout,), jnp.float32)
        var = jax.random.uniform(ks[5], (cout,), jnp.float32, 0.5, 1.5)
        return (w, b, gamma, beta, mean, var)

    def fc_layer(key, fin, fout):
        k1, k2 = jax.random.split(key)
        w = jax.random.normal(k1, (fout, fin), jnp.float32) / math.sqrt(fin)
        b = 0.1 * jax.random.normal(k2, (fout,), jnp.float32)
        return (w, b)

    keys = jax.random.split(key, 6)
    params["conv1"] = conv_layer(keys[0], 3, 32)
    params["conv2"] = conv_layer(keys[1], 32, 64)
    params["conv3"] = conv_layer(keys[2], 64, 128)
    params["conv4"] = conv_layer(keys[3], 128, 128)
    params["fc1"] = fc_layer(keys[4], 2048, 512)
    params["fc2"] = fc_layer(keys[5], 512, num_classes)
    return params


if __name__ == "__main__":
    key = jax.random.PRNGKey(0)
    pkey, xkey = jax.random.split(key)
    params = init_params(pkey)
    packed = pack_params(params)          # one-time packing, outside forward

    # Input: NCHW, 64x64 spatial (required so flatten yields 2048 = 128*4*4).
    x = jax.random.normal(xkey, (2, 3, 64, 64), jnp.float32)

    fwd = jax.jit(tinynet_forward)
    out = jax.block_until_ready(fwd(x, packed))
    assert out.shape == (2, NUM_CLASSES), out.shape

    ref = jax.block_until_ready(jax.jit(reference_forward)(x, params))
    err = float(jnp.max(jnp.abs(out - ref)))
    assert err < 1e-1, f"max abs error vs reference: {err}"

    print("KERNEL_OK")
</pallas_src>

<mosaic_0001>
module attributes {stable_mosaic.version = 11 : i64} {
  func.func @_conv_mm_kernel(%arg0: i32, %arg1: memref<1x1x1024x32xbf16, #tpu.memory_space<vmem>>, %arg2: memref<32x32xbf16, #tpu.memory_space<vmem>>, %arg3: memref<1x32xf32, #tpu.memory_space<vmem>>, %arg4: memref<1x1024x32xbf16, #tpu.memory_space<vmem>>) attributes {dimension_semantics = [#tpu.dimension_semantics<parallel>], iteration_bounds = array<i64: 2>, scalar_prefetch = 0 : i64, scratch_operands = 0 : i64, tpu.core_type = #tpu.core_type<tc>, window_params = [{transform_indices = @transform_0, window_bounds = array<i64: 1, 1, 1024, 32>}, {pipeline_mode = #tpu.pipeline_mode<synchronous>, transform_indices = @transform_1, window_bounds = array<i64: 32, 32>}, {pipeline_mode = #tpu.pipeline_mode<synchronous>, transform_indices = @transform_2, window_bounds = array<i64: 1, 32>}, {transform_indices = @transform_3, window_bounds = array<i64: 1, 1024, 32>}]} {
    %c0 = arith.constant 0 : index
    %c0_0 = arith.constant 0 : index
    %c0_1 = arith.constant 0 : index
    %c0_2 = arith.constant 0 : index
    %0 = vector.load %arg1[%c0, %c0_0, %c0_1, %c0_2] : memref<1x1x1024x32xbf16, #tpu.memory_space<vmem>>, vector<1x1x1024x32xbf16>
    %1 = vector.shape_cast %0 : vector<1x1x1024x32xbf16> to vector<1024x32xbf16>
    %c0_3 = arith.constant 0 : index
    %c0_4 = arith.constant 0 : index
    %2 = vector.load %arg2[%c0_3, %c0_4] : memref<32x32xbf16, #tpu.memory_space<vmem>>, vector<32x32xbf16>
    %cst = arith.constant dense<0.000000e+00> : vector<1024x32xf32>
    %3 = tpu.matmul %1, %2, %cst {dimension_numbers = #tpu.dot_dimension_numbers<[1], [0], [0], [1], [0, 0, 1, 1], [], []>} : vector<1024x32xbf16>, vector<32x32xbf16>, vector<1024x32xf32> -> vector<1024x32xf32>
    %4 = vector.shape_cast %3 : vector<1024x32xf32> to vector<1x1x1024x32xf32>
    %5 = vector.shape_cast %4 : vector<1x1x1024x32xf32> to vector<1x1024x32xf32>
    %c0_5 = arith.constant 0 : index
    %c0_6 = arith.constant 0 : index
    %6 = vector.load %arg3[%c0_5, %c0_6] : memref<1x32xf32, #tpu.memory_space<vmem>>, vector<1x32xf32>
    %7 = vector.shape_cast %6 : vector<1x32xf32> to vector<1x1x32xf32>
    %8 = vector.broadcast %7 : vector<1x1x32xf32> to vector<1x1024x32xf32>
    %9 = arith.addf %5, %8 : vector<1x1024x32xf32>
    %cst_7 = arith.constant 0.000000e+00 : f32
    %10 = vector.broadcast %cst_7 : f32 to vector<1x1024x32xf32>
    %11 = arith.maximumf %9, %10 : vector<1x1024x32xf32>
    %12 = arith.truncf %11 : vector<1x1024x32xf32> to vector<1x1024x32xbf16>
    %c0_8 = arith.constant 0 : index
    %c0_9 = arith.constant 0 : index
    %c0_10 = arith.constant 0 : index
    %13 = vector.load %arg4[%c0_8, %c0_9, %c0_10] : memref<1x1024x32xbf16, #tpu.memory_space<vmem>>, vector<1x1024x32xbf16>
    tpu.vector_store %arg4[%c0_8, %c0_9, %c0_10], %12 {strides = array<i32>} : memref<1x1024x32xbf16, #tpu.memory_space<vmem>>, vector<1x1024x32xbf16>,
    return
  }
  func.func @transform_0(%arg0: i32) -> (i32, i32, i32, i32) {
    %c0_i32 = arith.constant 0 : i32
    %c0_i32_0 = arith.constant 0 : i32
    %c0_i32_1 = arith.constant 0 : i32
    %c0_i32_2 = arith.constant 0 : i32
    return %arg0, %c0_i32, %c0_i32_0, %c0_i32_1 : i32, i32, i32, i32
  }
  func.func @transform_1(%arg0: i32) -> (i32, i32) {
    %c0_i32 = arith.constant 0 : i32
    %c0_i32_0 = arith.constant 0 : i32
    %c0_i32_1 = arith.constant 0 : i32
    return %c0_i32, %c0_i32_0 : i32, i32
  }
  func.func @transform_2(%arg0: i32) -> (i32, i32) {
    %c0_i32 = arith.constant 0 : i32
    %c0_i32_0 = arith.constant 0 : i32
    %c0_i32_1 = arith.constant 0 : i32
    return %c0_i32, %c0_i32_0 : i32, i32
  }
  func.func @transform_3(%arg0: i32) -> (i32, i32, i32) {
    %c0_i32 = arith.constant 0 : i32
    %c0_i32_0 = arith.constant 0 : i32
    %c0_i32_1 = arith.constant 0 : i32
    return %arg0, %c0_i32, %c0_i32_0 : i32, i32, i32
  }
}

module attributes {stable_mosaic.version = 11 : i64} {
  func.func @_conv_mm_kernel(%arg0: i32, %arg1: memref<1x1x256x288xbf16, #tpu.memory_space<vmem>>, %arg2: memref<288x64xbf16, #tpu.memory_space<vmem>>, %arg3: memref<1x64xf32, #tpu.memory_space<vmem>>, %arg4: memref<1x256x64xbf16, #tpu.memory_space<vmem>>) attributes {dimension_semantics = [#tpu.dimension_semantics<parallel>], iteration_bounds = array<i64: 2>, scalar_prefetch = 0 : i64, scratch_operands = 0 : i64, tpu.core_type = #tpu.core_type<tc>, window_params = [{transform_indices = @transform_0, window_bounds = array<i64: 1, 1, 256, 288>}, {pipeline_mode = #tpu.pipeline_mode<synchronous>, transform_indices = @transform_1, window_bounds = array<i64: 288, 64>}, {pipeline_mode = #tpu.pipeline_mode<synchronous>, transform_indices = @transform_2, window_bounds = array<i64: 1, 64>}, {transform_indices = @transform_3, window_bounds = array<i64: 1, 256, 64>}]} {
    %c0 = arith.constant 0 : index
    %c0_0 = arith.constant 0 : index
    %c0_1 = arith.constant 0 : index
    %c0_2 = arith.constant 0 : index
    %0 = vector.load %arg1[%c0, %c0_0, %c0_1, %c0_2] : memref<1x1x256x288xbf16, #tpu.memory_space<vmem>>, vector<1x1x256x288xbf16>
    %1 = vector.shape_cast %0 : vector<1x1x256x288xbf16> to vector<256x288xbf16>
    %c0_3 = arith.constant 0 : index
    %c0_4 = arith.constant 0 : index
    %2 = vector.load %arg2[%c0_3, %c0_4] : memref<288x64xbf16, #tpu.memory_space<vmem>>, vector<288x64xbf16>
    %cst = arith.constant dense<0.000000e+00> : vector<256x64xf32>
    %3 = tpu.matmul %1, %2, %cst {dimension_numbers = #tpu.dot_dimension_numbers<[1], [0], [0], [1], [0, 0, 1, 1], [], []>} : vector<256x288xbf16>, vector<288x64xbf16>, vector<256x64xf32> -> vector<256x64xf32>
    %4 = vector.shape_cast %3 : vector<256x64xf32> to vector<1x1x256x64xf32>
    %5 = vector.shape_cast %4 : vector<1x1x256x64xf32> to vector<1x256x64xf32>
    %c0_5 = arith.constant 0 : index
    %c0_6 = arith.constant 0 : index
    %6 = vector.load %arg3[%c0_5, %c0_6] : memref<1x64xf32, #tpu.memory_space<vmem>>, vector<1x64xf32>
    %7 = vector.shape_cast %6 : vector<1x64xf32> to vector<1x1x64xf32>
    %8 = vector.broadcast %7 : vector<1x1x64xf32> to vector<1x256x64xf32>
    %9 = arith.addf %5, %8 : vector<1x256x64xf32>
    %cst_7 = arith.constant 0.000000e+00 : f32
    %10 = vector.broadcast %cst_7 : f32 to vector<1x256x64xf32>
    %11 = arith.maximumf %9, %10 : vector<1x256x64xf32>
    %12 = arith.truncf %11 : vector<1x256x64xf32> to vector<1x256x64xbf16>
    %c0_8 = arith.constant 0 : index
    %c0_9 = arith.constant 0 : index
    %c0_10 = arith.constant 0 : index
    %13 = vector.load %arg4[%c0_8, %c0_9, %c0_10] : memref<1x256x64xbf16, #tpu.memory_space<vmem>>, vector<1x256x64xbf16>
    tpu.vector_store %arg4[%c0_8, %c0_9, %c0_10], %12 {strides = array<i32>} : memref<1x256x64xbf16, #tpu.memory_space<vmem>>, vector<1x256x64xbf16>,
    return
  }
  func.func @transform_0(%arg0: i32) -> (i32, i32, i32, i32) {
    %c0_i32 = arith.constant 0 : i32
    %c0_i32_0 = arith.constant 0 : i32
    %c0_i32_1 = arith.constant 0 : i32
    %c0_i32_2 = arith.constant 0 : i32
    return %arg0, %c0_i32, %c0_i32_0, %c0_i32_1 : i32, i32, i32, i32
  }
  func.func @transform_1(%arg0: i32) -> (i32, i32) {
    %c0_i32 = arith.constant 0 : i32
    %c0_i32_0 = arith.constant 0 : i32
    %c0_i32_1 = arith.constant 0 : i32
    return %c0_i32, %c0_i32_0 : i32, i32
  }
  func.func @transform_2(%arg0: i32) -> (i32, i32) {
    %c0_i32 = arith.constant 0 : i32
    %c0_i32_0 = arith.constant 0 : i32
    %c0_i32_1 = arith.constant 0 : i32
    return %c0_i32, %c0_i32_0 : i32, i32
  }
  func.func @transform_3(%arg0: i32) -> (i32, i32, i32) {
    %c0_i32 = arith.constant 0 : i32
    %c0_i32_0 = arith.constant 0 : i32
    %c0_i32_1 = arith.constant 0 : i32
    return %arg0, %c0_i32, %c0_i32_0 : i32, i32, i32
  }
}

module attributes {stable_mosaic.version = 11 : i64} {
  func.func @_conv_mm_kernel(%arg0: i32, %arg1: memref<1x4x64x576xbf16, #tpu.memory_space<vmem>>, %arg2: memref<576x128xbf16, #tpu.memory_space<vmem>>, %arg3: memref<1x128xf32, #tpu.memory_space<vmem>>, %arg4: memref<1x64x128xbf16, #tpu.memory_space<vmem>>) attributes {dimension_semantics = [#tpu.dimension_semantics<parallel>], iteration_bounds = array<i64: 2>, scalar_prefetch = 0 : i64, scratch_operands = 0 : i64, tpu.core_type = #tpu.core_type<tc>, window_params = [{transform_indices = @transform_0, window_bounds = array<i64: 1, 4, 64, 576>}, {pipeline_mode = #tpu.pipeline_mode<synchronous>, transform_indices = @transform_1, window_bounds = array<i64: 576, 128>}, {pipeline_mode = #tpu.pipeline_mode<synchronous>, transform_indices = @transform_2, window_bounds = array<i64: 1, 128>}, {transform_indices = @transform_3, window_bounds = array<i64: 1, 64, 128>}]} {
    %c0 = arith.constant 0 : index
    %c0_0 = arith.constant 0 : index
    %c0_1 = arith.constant 0 : index
    %c0_2 = arith.constant 0 : index
    %0 = vector.load %arg1[%c0, %c0_0, %c0_1, %c0_2] : memref<1x4x64x576xbf16, #tpu.memory_space<vmem>>, vector<1x4x64x576xbf16>
    %1 = vector.shape_cast %0 : vector<1x4x64x576xbf16> to vector<256x576xbf16>
    %c0_3 = arith.constant 0 : index
    %c0_4 = arith.constant 0 : index
    %2 = vector.load %arg2[%c0_3, %c0_4] : memref<576x128xbf16, #tpu.memory_space<vmem>>, vector<576x128xbf16>
    %cst = arith.constant dense<0.000000e+00> : vector<256x128xf32>
    %3 = tpu.matmul %1, %2, %cst {dimension_numbers = #tpu.dot_dimension_numbers<[1], [0], [0], [1], [0, 0, 1, 1], [], []>} : vector<256x576xbf16>, vector<576x128xbf16>, vector<256x128xf32> -> vector<256x128xf32>
    %4 = vector.shape_cast %3 : vector<256x128xf32> to vector<1x4x64x128xf32>
    %cst_5 = arith.constant dense<0xFF800000> : vector<1x64x128xf32>
    %5 = vector.multi_reduction <maximumf>, %4, %cst_5 [1] : vector<1x4x64x128xf32> to vector<1x64x128xf32>
    %c0_6 = arith.constant 0 : index
    %c0_7 = arith.constant 0 : index
    %6 = vector.load %arg3[%c0_6, %c0_7] : memref<1x128xf32, #tpu.memory_space<vmem>>, vector<1x128xf32>
    %7 = vector.shape_cast %6 : vector<1x128xf32> to vector<1x1x128xf32>
    %8 = vector.broadcast %7 : vector<1x1x128xf32> to vector<1x64x128xf32>
    %9 = arith.addf %5, %8 : vector<1x64x128xf32>
    %cst_8 = arith.constant 0.000000e+00 : f32
    %10 = vector.broadcast %cst_8 : f32 to vector<1x64x128xf32>
    %11 = arith.maximumf %9, %10 : vector<1x64x128xf32>
    %12 = arith.truncf %11 : vector<1x64x128xf32> to vector<1x64x128xbf16>
    %c0_9 = arith.constant 0 : index
    %c0_10 = arith.constant 0 : index
    %c0_11 = arith.constant 0 : index
    %13 = vector.load %arg4[%c0_9, %c0_10, %c0_11] : memref<1x64x128xbf16, #tpu.memory_space<vmem>>, vector<1x64x128xbf16>
    tpu.vector_store %arg4[%c0_9, %c0_10, %c0_11], %12 {strides = array<i32>} : memref<1x64x128xbf16, #tpu.memory_space<vmem>>, vector<1x64x128xbf16>,
    return
  }
  func.func @transform_0(%arg0: i32) -> (i32, i32, i32, i32) {
    %c0_i32 = arith.constant 0 : i32
    %c0_i32_0 = arith.constant 0 : i32
    %c0_i32_1 = arith.constant 0 : i32
    %c0_i32_2 = arith.constant 0 : i32
    return %arg0, %c0_i32, %c0_i32_0, %c0_i32_1 : i32, i32, i32, i32
  }
  func.func @transform_1(%arg0: i32) -> (i32, i32) {
    %c0_i32 = arith.constant 0 : i32
    %c0_i32_0 = arith.constant 0 : i32
    %c0_i32_1 = arith.constant 0 : i32
    return %c0_i32, %c0_i32_0 : i32, i32
  }
  func.func @transform_2(%arg0: i32) -> (i32, i32) {
    %c0_i32 = arith.constant 0 : i32
    %c0_i32_0 = arith.constant 0 : i32
    %c0_i32_1 = arith.constant 0 : i32
    return %c0_i32, %c0_i32_0 : i32, i32
  }
  func.func @transform_3(%arg0: i32) -> (i32, i32, i32) {
    %c0_i32 = arith.constant 0 : i32
    %c0_i32_0 = arith.constant 0 : i32
    %c0_i32_1 = arith.constant 0 : i32
    return %arg0, %c0_i32, %c0_i32_0 : i32, i32, i32
  }
}

module attributes {stable_mosaic.version = 11 : i64} {
  func.func @_fc_kernel(%arg0: i32, %arg1: memref<2x2048xbf16, #tpu.memory_space<vmem>>, %arg2: memref<2048x512xbf16, #tpu.memory_space<vmem>>, %arg3: memref<1x512xf32, #tpu.memory_space<vmem>>, %arg4: memref<512x256xbf16, #tpu.memory_space<vmem>>, %arg5: memref<1x256xf32, #tpu.memory_space<vmem>>, %arg6: memref<2x256xf32, #tpu.memory_space<vmem>>) attributes {dimension_semantics = [#tpu.dimension_semantics<parallel>], iteration_bounds = array<i64: 1>, scalar_prefetch = 0 : i64, scratch_operands = 0 : i64, tpu.core_type = #tpu.core_type<tc>, window_params = [{transform_indices = @transform_0, window_bounds = array<i64: 2, 2048>}, {pipeline_mode = #tpu.pipeline_mode<synchronous>, transform_indices = @transform_1, window_bounds = array<i64: 2048, 512>}, {pipeline_mode = #tpu.pipeline_mode<synchronous>, transform_indices = @transform_2, window_bounds = array<i64: 1, 512>}, {pipeline_mode = #tpu.pipeline_mode<synchronous>, transform_indices = @transform_3, window_bounds = array<i64: 512, 256>}, {pipeline_mode = #tpu.pipeline_mode<synchronous>, transform_indices = @transform_4, window_bounds = array<i64: 1, 256>}, {transform_indices = @transform_5, window_bounds = array<i64: 2, 256>}]} {
    %c0 = arith.constant 0 : index
    %c0_0 = arith.constant 0 : index
    %0 = vector.load %arg1[%c0, %c0_0] : memref<2x2048xbf16, #tpu.memory_space<vmem>>, vector<2x2048xbf16>
    %c0_1 = arith.constant 0 : index
    %c0_2 = arith.constant 0 : index
    %1 = vector.load %arg2[%c0_1, %c0_2] : memref<2048x512xbf16, #tpu.memory_space<vmem>>, vector<2048x512xbf16>
    %cst = arith.constant dense<0.000000e+00> : vector<2x512xf32>
    %2 = tpu.matmul %0, %1, %cst {dimension_numbers = #tpu.dot_dimension_numbers<[1], [0], [0], [1], [0, 0, 1, 1], [], []>} : vector<2x2048xbf16>, vector<2048x512xbf16>, vector<2x512xf32> -> vector<2x512xf32>
    %c0_3 = arith.constant 0 : index
    %c0_4 = arith.constant 0 : index
    %3 = vector.load %arg3[%c0_3, %c0_4] : memref<1x512xf32, #tpu.memory_space<vmem>>, vector<1x512xf32>
    %4 = vector.broadcast %3 : vector<1x512xf32> to vector<2x512xf32>
    %5 = arith.addf %2, %4 : vector<2x512xf32>
    %cst_5 = arith.constant 0.000000e+00 : f32
    %6 = vector.broadcast %cst_5 : f32 to vector<2x512xf32>
    %7 = arith.maximumf %5, %6 : vector<2x512xf32>
    %8 = arith.truncf %7 : vector<2x512xf32> to vector<2x512xbf16>
    %c0_6 = arith.constant 0 : index
    %c0_7 = arith.constant 0 : index
    %9 = vector.load %arg4[%c0_6, %c0_7] : memref<512x256xbf16, #tpu.memory_space<vmem>>, vector<512x256xbf16>
    %cst_8 = arith.constant dense<0.000000e+00> : vector<2x256xf32>
    %10 = tpu.matmul %8, %9, %cst_8 {dimension_numbers = #tpu.dot_dimension_numbers<[1], [0], [0], [1], [0, 0, 1, 1], [], []>} : vector<2x512xbf16>, vector<512x256xbf16>, vector<2x256xf32> -> vector<2x256xf32>
    %c0_9 = arith.constant 0 : index
    %c0_10 = arith.constant 0 : index
    %11 = vector.load %arg5[%c0_9, %c0_10] : memref<1x256xf32, #tpu.memory_space<vmem>>, vector<1x256xf32>
    %12 = vector.broadcast %11 : vector<1x256xf32> to vector<2x256xf32>
    %13 = arith.addf %10, %12 : vector<2x256xf32>
    %c0_11 = arith.constant 0 : index
    %c0_12 = arith.constant 0 : index
    %14 = vector.load %arg6[%c0_11, %c0_12] : memref<2x256xf32, #tpu.memory_space<vmem>>, vector<2x256xf32>
    tpu.vector_store %arg6[%c0_11, %c0_12], %13 {strides = array<i32>} : memref<2x256xf32, #tpu.memory_space<vmem>>, vector<2x256xf32>,
    return
  }
  func.func @transform_0(%arg0: i32) -> (i32, i32) {
    %c0_i32 = arith.constant 0 : i32
    %c0_i32_0 = arith.constant 0 : i32
    return %arg0, %c0_i32 : i32, i32
  }
  func.func @transform_1(%arg0: i32) -> (i32, i32) {
    %c0_i32 = arith.constant 0 : i32
    %c0_i32_0 = arith.constant 0 : i32
    %c0_i32_1 = arith.constant 0 : i32
    return %c0_i32, %c0_i32_0 : i32, i32
  }
  func.func @transform_2(%arg0: i32) -> (i32, i32) {
    %c0_i32 = arith.constant 0 : i32
    %c0_i32_0 = arith.constant 0 : i32
    %c0_i32_1 = arith.constant 0 : i32
    return %c0_i32, %c0_i32_0 : i32, i32
  }
  func.func @transform_3(%arg0: i32) -> (i32, i32) {
    %c0_i32 = arith.constant 0 : i32
    %c0_i32_0 = arith.constant 0 : i32
    %c0_i32_1 = arith.constant 0 : i32
    return %c0_i32, %c0_i32_0 : i32, i32
  }
  func.func @transform_4(%arg0: i32) -> (i32, i32) {
    %c0_i32 = arith.constant 0 : i32
    %c0_i32_0 = arith.constant 0 : i32
    %c0_i32_1 = arith.constant 0 : i32
    return %c0_i32, %c0_i32_0 : i32, i32
  }
  func.func @transform_5(%arg0: i32) -> (i32, i32) {
    %c0_i32 = arith.constant 0 : i32
    %c0_i32_0 = arith.constant 0 : i32
    return %arg0, %c0_i32 : i32, i32
  }
}

module attributes {stable_mosaic.version = 11 : i64} {
  func.func @_conv_mm_kernel(%arg0: i32, %arg1: memref<1x4x16x1152xbf16, #tpu.memory_space<vmem>>, %arg2: memref<1152x128xbf16, #tpu.memory_space<vmem>>, %arg3: memref<1x128xf32, #tpu.memory_space<vmem>>, %arg4: memref<1x16x128xbf16, #tpu.memory_space<vmem>>) attributes {dimension_semantics = [#tpu.dimension_semantics<parallel>], iteration_bounds = array<i64: 2>, scalar_prefetch = 0 : i64, scratch_operands = 0 : i64, tpu.core_type = #tpu.core_type<tc>, window_params = [{transform_indices = @transform_0, window_bounds = array<i64: 1, 4, 16, 1152>}, {pipeline_mode = #tpu.pipeline_mode<synchronous>, transform_indices = @transform_1, window_bounds = array<i64: 1152, 128>}, {pipeline_mode = #tpu.pipeline_mode<synchronous>, transform_indices = @transform_2, window_bounds = array<i64: 1, 128>}, {transform_indices = @transform_3, window_bounds = array<i64: 1, 16, 128>}]} {
    %c0 = arith.constant 0 : index
    %c0_0 = arith.constant 0 : index
    %c0_1 = arith.constant 0 : index
    %c0_2 = arith.constant 0 : index
    %0 = vector.load %arg1[%c0, %c0_0, %c0_1, %c0_2] : memref<1x4x16x1152xbf16, #tpu.memory_space<vmem>>, vector<1x4x16x1152xbf16>
    %1 = vector.shape_cast %0 : vector<1x4x16x1152xbf16> to vector<64x1152xbf16>
    %c0_3 = arith.constant 0 : index
    %c0_4 = arith.constant 0 : index
    %2 = vector.load %arg2[%c0_3, %c0_4] : memref<1152x128xbf16, #tpu.memory_space<vmem>>, vector<1152x128xbf16>
    %cst = arith.constant dense<0.000000e+00> : vector<64x128xf32>
    %3 = tpu.matmul %1, %2, %cst {dimension_numbers = #tpu.dot_dimension_numbers<[1], [0], [0], [1], [0, 0, 1, 1], [], []>} : vector<64x1152xbf16>, vector<1152x128xbf16>, vector<64x128xf32> -> vector<64x128xf32>
    %4 = vector.shape_cast %3 : vector<64x128xf32> to vector<1x4x16x128xf32>
    %cst_5 = arith.constant dense<0xFF800000> : vector<1x16x128xf32>
    %5 = vector.multi_reduction <maximumf>, %4, %cst_5 [1] : vector<1x4x16x128xf32> to vector<1x16x128xf32>
    %c0_6 = arith.constant 0 : index
    %c0_7 = arith.constant 0 : index
    %6 = vector.load %arg3[%c0_6, %c0_7] : memref<1x128xf32, #tpu.memory_space<vmem>>, vector<1x128xf32>
    %7 = vector.shape_cast %6 : vector<1x128xf32> to vector<1x1x128xf32>
    %8 = vector.broadcast %7 : vector<1x1x128xf32> to vector<1x16x128xf32>
    %9 = arith.addf %5, %8 : vector<1x16x128xf32>
    %cst_8 = arith.constant 0.000000e+00 : f32
    %10 = vector.broadcast %cst_8 : f32 to vector<1x16x128xf32>
    %11 = arith.maximumf %9, %10 : vector<1x16x128xf32>
    %12 = arith.truncf %11 : vector<1x16x128xf32> to vector<1x16x128xbf16>
    %c0_9 = arith.constant 0 : index
    %c0_10 = arith.constant 0 : index
    %c0_11 = arith.constant 0 : index
    %13 = vector.load %arg4[%c0_9, %c0_10, %c0_11] : memref<1x16x128xbf16, #tpu.memory_space<vmem>>, vector<1x16x128xbf16>
    tpu.vector_store %arg4[%c0_9, %c0_10, %c0_11], %12 {strides = array<i32>} : memref<1x16x128xbf16, #tpu.memory_space<vmem>>, vector<1x16x128xbf16>,
    return
  }
  func.func @transform_0(%arg0: i32) -> (i32, i32, i32, i32) {
    %c0_i32 = arith.constant 0 : i32
    %c0_i32_0 = arith.constant 0 : i32
    %c0_i32_1 = arith.constant 0 : i32
    %c0_i32_2 = arith.constant 0 : i32
    return %arg0, %c0_i32, %c0_i32_0, %c0_i32_1 : i32, i32, i32, i32
  }
  func.func @transform_1(%arg0: i32) -> (i32, i32) {
    %c0_i32 = arith.constant 0 : i32
    %c0_i32_0 = arith.constant 0 : i32
    %c0_i32_1 = arith.constant 0 : i32
    return %c0_i32, %c0_i32_0 : i32, i32
  }
  func.func @transform_2(%arg0: i32) -> (i32, i32) {
    %c0_i32 = arith.constant 0 : i32
    %c0_i32_0 = arith.constant 0 : i32
    %c0_i32_1 = arith.constant 0 : i32
    return %c0_i32, %c0_i32_0 : i32, i32
  }
  func.func @transform_3(%arg0: i32) -> (i32, i32, i32) {
    %c0_i32 = arith.constant 0 : i32
    %c0_i32_0 = arith.constant 0 : i32
    %c0_i32_1 = arith.constant 0 : i32
    return %arg0, %c0_i32, %c0_i32_0 : i32, i32, i32
  }
}

</mosaic_0001>

<bundles_post_ra>
// kernel: tinynet_forward.5
= control target key start
LH: loop header
LB: loop body
LE: loop exit
PB: predicated region body
PF: predicated region fallthrough
CT: control target
= control target key end

     0   :  { %s3038_s12 = smov 0   ;;  %s3594_s0 = inlined_call_operand.vmem [shape: bf16[2,1,1024,32], index: 0, kind: input, shape index: {}]   ;;  %s3595_s1 = inlined_call_operand.vmem [shape: bf16[32,32], index: 1, kind: input, shape index: {}]   ;;  %s3596_s2 = inlined_call_operand.vmem [shape: f32[1,32], index: 2, kind: input, shape index: {}]   ;;  %s3597_s3 = inlined_call_operand.vmem [shape: bf16[2,1024,32], index: 3, kind: output, shape index: {}]  }
   0x1 LB: > { %s2333_s13 = sadd.s32 4294967295, %s3016_s12   ;;  %p2337_p0 = scmp.ge.s32.totalorder %s3016_s12, 1  ;;  %s3016_s12 = sphi %s3038_s12, %s13_s12  }
   0x2   : > { %p137_p1 = scmp.lt.s32.totalorder %s3016_s12, 3 }
   0x4   : > { %p138_p2 = pnand %p2337_p0, %p137_p1 }
   0x5   : > { %v2943_v0 = vld [vmem:[%s3595_s1] sm:$0xff] (!%p138_p2)   ;;  %p161_p3 = scmp.lt.s32.totalorder (!%p138_p2), %s2333_s13, 1  ;;  %v2944_v1 = vld [vmem:[%s3595_s1 + $0x8] sm:$0xff] (!%p138_p2)   ;;  %vm636_vm0 = vcmask (!%p138_p2), 261120   ;;  %vm2149_vm1 = vcmask (!%p138_p2), 257024  }
   0x6   : > { %141 = sbr.rel (%p138_p2) target bundleno = 361 (0x169), region = 32  ;;  %2799 = vmatprep.subr.bf16.mxu0 (!%p138_p2), %v2943_v0  ;;  %2931 = vmatprep.subr.bf16.mxu1 (!%p138_p2), %v2943_v0 }
   0x7   : > { %2800 = vmatpush3.bf16.msra.mxu0 (!%p138_p2), %v2943_v0  ;;  %2933 = vmatpush3.bf16.msra.mxu1 (!%p138_p2), %v2943_v0 }
   0x8   : > { %2801 = vmatprep.subr.bf16.mxu0 (!%p138_p2), %v2944_v1  ;;  %2932 = vmatprep.subr.bf16.mxu1 (!%p138_p2), %v2944_v1 }
   0xb   : > { %2802 = vmatpush3.bf16.msra.mxu0 (!%p138_p2), %v2944_v1  ;;  %2934 = vmatpush3.bf16.msra.mxu1 (!%p138_p2), %v2944_v1 }
   0xd   : > { %s3599_s13 = smov (!%p161_p3, %s2333_s13), 1 }
   0xe   : > { %s2603_s18 = sshll.u32 %s3599_s13, 9 }
   0xf   : > { %s3060_s21 = scalar_lea.vmem %s3594_s0, %s2603_s18  ;;  %s3205_s26 = scalar_lea.vmem %s3597_s3, %s2603_s18 }
  0x10   : > { %v2945_v2 = vld [vmem:[%s3060_s21] sm:$0xff]   ;;  %v2947_v4 = vld [vmem:[%s3060_s21 + $0x8] sm:$0xff]   ;;  %v2949_v6 = vld [vmem:[%s3060_s21 + $0x10] sm:$0xff]  }
  0x11   : > { %v2946_v3 = vld [vmem:[%s3060_s21 + $0x100] sm:$0xff]   ;;  %2803 = vmatprep.mubr.msk.bf16.mxu0 %vm636_vm0, %v2945_v2  ;;  %v2948_v5 = vld [vmem:[%s3060_s21 + $0x108] sm:$0xff]   ;;  %v2950_v7 = vld [vmem:[%s3060_s21 + $0x110] sm:$0xff]  }
  0x12   : > { %2867 = vmatprep.mubr.msk.bf16.mxu1 %vm636_vm0, %v2946_v3  ;;  %2804 = vmatmul.mubr.msk.bf16.vlgmr.msra.gmra.mrb[0].mxu0 %vm636_vm0, %v2947_v4  ;;  %v2951_v8 = vld [vmem:[%s3060_s21 + $0x18] sm:$0xff]   ;;  %v2953_v10 = vld [vmem:[%s3060_s21 + $0x20] sm:$0xff]   ;;  %v2955_v12 = vld [vmem:[%s3060_s21 + $0x28] sm:$0xff]  }
  0x13   : > { %2868 = vmatmul.mubr.msk.bf16.vlgmr.msra.gmra.mrb[0].mxu1 %vm636_vm0, %v2948_v5  ;;  %2807 = vmatprep.mubr.msk.bf16.mxu0 %vm636_vm0, %v2949_v6  ;;  %v2952_v9 = vld [vmem:[%s3060_s21 + $0x118] sm:$0xff]   ;;  %v2954_v11 = vld [vmem:[%s3060_s21 + $0x120] sm:$0xff]   ;;  %v2956_v13 = vld [vmem:[%s3060_s21 + $0x128] sm:$0xff]  }
  0x14   : > { %2871 = vmatprep.mubr.msk.bf16.mxu1 %vm636_vm0, %v2950_v7  ;;  %v2957_v14 = vld [vmem:[%s3060_s21 + $0x30] sm:$0xff]   ;;  %v2959_v16 = vld [vmem:[%s3060_s21 + $0x38] sm:$0xff]   ;;  %v2961_v18 = vld [vmem:[%s3060_s21 + $0x40] sm:$0xff]  }
  0x15   : > { %v2958_v15 = vld [vmem:[%s3060_s21 + $0x130] sm:$0xff]   ;;  %v2960_v17 = vld [vmem:[%s3060_s21 + $0x138] sm:$0xff]   ;;  %v2962_v19 = vld [vmem:[%s3060_s21 + $0x140] sm:$0xff]  }
  0x16   : > { %v2963_v20 = vld [vmem:[%s3060_s21 + $0x48] sm:$0xff]   ;;  %v2965_v22 = vld [vmem:[%s3060_s21 + $0x50] sm:$0xff]   ;;  %v2967_v24 = vld [vmem:[%s3060_s21 + $0x58] sm:$0xff]  }
  0x17   : > { %v2964_v21 = vld [vmem:[%s3060_s21 + $0x148] sm:$0xff]   ;;  %v2966_v23 = vld [vmem:[%s3060_s21 + $0x150] sm:$0xff]   ;;  %v2968_v25 = vld [vmem:[%s3060_s21 + $0x158] sm:$0xff]  }
  0x18   : > { %v2969_v26 = vld [vmem:[%s3060_s21 + $0x60] sm:$0xff]   ;;  %v2971_v28 = vld [vmem:[%s3060_s21 + $0x68] sm:$0xff]   ;;  %v2973_v30 = vld [vmem:[%s3060_s21 + $0x70] sm:$0xff]  }
  0x19   : > { %v2970_v27 = vld [vmem:[%s3060_s21 + $0x160] sm:$0xff]   ;;  %v2972_v29 = vld [vmem:[%s3060_s21 + $0x168] sm:$0xff]   ;;  %v2974_v31 = vld [vmem:[%s3060_s21 + $0x170] sm:$0xff]  }
  0x1a   : > { %2808 = vmatmul.mubr.msk.bf16.gmra.mrb[4].mxu0 %vm636_vm0, %v2951_v8  ;;  %v2975_v32 = vld [vmem:[%s3060_s21 + $0x78] sm:$0xff]   ;;  %v2977_v34 = vld [vmem:[%s3060_s21 + $0x80] sm:$0xff]   ;;  %v2979_v36 = vld [vmem:[%s3060_s21 + $0x88] sm:$0xff]  }
  0x1b   : > { %2872 = vmatmul.mubr.msk.bf16.gmra.mrb[4].mxu1 %vm636_vm0, %v2952_v9  ;;  %2811 = vmatprep.mubr.msk.bf16.mxu0 %vm636_vm0, %v2953_v10  ;;  %v2976_v33 = vld [vmem:[%s3060_s21 + $0x178] sm:$0xff]   ;;  %v2978_v35 = vld [vmem:[%s3060_s21 + $0x180] sm:$0xff]   ;;  %v2980_v37 = vld [vmem:[%s3060_s21 + $0x188] sm:$0xff]  }
  0x1c   : > { %2875 = vmatprep.mubr.msk.bf16.mxu1 %vm636_vm0, %v2954_v11  ;;  %v2981_v38 = vld [vmem:[%s3060_s21 + $0x90] sm:$0xff]   ;;  %v2983_v40 = vld [vmem:[%s3060_s21 + $0x98] sm:$0xff]   ;;  %v2985_v42 = vld [vmem:[%s3060_s21 + $0xa0] sm:$0xff]  }
  0x1d   : > { %v2982_v39 = vld [vmem:[%s3060_s21 + $0x190] sm:$0xff]   ;;  %v2984_v41 = vld [vmem:[%s3060_s21 + $0x198] sm:$0xff]   ;;  %v2986_v43 = vld [vmem:[%s3060_s21 + $0x1a0] sm:$0xff]  }
  0x1e   : > { %v2987_v44 = vld [vmem:[%s3060_s21 + $0xa8] sm:$0xff]   ;;  %v2989_v46 = vld [vmem:[%s3060_s21 + $0xb0] sm:$0xff]   ;;  %v2991_v48 = vld [vmem:[%s3060_s21 + $0xb8] sm:$0xff]  }
  0x1f   : > { %v2988_v45 = vld [vmem:[%s3060_s21 + $0x1a8] sm:$0xff]   ;;  %v2990_v47 = vld [vmem:[%s3060_s21 + $0x1b0] sm:$0xff]   ;;  %v2992_v49 = vld [vmem:[%s3060_s21 + $0x1b8] sm:$0xff]  }
  0x20   : > { %v2993_v50 = vld [vmem:[%s3060_s21 + $0xc0] sm:$0xff]   ;;  %v2995_v52 = vld [vmem:[%s3060_s21 + $0xc8] sm:$0xff]   ;;  %v2997_v54 = vld [vmem:[%s3060_s21 + $0xd0] sm:$0xff]  }
  0x21   : > { %v2994_v51 = vld [vmem:[%s3060_s21 + $0x1c0] sm:$0xff]   ;;  %v2996_v53 = vld [vmem:[%s3060_s21 + $0x1c8] sm:$0xff]   ;;  %v2998_v55 = vld [vmem:[%s3060_s21 + $0x1d0] sm:$0xff]  }
  0x22   : > { %2812 = vmatmul.mubr.msk.bf16.gmra.mrb[8].mxu0 %vm636_vm0, %v2955_v12  ;;  %v2999_v56 = vld [vmem:[%s3060_s21 + $0xd8] sm:$0xff]   ;;  %v3001_v58 = vld [vmem:[%s3060_s21 + $0xe0] sm:$0xff]   ;;  %v3003_v60 = vld [vmem:[%s3060_s21 + $0xe8] sm:$0xff]  }
  0x23   : > { %2876 = vmatmul.mubr.msk.bf16.gmra.mrb[8].mxu1 %vm636_vm0, %v2956_v13  ;;  %2815 = vmatprep.mubr.msk.bf16.mxu0 %vm636_vm0, %v2957_v14  ;;  %v3000_v57 = vld [vmem:[%s3060_s21 + $0x1d8] sm:$0xff]   ;;  %v3002_v59 = vld [vmem:[%s3060_s21 + $0x1e0] sm:$0xff]   ;;  %v3004_v61 = vld [vmem:[%s3060_s21 + $0x1e8] sm:$0xff]  }
  0x24   : > { %2879 = vmatprep.mubr.msk.bf16.mxu1 %vm636_vm0, %v2958_v15  ;;  %v3005_v62 = vld [vmem:[%s3060_s21 + $0xf0] sm:$0xff]   ;;  %v3007_v0 = vld [vmem:[%s3060_s21 + $0xf8] sm:$0xff]   ;;  %v3193_v2 = vld [vmem:[%s3596_s2] ss:$0 sm:$0xff] }
  0x25   : > { %v3006_v63 = vld [vmem:[%s3060_s21 + $0x1f0] sm:$0xff]   ;;  %v3008_v1 = vld [vmem:[%s3060_s21 + $0x1f8] sm:$0xff]  }
  0x2a   : > { %2816 = vmatmul.mubr.msk.bf16.gmra.mrb[12].mxu0 %vm636_vm0, %v2959_v16 }
  0x2b   : > { %2880 = vmatmul.mubr.msk.bf16.gmra.mrb[12].mxu1 %vm636_vm0, %v2960_v17  ;;  %2819 = vmatprep.mubr.msk.bf16.mxu0 %vm636_vm0, %v2961_v18 }
  0x2c   : > { %2883 = vmatprep.mubr.msk.bf16.mxu1 %vm636_vm0, %v2962_v19 }
  0x32   : > { %2820 = vmatmul.mubr.msk.bf16.gmra.mrb[16].mxu0 %vm636_vm0, %v2963_v20 }
  0x33   : > { %2884 = vmatmul.mubr.msk.bf16.gmra.mrb[16].mxu1 %vm636_vm0, %v2964_v21  ;;  %2823 = vmatprep.mubr.msk.bf16.mxu0 %vm636_vm0, %v2965_v22 }
  0x34   : > { %2887 = vmatprep.mubr.msk.bf16.mxu1 %vm636_vm0, %v2966_v23 }
  0x3a   : > { %2824 = vmatmul.mubr.msk.bf16.gmra.mrb[20].mxu0 %vm636_vm0, %v2967_v24 }
  0x3b   : > { %2888 = vmatmul.mubr.msk.bf16.gmra.mrb[20].mxu1 %vm636_vm0, %v2968_v25  ;;  %2827 = vmatprep.mubr.msk.bf16.mxu0 %vm636_vm0, %v2969_v26 }
  0x3c   : > { %2891 = vmatprep.mubr.msk.bf16.mxu1 %vm636_vm0, %v2970_v27 }
  0x42   : > { %2828 = vmatmul.mubr.msk.bf16.gmra.mrb[24].mxu0 %vm636_vm0, %v2971_v28 }
  0x43   : > { %2892 = vmatmul.mubr.msk.bf16.gmra.mrb[24].mxu1 %vm636_vm0, %v2972_v29  ;;  %2831 = vmatprep.mubr.msk.bf16.mxu0 %vm636_vm0, %v2973_v30 }
  0x44   : > { %2895 = vmatprep.mubr.msk.bf16.mxu1 %vm636_vm0, %v2974_v31 }
  0x4a   : > { %2832 = vmatmul.mubr.msk.bf16.gmra.mrb[28].mxu0 %vm636_vm0, %v2975_v32 }
  0x4b   : > { %2896 = vmatmul.mubr.msk.bf16.gmra.mrb[28].mxu1 %vm636_vm0, %v2976_v33  ;;  %2835 = vmatprep.mubr.msk.bf16.mxu0 %vm636_vm0, %v2977_v34 }
  0x4c   : > { %2899 = vmatprep.mubr.msk.bf16.mxu1 %vm636_vm0, %v2978_v35 }
  0x52   : > { %2836 = vmatmul.mubr.msk.bf16.gmra.mrb[32].mxu0 %vm636_vm0, %v2979_v36 }
  0x53   : > { %2900 = vmatmul.mubr.msk.bf16.gmra.mrb[32].mxu1 %vm636_vm0, %v2980_v37  ;;  %2839 = vmatprep.mubr.msk.bf16.mxu0 %vm636_vm0, %v2981_v38 }
  0x54   : > { %2903 = vmatprep.mubr.msk.bf16.mxu1 %vm636_vm0, %v2982_v39 }
  0x5a   : > { %2840 = vmatmul.mubr.msk.bf16.gmra.mrb[36].mxu0 %vm636_vm0, %v2983_v40 }
  0x5b   : > { %2904 = vmatmul.mubr.msk.bf16.gmra.mrb[36].mxu1 %vm636_vm0, %v2984_v41  ;;  %2843 = vmatprep.mubr.msk.bf16.mxu0 %vm636_vm0, %v2985_v42 }
  0x5c   : > { %2907 = vmatprep.mubr.msk.bf16.mxu1 %vm636_vm0, %v2986_v43 }
  0x62   : > { %2844 = vmatmul.mubr.msk.bf16.gmra.mrb[40].mxu0 %vm636_vm0, %v2987_v44 }
  0x63   : > { %2908 = vmatmul.mubr.msk.bf16.gmra.mrb[40].mxu1 %vm636_vm0, %v2988_v45  ;;  %2847 = vmatprep.mubr.msk.bf16.mxu0 %vm636_vm0, %v2989_v46 }
  0x64   : > { %2911 = vmatprep.mubr.msk.bf16.mxu1 %vm636_vm0, %v2990_v47 }
  0x6a   : > { %2848 = vmatmul.mubr.msk.bf16.gmra.mrb[44].mxu0 %vm636_vm0, %v2991_v48 }
  0x6b   : > { %2912 = vmatmul.mubr.msk.bf16.gmra.mrb[44].mxu1 %vm636_vm0, %v2992_v49  ;;  %2851 = vmatprep.mubr.msk.bf16.mxu0 %vm636_vm0, %v2993_v50 }
  0x6c   : > { %2915 = vmatprep.mubr.msk.bf16.mxu1 %vm636_vm0, %v2994_v51 }
  0x72   : > { %2852 = vmatmul.mubr.msk.bf16.gmra.mrb[48].mxu0 %vm636_vm0, %v2995_v52 }
  0x73   : > { %2916 = vmatmul.mubr.msk.bf16.gmra.mrb[48].mxu1 %vm636_vm0, %v2996_v53  ;;  %2855 = vmatprep.mubr.msk.bf16.mxu0 %vm636_vm0, %v2997_v54 }
  0x74   : > { %2919 = vmatprep.mubr.msk.bf16.mxu1 %vm636_vm0, %v2998_v55 }
  0x7a   : > { %2856 = vmatmul.mubr.msk.bf16.gmra.mrb[52].mxu0 %vm636_vm0, %v2999_v56 }
  0x7b   : > { %2920 = vmatmul.mubr.msk.bf16.gmra.mrb[52].mxu1 %vm636_vm0, %v3000_v57  ;;  %2859 = vmatprep.mubr.msk.bf16.mxu0 %vm636_vm0, %v3001_v58 }
  0x7c   : > { %2923 = vmatprep.mubr.msk.bf16.mxu1 %vm636_vm0, %v3002_v59 }
  0x82   : > { %2860 = vmatmul.mubr.msk.bf16.gmra.mrb[56].mxu0 %vm636_vm0, %v3003_v60 }
  0x83   : > { %2924 = vmatmul.mubr.msk.bf16.gmra.mrb[56].mxu1 %vm636_vm0, %v3004_v61  ;;  %2863 = vmatprep.mubr.msk.bf16.mxu0 %vm636_vm0, %v3005_v62 }
  0x84   : > { %2927 = vmatprep.mubr.msk.bf16.mxu1 %vm636_vm0, %v3006_v63 }
  0x8a   : > { %2864 = vmatmul.mubr.msk.bf16.gmra.mrb[60].mxu0 %vm636_vm0, %v3007_v0 }
  0x8b   : > { %2928 = vmatmul.mubr.msk.bf16.gmra.mrb[60].mxu1 %vm636_vm0, %v3008_v1 }
  0xe5   : > { %v2805_v3 = vpop.f32.mrb[0].mxu0 }
  0xe6   : > { %v1383_v4 = vadd.f32 %v2805_v3, %v3193_v2  ;;  %v2869_v5 = vpop.f32.mrb[0].mxu1  ;;  %v863_v6 = vpop.f32.mrb[1].mxu0 }
  0xe7   : > { %v1447_v7 = vadd.f32 %v2869_v5, %v3193_v2  ;;  %v1381_v8 = vadd.f32 %v3193_v2, %v863_v6  ;;  %v1119_v9 = vpop.f32.mrb[1].mxu1  ;;  %v2806_v10 = vpop.f32.mrb[2].mxu0 }
  0xe8   : > { %v1511_v11 = vmax.f32 %v1383_v4, 0.0  ;;  %v1445_v12 = vadd.f32 %v3193_v2, %v1119_v9  ;;  %v1384_v13 = vadd.f32 %v2806_v10, %v3193_v2  ;;  %v2870_v14 = vpop.f32.mrb[2].mxu1  ;;  %v866_v15 = vpop.f32.mrb[3].mxu0 }
  0xe9   : > { %v1575_v16 = vmax.f32 %v1447_v7, 0.0  ;;  %v1509_v17 = vmax.f32 %v1381_v8, 0.0  ;;  %v1448_v18 = vadd.f32 %v2870_v14, %v3193_v2  ;;  %v1382_v19 = vadd.f32 %v3193_v2, %v866_v15  ;;  %v1122_v20 = vpop.f32.mrb[3].mxu1 }
  0xea   : > { %v2607_v21 = vpack.c.bf16 %v1511_v11, %v1511_v11  ;;  %v1573_v22 = vmax.f32 %v1445_v12, 0.0  ;;  %v1512_v23 = vmax.f32 %v1384_v13, 0.0  ;;  %v1446_v24 = vadd.f32 %v3193_v2, %v1122_v20 }
  0xeb   : > { %v2671_v25 = vpack.c.bf16 %v1575_v16, %v1575_v16  ;;  %v2605_v26 = vpack.c.bf16 %v1509_v17, %v1509_v17  ;;  %v1576_v27 = vmax.f32 %v1448_v18, 0.0  ;;  %v1510_v28 = vmax.f32 %v1382_v19, 0.0 }
  0xec   : > { %2152 = vst.msk [vmem:[%s3205_s26 + $0x8] sm:$0xf] %vm2149_vm1, %v2607_v21  ;;  %v2669_v29 = vpack.c.bf16 %v1573_v22, %v1573_v22  ;;  %v2608_v30 = vpack.c.bf16 %v1512_v23, %v1512_v23  ;;  %v1574_v31 = vmax.f32 %v1446_v24, 0.0 }
  0xed   : > { %2216 = vst.msk [vmem:[%s3205_s26 + $0x108] sm:$0xf] %vm2149_vm1, %v2671_v25  ;;  %2150 = vst.msk [vmem:[%s3205_s26] sm:$0xf] %vm2149_vm1, %v2605_v26  ;;  %v2672_v32 = vpack.c.bf16 %v1576_v27, %v1576_v27  ;;  %v2606_v33 = vpack.c.bf16 %v1510_v28, %v1510_v28  ;;  %v2809_v34 = vpop.f32.mrb[4].mxu0 }
  0xee   : > { %2214 = vst.msk [vmem:[%s3205_s26 + $0x100] sm:$0xf] %vm2149_vm1, %v2669_v29  ;;  %2153 = vst.msk [vmem:[%s3205_s26 + $0xc] sm:$0xf] %vm2149_vm1, %v2608_v30  ;;  %v2670_v35 = vpack.c.bf16 %v1574_v31, %v1574_v31  ;;  %v1387_v36 = vadd.f32 %v2809_v34, %v3193_v2  ;;  %v2873_v37 = vpop.f32.mrb[4].mxu1  ;;  %v879_v38 = vpop.f32.mrb[5].mxu0 }
  0xef   : > { %2217 = vst.msk [vmem:[%s3205_s26 + $0x10c] sm:$0xf] %vm2149_vm1, %v2672_v32  ;;  %2151 = vst.msk [vmem:[%s3205_s26 + $0x4] sm:$0xf] %vm2149_vm1, %v2606_v33  ;;  %v1451_v39 = vadd.f32 %v2873_v37, %v3193_v2  ;;  %v1385_v40 = vadd.f32 %v3193_v2, %v879_v38  ;;  %v1135_v41 = vpop.f32.mrb[5].mxu1  ;;  %v2810_v42 = vpop.f32.mrb[6].mxu0 }
  0xf0   : > { %2215 = vst.msk [vmem:[%s3205_s26 + $0x104] sm:$0xf] %vm2149_vm1, %v2670_v35  ;;  %v1515_v43 = vmax.f32 %v1387_v36, 0.0  ;;  %v1449_v44 = vadd.f32 %v3193_v2, %v1135_v41  ;;  %v1388_v45 = vadd.f32 %v2810_v42, %v3193_v2  ;;  %v2874_v46 = vpop.f32.mrb[6].mxu1  ;;  %v882_v47 = vpop.f32.mrb[7].mxu0 }
  0xf1   : > { %v1579_v48 = vmax.f32 %v1451_v39, 0.0  ;;  %v1513_v49 = vmax.f32 %v1385_v40, 0.0  ;;  %v1452_v50 = vadd.f32 %v2874_v46, %v3193_v2  ;;  %v1386_v51 = vadd.f32 %v3193_v2, %v882_v47  ;;  %v1138_v52 = vpop.f32.mrb[7].mxu1 }
  0xf2   : > { %v2611_v53 = vpack.c.bf16 %v1515_v43, %v1515_v43  ;;  %v1577_v54 = vmax.f32 %v1449_v44, 0.0  ;;  %v1516_v55 = vmax.f32 %v1388_v45, 0.0  ;;  %v1450_v56 = vadd.f32 %v3193_v2, %v1138_v52 }
  0xf3   : > { %v2675_v57 = vpack.c.bf16 %v1579_v48, %v1579_v48  ;;  %v2609_v58 = vpack.c.bf16 %v1513_v49, %v1513_v49  ;;  %v1580_v59 = vmax.f32 %v1452_v50, 0.0  ;;  %v1514_v60 = vmax.f32 %v1386_v51, 0.0 }
  0xf4   : > { %2156 = vst.msk [vmem:[%s3205_s26 + $0x18] sm:$0xf] %vm2149_vm1, %v2611_v53  ;;  %v2673_v61 = vpack.c.bf16 %v1577_v54, %v1577_v54  ;;  %v2612_v62 = vpack.c.bf16 %v1516_v55, %v1516_v55  ;;  %v1578_v63 = vmax.f32 %v1450_v56, 0.0 }
  0xf5   : > { %2220 = vst.msk [vmem:[%s3205_s26 + $0x118] sm:$0xf] %vm2149_vm1, %v2675_v57  ;;  %2154 = vst.msk [vmem:[%s3205_s26 + $0x10] sm:$0xf] %vm2149_vm1, %v2609_v58  ;;  %v2676_v0 = vpack.c.bf16 %v1580_v59, %v1580_v59  ;;  %v2610_v1 = vpack.c.bf16 %v1514_v60, %v1514_v60  ;;  %v2813_v3 = vpop.f32.mrb[8].mxu0 }
  0xf6   : > { %2218 = vst.msk [vmem:[%s3205_s26 + $0x110] sm:$0xf] %vm2149_vm1, %v2673_v61  ;;  %2157 = vst.msk [vmem:[%s3205_s26 + $0x1c] sm:$0xf] %vm2149_vm1, %v2612_v62  ;;  %v2674_v4 = vpack.c.bf16 %v1578_v63, %v1578_v63  ;;  %v1391_v5 = vadd.f32 %v2813_v3, %v3193_v2  ;;  %v2877_v6 = vpop.f32.mrb[8].mxu1  ;;  %v895_v7 = vpop.f32.mrb[9].mxu0 }
  0xf7   : > { %2221 = vst.msk [vmem:[%s3205_s26 + $0x11c] sm:$0xf] %vm2149_vm1, %v2676_v0  ;;  %2155 = vst.msk [vmem:[%s3205_s26 + $0x14] sm:$0xf] %vm2149_vm1, %v2610_v1  ;;  %v1455_v8 = vadd.f32 %v2877_v6, %v3193_v2  ;;  %v1389_v9 = vadd.f32 %v3193_v2, %v895_v7  ;;  %v1151_v10 = vpop.f32.mrb[9].mxu1  ;;  %v2814_v11 = vpop.f32.mrb[10].mxu0 }
  0xf8   : > { %2219 = vst.msk [vmem:[%s3205_s26 + $0x114] sm:$0xf] %vm2149_vm1, %v2674_v4  ;;  %v1519_v12 = vmax.f32 %v1391_v5, 0.0  ;;  %v1453_v13 = vadd.f32 %v3193_v2, %v1151_v10  ;;  %v1392_v14 = vadd.f32 %v2814_v11, %v3193_v2  ;;  %v2878_v15 = vpop.f32.mrb[10].mxu1  ;;  %v898_v16 = vpop.f32.mrb[11].mxu0 }
  0xf9   : > { %v1583_v17 = vmax.f32 %v1455_v8, 0.0  ;;  %v1517_v18 = vmax.f32 %v1389_v9, 0.0  ;;  %v1456_v19 = vadd.f32 %v2878_v15, %v3193_v2  ;;  %v1390_v20 = vadd.f32 %v3193_v2, %v898_v16  ;;  %v1154_v21 = vpop.f32.mrb[11].mxu1 }
  0xfa   : > { %v2615_v22 = vpack.c.bf16 %v1519_v12, %v1519_v12  ;;  %v1581_v23 = vmax.f32 %v1453_v13, 0.0  ;;  %v1520_v24 = vmax.f32 %v1392_v14, 0.0  ;;  %v1454_v25 = vadd.f32 %v3193_v2, %v1154_v21 }
  0xfb   : > { %v2679_v26 = vpack.c.bf16 %v1583_v17, %v1583_v17  ;;  %v2613_v27 = vpack.c.bf16 %v1517_v18, %v1517_v18  ;;  %v1584_v28 = vmax.f32 %v1456_v19, 0.0  ;;  %v1518_v29 = vmax.f32 %v1390_v20, 0.0 }
  0xfc   : > { %2160 = vst.msk [vmem:[%s3205_s26 + $0x28] sm:$0xf] %vm2149_vm1, %v2615_v22  ;;  %v2677_v30 = vpack.c.bf16 %v1581_v23, %v1581_v23  ;;  %v2616_v31 = vpack.c.bf16 %v1520_v24, %v1520_v24  ;;  %v1582_v32 = vmax.f32 %v1454_v25, 0.0 }
  0xfd   : > { %2224 = vst.msk [vmem:[%s3205_s26 + $0x128] sm:$0xf] %vm2149_vm1, %v2679_v26  ;;  %2158 = vst.msk [vmem:[%s3205_s26 + $0x20] sm:$0xf] %vm2149_vm1, %v2613_v27  ;;  %v2680_v33 = vpack.c.bf16 %v1584_v28, %v1584_v28  ;;  %v2614_v34 = vpack.c.bf16 %v1518_v29, %v1518_v29  ;;  %v2817_v35 = vpop.f32.mrb[12].mxu0 }
  0xfe   : > { %2222 = vst.msk [vmem:[%s3205_s26 + $0x120] sm:$0xf] %vm2149_vm1, %v2677_v30  ;;  %2161 = vst.msk [vmem:[%s3205_s26 + $0x2c] sm:$0xf] %vm2149_vm1, %v2616_v31  ;;  %v2678_v36 = vpack.c.bf16 %v1582_v32, %v1582_v32  ;;  %v1395_v37 = vadd.f32 %v2817_v35, %v3193_v2  ;;  %v2881_v38 = vpop.f32.mrb[12].mxu1  ;;  %v911_v39 = vpop.f32.mrb[13].mxu0 }
  0xff   : > { %2225 = vst.msk [vmem:[%s3205_s26 + $0x12c] sm:$0xf] %vm2149_vm1, %v2680_v33  ;;  %2159 = vst.msk [vmem:[%s3205_s26 + $0x24] sm:$0xf] %vm2149_vm1, %v2614_v34  ;;  %v1459_v40 = vadd.f32 %v2881_v38, %v3193_v2  ;;  %v1393_v41 = vadd.f32 %v3193_v2, %v911_v39  ;;  %v1167_v42 = vpop.f32.mrb[13].mxu1  ;;  %v2818_v43 = vpop.f32.mrb[14].mxu0 }
 0x100   : > { %2223 = vst.msk [vmem:[%s3205_s26 + $0x124] sm:$0xf] %vm2149_vm1, %v2678_v36  ;;  %v1523_v44 = vmax.f32 %v1395_v37, 0.0  ;;  %v1457_v45 = vadd.f32 %v3193_v2, %v1167_v42  ;;  %v1396_v46 = vadd.f32 %v2818_v43, %v3193_v2  ;;  %v2882_v47 = vpop.f32.mrb[14].mxu1  ;;  %v914_v48 = vpop.f32.mrb[15].mxu0 }
 0x101   : > { %v1587_v49 = vmax.f32 %v1459_v40, 0.0  ;;  %v1521_v50 = vmax.f32 %v1393_v41, 0.0  ;;  %v1460_v51 = vadd.f32 %v2882_v47, %v3193_v2  ;;  %v1394_v52 = vadd.f32 %v3193_v2, %v914_v48  ;;  %v1170_v53 = vpop.f32.mrb[15].mxu1 }
 0x102   : > { %v2619_v54 = vpack.c.bf16 %v1523_v44, %v1523_v44  ;;  %v1585_v55 = vmax.f32 %v1457_v45, 0.0  ;;  %v1524_v56 = vmax.f32 %v1396_v46, 0.0  ;;  %v1458_v57 = vadd.f32 %v3193_v2, %v1170_v53 }
 0x103   : > { %v2683_v58 = vpack.c.bf16 %v1587_v49, %v1587_v49  ;;  %v2617_v59 = vpack.c.bf16 %v1521_v50, %v1521_v50  ;;  %v1588_v60 = vmax.f32 %v1460_v51, 0.0  ;;  %v1522_v61 = vmax.f32 %v1394_v52, 0.0 }
 0x104   : > { %2164 = vst.msk [vmem:[%s3205_s26 + $0x38] sm:$0xf] %vm2149_vm1, %v2619_v54  ;;  %v2681_v62 = vpack.c.bf16 %v1585_v55, %v1585_v55  ;;  %v2620_v63 = vpack.c.bf16 %v1524_v56, %v1524_v56  ;;  %v1586_v0 = vmax.f32 %v1458_v57, 0.0 }
 0x105   : > { %2228 = vst.msk [vmem:[%s3205_s26 + $0x138] sm:$0xf] %vm2149_vm1, %v2683_v58  ;;  %2162 = vst.msk [vmem:[%s3205_s26 + $0x30] sm:$0xf] %vm2149_vm1, %v2617_v59  ;;  %v2684_v1 = vpack.c.bf16 %v1588_v60, %v1588_v60  ;;  %v2618_v3 = vpack.c.bf16 %v1522_v61, %v1522_v61  ;;  %v2821_v4 = vpop.f32.mrb[16].mxu0 }
 0x106   : > { %2226 = vst.msk [vmem:[%s3205_s26 + $0x130] sm:$0xf] %vm2149_vm1, %v2681_v62  ;;  %2165 = vst.msk [vmem:[%s3205_s26 + $0x3c] sm:$0xf] %vm2149_vm1, %v2620_v63  ;;  %v2682_v5 = vpack.c.bf16 %v1586_v0, %v1586_v0  ;;  %v1399_v6 = vadd.f32 %v2821_v4, %v3193_v2  ;;  %v2885_v7 = vpop.f32.mrb[16].mxu1  ;;  %v927_v8 = vpop.f32.mrb[17].mxu0 }
 0x107   : > { %2229 = vst.msk [vmem:[%s3205_s26 + $0x13c] sm:$0xf] %vm2149_vm1, %v2684_v1  ;;  %2163 = vst.msk [vmem:[%s3205_s26 + $0x34] sm:$0xf] %vm2149_vm1, %v2618_v3  ;;  %v1463_v9 = vadd.f32 %v2885_v7, %v3193_v2  ;;  %v1397_v10 = vadd.f32 %v3193_v2, %v927_v8  ;;  %v1183_v11 = vpop.f32.mrb[17].mxu1  ;;  %v2822_v12 = vpop.f32.mrb[18].mxu0 }
 0x108   : > { %2227 = vst.msk [vmem:[%s3205_s26 + $0x134] sm:$0xf] %vm2149_vm1, %v2682_v5  ;;  %v1527_v13 = vmax.f32 %v1399_v6, 0.0  ;;  %v1461_v14 = vadd.f32 %v3193_v2, %v1183_v11  ;;  %v1400_v15 = vadd.f32 %v2822_v12, %v3193_v2  ;;  %v2886_v16 = vpop.f32.mrb[18].mxu1  ;;  %v930_v17 = vpop.f32.mrb[19].mxu0 }
 0x109   : > { %v1591_v18 = vmax.f32 %v1463_v9, 0.0  ;;  %v1525_v19 = vmax.f32 %v1397_v10, 0.0  ;;  %v1464_v20 = vadd.f32 %v2886_v16, %v3193_v2  ;;  %v1398_v21 = vadd.f32 %v3193_v2, %v930_v17  ;;  %v1186_v22 = vpop.f32.mrb[19].mxu1 }
 0x10a   : > { %v2623_v23 = vpack.c.bf16 %v1527_v13, %v1527_v13  ;;  %v1589_v24 = vmax.f32 %v1461_v14, 0.0  ;;  %v1528_v25 = vmax.f32 %v1400_v15, 0.0  ;;  %v1462_v26 = vadd.f32 %v3193_v2, %v1186_v22 }
 0x10b   : > { %v2687_v27 = vpack.c.bf16 %v1591_v18, %v1591_v18  ;;  %v2621_v28 = vpack.c.bf16 %v1525_v19, %v1525_v19  ;;  %v1592_v29 = vmax.f32 %v1464_v20, 0.0  ;;  %v1526_v30 = vmax.f32 %v1398_v21, 0.0 }
 0x10c   : > { %2168 = vst.msk [vmem:[%s3205_s26 + $0x48] sm:$0xf] %vm2149_vm1, %v2623_v23  ;;  %v2685_v31 = vpack.c.bf16 %v1589_v24, %v1589_v24  ;;  %v2624_v32 = vpack.c.bf16 %v1528_v25, %v1528_v25  ;;  %v1590_v33 = vmax.f32 %v1462_v26, 0.0 }
 0x10d   : > { %2232 = vst.msk [vmem:[%s3205_s26 + $0x148] sm:$0xf] %vm2149_vm1, %v2687_v27  ;;  %2166 = vst.msk [vmem:[%s3205_s26 + $0x40] sm:$0xf] %vm2149_vm1, %v2621_v28  ;;  %v2688_v34 = vpack.c.bf16 %v1592_v29, %v1592_v29  ;;  %v2622_v35 = vpack.c.bf16 %v1526_v30, %v1526_v30  ;;  %v2825_v36 = vpop.f32.mrb[20].mxu0 }
 0x10e   : > { %2230 = vst.msk [vmem:[%s3205_s26 + $0x140] sm:$0xf] %vm2149_vm1, %v2685_v31  ;;  %2169 = vst.msk [vmem:[%s3205_s26 + $0x4c] sm:$0xf] %vm2149_vm1, %v2624_v32  ;;  %v2686_v37 = vpack.c.bf16 %v1590_v33, %v1590_v33  ;;  %v1403_v38 = vadd.f32 %v2825_v36, %v3193_v2  ;;  %v2889_v39 = vpop.f32.mrb[20].mxu1  ;;  %v943_v40 = vpop.f32.mrb[21].mxu0 }
 0x10f   : > { %2233 = vst.msk [vmem:[%s3205_s26 + $0x14c] sm:$0xf] %vm2149_vm1, %v2688_v34  ;;  %2167 = vst.msk [vmem:[%s3205_s26 + $0x44] sm:$0xf] %vm2149_vm1, %v2622_v35  ;;  %v1467_v41 = vadd.f32 %v2889_v39, %v3193_v2  ;;  %v1401_v42 = vadd.f32 %v3193_v2, %v943_v40  ;;  %v1199_v43 = vpop.f32.mrb[21].mxu1  ;;  %v2826_v44 = vpop.f32.mrb[22].mxu0 }
 0x110   : > { %2231 = vst.msk [vmem:[%s3205_s26 + $0x144] sm:$0xf] %vm2149_vm1, %v2686_v37  ;;  %v1531_v45 = vmax.f32 %v1403_v38, 0.0  ;;  %v1465_v46 = vadd.f32 %v3193_v2, %v1199_v43  ;;  %v1404_v47 = vadd.f32 %v2826_v44, %v3193_v2  ;;  %v2890_v48 = vpop.f32.mrb[22].mxu1  ;;  %v946_v49 = vpop.f32.mrb[23].mxu0 }
 0x111   : > { %v1595_v50 = vmax.f32 %v1467_v41, 0.0  ;;  %v1529_v51 = vmax.f32 %v1401_v42, 0.0  ;;  %v1468_v52 = vadd.f32 %v2890_v48, %v3193_v2  ;;  %v1402_v53 = vadd.f32 %v3193_v2, %v946_v49  ;;  %v1202_v54 = vpop.f32.mrb[23].mxu1 }
 0x112   : > { %v2627_v55 = vpack.c.bf16 %v1531_v45, %v1531_v45  ;;  %v1593_v56 = vmax.f32 %v1465_v46, 0.0  ;;  %v1532_v57 = vmax.f32 %v1404_v47, 0.0  ;;  %v1466_v58 = vadd.f32 %v3193_v2, %v1202_v54 }
 0x113   : > { %v2691_v59 = vpack.c.bf16 %v1595_v50, %v1595_v50  ;;  %v2625_v60 = vpack.c.bf16 %v1529_v51, %v1529_v51  ;;  %v1596_v61 = vmax.f32 %v1468_v52, 0.0  ;;  %v1530_v62 = vmax.f32 %v1402_v53, 0.0 }
 0x114   : > { %2172 = vst.msk [vmem:[%s3205_s26 + $0x58] sm:$0xf] %vm2149_vm1, %v2627_v55  ;;  %v2689_v63 = vpack.c.bf16 %v1593_v56, %v1593_v56  ;;  %v2628_v0 = vpack.c.bf16 %v1532_v57, %v1532_v57  ;;  %v1594_v1 = vmax.f32 %v1466_v58, 0.0 }
 0x115   : > { %2236 = vst.msk [vmem:[%s3205_s26 + $0x158] sm:$0xf] %vm2149_vm1, %v2691_v59  ;;  %2170 = vst.msk [vmem:[%s3205_s26 + $0x50] sm:$0xf] %vm2149_vm1, %v2625_v60  ;;  %v2692_v3 = vpack.c.bf16 %v1596_v61, %v1596_v61  ;;  %v2626_v4 = vpack.c.bf16 %v1530_v62, %v1530_v62  ;;  %v2829_v5 = vpop.f32.mrb[24].mxu0 }
 0x116   : > { %2234 = vst.msk [vmem:[%s3205_s26 + $0x150] sm:$0xf] %vm2149_vm1, %v2689_v63  ;;  %2173 = vst.msk [vmem:[%s3205_s26 + $0x5c] sm:$0xf] %vm2149_vm1, %v2628_v0  ;;  %v2690_v6 = vpack.c.bf16 %v1594_v1, %v1594_v1  ;;  %v1407_v7 = vadd.f32 %v2829_v5, %v3193_v2  ;;  %v2893_v8 = vpop.f32.mrb[24].mxu1  ;;  %v959_v9 = vpop.f32.mrb[25].mxu0 }
 0x117   : > { %2237 = vst.msk [vmem:[%s3205_s26 + $0x15c] sm:$0xf] %vm2149_vm1, %v2692_v3  ;;  %2171 = vst.msk [vmem:[%s3205_s26 + $0x54] sm:$0xf] %vm2149_vm1, %v2626_v4  ;;  %v1471_v10 = vadd.f32 %v2893_v8, %v3193_v2  ;;  %v1405_v11 = vadd.f32 %v3193_v2, %v959_v9  ;;  %v1215_v12 = vpop.f32.mrb[25].mxu1  ;;  %v2830_v13 = vpop.f32.mrb[26].mxu0 }
 0x118   : > { %2235 = vst.msk [vmem:[%s3205_s26 + $0x154] sm:$0xf] %vm2149_vm1, %v2690_v6  ;;  %v1535_v14 = vmax.f32 %v1407_v7, 0.0  ;;  %v1469_v15 = vadd.f32 %v3193_v2, %v1215_v12  ;;  %v1408_v16 = vadd.f32 %v2830_v13, %v3193_v2  ;;  %v2894_v17 = vpop.f32.mrb[26].mxu1  ;;  %v962_v18 = vpop.f32.mrb[27].mxu0 }
 0x119   : > { %v1599_v19 = vmax.f32 %v1471_v10, 0.0  ;;  %v1533_v20 = vmax.f32 %v1405_v11, 0.0  ;;  %v1472_v21 = vadd.f32 %v2894_v17, %v3193_v2  ;;  %v1406_v22 = vadd.f32 %v3193_v2, %v962_v18  ;;  %v1218_v23 = vpop.f32.mrb[27].mxu1 }
 0x11a   : > { %v2631_v24 = vpack.c.bf16 %v1535_v14, %v1535_v14  ;;  %v1597_v25 = vmax.f32 %v1469_v15, 0.0  ;;  %v1536_v26 = vmax.f32 %v1408_v16, 0.0  ;;  %v1470_v27 = vadd.f32 %v3193_v2, %v1218_v23 }
 0x11b   : > { %v2695_v28 = vpack.c.bf16 %v1599_v19, %v1599_v19  ;;  %v2629_v29 = vpack.c.bf16 %v1533_v20, %v1533_v20  ;;  %v1600_v30 = vmax.f32 %v1472_v21, 0.0  ;;  %v1534_v31 = vmax.f32 %v1406_v22, 0.0 }
 0x11c   : > { %2176 = vst.msk [vmem:[%s3205_s26 + $0x68] sm:$0xf] %vm2149_vm1, %v2631_v24  ;;  %v2693_v32 = vpack.c.bf16 %v1597_v25, %v1597_v25  ;;  %v2632_v33 = vpack.c.bf16 %v1536_v26, %v1536_v26  ;;  %v1598_v34 = vmax.f32 %v1470_v27, 0.0 }
 0x11d   : > { %2240 = vst.msk [vmem:[%s3205_s26 + $0x168] sm:$0xf] %vm2149_vm1, %v2695_v28  ;;  %2174 = vst.msk [vmem:[%s3205_s26 + $0x60] sm:$0xf] %vm2149_vm1, %v2629_v29  ;;  %v2696_v35 = vpack.c.bf16 %v1600_v30, %v1600_v30  ;;  %v2630_v36 = vpack.c.bf16 %v1534_v31, %v1534_v31  ;;  %v2833_v37 = vpop.f32.mrb[28].mxu0 }
 0x11e   : > { %2238 = vst.msk [vmem:[%s3205_s26 + $0x160] sm:$0xf] %vm2149_vm1, %v2693_v32  ;;  %2177 = vst.msk [vmem:[%s3205_s26 + $0x6c] sm:$0xf] %vm2149_vm1, %v2632_v33  ;;  %v2694_v38 = vpack.c.bf16 %v1598_v34, %v1598_v34  ;;  %v1411_v39 = vadd.f32 %v2833_v37, %v3193_v2  ;;  %v2897_v40 = vpop.f32.mrb[28].mxu1  ;;  %v975_v41 = vpop.f32.mrb[29].mxu0 }
 0x11f   : > { %2241 = vst.msk [vmem:[%s3205_s26 + $0x16c] sm:$0xf] %vm2149_vm1, %v2696_v35  ;;  %2175 = vst.msk [vmem:[%s3205_s26 + $0x64] sm:$0xf] %vm2149_vm1, %v2630_v36  ;;  %v1475_v42 = vadd.f32 %v2897_v40, %v3193_v2  ;;  %v1409_v43 = vadd.f32 %v3193_v2, %v975_v41  ;;  %v1231_v44 = vpop.f32.mrb[29].mxu1  ;;  %v2834_v45 = vpop.f32.mrb[30].mxu0 }
 0x120   : > { %2239 = vst.msk [vmem:[%s3205_s26 + $0x164] sm:$0xf] %vm2149_vm1, %v2694_v38  ;;  %v1539_v46 = vmax.f32 %v1411_v39, 0.0  ;;  %v1473_v47 = vadd.f32 %v3193_v2, %v1231_v44  ;;  %v1412_v48 = vadd.f32 %v2834_v45, %v3193_v2  ;;  %v2898_v49 = vpop.f32.mrb[30].mxu1  ;;  %v978_v50 = vpop.f32.mrb[31].mxu0 }
 0x121   : > { %v1603_v51 = vmax.f32 %v1475_v42, 0.0  ;;  %v1537_v52 = vmax.f32 %v1409_v43, 0.0  ;;  %v1476_v53 = vadd.f32 %v2898_v49, %v3193_v2  ;;  %v1410_v54 = vadd.f32 %v3193_v2, %v978_v50  ;;  %v1234_v55 = vpop.f32.mrb[31].mxu1 }
 0x122   : > { %v2635_v56 = vpack.c.bf16 %v1539_v46, %v1539_v46  ;;  %v1601_v57 = vmax.f32 %v1473_v47, 0.0  ;;  %v1540_v58 = vmax.f32 %v1412_v48, 0.0  ;;  %v1474_v59 = vadd.f32 %v3193_v2, %v1234_v55 }
 0x123   : > { %v2699_v60 = vpack.c.bf16 %v1603_v51, %v1603_v51  ;;  %v2633_v61 = vpack.c.bf16 %v1537_v52, %v1537_v52  ;;  %v1604_v62 = vmax.f32 %v1476_v53, 0.0  ;;  %v1538_v63 = vmax.f32 %v1410_v54, 0.0 }
 0x124   : > { %2180 = vst.msk [vmem:[%s3205_s26 + $0x78] sm:$0xf] %vm2149_vm1, %v2635_v56  ;;  %v2697_v0 = vpack.c.bf16 %v1601_v57, %v1601_v57  ;;  %v2636_v1 = vpack.c.bf16 %v1540_v58, %v1540_v58  ;;  %v1602_v3 = vmax.f32 %v1474_v59, 0.0 }
 0x125   : > { %2244 = vst.msk [vmem:[%s3205_s26 + $0x178] sm:$0xf] %vm2149_vm1, %v2699_v60  ;;  %2178 = vst.msk [vmem:[%s3205_s26 + $0x70] sm:$0xf] %vm2149_vm1, %v2633_v61  ;;  %v2700_v4 = vpack.c.bf16 %v1604_v62, %v1604_v62  ;;  %v2634_v5 = vpack.c.bf16 %v1538_v63, %v1538_v63  ;;  %v2837_v6 = vpop.f32.mrb[32].mxu0 }
 0x126   : > { %2242 = vst.msk [vmem:[%s3205_s26 + $0x170] sm:$0xf] %vm2149_vm1, %v2697_v0  ;;  %2181 = vst.msk [vmem:[%s3205_s26 + $0x7c] sm:$0xf] %vm2149_vm1, %v2636_v1  ;;  %v2698_v7 = vpack.c.bf16 %v1602_v3, %v1602_v3  ;;  %v1415_v8 = vadd.f32 %v2837_v6, %v3193_v2  ;;  %v2901_v9 = vpop.f32.mrb[32].mxu1  ;;  %v991_v10 = vpop.f32.mrb[33].mxu0 }
 0x127   : > { %2245 = vst.msk [vmem:[%s3205_s26 + $0x17c] sm:$0xf] %vm2149_vm1, %v2700_v4  ;;  %2179 = vst.msk [vmem:[%s3205_s26 + $0x74] sm:$0xf] %vm2149_vm1, %v2634_v5  ;;  %v1479_v11 = vadd.f32 %v2901_v9, %v3193_v2  ;;  %v1413_v12 = vadd.f32 %v3193_v2, %v991_v10  ;;  %v1247_v13 = vpop.f32.mrb[33].mxu1  ;;  %v2838_v14 = vpop.f32.mrb[34].mxu0 }
 0x128   : > { %2243 = vst.msk [vmem:[%s3205_s26 + $0x174] sm:$0xf] %vm2149_vm1, %v2698_v7  ;;  %v1543_v15 = vmax.f32 %v1415_v8, 0.0  ;;  %v1477_v16 = vadd.f32 %v3193_v2, %v1247_v13  ;;  %v1416_v17 = vadd.f32 %v2838_v14, %v3193_v2  ;;  %v2902_v18 = vpop.f32.mrb[34].mxu1  ;;  %v994_v19 = vpop.f32.mrb[35].mxu0 }
 0x129   : > { %v1607_v20 = vmax.f32 %v1479_v11, 0.0  ;;  %v1541_v21 = vmax.f32 %v1413_v12, 0.0  ;;  %v1480_v22 = vadd.f32 %v2902_v18, %v3193_v2  ;;  %v1414_v23 = vadd.f32 %v3193_v2, %v994_v19  ;;  %v1250_v24 = vpop.f32.mrb[35].mxu1 }
 0x12a   : > { %v2639_v25 = vpack.c.bf16 %v1543_v15, %v1543_v15  ;;  %v1605_v26 = vmax.f32 %v1477_v16, 0.0  ;;  %v1544_v27 = vmax.f32 %v1416_v17, 0.0  ;;  %v1478_v28 = vadd.f32 %v3193_v2, %v1250_v24 }
 0x12b   : > { %v2703_v29 = vpack.c.bf16 %v1607_v20, %v1607_v20  ;;  %v2637_v30 = vpack.c.bf16 %v1541_v21, %v1541_v21  ;;  %v1608_v31 = vmax.f32 %v1480_v22, 0.0  ;;  %v1542_v32 = vmax.f32 %v1414_v23, 0.0 }
 0x12c   : > { %2184 = vst.msk [vmem:[%s3205_s26 + $0x88] sm:$0xf] %vm2149_vm1, %v2639_v25  ;;  %v2701_v33 = vpack.c.bf16 %v1605_v26, %v1605_v26  ;;  %v2640_v34 = vpack.c.bf16 %v1544_v27, %v1544_v27  ;;  %v1606_v35 = vmax.f32 %v1478_v28, 0.0 }
 0x12d   : > { %2248 = vst.msk [vmem:[%s3205_s26 + $0x188] sm:$0xf] %vm2149_vm1, %v2703_v29  ;;  %2182 = vst.msk [vmem:[%s3205_s26 + $0x80] sm:$0xf] %vm2149_vm1, %v2637_v30  ;;  %v2704_v36 = vpack.c.bf16 %v1608_v31, %v1608_v31  ;;  %v2638_v37 = vpack.c.bf16 %v1542_v32, %v1542_v32  ;;  %v2841_v38 = vpop.f32.mrb[36].mxu0 }
 0x12e   : > { %2246 = vst.msk [vmem:[%s3205_s26 + $0x180] sm:$0xf] %vm2149_vm1, %v2701_v33  ;;  %2185 = vst.msk [vmem:[%s3205_s26 + $0x8c] sm:$0xf] %vm2149_vm1, %v2640_v34  ;;  %v2702_v39 = vpack.c.bf16 %v1606_v35, %v1606_v35  ;;  %v1419_v40 = vadd.f32 %v2841_v38, %v3193_v2  ;;  %v2905_v41 = vpop.f32.mrb[36].mxu1  ;;  %v1007_v42 = vpop.f32.mrb[37].mxu0 }
 0x12f   : > { %2249 = vst.msk [vmem:[%s3205_s26 + $0x18c] sm:$0xf] %vm2149_vm1, %v2704_v36  ;;  %2183 = vst.msk [vmem:[%s3205_s26 + $0x84] sm:$0xf] %vm2149_vm1, %v2638_v37  ;;  %v1483_v43 = vadd.f32 %v2905_v41, %v3193_v2  ;;  %v1417_v44 = vadd.f32 %v3193_v2, %v1007_v42  ;;  %v1263_v45 = vpop.f32.mrb[37].mxu1  ;;  %v2842_v46 = vpop.f32.mrb[38].mxu0 }
 0x130   : > { %2247 = vst.msk [vmem:[%s3205_s26 + $0x184] sm:$0xf] %vm2149_vm1, %v2702_v39  ;;  %v1547_v47 = vmax.f32 %v1419_v40, 0.0  ;;  %v1481_v48 = vadd.f32 %v3193_v2, %v1263_v45  ;;  %v1420_v49 = vadd.f32 %v2842_v46, %v3193_v2  ;;  %v2906_v50 = vpop.f32.mrb[38].mxu1  ;;  %v1010_v51 = vpop.f32.mrb[39].mxu0 }
 0x131   : > { %v1611_v52 = vmax.f32 %v1483_v43, 0.0  ;;  %v1545_v53 = vmax.f32 %v1417_v44, 0.0  ;;  %v1484_v54 = vadd.f32 %v2906_v50, %v3193_v2  ;;  %v1418_v55 = vadd.f32 %v3193_v2, %v1010_v51  ;;  %v1266_v56 = vpop.f32.mrb[39].mxu1 }
 0x132   : > { %v2643_v57 = vpack.c.bf16 %v1547_v47, %v1547_v47  ;;  %v1609_v58 = vmax.f32 %v1481_v48, 0.0  ;;  %v1548_v59 = vmax.f32 %v1420_v49, 0.0  ;;  %v1482_v60 = vadd.f32 %v3193_v2, %v1266_v56 }
 0x133   : > { %v2707_v61 = vpack.c.bf16 %v1611_v52, %v1611_v52  ;;  %v2641_v62 = vpack.c.bf16 %v1545_v53, %v1545_v53  ;;  %v1612_v63 = vmax.f32 %v1484_v54, 0.0  ;;  %v1546_v0 = vmax.f32 %v1418_v55, 0.0 }
 0x134   : > { %2188 = vst.msk [vmem:[%s3205_s26 + $0x98] sm:$0xf] %vm2149_vm1, %v2643_v57  ;;  %v2705_v1 = vpack.c.bf16 %v1609_v58, %v1609_v58  ;;  %v2644_v3 = vpack.c.bf16 %v1548_v59, %v1548_v59  ;;  %v1610_v4 = vmax.f32 %v1482_v60, 0.0 }
 0x135   : > { %2252 = vst.msk [vmem:[%s3205_s26 + $0x198] sm:$0xf] %vm2149_vm1, %v2707_v61  ;;  %2186 = vst.msk [vmem:[%s3205_s26 + $0x90] sm:$0xf] %vm2149_vm1, %v2641_v62  ;;  %v2708_v5 = vpack.c.bf16 %v1612_v63, %v1612_v63  ;;  %v2642_v6 = vpack.c.bf16 %v1546_v0, %v1546_v0  ;;  %v2845_v7 = vpop.f32.mrb[40].mxu0 }
 0x136   : > { %2250 = vst.msk [vmem:[%s3205_s26 + $0x190] sm:$0xf] %vm2149_vm1, %v2705_v1  ;;  %2189 = vst.msk [vmem:[%s3205_s26 + $0x9c] sm:$0xf] %vm2149_vm1, %v2644_v3  ;;  %v2706_v8 = vpack.c.bf16 %v1610_v4, %v1610_v4  ;;  %v1423_v9 = vadd.f32 %v2845_v7, %v3193_v2  ;;  %v2909_v10 = vpop.f32.mrb[40].mxu1  ;;  %v1023_v11 = vpop.f32.mrb[41].mxu0 }
 0x137   : > { %2253 = vst.msk [vmem:[%s3205_s26 + $0x19c] sm:$0xf] %vm2149_vm1, %v2708_v5  ;;  %2187 = vst.msk [vmem:[%s3205_s26 + $0x94] sm:$0xf] %vm2149_vm1, %v2642_v6  ;;  %v1487_v12 = vadd.f32 %v2909_v10, %v3193_v2  ;;  %v1421_v13 = vadd.f32 %v3193_v2, %v1023_v11  ;;  %v1279_v14 = vpop.f32.mrb[41].mxu1  ;;  %v2846_v15 = vpop.f32.mrb[42].mxu0 }
 0x138   : > { %2251 = vst.msk [vmem:[%s3205_s26 + $0x194] sm:$0xf] %vm2149_vm1, %v2706_v8  ;;  %v1551_v16 = vmax.f32 %v1423_v9, 0.0  ;;  %v1485_v17 = vadd.f32 %v3193_v2, %v1279_v14  ;;  %v1424_v18 = vadd.f32 %v2846_v15, %v3193_v2  ;;  %v2910_v19 = vpop.f32.mrb[42].mxu1  ;;  %v1026_v20 = vpop.f32.mrb[43].mxu0 }
 0x139   : > { %v1615_v21 = vmax.f32 %v1487_v12, 0.0  ;;  %v1549_v22 = vmax.f32 %v1421_v13, 0.0  ;;  %v1488_v23 = vadd.f32 %v2910_v19, %v3193_v2  ;;  %v1422_v24 = vadd.f32 %v3193_v2, %v1026_v20  ;;  %v1282_v25 = vpop.f32.mrb[43].mxu1 }
 0x13a   : > { %v2647_v26 = vpack.c.bf16 %v1551_v16, %v1551_v16  ;;  %v1613_v27 = vmax.f32 %v1485_v17, 0.0  ;;  %v1552_v28 = vmax.f32 %v1424_v18, 0.0  ;;  %v1486_v29 = vadd.f32 %v3193_v2, %v1282_v25 }
 0x13b   : > { %v2711_v30 = vpack.c.bf16 %v1615_v21, %v1615_v21  ;;  %v2645_v31 = vpack.c.bf16 %v1549_v22, %v1549_v22  ;;  %v1616_v32 = vmax.f32 %v1488_v23, 0.0  ;;  %v1550_v33 = vmax.f32 %v1422_v24, 0.0 }
 0x13c   : > { %2192 = vst.msk [vmem:[%s3205_s26 + $0xa8] sm:$0xf] %vm2149_vm1, %v2647_v26  ;;  %v2709_v34 = vpack.c.bf16 %v1613_v27, %v1613_v27  ;;  %v2648_v35 = vpack.c.bf16 %v1552_v28, %v1552_v28  ;;  %v1614_v36 = vmax.f32 %v1486_v29, 0.0 }
 0x13d   : > { %2256 = vst.msk [vmem:[%s3205_s26 + $0x1a8] sm:$0xf] %vm2149_vm1, %v2711_v30  ;;  %2190 = vst.msk [vmem:[%s3205_s26 + $0xa0] sm:$0xf] %vm2149_vm1, %v2645_v31  ;;  %v2712_v37 = vpack.c.bf16 %v1616_v32, %v1616_v32  ;;  %v2646_v38 = vpack.c.bf16 %v1550_v33, %v1550_v33  ;;  %v2849_v39 = vpop.f32.mrb[44].mxu0 }
 0x13e   : > { %2254 = vst.msk [vmem:[%s3205_s26 + $0x1a0] sm:$0xf] %vm2149_vm1, %v2709_v34  ;;  %2193 = vst.msk [vmem:[%s3205_s26 + $0xac] sm:$0xf] %vm2149_vm1, %v2648_v35  ;;  %v2710_v40 = vpack.c.bf16 %v1614_v36, %v1614_v36  ;;  %v1427_v41 = vadd.f32 %v2849_v39, %v3193_v2  ;;  %v2913_v42 = vpop.f32.mrb[44].mxu1  ;;  %v1039_v43 = vpop.f32.mrb[45].mxu0 }
 0x13f   : > { %2257 = vst.msk [vmem:[%s3205_s26 + $0x1ac] sm:$0xf] %vm2149_vm1, %v2712_v37  ;;  %2191 = vst.msk [vmem:[%s3205_s26 + $0xa4] sm:$0xf] %vm2149_vm1, %v2646_v38  ;;  %v1491_v44 = vadd.f32 %v2913_v42, %v3193_v2  ;;  %v1425_v45 = vadd.f32 %v3193_v2, %v1039_v43  ;;  %v1295_v46 = vpop.f32.mrb[45].mxu1  ;;  %v2850_v47 = vpop.f32.mrb[46].mxu0 }
 0x140   : > { %2255 = vst.msk [vmem:[%s3205_s26 + $0x1a4] sm:$0xf] %vm2149_vm1, %v2710_v40  ;;  %v1555_v48 = vmax.f32 %v1427_v41, 0.0  ;;  %v1489_v49 = vadd.f32 %v3193_v2, %v1295_v46  ;;  %v1428_v50 = vadd.f32 %v2850_v47, %v3193_v2  ;;  %v2914_v51 = vpop.f32.mrb[46].mxu1  ;;  %v1042_v52 = vpop.f32.mrb[47].mxu0 }
 0x141   : > { %v1619_v53 = vmax.f32 %v1491_v44, 0.0  ;;  %v1553_v54 = vmax.f32 %v1425_v45, 0.0  ;;  %v1492_v55 = vadd.f32 %v2914_v51, %v3193_v2  ;;  %v1426_v56 = vadd.f32 %v3193_v2, %v1042_v52  ;;  %v1298_v57 = vpop.f32.mrb[47].mxu1  ;;  %v3511_v41 = vld [vmem:[%s3596_s2] ss:$0 sm:$0xff] }
 0x142   : > { %v2651_v58 = vpack.c.bf16 %v1555_v48, %v1555_v48  ;;  %v1617_v59 = vmax.f32 %v1489_v49, 0.0  ;;  %v1556_v60 = vmax.f32 %v1428_v50, 0.0  ;;  %v1490_v61 = vadd.f32 %v3193_v2, %v1298_v57 }
 0x143   : > { %v2715_v62 = vpack.c.bf16 %v1619_v53, %v1619_v53  ;;  %v2649_v63 = vpack.c.bf16 %v1553_v54, %v1553_v54  ;;  %v1620_v0 = vmax.f32 %v1492_v55, 0.0  ;;  %v1554_v1 = vmax.f32 %v1426_v56, 0.0 }
 0x144   : > { %2196 = vst.msk [vmem:[%s3205_s26 + $0xb8] sm:$0xf] %vm2149_vm1, %v2651_v58  ;;  %v2713_v3 = vpack.c.bf16 %v1617_v59, %v1617_v59  ;;  %v2652_v4 = vpack.c.bf16 %v1556_v60, %v1556_v60  ;;  %v1618_v5 = vmax.f32 %v1490_v61, 0.0 }
 0x145   : > { %2260 = vst.msk [vmem:[%s3205_s26 + $0x1b8] sm:$0xf] %vm2149_vm1, %v2715_v62  ;;  %2194 = vst.msk [vmem:[%s3205_s26 + $0xb0] sm:$0xf] %vm2149_vm1, %v2649_v63  ;;  %v2716_v6 = vpack.c.bf16 %v1620_v0, %v1620_v0  ;;  %v2650_v7 = vpack.c.bf16 %v1554_v1, %v1554_v1  ;;  %v2853_v8 = vpop.f32.mrb[48].mxu0 }
 0x146   : > { %2258 = vst.msk [vmem:[%s3205_s26 + $0x1b0] sm:$0xf] %vm2149_vm1, %v2713_v3  ;;  %2197 = vst.msk [vmem:[%s3205_s26 + $0xbc] sm:$0xf] %vm2149_vm1, %v2652_v4  ;;  %v2714_v9 = vpack.c.bf16 %v1618_v5, %v1618_v5  ;;  %v1431_v10 = vadd.f32 %v2853_v8, %v3193_v2  ;;  %v2917_v11 = vpop.f32.mrb[48].mxu1  ;;  %v1055_v12 = vpop.f32.mrb[49].mxu0 }
 0x147   : > { %2261 = vst.msk [vmem:[%s3205_s26 + $0x1bc] sm:$0xf] %vm2149_vm1, %v2716_v6  ;;  %2195 = vst.msk [vmem:[%s3205_s26 + $0xb4] sm:$0xf] %vm2149_vm1, %v2650_v7  ;;  %v1495_v13 = vadd.f32 %v2917_v11, %v3193_v2  ;;  %v1429_v14 = vadd.f32 %v3193_v2, %v1055_v12  ;;  %v1311_v15 = vpop.f32.mrb[49].mxu1  ;;  %v2854_v16 = vpop.f32.mrb[50].mxu0 }
 0x148   : > { %2259 = vst.msk [vmem:[%s3205_s26 + $0x1b4] sm:$0xf] %vm2149_vm1, %v2714_v9  ;;  %v1559_v17 = vmax.f32 %v1431_v10, 0.0  ;;  %v1493_v18 = vadd.f32 %v3193_v2, %v1311_v15  ;;  %v1432_v19 = vadd.f32 %v2854_v16, %v3193_v2  ;;  %v2918_v20 = vpop.f32.mrb[50].mxu1  ;;  %v1058_v21 = vpop.f32.mrb[51].mxu0 }
 0x149   : > { %v1623_v22 = vmax.f32 %v1495_v13, 0.0  ;;  %v1557_v23 = vmax.f32 %v1429_v14, 0.0  ;;  %v1496_v24 = vadd.f32 %v2918_v20, %v3193_v2  ;;  %v1430_v25 = vadd.f32 %v3193_v2, %v1058_v21  ;;  %v1314_v26 = vpop.f32.mrb[51].mxu1 }
 0x14a   : > { %v2655_v27 = vpack.c.bf16 %v1559_v17, %v1559_v17  ;;  %v1621_v28 = vmax.f32 %v1493_v18, 0.0  ;;  %v1560_v29 = vmax.f32 %v1432_v19, 0.0  ;;  %v1494_v30 = vadd.f32 %v3193_v2, %v1314_v26 }
 0x14b   : > { %v2719_v31 = vpack.c.bf16 %v1623_v22, %v1623_v22  ;;  %v2653_v32 = vpack.c.bf16 %v1557_v23, %v1557_v23  ;;  %v1624_v33 = vmax.f32 %v1496_v24, 0.0  ;;  %v1558_v34 = vmax.f32 %v1430_v25, 0.0 }
 0x14c   : > { %2200 = vst.msk [vmem:[%s3205_s26 + $0xc8] sm:$0xf] %vm2149_vm1, %v2655_v27  ;;  %v2717_v35 = vpack.c.bf16 %v1621_v28, %v1621_v28  ;;  %v2656_v36 = vpack.c.bf16 %v1560_v29, %v1560_v29  ;;  %v1622_v37 = vmax.f32 %v1494_v30, 0.0 }
 0x14d   : > { %2264 = vst.msk [vmem:[%s3205_s26 + $0x1c8] sm:$0xf] %vm2149_vm1, %v2719_v31  ;;  %2198 = vst.msk [vmem:[%s3205_s26 + $0xc0] sm:$0xf] %vm2149_vm1, %v2653_v32  ;;  %v2720_v38 = vpack.c.bf16 %v1624_v33, %v1624_v33  ;;  %v2654_v39 = vpack.c.bf16 %v1558_v34, %v1558_v34  ;;  %v2857_v40 = vpop.f32.mrb[52].mxu0 }
 0x14e   : > { %2262 = vst.msk [vmem:[%s3205_s26 + $0x1c0] sm:$0xf] %vm2149_vm1, %v2717_v35  ;;  %2201 = vst.msk [vmem:[%s3205_s26 + $0xcc] sm:$0xf] %vm2149_vm1, %v2656_v36  ;;  %v2718_v2 = vpack.c.bf16 %v1622_v37, %v1622_v37  ;;  %v1435_v42 = vadd.f32 %v3511_v41, %v2857_v40  ;;  %v2921_v43 = vpop.f32.mrb[52].mxu1  ;;  %v1071_v44 = vpop.f32.mrb[53].mxu0 }
 0x14f   : > { %2265 = vst.msk [vmem:[%s3205_s26 + $0x1cc] sm:$0xf] %vm2149_vm1, %v2720_v38  ;;  %2199 = vst.msk [vmem:[%s3205_s26 + $0xc4] sm:$0xf] %vm2149_vm1, %v2654_v39  ;;  %v1499_v45 = vadd.f32 %v3511_v41, %v2921_v43  ;;  %v1433_v46 = vadd.f32 %v3511_v41, %v1071_v44  ;;  %v1327_v47 = vpop.f32.mrb[53].mxu1  ;;  %v2858_v48 = vpop.f32.mrb[54].mxu0 }
 0x150   : > { %2263 = vst.msk [vmem:[%s3205_s26 + $0x1c4] sm:$0xf] %vm2149_vm1, %v2718_v2  ;;  %v1563_v49 = vmax.f32 %v1435_v42, 0.0  ;;  %v1497_v50 = vadd.f32 %v3511_v41, %v1327_v47  ;;  %v1436_v51 = vadd.f32 %v3511_v41, %v2858_v48  ;;  %v2922_v52 = vpop.f32.mrb[54].mxu1  ;;  %v1074_v53 = vpop.f32.mrb[55].mxu0 }
 0x151   : > { %v1627_v54 = vmax.f32 %v1499_v45, 0.0  ;;  %v1561_v55 = vmax.f32 %v1433_v46, 0.0  ;;  %v1500_v56 = vadd.f32 %v3511_v41, %v2922_v52  ;;  %v1434_v57 = vadd.f32 %v3511_v41, %v1074_v53  ;;  %v1330_v58 = vpop.f32.mrb[55].mxu1 }
 0x152   : > { %v2659_v59 = vpack.c.bf16 %v1563_v49, %v1563_v49  ;;  %v1625_v60 = vmax.f32 %v1497_v50, 0.0  ;;  %v1564_v61 = vmax.f32 %v1436_v51, 0.0  ;;  %v1498_v62 = vadd.f32 %v3511_v41, %v1330_v58 }
 0x153   : > { %v2723_v63 = vpack.c.bf16 %v1627_v54, %v1627_v54  ;;  %v2657_v0 = vpack.c.bf16 %v1561_v55, %v1561_v55  ;;  %v1628_v1 = vmax.f32 %v1500_v56, 0.0  ;;  %v1562_v3 = vmax.f32 %v1434_v57, 0.0 }
 0x154   : > { %2204 = vst.msk [vmem:[%s3205_s26 + $0xd8] sm:$0xf] %vm2149_vm1, %v2659_v59  ;;  %v2721_v4 = vpack.c.bf16 %v1625_v60, %v1625_v60  ;;  %v2660_v5 = vpack.c.bf16 %v1564_v61, %v1564_v61  ;;  %v1626_v6 = vmax.f32 %v1498_v62, 0.0 }
 0x155   : > { %2268 = vst.msk [vmem:[%s3205_s26 + $0x1d8] sm:$0xf] %vm2149_vm1, %v2723_v63  ;;  %2202 = vst.msk [vmem:[%s3205_s26 + $0xd0] sm:$0xf] %vm2149_vm1, %v2657_v0  ;;  %v2724_v7 = vpack.c.bf16 %v1628_v1, %v1628_v1  ;;  %v2658_v8 = vpack.c.bf16 %v1562_v3, %v1562_v3  ;;  %v2861_v9 = vpop.f32.mrb[56].mxu0 }
 0x156   : > { %2266 = vst.msk [vmem:[%s3205_s26 + $0x1d0] sm:$0xf] %vm2149_vm1, %v2721_v4  ;;  %2205 = vst.msk [vmem:[%s3205_s26 + $0xdc] sm:$0xf] %vm2149_vm1, %v2660_v5  ;;  %v2722_v10 = vpack.c.bf16 %v1626_v6, %v1626_v6  ;;  %v1439_v11 = vadd.f32 %v3511_v41, %v2861_v9  ;;  %v2925_v12 = vpop.f32.mrb[56].mxu1  ;;  %v1087_v13 = vpop.f32.mrb[57].mxu0 }
 0x157   : > { %2269 = vst.msk [vmem:[%s3205_s26 + $0x1dc] sm:$0xf] %vm2149_vm1, %v2724_v7  ;;  %2203 = vst.msk [vmem:[%s3205_s26 + $0xd4] sm:$0xf] %vm2149_vm1, %v2658_v8  ;;  %v1503_v14 = vadd.f32 %v3511_v41, %v2925_v12  ;;  %v1437_v15 = vadd.f32 %v3511_v41, %v1087_v13  ;;  %v1343_v16 = vpop.f32.mrb[57].mxu1  ;;  %v2862_v17 = vpop.f32.mrb[58].mxu0 }
 0x158   : > { %2267 = vst.msk [vmem:[%s3205_s26 + $0x1d4] sm:$0xf] %vm2149_vm1, %v2722_v10  ;;  %v1567_v18 = vmax.f32 %v1439_v11, 0.0  ;;  %v1501_v19 = vadd.f32 %v3511_v41, %v1343_v16  ;;  %v1440_v20 = vadd.f32 %v3511_v41, %v2862_v17  ;;  %v2926_v21 = vpop.f32.mrb[58].mxu1  ;;  %v1090_v22 = vpop.f32.mrb[59].mxu0 }
 0x159   : > { %v1631_v23 = vmax.f32 %v1503_v14, 0.0  ;;  %v1565_v24 = vmax.f32 %v1437_v15, 0.0  ;;  %v1504_v25 = vadd.f32 %v3511_v41, %v2926_v21  ;;  %v1438_v26 = vadd.f32 %v3511_v41, %v1090_v22  ;;  %v1346_v27 = vpop.f32.mrb[59].mxu1 }
 0x15a   : > { %v2663_v28 = vpack.c.bf16 %v1567_v18, %v1567_v18  ;;  %v1629_v29 = vmax.f32 %v1501_v19, 0.0  ;;  %v1568_v30 = vmax.f32 %v1440_v20, 0.0  ;;  %v1502_v31 = vadd.f32 %v3511_v41, %v1346_v27 }
 0x15b   : > { %v2727_v32 = vpack.c.bf16 %v1631_v23, %v1631_v23  ;;  %v2661_v33 = vpack.c.bf16 %v1565_v24, %v1565_v24  ;;  %v1632_v34 = vmax.f32 %v1504_v25, 0.0  ;;  %v1566_v35 = vmax.f32 %v1438_v26, 0.0 }
 0x15c   : > { %2208 = vst.msk [vmem:[%s3205_s26 + $0xe8] sm:$0xf] %vm2149_vm1, %v2663_v28  ;;  %v2725_v36 = vpack.c.bf16 %v1629_v29, %v1629_v29  ;;  %v2664_v37 = vpack.c.bf16 %v1568_v30, %v1568_v30  ;;  %v1630_v38 = vmax.f32 %v1502_v31, 0.0 }
 0x15d   : > { %2272 = vst.msk [vmem:[%s3205_s26 + $0x1e8] sm:$0xf] %vm2149_vm1, %v2727_v32  ;;  %2206 = vst.msk [vmem:[%s3205_s26 + $0xe0] sm:$0xf] %vm2149_vm1, %v2661_v33  ;;  %v2728_v39 = vpack.c.bf16 %v1632_v34, %v1632_v34  ;;  %v2662_v40 = vpack.c.bf16 %v1566_v35, %v1566_v35  ;;  %v2865_v2 = vpop.f32.mrb[60].mxu0 }
 0x15e   : > { %2270 = vst.msk [vmem:[%s3205_s26 + $0x1e0] sm:$0xf] %vm2149_vm1, %v2725_v36  ;;  %2209 = vst.msk [vmem:[%s3205_s26 + $0xec] sm:$0xf] %vm2149_vm1, %v2664_v37  ;;  %v2726_v42 = vpack.c.bf16 %v1630_v38, %v1630_v38  ;;  %v1443_v43 = vadd.f32 %v3511_v41, %v2865_v2  ;;  %v2929_v44 = vpop.f32.mrb[60].mxu1  ;;  %v1103_v45 = vpop.f32.mrb[61].mxu0 }
 0x15f   : > { %2273 = vst.msk [vmem:[%s3205_s26 + $0x1ec] sm:$0xf] %vm2149_vm1, %v2728_v39  ;;  %2207 = vst.msk [vmem:[%s3205_s26 + $0xe4] sm:$0xf] %vm2149_vm1, %v2662_v40  ;;  %v1507_v46 = vadd.f32 %v3511_v41, %v2929_v44  ;;  %v1441_v47 = vadd.f32 %v3511_v41, %v1103_v45  ;;  %v1359_v48 = vpop.f32.mrb[61].mxu1  ;;  %v2866_v49 = vpop.f32.mrb[62].mxu0 }
 0x160   : > { %2271 = vst.msk [vmem:[%s3205_s26 + $0x1e4] sm:$0xf] %vm2149_vm1, %v2726_v42  ;;  %v1571_v50 = vmax.f32 %v1443_v43, 0.0  ;;  %v1505_v51 = vadd.f32 %v3511_v41, %v1359_v48  ;;  %v1444_v52 = vadd.f32 %v3511_v41, %v2866_v49  ;;  %v2930_v53 = vpop.f32.mrb[62].mxu1  ;;  %v1106_v54 = vpop.f32.mrb[63].mxu0 }
 0x161   : > { %v1635_v55 = vmax.f32 %v1507_v46, 0.0  ;;  %v1569_v56 = vmax.f32 %v1441_v47, 0.0  ;;  %v1508_v57 = vadd.f32 %v3511_v41, %v2930_v53  ;;  %v1442_v58 = vadd.f32 %v3511_v41, %v1106_v54  ;;  %v1362_v59 = vpop.f32.mrb[63].mxu1 }
 0x162   : > { %v2667_v60 = vpack.c.bf16 %v1571_v50, %v1571_v50  ;;  %v1633_v61 = vmax.f32 %v1505_v51, 0.0  ;;  %v1572_v62 = vmax.f32 %v1444_v52, 0.0  ;;  %v1506_v63 = vadd.f32 %v3511_v41, %v1362_v59 }
 0x163   : > { %v2731_v0 = vpack.c.bf16 %v1635_v55, %v1635_v55  ;;  %v2665_v1 = vpack.c.bf16 %v1569_v56, %v1569_v56  ;;  %v1636_v3 = vmax.f32 %v1508_v57, 0.0  ;;  %v1570_v4 = vmax.f32 %v1442_v58, 0.0 }
 0x164   : > { %2212 = vst.msk [vmem:[%s3205_s26 + $0xf8] sm:$0xf] %vm2149_vm1, %v2667_v60  ;;  %v2729_v5 = vpack.c.bf16 %v1633_v61, %v1633_v61  ;;  %v2668_v6 = vpack.c.bf16 %v1572_v62, %v1572_v62  ;;  %v1634_v7 = vmax.f32 %v1506_v63, 0.0 }
 0x165   : > { %2276 = vst.msk [vmem:[%s3205_s26 + $0x1f8] sm:$0xf] %vm2149_vm1, %v2731_v0  ;;  %2210 = vst.msk [vmem:[%s3205_s26 + $0xf0] sm:$0xf] %vm2149_vm1, %v2665_v1  ;;  %v2732_v8 = vpack.c.bf16 %v1636_v3, %v1636_v3  ;;  %v2666_v9 = vpack.c.bf16 %v1570_v4, %v1570_v4 }
 0x166   : > { %2274 = vst.msk [vmem:[%s3205_s26 + $0x1f0] sm:$0xf] %vm2149_vm1, %v2729_v5  ;;  %2213 = vst.msk [vmem:[%s3205_s26 + $0xfc] sm:$0xf] %vm2149_vm1, %v2668_v6  ;;  %v2730_v41 = vpack.c.bf16 %v1634_v7, %v1634_v7 }
 0x167   : > { %2277 = vst.msk [vmem:[%s3205_s26 + $0x1fc] sm:$0xf] %vm2149_vm1, %v2732_v8  ;;  %2211 = vst.msk [vmem:[%s3205_s26 + $0xf4] sm:$0xf] %vm2149_vm1, %v2666_v9 }
 0x168   : > { %2275 = vst.msk [vmem:[%s3205_s26 + $0x1f4] sm:$0xf] %vm2149_vm1, %v2730_v41 }
 0x169 PF: > { %s13_s12 = sadd.s32 1, %s3016_s12  }
 0x16a   : > { %p10_p4 = scmp.ge.s32.totalorder %s13_s12, 4  }
 0x16c   :  { %12 = sbr.rel (!%p10_p4) target bundleno = 1 (0x1), region = 62 }

// kernel: tinynet_forward.6
= control target key start
LH: loop header
LB: loop body
LE: loop exit
PB: predicated region body
PF: predicated region fallthrough
CT: control target
= control target key end

     0   :  { %s1737_s12 = smov 0   ;;  %s2017_s0 = inlined_call_operand.vmem [shape: bf16[2,1,256,288], index: 0, kind: input, shape index: {}]   ;;  %s2018_s1 = inlined_call_operand.vmem [shape: bf16[288,64], index: 1, kind: input, shape index: {}]   ;;  %s2019_s2 = inlined_call_operand.vmem [shape: f32[1,64], index: 2, kind: input, shape index: {}]   ;;  %s2020_s3 = inlined_call_operand.vmem [shape: bf16[2,256,64], index: 3, kind: output, shape index: {}]  }
   0x1 LB: > { %s1278_s13 = sadd.s32 4294967295, %s1715_s12   ;;  %p1282_p0 = scmp.ge.s32.totalorder %s1715_s12, 1  ;;  %s1715_s12 = sphi %s1737_s12, %s13_s12  }
   0x2   : > { %p137_p1 = scmp.lt.s32.totalorder %s1715_s12, 3 }
   0x4   : > { %p138_p2 = pnand %p1282_p0, %p137_p1 }
   0x5   : > { %v1627_v0 = vld [vmem:[%s2018_s1 + $0x40] sm:$0xff] (!%p138_p2)   ;;  %v1629_v2 = vld [vmem:[%s2018_s1 + $0x48] sm:$0xff] (!%p138_p2)   ;;  %p161_p3 = scmp.lt.s32.totalorder (!%p138_p2), %s1278_s13, 1  ;;  %v1631_v4 = vld [vmem:[%s2018_s1 + $0x50] sm:$0xff] (!%p138_p2)   ;;  %vm620_vm0 = vcmask (!%p138_p2), 261120   ;;  %vm1190_vm1 = vcmask (!%p138_p2), 519168  }
   0x6   : > { %141 = sbr.rel (%p138_p2) target bundleno = 352 (0x160), region = 32  ;;  %v1628_v1 = vld [vmem:[%s2018_s1] sm:$0xff] (!%p138_p2)   ;;  %1436 = vmatprep.subr.bf16.mxu0 (!%p138_p2), %v1627_v0  ;;  %1602 = vmatprep.subr.bf16.mxu1 (!%p138_p2), %v1627_v0  ;;  %v1630_v3 = vld [vmem:[%s2018_s1 + $0x8] sm:$0xff] (!%p138_p2)   ;;  %v1632_v5 = vld [vmem:[%s2018_s1 + $0x10] sm:$0xff] (!%p138_p2)  }
   0x7   : > { %1437 = vmatpush3.bf16.msra.mxu0 (!%p138_p2), %v1628_v1  ;;  %1610 = vmatpush3.bf16.msra.mxu1 (!%p138_p2), %v1628_v1  ;;  %v1633_v6 = vld [vmem:[%s2018_s1 + $0x58] sm:$0xff] (!%p138_p2)   ;;  %v1635_v8 = vld [vmem:[%s2018_s1 + $0x60] sm:$0xff] (!%p138_p2)   ;;  %v1637_v10 = vld [vmem:[%s2018_s1 + $0x68] sm:$0xff] (!%p138_p2)  }
   0x8   : > { %1438 = vmatprep.subr.bf16.mxu0 (!%p138_p2), %v1629_v2  ;;  %1603 = vmatprep.subr.bf16.mxu1 (!%p138_p2), %v1629_v2  ;;  %v1634_v7 = vld [vmem:[%s2018_s1 + $0x18] sm:$0xff] (!%p138_p2)   ;;  %v1636_v9 = vld [vmem:[%s2018_s1 + $0x20] sm:$0xff] (!%p138_p2)   ;;  %v1638_v13 = vld [vmem:[%s2018_s1 + $0x28] sm:$0xff] (!%p138_p2)  }
   0x9   : > { %v1639_v14 = vld [vmem:[%s2018_s1 + $0x70] sm:$0xff] (!%p138_p2)   ;;  %v1641_v16 = vld [vmem:[%s2018_s1 + $0x78] sm:$0xff] (!%p138_p2)   ;;  %v1649_v18 = vld [vmem:[%s2018_s1 + $0x80] sm:$0xff] (!%p138_p2)  }
   0xa   : > { %v1640_v15 = vld [vmem:[%s2018_s1 + $0x30] sm:$0xff] (!%p138_p2)   ;;  %v1642_v17 = vld [vmem:[%s2018_s1 + $0x38] sm:$0xff] (!%p138_p2)   ;;  %v1662_v23 = vld [vmem:[%s2018_s1 + $0x88] sm:$0xff] (!%p138_p2)  }
   0xb   : > { %1439 = vmatpush3.bf16.msra.mxu0 (!%p138_p2), %v1630_v3  ;;  %1611 = vmatpush3.bf16.msra.mxu1 (!%p138_p2), %v1630_v3 }
   0xc   : > { %1440 = vmatprep.subr.bf16.mxu0 (!%p138_p2), %v1631_v4  ;;  %1604 = vmatprep.subr.bf16.mxu1 (!%p138_p2), %v1631_v4 }
   0xd   : > { %s2022_s13 = smov (!%p161_p3, %s1278_s13), 1 }
   0xe   : > { %s1618_s28 = smul.u32 384, %s2022_s13  ;;  %s1403_s4 = sshll.u32 %s2022_s13, 7 }
   0xf   : > { %1441 = vmatpush3.bf16.msra.mxu0 %v1632_v5  ;;  %1612 = vmatpush3.bf16.msra.mxu1 %v1632_v5  ;;  %s1903_s7 = scalar_lea.vmem %s2020_s3, %s1403_s4 }
  0x10   : > { %1442 = vmatprep.subr.bf16.mxu0 %v1633_v6  ;;  %1605 = vmatprep.subr.bf16.mxu1 %v1633_v6  ;;  %s1778_s8 = scalar_lea.vmem %s2017_s0, %s1618_s28 }
  0x11   : > { %v1645_v11 = vld [vmem:[%s1778_s8 + $0x4] ss:$12 sps:$4 sm:$0xff]   ;;  %v1643_v19 = vld [vmem:[%s1778_s8] ss:$12 sps:$4 sm:$0xff]   ;;  %v1650_v21 = vld [vmem:[%s1778_s8 + $0x1c] ss:$12 sps:$4 sm:$0xff]  }
  0x12   : > { %v1648_v12 = vld [vmem:[%s1778_s8 + $0x124] ss:$12 sps:$4 sm:$0xff]   ;;  %701 = vmatprep.mubr.bf16.mxu0 %v1645_v11  ;;  %v1646_v20 = vld [vmem:[%s1778_s8 + $0x120] ss:$12 sps:$4 sm:$0xff]   ;;  %v1652_v22 = vld [vmem:[%s1778_s8 + $0x13c] ss:$12 sps:$4 sm:$0xff]  }
  0x13   : > { %1443 = vmatpush3.bf16.msra.mxu0 %v1634_v7  ;;  %1613 = vmatpush3.bf16.msra.mxu1 %v1634_v7  ;;  %v1654_v24 = vld [vmem:[%s1778_s8 + $0x18] ss:$12 sps:$4 sm:$0xff]   ;;  %v1656_v26 = vld [vmem:[%s1778_s8 + $0x34] ss:$12 sps:$4 sm:$0xff]   ;;  %v1660_v28 = vld [vmem:[%s1778_s8 + $0x30] ss:$12 sps:$4 sm:$0xff]  }
  0x14   : > { %1444 = vmatprep.subr.bf16.mxu0 %v1635_v8  ;;  %1606 = vmatprep.subr.bf16.mxu1 %v1635_v8  ;;  %v1655_v25 = vld [vmem:[%s1778_s8 + $0x138] ss:$12 sps:$4 sm:$0xff]   ;;  %v1658_v27 = vld [vmem:[%s1778_s8 + $0x154] ss:$12 sps:$4 sm:$0xff]   ;;  %v1661_v29 = vld [vmem:[%s1778_s8 + $0x150] ss:$12 sps:$4 sm:$0xff]  }
  0x15   : > { %797 = vmatprep.mubr.bf16.mxu1 %v1648_v12  ;;  %v1663_v30 = vld [vmem:[%s1778_s8 + $0x4c] ss:$12 sps:$4 sm:$0xff]   ;;  %v1667_v32 = vld [vmem:[%s1778_s8 + $0x48] ss:$12 sps:$4 sm:$0xff]   ;;  %v1669_v34 = vld [vmem:[%s1778_s8 + $0x64] ss:$12 sps:$4 sm:$0xff]  }
  0x16   : > { %v1665_v31 = vld [vmem:[%s1778_s8 + $0x16c] ss:$12 sps:$4 sm:$0xff]   ;;  %v1668_v33 = vld [vmem:[%s1778_s8 + $0x168] ss:$12 sps:$4 sm:$0xff]   ;;  %v1678_v41 = vld [vmem:[%s1778_s8 + $0x50] ss:$12 sps:$4 sm:$0xff]  }
  0x17   : > { %1445 = vmatpush3.bf16.msra.mxu0 %v1636_v9  ;;  %1614 = vmatpush3.bf16.msra.mxu1 %v1636_v9  ;;  %v1671_v35 = vld [vmem:[%s1778_s8 + $0x8] ss:$12 sps:$4 sm:$0xff]   ;;  %v1672_v36 = vld [vmem:[%s1778_s8 + $0x60] ss:$12 sps:$4 sm:$0xff]   ;;  %v1676_v39 = vld [vmem:[%s1778_s8 + $0x38] ss:$12 sps:$4 sm:$0xff]  }
  0x18   : > { %1446 = vmatprep.subr.bf16.mxu0 %v1637_v10  ;;  %1607 = vmatprep.subr.bf16.mxu1 %v1637_v10  ;;  %v1673_v37 = vld [vmem:[%s1778_s8 + $0x20] ss:$12 sps:$4 sm:$0xff]   ;;  %v1674_v38 = vld [vmem:[%s1778_s8 + $0x7c] ss:$12 sps:$4 sm:$0xff]   ;;  %v1677_v40 = vld [vmem:[%s1778_s8 + $0x78] ss:$12 sps:$4 sm:$0xff]  }
  0x19   : > { %v1679_v42 = vld [vmem:[%s1778_s8 + $0x94] ss:$12 sps:$4 sm:$0xff]   ;;  %v1682_v44 = vld [vmem:[%s1778_s8 + $0x90] ss:$12 sps:$4 sm:$0xff]   ;;  %v1684_v46 = vld [vmem:[%s1778_s8 + $0xac] ss:$12 sps:$4 sm:$0xff]  }
  0x1a   : > { %v1681_v43 = vld [vmem:[%s1778_s8 + $0x68] ss:$12 sps:$4 sm:$0xff]   ;;  %v1683_v45 = vld [vmem:[%s1778_s8 + $0x80] ss:$12 sps:$4 sm:$0xff]   ;;  %v1686_v47 = vld [vmem:[%s1778_s8 + $0x98] ss:$12 sps:$4 sm:$0xff]  }
  0x1b   : > { %1447 = vmatpush3.bf16.msra.mxu0 %v1638_v13  ;;  %1615 = vmatpush3.bf16.msra.mxu1 %v1638_v13  ;;  %v1687_v48 = vld [vmem:[%s1778_s8 + $0xa8] ss:$12 sps:$4 sm:$0xff]   ;;  %v1688_v49 = vld [vmem:[%s1778_s8 + $0xb0] ss:$12 sps:$4 sm:$0xff]   ;;  %v1692_v52 = vld [vmem:[%s1778_s8 + $0xc0] ss:$12 sps:$4 sm:$0xff]  }
  0x1c   : > { %1448 = vmatprep.subr.bf16.mxu0 %v1639_v14  ;;  %1608 = vmatprep.subr.bf16.mxu1 %v1639_v14  ;;  %v1689_v50 = vld [vmem:[%s1778_s8 + $0xc4] ss:$12 sps:$4 sm:$0xff]   ;;  %v1691_v51 = vld [vmem:[%s1778_s8 + $0xc8] ss:$12 sps:$4 sm:$0xff]   ;;  %v1693_v53 = vld [vmem:[%s1778_s8 + $0xe0] ss:$12 sps:$4 sm:$0xff]  }
  0x1d   : > { %v1694_v54 = vld [vmem:[%s1778_s8 + $0xdc] ss:$12 sps:$4 sm:$0xff]   ;;  %v1696_v55 = vld [vmem:[%s1778_s8 + $0xf8] ss:$12 sps:$4 sm:$0xff]   ;;  %v1699_v58 = vld [vmem:[%s1778_s8 + $0xf4] ss:$12 sps:$4 sm:$0xff]  }
  0x1e   : > { %v1697_v56 = vld [vmem:[%s1778_s8 + $0xd8] ss:$12 sps:$4 sm:$0xff]   ;;  %v1698_v57 = vld [vmem:[%s1778_s8 + $0x110] ss:$12 sps:$4 sm:$0xff]   ;;  %v1701_v59 = vld [vmem:[%s1778_s8 + $0x128] ss:$12 sps:$4 sm:$0xff]  }
  0x1f   : > { %1449 = vmatpush3.bf16.msra.mxu0 %v1640_v15  ;;  %1616 = vmatpush3.bf16.msra.mxu1 %v1640_v15  ;;  %v1702_v60 = vld [vmem:[%s1778_s8 + $0xf0] ss:$12 sps:$4 sm:$0xff]   ;;  %v1703_v61 = vld [vmem:[%s1778_s8 + $0x140] ss:$12 sps:$4 sm:$0xff]   ;;  %v1706_v63 = vld [vmem:[%s1778_s8 + $0x158] ss:$12 sps:$4 sm:$0xff]  }
  0x20   : > { %1450 = vmatprep.subr.bf16.mxu0 %v1641_v16  ;;  %1609 = vmatprep.subr.bf16.mxu1 %v1641_v16  ;;  %v1704_v62 = vld [vmem:[%s1778_s8 + $0x10c] ss:$12 sps:$4 sm:$0xff]   ;;  %v1707_v0 = vld [vmem:[%s1778_s8 + $0x108] ss:$12 sps:$4 sm:$0xff]   ;;  %v1708_v1 = vld [vmem:[%s1778_s8 + $0x170] ss:$12 sps:$4 sm:$0xff]  }
  0x23   : > { %1451 = vmatpush3.bf16.msra.mxu0 %v1642_v17  ;;  %1617 = vmatpush3.bf16.msra.mxu1 %v1642_v17 }
  0x24   : > { %1566 = vmatprep.subr.bf16.mxu1 %v1649_v18 }
  0x26   : > { %702 = vmatmul.mubr.bf16.vlgmr.msra.gmra.mrb[0].mxu0 %v1643_v19  ;;  %798 = vmatmul.mubr.bf16.vlgmr.msra.gmra.mrb[0].mxu1 %v1646_v20 }
  0x27   : > { %1567 = vmatpush3.bf16.msra.mxu1 %v1649_v18  ;;  %709 = vmatprep.mubr.bf16.mxu0 %v1650_v21 }
  0x28   : > { %805 = vmatprep.mubr.bf16.mxu1 %v1652_v22  ;;  %1568 = vmatprep.subr.bf16.mxu1 %v1662_v23 }
  0x2b   : > { %1569 = vmatpush3.bf16.msra.mxu1 %v1662_v23 }
  0x2e   : > { %710 = vmatmul.mubr.bf16.gmra.mrb[4].mxu0 %v1654_v24  ;;  %806 = vmatmul.mubr.bf16.gmra.mrb[4].mxu1 %v1655_v25 }
  0x2f   : > { %717 = vmatprep.mubr.bf16.mxu0 %v1656_v26  ;;  %813 = vmatprep.mubr.bf16.mxu1 %v1658_v27 }
  0x36   : > { %718 = vmatmul.mubr.bf16.gmra.mrb[8].mxu0 %v1660_v28  ;;  %814 = vmatmul.mubr.bf16.gmra.mrb[8].mxu1 %v1661_v29 }
  0x37   : > { %725 = vmatprep.mubr.bf16.mxu0 %v1663_v30  ;;  %821 = vmatprep.mubr.bf16.mxu1 %v1665_v31 }
  0x3e   : > { %726 = vmatmul.mubr.bf16.gmra.mrb[12].mxu0 %v1667_v32  ;;  %822 = vmatmul.mubr.bf16.gmra.mrb[12].mxu1 %v1668_v33 }
  0x3f   : > { %733 = vmatprep.mubr.bf16.mxu0 %v1669_v34  ;;  %1570 = vmatprep.mubr.msk.bf16.mxu1 %vm620_vm0, %v1671_v35 }
  0x46   : > { %734 = vmatmul.mubr.bf16.gmra.mrb[16].mxu0 %v1672_v36  ;;  %1571 = vmatmul.mubr.msk.bf16.vlgmr.msra.gmra.mrb[16].mxu1 %vm620_vm0, %v1673_v37 }
  0x47   : > { %741 = vmatprep.mubr.bf16.mxu0 %v1674_v38  ;;  %1574 = vmatprep.mubr.msk.bf16.mxu1 %vm620_vm0, %v1676_v39 }
  0x4e   : > { %742 = vmatmul.mubr.bf16.gmra.mrb[20].mxu0 %v1677_v40  ;;  %1575 = vmatmul.mubr.msk.bf16.gmra.mrb[20].mxu1 %vm620_vm0, %v1678_v41 }
  0x4f   : > { %749 = vmatprep.mubr.bf16.mxu0 %v1679_v42  ;;  %1578 = vmatprep.mubr.msk.bf16.mxu1 %vm620_vm0, %v1681_v43 }
  0x56   : > { %750 = vmatmul.mubr.bf16.gmra.mrb[24].mxu0 %v1682_v44  ;;  %1579 = vmatmul.mubr.msk.bf16.gmra.mrb[24].mxu1 %vm620_vm0, %v1683_v45 }
  0x57   : > { %757 = vmatprep.mubr.bf16.mxu0 %v1684_v46  ;;  %1582 = vmatprep.mubr.msk.bf16.mxu1 %vm620_vm0, %v1686_v47 }
  0x5e   : > { %758 = vmatmul.mubr.bf16.gmra.mrb[28].mxu0 %v1687_v48  ;;  %1583 = vmatmul.mubr.msk.bf16.gmra.mrb[28].mxu1 %vm620_vm0, %v1688_v49 }
  0x5f   : > { %765 = vmatprep.mubr.bf16.mxu0 %v1689_v50  ;;  %1586 = vmatprep.mubr.msk.bf16.mxu1 %vm620_vm0, %v1691_v51 }
  0x66   : > { %766 = vmatmul.mubr.bf16.gmra.mrb[32].mxu0 %v1692_v52  ;;  %1587 = vmatmul.mubr.msk.bf16.gmra.mrb[32].mxu1 %vm620_vm0, %v1693_v53  ;;  %v1892_v52 = vld [vmem:[%s2019_s2] ss:$0 sm:$0xff] }
  0x67   : > { %773 = vmatprep.mubr.bf16.mxu0 %v1694_v54  ;;  %1590 = vmatprep.mubr.msk.bf16.mxu1 %vm620_vm0, %v1696_v55 }
  0x6e   : > { %774 = vmatmul.mubr.bf16.gmra.mrb[36].mxu0 %v1697_v56  ;;  %1591 = vmatmul.mubr.msk.bf16.gmra.mrb[36].mxu1 %vm620_vm0, %v1698_v57 }
  0x6f   : > { %781 = vmatprep.mubr.bf16.mxu0 %v1699_v58  ;;  %1594 = vmatprep.mubr.msk.bf16.mxu1 %vm620_vm0, %v1701_v59 }
  0x76   : > { %782 = vmatmul.mubr.bf16.gmra.mrb[40].mxu0 %v1702_v60  ;;  %1595 = vmatmul.mubr.msk.bf16.gmra.mrb[40].mxu1 %vm620_vm0, %v1703_v61 }
  0x77   : > { %789 = vmatprep.mubr.bf16.mxu0 %v1704_v62  ;;  %1598 = vmatprep.mubr.msk.bf16.mxu1 %vm620_vm0, %v1706_v63 }
  0x7e   : > { %790 = vmatmul.mubr.bf16.gmra.mrb[44].mxu0 %v1707_v0  ;;  %1599 = vmatmul.mubr.msk.bf16.gmra.mrb[44].mxu1 %vm620_vm0, %v1708_v1 }
  0xf9   : > { %v1452_v2 = vpop.f32.mrb[0].mxu0  ;;  %v1524_v3 = vpop.f32.mrb[0].mxu1 }
  0xfa   : > { %v1453_v4 = vpop.f32.mrb[1].mxu0  ;;  %v1525_v5 = vpop.f32.mrb[1].mxu1 }
  0xfb   : > { %v1454_v6 = vadd.f32 %v1453_v4, %v1452_v2  ;;  %v1871_v7 = vadd.f32 %v1525_v5, %v1524_v3  ;;  %v1455_v8 = vpop.f32.mrb[2].mxu0  ;;  %v1527_v9 = vpop.f32.mrb[2].mxu1 }
  0xfc   : > { %v1456_v10 = vpop.f32.mrb[3].mxu0  ;;  %v1528_v11 = vpop.f32.mrb[3].mxu1 }
  0xfd   : > { %v1457_v12 = vadd.f32 %v1456_v10, %v1455_v8  ;;  %v1873_v13 = vadd.f32 %v1528_v11, %v1527_v9 }
 0x101   : > { %v1458_v14 = vpop.f32.mrb[4].mxu0  ;;  %v1530_v15 = vpop.f32.mrb[4].mxu1 }
 0x102   : > { %v1459_v16 = vpop.f32.mrb[5].mxu0  ;;  %v1531_v17 = vpop.f32.mrb[5].mxu1 }
 0x103   : > { %v1460_v18 = vadd.f32 %v1459_v16, %v1458_v14  ;;  %v1875_v19 = vadd.f32 %v1531_v17, %v1530_v15  ;;  %v1461_v20 = vpop.f32.mrb[6].mxu0  ;;  %v1533_v21 = vpop.f32.mrb[6].mxu1 }
 0x104   : > { %v1462_v22 = vpop.f32.mrb[7].mxu0  ;;  %v1534_v23 = vpop.f32.mrb[7].mxu1 }
 0x105   : > { %v1463_v24 = vadd.f32 %v1462_v22, %v1461_v20  ;;  %v1877_v25 = vadd.f32 %v1534_v23, %v1533_v21 }
 0x109   : > { %v1464_v26 = vpop.f32.mrb[8].mxu0  ;;  %v1536_v27 = vpop.f32.mrb[8].mxu1 }
 0x10a   : > { %v1465_v28 = vpop.f32.mrb[9].mxu0  ;;  %v1537_v29 = vpop.f32.mrb[9].mxu1 }
 0x10b   : > { %v1466_v30 = vadd.f32 %v1465_v28, %v1464_v26  ;;  %v1879_v31 = vadd.f32 %v1537_v29, %v1536_v27  ;;  %v1467_v32 = vpop.f32.mrb[10].mxu0  ;;  %v1539_v33 = vpop.f32.mrb[10].mxu1 }
 0x10c   : > { %v1468_v34 = vpop.f32.mrb[11].mxu0  ;;  %v1540_v35 = vpop.f32.mrb[11].mxu1 }
 0x10d   : > { %v1881_v36 = vadd.f32 %v1468_v34, %v1467_v32  ;;  %v1883_v37 = vadd.f32 %v1540_v35, %v1539_v33 }
 0x111   : > { %v1470_v38 = vpop.f32.mrb[12].mxu0  ;;  %v1542_v39 = vpop.f32.mrb[12].mxu1 }
 0x112   : > { %v1471_v40 = vpop.f32.mrb[13].mxu0  ;;  %v1543_v41 = vpop.f32.mrb[13].mxu1 }
 0x113   : > { %v1472_v42 = vadd.f32 %v1471_v40, %v1470_v38  ;;  %v1885_v43 = vadd.f32 %v1543_v41, %v1542_v39  ;;  %v1473_v44 = vpop.f32.mrb[14].mxu0  ;;  %v1545_v45 = vpop.f32.mrb[14].mxu1 }
 0x114   : > { %v1474_v46 = vpop.f32.mrb[15].mxu0  ;;  %v1546_v47 = vpop.f32.mrb[15].mxu1 }
 0x115   : > { %v1475_v48 = vadd.f32 %v1474_v46, %v1473_v44  ;;  %v1887_v49 = vadd.f32 %v1546_v47, %v1545_v45 }
 0x119   : > { %v1476_v50 = vpop.f32.mrb[16].mxu0  ;;  %v1572_v51 = vpop.f32.mrb[16].mxu1 }
 0x11a   : > { %v873_v53 = vadd.f32 %v1572_v51, %v1460_v18  ;;  %v1477_v54 = vpop.f32.mrb[17].mxu0  ;;  %v864_v55 = vpop.f32.mrb[17].mxu1 }
 0x11b   : > { %v1478_v56 = vadd.f32 %v1477_v54, %v1476_v50  ;;  %v865_v57 = vadd.f32 %v1454_v6, %v864_v55  ;;  %v1479_v58 = vpop.f32.mrb[18].mxu0  ;;  %v1573_v59 = vpop.f32.mrb[18].mxu1 }
 0x11c   : > { %v1000_v60 = vadd.f32 %v1892_v52, %v873_v53  ;;  %v876_v61 = vadd.f32 %v1573_v59, %v1463_v24  ;;  %v1480_v62 = vpop.f32.mrb[19].mxu0  ;;  %v867_v63 = vpop.f32.mrb[19].mxu1 }
 0x11d   : > { %v998_v0 = vadd.f32 %v1892_v52, %v865_v57  ;;  %v1897_v1 = vadd.f32 %v1480_v62, %v1479_v58  ;;  %v868_v2 = vadd.f32 %v1457_v12, %v867_v63 }
 0x11e   : > { %v1032_v3 = vmax.f32 %v1000_v60, 0.0  ;;  %v1001_v4 = vadd.f32 %v1892_v52, %v876_v61 }
 0x11f   : > { %v1030_v5 = vmax.f32 %v998_v0, 0.0  ;;  %v999_v6 = vadd.f32 %v1892_v52, %v868_v2 }
 0x120   : > { %v1406_v8 = vpack.c.bf16 %v1032_v3, %v1032_v3  ;;  %v1033_v9 = vmax.f32 %v1001_v4, 0.0 }
 0x121   : > { %v1404_v10 = vpack.c.bf16 %v1030_v5, %v1030_v5  ;;  %v1031_v11 = vmax.f32 %v999_v6, 0.0  ;;  %v1482_v12 = vpop.f32.mrb[20].mxu0  ;;  %v1576_v14 = vpop.f32.mrb[20].mxu1 }
 0x122   : > { %1193 = vst.msk [vmem:[%s1903_s7 + $0x8] sm:$0xf] %vm1190_vm1, %v1406_v8  ;;  %v1407_v15 = vpack.c.bf16 %v1033_v9, %v1033_v9  ;;  %v889_v16 = vadd.f32 %v1576_v14, %v1472_v42  ;;  %v1483_v17 = vpop.f32.mrb[21].mxu0  ;;  %v880_v18 = vpop.f32.mrb[21].mxu1 }
 0x123   : > { %1191 = vst.msk [vmem:[%s1903_s7] sm:$0xf] %vm1190_vm1, %v1404_v10  ;;  %v1405_v20 = vpack.c.bf16 %v1031_v11, %v1031_v11  ;;  %v1484_v21 = vadd.f32 %v1483_v17, %v1482_v12  ;;  %v881_v22 = vadd.f32 %v1466_v30, %v880_v18  ;;  %v1485_v23 = vpop.f32.mrb[22].mxu0  ;;  %v1577_v24 = vpop.f32.mrb[22].mxu1 }
 0x124   : > { %1194 = vst.msk [vmem:[%s1903_s7 + $0xc] sm:$0xf] %vm1190_vm1, %v1407_v15  ;;  %v1004_v26 = vadd.f32 %v1892_v52, %v889_v16  ;;  %v892_v27 = vadd.f32 %v1577_v24, %v1475_v48  ;;  %v1486_v28 = vpop.f32.mrb[23].mxu0  ;;  %v883_v29 = vpop.f32.mrb[23].mxu1 }
 0x125   : > { %1192 = vst.msk [vmem:[%s1903_s7 + $0x4] sm:$0xf] %vm1190_vm1, %v1405_v20  ;;  %v1002_v32 = vadd.f32 %v1892_v52, %v881_v22  ;;  %v1487_v33 = vadd.f32 %v1486_v28, %v1485_v23  ;;  %v884_v34 = vadd.f32 %v1881_v36, %v883_v29 }
 0x126   : > { %v1036_v35 = vmax.f32 %v1004_v26, 0.0  ;;  %v1005_v30 = vadd.f32 %v1892_v52, %v892_v27 }
 0x127   : > { %v1034_v38 = vmax.f32 %v1002_v32, 0.0  ;;  %v1003_v39 = vadd.f32 %v1892_v52, %v884_v34 }
 0x128   : > { %v1410_v40 = vpack.c.bf16 %v1036_v35, %v1036_v35  ;;  %v1037_v41 = vmax.f32 %v1005_v30, 0.0 }
 0x129   : > { %v1408_v42 = vpack.c.bf16 %v1034_v38, %v1034_v38  ;;  %v1035_v44 = vmax.f32 %v1003_v39, 0.0  ;;  %v1488_v45 = vpop.f32.mrb[24].mxu0  ;;  %v1580_v46 = vpop.f32.mrb[24].mxu1 }
 0x12a   : > { %1197 = vst.msk [vmem:[%s1903_s7 + $0x18] sm:$0xf] %vm1190_vm1, %v1410_v40  ;;  %v1411_v47 = vpack.c.bf16 %v1037_v41, %v1037_v41  ;;  %v905_v48 = vadd.f32 %v1580_v46, %v1484_v21  ;;  %v1489_v36 = vpop.f32.mrb[25].mxu0  ;;  %v896_v50 = vpop.f32.mrb[25].mxu1 }
 0x12b   : > { %1195 = vst.msk [vmem:[%s1903_s7 + $0x10] sm:$0xf] %vm1190_vm1, %v1408_v42  ;;  %v1409_v51 = vpack.c.bf16 %v1035_v44, %v1035_v44  ;;  %v1490_v53 = vadd.f32 %v1489_v36, %v1488_v45  ;;  %v897_v54 = vadd.f32 %v1478_v56, %v896_v50  ;;  %v1491_v55 = vpop.f32.mrb[26].mxu0  ;;  %v1581_v57 = vpop.f32.mrb[26].mxu1 }
 0x12c   : > { %1198 = vst.msk [vmem:[%s1903_s7 + $0x1c] sm:$0xf] %vm1190_vm1, %v1411_v47  ;;  %v1008_v58 = vadd.f32 %v1892_v52, %v905_v48  ;;  %v908_v59 = vadd.f32 %v1581_v57, %v1487_v33  ;;  %v1492_v60 = vpop.f32.mrb[27].mxu0  ;;  %v899_v61 = vpop.f32.mrb[27].mxu1 }
 0x12d   : > { %1196 = vst.msk [vmem:[%s1903_s7 + $0x14] sm:$0xf] %vm1190_vm1, %v1409_v51  ;;  %v1006_v62 = vadd.f32 %v1892_v52, %v897_v54  ;;  %v1493_v63 = vadd.f32 %v1492_v60, %v1491_v55  ;;  %v900_v0 = vadd.f32 %v1897_v1, %v899_v61 }
 0x12e   : > { %v1040_v2 = vmax.f32 %v1008_v58, 0.0  ;;  %v1009_v56 = vadd.f32 %v1892_v52, %v908_v59 }
 0x12f   : > { %v1038_v3 = vmax.f32 %v1006_v62, 0.0  ;;  %v1007_v4 = vadd.f32 %v1892_v52, %v900_v0 }
 0x130   : > { %v1414_v5 = vpack.c.bf16 %v1040_v2, %v1040_v2  ;;  %v1041_v6 = vmax.f32 %v1009_v56, 0.0 }
 0x131   : > { %v1412_v8 = vpack.c.bf16 %v1038_v3, %v1038_v3  ;;  %v1039_v9 = vmax.f32 %v1007_v4, 0.0  ;;  %v1494_v10 = vpop.f32.mrb[28].mxu0  ;;  %v1584_v11 = vpop.f32.mrb[28].mxu1 }
 0x132   : > { %1201 = vst.msk [vmem:[%s1903_s7 + $0x28] sm:$0xf] %vm1190_vm1, %v1414_v5  ;;  %v1415_v12 = vpack.c.bf16 %v1041_v6, %v1041_v6  ;;  %v1495_v14 = vpop.f32.mrb[29].mxu0  ;;  %v912_v15 = vpop.f32.mrb[29].mxu1 }
 0x133   : > { %1199 = vst.msk [vmem:[%s1903_s7 + $0x20] sm:$0xf] %vm1190_vm1, %v1412_v8  ;;  %v1413_v1 = vpack.c.bf16 %v1039_v9, %v1039_v9  ;;  %v1496_v16 = vadd.f32 %v1495_v14, %v1494_v10  ;;  %v913_v17 = vadd.f32 %v1490_v53, %v912_v15  ;;  %v1497_v18 = vpop.f32.mrb[30].mxu0  ;;  %v1585_v20 = vpop.f32.mrb[30].mxu1 }
 0x134   : > { %1202 = vst.msk [vmem:[%s1903_s7 + $0x2c] sm:$0xf] %vm1190_vm1, %v1415_v12  ;;  %v1498_v21 = vpop.f32.mrb[31].mxu0  ;;  %v915_v22 = vpop.f32.mrb[31].mxu1 }
 0x135   : > { %1200 = vst.msk [vmem:[%s1903_s7 + $0x24] sm:$0xf] %vm1190_vm1, %v1413_v1  ;;  %v921_v23 = vadd.f32 %v1584_v11, %v1496_v16  ;;  %v1010_v24 = vadd.f32 %v1892_v52, %v913_v17  ;;  %v1499_v26 = vadd.f32 %v1498_v21, %v1497_v18  ;;  %v916_v27 = vadd.f32 %v1493_v63, %v915_v22 }
 0x137   : > { %v1012_v28 = vadd.f32 %v1892_v52, %v921_v23  ;;  %v1042_v29 = vmax.f32 %v1010_v24, 0.0  ;;  %v924_v32 = vadd.f32 %v1585_v20, %v1499_v26  ;;  %v1011_v33 = vadd.f32 %v1892_v52, %v916_v27 }
 0x139   : > { %v1044_v34 = vmax.f32 %v1012_v28, 0.0  ;;  %v1416_v35 = vpack.c.bf16 %v1042_v29, %v1042_v29  ;;  %v1013_v30 = vadd.f32 %v1892_v52, %v924_v32  ;;  %v1043_v38 = vmax.f32 %v1011_v33, 0.0  ;;  %v1500_v39 = vpop.f32.mrb[32].mxu0  ;;  %v1588_v40 = vpop.f32.mrb[32].mxu1 }
 0x13a   : > { %v1501_v41 = vpop.f32.mrb[33].mxu0  ;;  %v928_v42 = vpop.f32.mrb[33].mxu1 }
 0x13b   : > { %v1418_v44 = vpack.c.bf16 %v1044_v34, %v1044_v34  ;;  %1203 = vst.msk [vmem:[%s1903_s7 + $0x30] sm:$0xf] %vm1190_vm1, %v1416_v35  ;;  %v1045_v45 = vmax.f32 %v1013_v30, 0.0  ;;  %v1417_v46 = vpack.c.bf16 %v1043_v38, %v1043_v38  ;;  %v1502_v47 = vadd.f32 %v1501_v41, %v1500_v39  ;;  %v1503_v48 = vpop.f32.mrb[34].mxu0  ;;  %v1589_v36 = vpop.f32.mrb[34].mxu1 }
 0x13c   : > { %v1504_v50 = vpop.f32.mrb[35].mxu0  ;;  %v931_v51 = vpop.f32.mrb[35].mxu1 }
 0x13d   : > { %1205 = vst.msk [vmem:[%s1903_s7 + $0x38] sm:$0xf] %vm1190_vm1, %v1418_v44  ;;  %v1419_v53 = vpack.c.bf16 %v1045_v45, %v1045_v45  ;;  %1204 = vst.msk [vmem:[%s1903_s7 + $0x34] sm:$0xf] %vm1190_vm1, %v1417_v46  ;;  %v929_v54 = vadd.f32 %v1502_v47, %v928_v42  ;;  %v1505_v55 = vadd.f32 %v1504_v50, %v1503_v48 }
 0x13f   : > { %1206 = vst.msk [vmem:[%s1903_s7 + $0x3c] sm:$0xf] %vm1190_vm1, %v1419_v53  ;;  %v1014_v57 = vadd.f32 %v1892_v52, %v929_v54  ;;  %v932_v58 = vadd.f32 %v1505_v55, %v931_v51 }
 0x141   : > { %v1046_v59 = vmax.f32 %v1014_v57, 0.0  ;;  %v1015_v60 = vadd.f32 %v1892_v52, %v932_v58  ;;  %v1506_v61 = vpop.f32.mrb[36].mxu0  ;;  %v1954_v62 = vpop.f32.mrb[36].mxu1 }
 0x142   : > { %v1507_v63 = vpop.f32.mrb[37].mxu0  ;;  %v944_v0 = vpop.f32.mrb[37].mxu1 }
 0x143   : > { %v1420_v2 = vpack.c.bf16 %v1046_v59, %v1046_v59  ;;  %v1047_v56 = vmax.f32 %v1015_v60, 0.0  ;;  %v1508_v3 = vadd.f32 %v1507_v63, %v1506_v61  ;;  %v1509_v4 = vpop.f32.mrb[38].mxu0  ;;  %v1956_v5 = vpop.f32.mrb[38].mxu1 }
 0x144   : > { %v1510_v6 = vpop.f32.mrb[39].mxu0  ;;  %v947_v8 = vpop.f32.mrb[39].mxu1 }
 0x145   : > { %1207 = vst.msk [vmem:[%s1903_s7 + $0x40] sm:$0xf] %vm1190_vm1, %v1420_v2  ;;  %v1421_v9 = vpack.c.bf16 %v1047_v56, %v1047_v56  ;;  %v937_v10 = vadd.f32 %v1588_v40, %v1508_v3  ;;  %v1511_v11 = vadd.f32 %v1510_v6, %v1509_v4 }
 0x147   : > { %1208 = vst.msk [vmem:[%s1903_s7 + $0x44] sm:$0xf] %vm1190_vm1, %v1421_v9  ;;  %v1016_v12 = vadd.f32 %v1892_v52, %v937_v10  ;;  %v940_v14 = vadd.f32 %v1589_v36, %v1511_v11 }
 0x149   : > { %v1048_v15 = vmax.f32 %v1016_v12, 0.0  ;;  %v1017_v1 = vadd.f32 %v1892_v52, %v940_v14  ;;  %v1512_v16 = vpop.f32.mrb[40].mxu0  ;;  %v1596_v17 = vpop.f32.mrb[40].mxu1 }
 0x14a   : > { %v969_v18 = vadd.f32 %v1596_v17, %v1875_v19  ;;  %v1513_v20 = vpop.f32.mrb[41].mxu0  ;;  %v960_v21 = vpop.f32.mrb[41].mxu1 }
 0x14b   : > { %v1422_v22 = vpack.c.bf16 %v1048_v15, %v1048_v15  ;;  %v1049_v23 = vmax.f32 %v1017_v1, 0.0  ;;  %v1514_v24 = vadd.f32 %v1513_v20, %v1512_v16  ;;  %v961_v26 = vadd.f32 %v1871_v7, %v960_v21  ;;  %v1515_v27 = vpop.f32.mrb[42].mxu0  ;;  %v1597_v28 = vpop.f32.mrb[42].mxu1 }
 0x14c   : > { %v1024_v29 = vadd.f32 %v1892_v52, %v969_v18  ;;  %v972_v32 = vadd.f32 %v1597_v28, %v1877_v25  ;;  %v1516_v33 = vpop.f32.mrb[43].mxu0  ;;  %v963_v34 = vpop.f32.mrb[43].mxu1 }
 0x14d   : > { %1209 = vst.msk [vmem:[%s1903_s7 + $0x48] sm:$0xf] %vm1190_vm1, %v1422_v22  ;;  %v1423_v35 = vpack.c.bf16 %v1049_v23, %v1049_v23  ;;  %v945_v19 = vadd.f32 %v1514_v24, %v944_v0  ;;  %v1022_v30 = vadd.f32 %v1892_v52, %v961_v26  ;;  %v1517_v38 = vadd.f32 %v1516_v33, %v1515_v27 }
 0x14e   : > { %v1056_v39 = vmax.f32 %v1024_v29, 0.0  ;;  %v1025_v40 = vadd.f32 %v1892_v52, %v972_v32  ;;  %v964_v7 = vadd.f32 %v1873_v13, %v963_v34 }
 0x14f   : > { %1210 = vst.msk [vmem:[%s1903_s7 + $0x4c] sm:$0xf] %vm1190_vm1, %v1423_v35  ;;  %v1018_v41 = vadd.f32 %v1892_v52, %v945_v19  ;;  %v1054_v25 = vmax.f32 %v1022_v30, 0.0  ;;  %v948_v42 = vadd.f32 %v1517_v38, %v947_v8 }
 0x150   : > { %v1430_v44 = vpack.c.bf16 %v1056_v39, %v1056_v39  ;;  %v1057_v45 = vmax.f32 %v1025_v40, 0.0  ;;  %v1023_v46 = vadd.f32 %v1892_v52, %v964_v7 }
 0x151   : > { %v1050_v47 = vmax.f32 %v1018_v41, 0.0  ;;  %v1428_v48 = vpack.c.bf16 %v1054_v25, %v1054_v25  ;;  %v1019_v36 = vadd.f32 %v1892_v52, %v948_v42  ;;  %v1518_v50 = vpop.f32.mrb[44].mxu0  ;;  %v1600_v51 = vpop.f32.mrb[44].mxu1 }
 0x152   : > { %1217 = vst.msk [vmem:[%s1903_s7 + $0x68] sm:$0xf] %vm1190_vm1, %v1430_v44  ;;  %v1431_v13 = vpack.c.bf16 %v1057_v45, %v1057_v45  ;;  %v1055_v53 = vmax.f32 %v1023_v46, 0.0  ;;  %v985_v54 = vadd.f32 %v1600_v51, %v1885_v43  ;;  %v1519_v55 = vpop.f32.mrb[45].mxu0  ;;  %v976_v57 = vpop.f32.mrb[45].mxu1 }
 0x153   : > { %v1424_v58 = vpack.c.bf16 %v1050_v47, %v1050_v47  ;;  %1215 = vst.msk [vmem:[%s1903_s7 + $0x60] sm:$0xf] %vm1190_vm1, %v1428_v48  ;;  %v1051_v59 = vmax.f32 %v1019_v36, 0.0  ;;  %v1520_v60 = vadd.f32 %v1519_v55, %v1518_v50  ;;  %v977_v61 = vadd.f32 %v1879_v31, %v976_v57  ;;  %v1521_v63 = vpop.f32.mrb[46].mxu0  ;;  %v1601_v0 = vpop.f32.mrb[46].mxu1 }
 0x154   : > { %1218 = vst.msk [vmem:[%s1903_s7 + $0x6c] sm:$0xf] %vm1190_vm1, %v1431_v13  ;;  %v1429_v2 = vpack.c.bf16 %v1055_v53, %v1055_v53  ;;  %v1028_v56 = vadd.f32 %v1892_v52, %v985_v54  ;;  %v988_v43 = vadd.f32 %v1601_v0, %v1887_v49  ;;  %v1522_v3 = vpop.f32.mrb[47].mxu0  ;;  %v979_v4 = vpop.f32.mrb[47].mxu1 }
 0x155   : > { %1211 = vst.msk [vmem:[%s1903_s7 + $0x50] sm:$0xf] %vm1190_vm1, %v1424_v58  ;;  %v1425_v6 = vpack.c.bf16 %v1051_v59, %v1051_v59  ;;  %v953_v8 = vadd.f32 %v1954_v62, %v1520_v60  ;;  %v1026_v9 = vadd.f32 %v1892_v52, %v977_v61  ;;  %v1523_v31 = vadd.f32 %v1522_v3, %v1521_v63 }
 0x156   : > { %1216 = vst.msk [vmem:[%s1903_s7 + $0x64] sm:$0xf] %vm1190_vm1, %v1429_v2  ;;  %v1060_v10 = vmax.f32 %v1028_v56, 0.0  ;;  %v1029_v11 = vadd.f32 %v1892_v52, %v988_v43  ;;  %v980_v12 = vadd.f32 %v1883_v37, %v979_v4 }
 0x157   : > { %1212 = vst.msk [vmem:[%s1903_s7 + $0x54] sm:$0xf] %vm1190_vm1, %v1425_v6  ;;  %v1020_v49 = vadd.f32 %v1892_v52, %v953_v8  ;;  %v1058_v14 = vmax.f32 %v1026_v9, 0.0  ;;  %v956_v62 = vadd.f32 %v1956_v5, %v1523_v31 }
 0x158   : > { %v1434_v15 = vpack.c.bf16 %v1060_v10, %v1060_v10  ;;  %v1061_v1 = vmax.f32 %v1029_v11, 0.0  ;;  %v1027_v16 = vadd.f32 %v1892_v52, %v980_v12 }
 0x159   : > { %v1052_v17 = vmax.f32 %v1020_v49, 0.0  ;;  %v1432_v18 = vpack.c.bf16 %v1058_v14, %v1058_v14  ;;  %v1021_v20 = vadd.f32 %v1892_v52, %v956_v62 }
 0x15a   : > { %1221 = vst.msk [vmem:[%s1903_s7 + $0x78] sm:$0xf] %vm1190_vm1, %v1434_v15  ;;  %v1435_v37 = vpack.c.bf16 %v1061_v1, %v1061_v1  ;;  %v1059_v21 = vmax.f32 %v1027_v16, 0.0 }
 0x15b   : > { %v1426_v22 = vpack.c.bf16 %v1052_v17, %v1052_v17  ;;  %1219 = vst.msk [vmem:[%s1903_s7 + $0x70] sm:$0xf] %vm1190_vm1, %v1432_v18  ;;  %v1053_v23 = vmax.f32 %v1021_v20, 0.0 }
 0x15c   : > { %1222 = vst.msk [vmem:[%s1903_s7 + $0x7c] sm:$0xf] %vm1190_vm1, %v1435_v37  ;;  %v1433_v5 = vpack.c.bf16 %v1059_v21, %v1059_v21 }
 0x15d   : > { %1213 = vst.msk [vmem:[%s1903_s7 + $0x58] sm:$0xf] %vm1190_vm1, %v1426_v22  ;;  %v1427_v24 = vpack.c.bf16 %v1053_v23, %v1053_v23 }
 0x15e   : > { %1220 = vst.msk [vmem:[%s1903_s7 + $0x74] sm:$0xf] %vm1190_vm1, %v1433_v5 }
 0x15f   : > { %1214 = vst.msk [vmem:[%s1903_s7 + $0x5c] sm:$0xf] %vm1190_vm1, %v1427_v24 }
 0x160 PF: > { %s13_s12 = sadd.s32 1, %s1715_s12  }
 0x161   : > { %p10_p4 = scmp.ge.s32.totalorder %s13_s12, 4  }
 0x163   :  { %12 = sbr.rel (!%p10_p4) target bundleno = 1 (0x1), region = 62 }

// kernel: tinynet_forward.7
= control target key start
LH: loop header
LB: loop body
LE: loop exit
PB: predicated region body
PF: predicated region fallthrough
CT: control target
= control target key end

     0   :  { %s2298_s12 = smov 0   ;;  %s2657_s0 = inlined_call_operand.vmem [shape: bf16[2,4,64,576], index: 0, kind: input, shape index: {}]   ;;  %s2658_s1 = inlined_call_operand.vmem [shape: bf16[576,128], index: 1, kind: input, shape index: {}]   ;;  %s2659_s2 = inlined_call_operand.vmem [shape: f32[1,128], index: 2, kind: input, shape index: {}]   ;;  %s2660_s3 = inlined_call_operand.vmem [shape: bf16[2,64,128], index: 3, kind: output, shape index: {}]  }
   0x1 LB: > { %s1630_s13 = sadd.s32 4294967295, %s2276_s12   ;;  %p1634_p0 = scmp.ge.s32.totalorder %s2276_s12, 1  ;;  %s2276_s12 = sphi %s2298_s12, %s13_s12  }
   0x2   : > { %p137_p1 = scmp.lt.s32.totalorder %s2276_s12, 3 }
   0x4   : > { %p138_p2 = pnand %p1634_p0, %p137_p1 }
   0x5   : > { %v2122_v0 = vld [vmem:[%s2658_s1 + $0x40] sm:$0xff] (!%p138_p2)   ;;  %v2124_v2 = vld [vmem:[%s2658_s1 + $0x48] sm:$0xff] (!%p138_p2)   ;;  %p161_p3 = scmp.lt.s32.totalorder (!%p138_p2), %s1630_s13, 1  ;;  %v2126_v4 = vld [vmem:[%s2658_s1 + $0x50] sm:$0xff] (!%p138_p2)   ;;  %vm956_vm0 = vcmask (!%p138_p2), 523264  }
   0x6   : > { %141 = sbr.rel (%p138_p2) target bundleno = 420 (0x1a4), region = 32  ;;  %v2123_v1 = vld [vmem:[%s2658_s1] sm:$0xff] (!%p138_p2)   ;;  %1813 = vmatprep.subr.bf16.mxu0 (!%p138_p2), %v2122_v0  ;;  %2097 = vmatprep.subr.bf16.mxu1 (!%p138_p2), %v2122_v0  ;;  %v2125_v3 = vld [vmem:[%s2658_s1 + $0x8] sm:$0xff] (!%p138_p2)   ;;  %v2127_v5 = vld [vmem:[%s2658_s1 + $0x10] sm:$0xff] (!%p138_p2)  }
   0x7   : > { %1814 = vmatpush3.bf16.msra.mxu0 (!%p138_p2), %v2123_v1  ;;  %2105 = vmatpush3.bf16.msra.mxu1 (!%p138_p2), %v2123_v1  ;;  %v2128_v6 = vld [vmem:[%s2658_s1 + $0x58] sm:$0xff] (!%p138_p2)   ;;  %v2130_v8 = vld [vmem:[%s2658_s1 + $0x60] sm:$0xff] (!%p138_p2)   ;;  %v2132_v10 = vld [vmem:[%s2658_s1 + $0x68] sm:$0xff] (!%p138_p2)  }
   0x8   : > { %1815 = vmatprep.subr.bf16.mxu0 (!%p138_p2), %v2124_v2  ;;  %2098 = vmatprep.subr.bf16.mxu1 (!%p138_p2), %v2124_v2  ;;  %v2129_v7 = vld [vmem:[%s2658_s1 + $0x18] sm:$0xff] (!%p138_p2)   ;;  %v2131_v9 = vld [vmem:[%s2658_s1 + $0x20] sm:$0xff] (!%p138_p2)   ;;  %v2133_v13 = vld [vmem:[%s2658_s1 + $0x28] sm:$0xff] (!%p138_p2)  }
   0x9   : > { %v2134_v14 = vld [vmem:[%s2658_s1 + $0x70] sm:$0xff] (!%p138_p2)   ;;  %v2136_v16 = vld [vmem:[%s2658_s1 + $0x78] sm:$0xff] (!%p138_p2)   ;;  %v2144_v18 = vld [vmem:[%s2658_s1 + $0xc0] sm:$0xff] (!%p138_p2)  }
   0xa   : > { %v2135_v15 = vld [vmem:[%s2658_s1 + $0x30] sm:$0xff] (!%p138_p2)   ;;  %v2137_v17 = vld [vmem:[%s2658_s1 + $0x38] sm:$0xff] (!%p138_p2)   ;;  %v2147_v19 = vld [vmem:[%s2658_s1 + $0x100] sm:$0xff] (!%p138_p2)  }
   0xb   : > { %1816 = vmatpush3.bf16.msra.mxu0 (!%p138_p2), %v2125_v3  ;;  %2106 = vmatpush3.bf16.msra.mxu1 (!%p138_p2), %v2125_v3  ;;  %v2145_v22 = vld [vmem:[%s2658_s1 + $0x80] sm:$0xff] (!%p138_p2)   ;;  %v2146_v23 = vld [vmem:[%s2658_s1 + $0xc8] sm:$0xff] (!%p138_p2)   ;;  %v2155_v28 = vld [vmem:[%s2658_s1 + $0xd0] sm:$0xff] (!%p138_p2)  }
   0xc   : > { %1817 = vmatprep.subr.bf16.mxu0 (!%p138_p2), %v2126_v4  ;;  %2099 = vmatprep.subr.bf16.mxu1 (!%p138_p2), %v2126_v4  ;;  %v2148_v26 = vld [vmem:[%s2658_s1 + $0x88] sm:$0xff] (!%p138_p2)   ;;  %v2156_v30 = vld [vmem:[%s2658_s1 + $0x90] sm:$0xff] (!%p138_p2)   ;;  %v2157_v31 = vld [vmem:[%s2658_s1 + $0xd8] sm:$0xff] (!%p138_p2)  }
   0xd   : > { %s2662_s13 = smov (!%p161_p3, %s1630_s13), 1  ;;  %v2158_v34 = vld [vmem:[%s2658_s1 + $0x98] sm:$0xff]   ;;  %v2178_v35 = vld [vmem:[%s2658_s1 + $0x108] sm:$0xff]   ;;  %v2165_v37 = vld [vmem:[%s2658_s1 + $0xe0] sm:$0xff]  }
   0xe   : > { %s2113_s28 = smul.u32 640, %s2662_s13  ;;  %v2166_v39 = vld [vmem:[%s2658_s1 + $0xa0] sm:$0xff]   ;;  %v2167_v40 = vld [vmem:[%s2658_s1 + $0xe8] sm:$0xff]   ;;  %v2175_v46 = vld [vmem:[%s2658_s1 + $0xf0] sm:$0xff]   ;;  %s1781_s18 = sshll.u32 %s2662_s13, 5 }
   0xf   : > { %1818 = vmatpush3.bf16.msra.mxu0 %v2127_v5  ;;  %2107 = vmatpush3.bf16.msra.mxu1 %v2127_v5  ;;  %v2168_v43 = vld [vmem:[%s2658_s1 + $0xa8] sm:$0xff]   ;;  %v2198_v47 = vld [vmem:[%s2658_s1 + $0x110] sm:$0xff]   ;;  %v2177_v49 = vld [vmem:[%s2658_s1 + $0xf8] sm:$0xff]   ;;  %s2644_s21 = scalar_lea.vmem %s2660_s3, %s1781_s18 }
  0x10   : > { %1819 = vmatprep.subr.bf16.mxu0 %v2128_v6  ;;  %2100 = vmatprep.subr.bf16.mxu1 %v2128_v6  ;;  %s2339_s8 = scalar_lea.vmem %s2657_s0, %s2113_s28  ;;  %v2176_v48 = vld [vmem:[%s2658_s1 + $0xb0] sm:$0xff]   ;;  %v2179_v52 = vld [vmem:[%s2658_s1 + $0xb8] sm:$0xff]  }
  0x11   : > { %v2140_v11 = vld [vmem:[%s2339_s8 + $0x4] ss:$20 sps:$4 sm:$0xff]   ;;  %v2138_v20 = vld [vmem:[%s2339_s8] ss:$20 sps:$4 sm:$0xff]   ;;  %v2153_v27 = vld [vmem:[%s2339_s8 + $0x28] ss:$20 sps:$4 sm:$0xff]  }
  0x12   : > { %v2143_v12 = vld [vmem:[%s2339_s8 + $0x1e4] ss:$20 sps:$4 sm:$0xff]   ;;  %1037 = vmatprep.mubr.bf16.mxu0 %v2140_v11  ;;  %v2141_v21 = vld [vmem:[%s2339_s8 + $0x1e0] ss:$20 sps:$4 sm:$0xff]   ;;  %v2154_v29 = vld [vmem:[%s2339_s8 + $0x208] ss:$20 sps:$4 sm:$0xff]  }
  0x13   : > { %1820 = vmatpush3.bf16.msra.mxu0 %v2129_v7  ;;  %2108 = vmatpush3.bf16.msra.mxu1 %v2129_v7  ;;  %v2149_v24 = vld [vmem:[%s2339_s8 + $0x2c] ss:$20 sps:$4 sm:$0xff]   ;;  %v2159_v32 = vld [vmem:[%s2339_s8 + $0x54] ss:$20 sps:$4 sm:$0xff]   ;;  %v2163_v36 = vld [vmem:[%s2339_s8 + $0x50] ss:$20 sps:$4 sm:$0xff]  }
  0x14   : > { %1821 = vmatprep.subr.bf16.mxu0 %v2130_v8  ;;  %2101 = vmatprep.subr.bf16.mxu1 %v2130_v8  ;;  %v2151_v25 = vld [vmem:[%s2339_s8 + $0x20c] ss:$20 sps:$4 sm:$0xff]   ;;  %v2161_v33 = vld [vmem:[%s2339_s8 + $0x234] ss:$20 sps:$4 sm:$0xff]   ;;  %v2164_v38 = vld [vmem:[%s2339_s8 + $0x230] ss:$20 sps:$4 sm:$0xff]  }
  0x15   : > { %1133 = vmatprep.mubr.bf16.mxu1 %v2143_v12  ;;  %v2169_v41 = vld [vmem:[%s2339_s8 + $0x7c] ss:$20 sps:$4 sm:$0xff]   ;;  %v2173_v44 = vld [vmem:[%s2339_s8 + $0x78] ss:$20 sps:$4 sm:$0xff]   ;;  %v2185_v54 = vld [vmem:[%s2339_s8 + $0xa0] ss:$20 sps:$4 sm:$0xff]  }
  0x16   : > { %v2171_v42 = vld [vmem:[%s2339_s8 + $0x25c] ss:$20 sps:$4 sm:$0xff]   ;;  %v2174_v45 = vld [vmem:[%s2339_s8 + $0x258] ss:$20 sps:$4 sm:$0xff]   ;;  %v2188_v57 = vld [vmem:[%s2339_s8 + $0x34] ss:$20 sps:$4 sm:$0xff]  }
  0x17   : > { %1822 = vmatpush3.bf16.msra.mxu0 %v2131_v9  ;;  %2109 = vmatpush3.bf16.msra.mxu1 %v2131_v9  ;;  %v2180_v50 = vld [vmem:[%s2339_s8 + $0xa4] ss:$20 sps:$4 sm:$0xff]   ;;  %v2184_v51 = vld [vmem:[%s2339_s8 + $0xc] ss:$20 sps:$4 sm:$0xff]   ;;  %v2182_v53 = vld [vmem:[%s2339_s8 + $0x8] ss:$20 sps:$4 sm:$0xff]  }
  0x18   : > { %1823 = vmatprep.subr.bf16.mxu0 %v2132_v10  ;;  %2102 = vmatprep.subr.bf16.mxu1 %v2132_v10  ;;  %v2186_v55 = vld [vmem:[%s2339_s8 + $0xcc] ss:$20 sps:$4 sm:$0xff]   ;;  %v2217_v56 = vld [vmem:[%s2658_s1 + $0x118] sm:$0xff]   ;;  %v2191_v59 = vld [vmem:[%s2339_s8 + $0x30] ss:$20 sps:$4 sm:$0xff]  }
  0x19   : > { %v2190_v58 = vld [vmem:[%s2339_s8 + $0xc8] ss:$20 sps:$4 sm:$0xff]   ;;  %v2196_v62 = vld [vmem:[%s2339_s8 + $0xf0] ss:$20 sps:$4 sm:$0xff]   ;;  %v2197_v63 = vld [vmem:[%s2339_s8 + $0x58] ss:$20 sps:$4 sm:$0xff]  }
  0x1a   : > { %v2192_v60 = vld [vmem:[%s2339_s8 + $0xf4] ss:$20 sps:$4 sm:$0xff]   ;;  %v2194_v61 = vld [vmem:[%s2339_s8 + $0x5c] ss:$20 sps:$4 sm:$0xff]   ;;  %v2201_v1 = vld [vmem:[%s2339_s8 + $0x84] ss:$20 sps:$4 sm:$0xff]  }
  0x1b   : > { %1824 = vmatpush3.bf16.msra.mxu0 %v2133_v13  ;;  %2110 = vmatpush3.bf16.msra.mxu1 %v2133_v13  ;;  %v2199_v0 = vld [vmem:[%s2339_s8 + $0x11c] ss:$20 sps:$4 sm:$0xff]   ;;  %v2203_v2 = vld [vmem:[%s2339_s8 + $0x118] ss:$20 sps:$4 sm:$0xff]   ;;  %v2204_v3 = vld [vmem:[%s2339_s8 + $0x80] ss:$20 sps:$4 sm:$0xff]  }
  0x1c   : > { %1825 = vmatprep.subr.bf16.mxu0 %v2134_v14  ;;  %2103 = vmatprep.subr.bf16.mxu1 %v2134_v14  ;;  %v2205_v4 = vld [vmem:[%s2339_s8 + $0x144] ss:$20 sps:$4 sm:$0xff]   ;;  %v2207_v5 = vld [vmem:[%s2339_s8 + $0xac] ss:$20 sps:$4 sm:$0xff]   ;;  %v2210_v7 = vld [vmem:[%s2339_s8 + $0xa8] ss:$20 sps:$4 sm:$0xff]  }
  0x1d   : > { %v2209_v6 = vld [vmem:[%s2339_s8 + $0x140] ss:$20 sps:$4 sm:$0xff]   ;;  %v2215_v10 = vld [vmem:[%s2339_s8 + $0x168] ss:$20 sps:$4 sm:$0xff]   ;;  %v2216_v11 = vld [vmem:[%s2339_s8 + $0xd0] ss:$20 sps:$4 sm:$0xff]  }
  0x1e   : > { %v2211_v8 = vld [vmem:[%s2339_s8 + $0x16c] ss:$20 sps:$4 sm:$0xff]   ;;  %v2213_v9 = vld [vmem:[%s2339_s8 + $0xd4] ss:$20 sps:$4 sm:$0xff]   ;;  %v2220_v13 = vld [vmem:[%s2339_s8 + $0xfc] ss:$20 sps:$4 sm:$0xff]  }
  0x1f   : > { %1826 = vmatpush3.bf16.msra.mxu0 %v2135_v15  ;;  %2111 = vmatpush3.bf16.msra.mxu1 %v2135_v15  ;;  %v2218_v12 = vld [vmem:[%s2339_s8 + $0x194] ss:$20 sps:$4 sm:$0xff]   ;;  %v2222_v14 = vld [vmem:[%s2339_s8 + $0x190] ss:$20 sps:$4 sm:$0xff]   ;;  %v2223_v15 = vld [vmem:[%s2339_s8 + $0xf8] ss:$20 sps:$4 sm:$0xff]  }
  0x20   : > { %1827 = vmatprep.subr.bf16.mxu0 %v2136_v16  ;;  %2104 = vmatprep.subr.bf16.mxu1 %v2136_v16  ;;  %v2224_v16 = vld [vmem:[%s2339_s8 + $0x1bc] ss:$20 sps:$4 sm:$0xff]  }
  0x23   : > { %1828 = vmatpush3.bf16.msra.mxu0 %v2137_v17  ;;  %2112 = vmatpush3.bf16.msra.mxu1 %v2137_v17  ;;  %v2226_v17 = vld [vmem:[%s2339_s8 + $0x124] ss:$20 sps:$4 sm:$0xff]  }
  0x24   : > { %1925 = vmatprep.subr.bf16.mxu1 %v2144_v18  ;;  %2057 = vmatprep.subr.bf16.mxu0 %v2147_v19  ;;  %v2228_v18 = vld [vmem:[%s2339_s8 + $0x1b8] ss:$20 sps:$4 sm:$0xff]  }
  0x26   : > { %1038 = vmatmul.mubr.bf16.vlgmr.msra.gmra.mrb[0].mxu0 %v2138_v20  ;;  %1134 = vmatmul.mubr.bf16.vlgmr.msra.gmra.mrb[0].mxu1 %v2141_v21  ;;  %v2230_v20 = vld [vmem:[%s2339_s8 + $0x14c] ss:$20 sps:$4 sm:$0xff]   ;;  %v2232_v21 = vld [vmem:[%s2339_s8 + $0x10] ss:$20 sps:$4 sm:$0xff]  }
  0x27   : > { %1926 = vmatpush3.bf16.msra.mxu1 %v2145_v22  ;;  %2058 = vmatpush3.bf16.msra.mxu0 %v2147_v19  ;;  %v2229_v19 = vld [vmem:[%s2339_s8 + $0x120] ss:$20 sps:$4 sm:$0xff]   ;;  %v2233_v22 = vld [vmem:[%s2339_s8 + $0x148] ss:$20 sps:$4 sm:$0xff]  }
  0x28   : > { %1927 = vmatprep.subr.bf16.mxu1 %v2146_v23  ;;  %1045 = vmatprep.mubr.bf16.mxu0 %v2149_v24  ;;  %v2234_v23 = vld [vmem:[%s2339_s8 + $0x38] ss:$20 sps:$4 sm:$0xff]   ;;  %v2235_v24 = vld [vmem:[%s2339_s8 + $0x174] ss:$20 sps:$4 sm:$0xff]  }
  0x29   : > { %1141 = vmatprep.mubr.bf16.mxu1 %v2151_v25  ;;  %2059 = vmatprep.subr.bf16.mxu0 %v2178_v35  ;;  %v2237_v25 = vld [vmem:[%s2339_s8 + $0x60] ss:$20 sps:$4 sm:$0xff]  }
  0x2b   : > { %1928 = vmatpush3.bf16.msra.mxu1 %v2148_v26  ;;  %2060 = vmatpush3.bf16.msra.mxu0 %v2178_v35  ;;  %v2238_v26 = vld [vmem:[%s2339_s8 + $0x170] ss:$20 sps:$4 sm:$0xff]   ;;  %v2249_v35 = vld [vmem:[%s2339_s8 + $0x128] ss:$20 sps:$4 sm:$0xff]  }
  0x2c   : > { %1929 = vmatprep.subr.bf16.mxu1 %v2155_v28  ;;  %2061 = vmatprep.subr.bf16.mxu0 %v2198_v47  ;;  %v2240_v28 = vld [vmem:[%s2339_s8 + $0x19c] ss:$20 sps:$4 sm:$0xff]  }
  0x2e   : > { %1046 = vmatmul.mubr.bf16.gmra.mrb[4].mxu0 %v2153_v27  ;;  %1142 = vmatmul.mubr.bf16.gmra.mrb[4].mxu1 %v2154_v29  ;;  %v2239_v27 = vld [vmem:[%s2339_s8 + $0x88] ss:$20 sps:$4 sm:$0xff]   ;;  %v2242_v29 = vld [vmem:[%s2339_s8 + $0xb0] ss:$20 sps:$4 sm:$0xff]  }
  0x2f   : > { %1930 = vmatpush3.bf16.msra.mxu1 %v2156_v30  ;;  %1053 = vmatprep.mubr.bf16.mxu0 %v2159_v32  ;;  %v2243_v30 = vld [vmem:[%s2339_s8 + $0x198] ss:$20 sps:$4 sm:$0xff]  }
  0x30   : > { %1931 = vmatprep.subr.bf16.mxu1 %v2157_v31  ;;  %1149 = vmatprep.mubr.bf16.mxu1 %v2161_v33  ;;  %v2244_v31 = vld [vmem:[%s2339_s8 + $0xd8] ss:$20 sps:$4 sm:$0xff]   ;;  %v2247_v33 = vld [vmem:[%s2339_s8 + $0x100] ss:$20 sps:$4 sm:$0xff]  }
  0x31   : > { %2062 = vmatpush3.bf16.msra.mxu0 %v2198_v47  ;;  %v2245_v32 = vld [vmem:[%s2339_s8 + $0x1c4] ss:$20 sps:$4 sm:$0xff]  }
  0x32   : > { %2063 = vmatprep.subr.bf16.mxu0 %v2217_v56  ;;  %v2264_v47 = vld [vmem:[%s2339_s8 + $0x218] ss:$20 sps:$4 sm:$0xff]  }
  0x33   : > { %1932 = vmatpush3.bf16.msra.mxu1 %v2158_v34  ;;  %v2248_v34 = vld [vmem:[%s2339_s8 + $0x1c0] ss:$20 sps:$4 sm:$0xff]  }
  0x34   : > { %1933 = vmatprep.subr.bf16.mxu1 %v2165_v37  ;;  %v2252_v37 = vld [vmem:[%s2339_s8 + $0x150] ss:$20 sps:$4 sm:$0xff]  }
  0x35   : > { %2064 = vmatpush3.bf16.msra.mxu0 %v2217_v56 }
  0x36   : > { %1054 = vmatmul.mubr.bf16.gmra.mrb[8].mxu0 %v2163_v36  ;;  %1150 = vmatmul.mubr.bf16.gmra.mrb[8].mxu1 %v2164_v38  ;;  %v2250_v36 = vld [vmem:[%s2339_s8 + $0x1ec] ss:$20 sps:$4 sm:$0xff]   ;;  %v2253_v38 = vld [vmem:[%s2339_s8 + $0x1e8] ss:$20 sps:$4 sm:$0xff]  }
  0x37   : > { %1934 = vmatpush3.bf16.msra.mxu1 %v2166_v39  ;;  %1061 = vmatprep.mubr.bf16.mxu0 %v2169_v41  ;;  %v2254_v39 = vld [vmem:[%s2339_s8 + $0x178] ss:$20 sps:$4 sm:$0xff]   ;;  %v2257_v41 = vld [vmem:[%s2339_s8 + $0x1a0] ss:$20 sps:$4 sm:$0xff]  }
  0x38   : > { %1935 = vmatprep.subr.bf16.mxu1 %v2167_v40  ;;  %1157 = vmatprep.mubr.bf16.mxu1 %v2171_v42  ;;  %v2255_v40 = vld [vmem:[%s2339_s8 + $0x214] ss:$20 sps:$4 sm:$0xff]   ;;  %v2258_v42 = vld [vmem:[%s2339_s8 + $0x210] ss:$20 sps:$4 sm:$0xff]  }
  0x3b   : > { %1936 = vmatpush3.bf16.msra.mxu1 %v2168_v43  ;;  %v2259_v43 = vld [vmem:[%s2339_s8 + $0x1c8] ss:$20 sps:$4 sm:$0xff]  }
  0x3c   : > { %1937 = vmatprep.subr.bf16.mxu1 %v2175_v46  ;;  %v2263_v46 = vld [vmem:[%s2339_s8 + $0x238] ss:$20 sps:$4 sm:$0xff]  }
  0x3e   : > { %1062 = vmatmul.mubr.bf16.gmra.mrb[12].mxu0 %v2173_v44  ;;  %1158 = vmatmul.mubr.bf16.gmra.mrb[12].mxu1 %v2174_v45  ;;  %v2260_v44 = vld [vmem:[%s2339_s8 + $0x23c] ss:$20 sps:$4 sm:$0xff]  }
  0x3f   : > { %1938 = vmatpush3.bf16.msra.mxu1 %v2176_v48  ;;  %1069 = vmatprep.mubr.bf16.mxu0 %v2180_v50  ;;  %v2262_v45 = vld [vmem:[%s2339_s8 + $0x1f0] ss:$20 sps:$4 sm:$0xff]   ;;  %v2268_v50 = vld [vmem:[%s2339_s8 + $0x260] ss:$20 sps:$4 sm:$0xff]  }
  0x40   : > { %1939 = vmatprep.subr.bf16.mxu1 %v2177_v49  ;;  %1198 = vmatprep.mubr.bf16.mxu1 %v2184_v51  ;;  %v2265_v48 = vld [vmem:[%s2339_s8 + $0x264] ss:$20 sps:$4 sm:$0xff]   ;;  %v2267_v49 = vld [vmem:[%s2339_s8 + $0x240] ss:$20 sps:$4 sm:$0xff]   ;;  %v2269_v51 = vld [vmem:[%s2339_s8 + $0x268] ss:$20 sps:$4 sm:$0xff]  }
  0x43   : > { %1940 = vmatpush3.bf16.msra.mxu1 %v2179_v52 }
  0x46   : > { %1070 = vmatmul.mubr.bf16.gmra.mrb[16].mxu0 %v2185_v54  ;;  %1199 = vmatmul.mubr.bf16.vlgmr.msra.gmra.mrb[16].mxu1 %v2182_v53 }
  0x47   : > { %1077 = vmatprep.mubr.bf16.mxu0 %v2186_v55  ;;  %1206 = vmatprep.mubr.bf16.mxu1 %v2188_v57 }
  0x4e   : > { %1078 = vmatmul.mubr.bf16.gmra.mrb[20].mxu0 %v2190_v58  ;;  %1207 = vmatmul.mubr.bf16.gmra.mrb[20].mxu1 %v2191_v59 }
  0x4f   : > { %1085 = vmatprep.mubr.bf16.mxu0 %v2192_v60  ;;  %1214 = vmatprep.mubr.bf16.mxu1 %v2194_v61 }
  0x56   : > { %1086 = vmatmul.mubr.bf16.gmra.mrb[24].mxu0 %v2196_v62  ;;  %1215 = vmatmul.mubr.bf16.gmra.mrb[24].mxu1 %v2197_v63 }
  0x57   : > { %1093 = vmatprep.mubr.bf16.mxu0 %v2199_v0  ;;  %1222 = vmatprep.mubr.bf16.mxu1 %v2201_v1 }
  0x5e   : > { %1094 = vmatmul.mubr.bf16.gmra.mrb[28].mxu0 %v2203_v2  ;;  %1223 = vmatmul.mubr.bf16.gmra.mrb[28].mxu1 %v2204_v3 }
  0x5f   : > { %1101 = vmatprep.mubr.bf16.mxu0 %v2205_v4  ;;  %1230 = vmatprep.mubr.bf16.mxu1 %v2207_v5 }
  0x66   : > { %1102 = vmatmul.mubr.bf16.gmra.mrb[32].mxu0 %v2209_v6  ;;  %1231 = vmatmul.mubr.bf16.gmra.mrb[32].mxu1 %v2210_v7 }
  0x67   : > { %1109 = vmatprep.mubr.bf16.mxu0 %v2211_v8  ;;  %1238 = vmatprep.mubr.bf16.mxu1 %v2213_v9 }
  0x6e   : > { %1110 = vmatmul.mubr.bf16.gmra.mrb[36].mxu0 %v2215_v10  ;;  %1239 = vmatmul.mubr.bf16.gmra.mrb[36].mxu1 %v2216_v11 }
  0x6f   : > { %1117 = vmatprep.mubr.bf16.mxu0 %v2218_v12  ;;  %1246 = vmatprep.mubr.bf16.mxu1 %v2220_v13 }
  0x76   : > { %1118 = vmatmul.mubr.bf16.gmra.mrb[40].mxu0 %v2222_v14  ;;  %1247 = vmatmul.mubr.bf16.gmra.mrb[40].mxu1 %v2223_v15 }
  0x77   : > { %1125 = vmatprep.mubr.bf16.mxu0 %v2224_v16  ;;  %1254 = vmatprep.mubr.bf16.mxu1 %v2226_v17 }
  0x7e   : > { %1126 = vmatmul.mubr.bf16.gmra.mrb[44].mxu0 %v2228_v18  ;;  %1255 = vmatmul.mubr.bf16.gmra.mrb[44].mxu1 %v2229_v19 }
  0x7f   : > { %1262 = vmatprep.mubr.bf16.mxu1 %v2230_v20  ;;  %2065 = vmatprep.mubr.msk.bf16.mxu0 %vm956_vm0, %v2232_v21 }
  0x86   : > { %1263 = vmatmul.mubr.bf16.gmra.mrb[48].mxu1 %v2233_v22  ;;  %2066 = vmatmul.mubr.msk.bf16.vlgmr.msra.gmra.mrb[48].mxu0 %vm956_vm0, %v2234_v23 }
  0x87   : > { %1270 = vmatprep.mubr.bf16.mxu1 %v2235_v24  ;;  %2069 = vmatprep.mubr.msk.bf16.mxu0 %vm956_vm0, %v2237_v25 }
  0x8e   : > { %1271 = vmatmul.mubr.bf16.gmra.mrb[52].mxu1 %v2238_v26  ;;  %2070 = vmatmul.mubr.msk.bf16.gmra.mrb[52].mxu0 %vm956_vm0, %v2239_v27 }
  0x8f   : > { %1278 = vmatprep.mubr.bf16.mxu1 %v2240_v28  ;;  %2073 = vmatprep.mubr.msk.bf16.mxu0 %vm956_vm0, %v2242_v29 }
  0x96   : > { %1279 = vmatmul.mubr.bf16.gmra.mrb[56].mxu1 %v2243_v30  ;;  %2074 = vmatmul.mubr.msk.bf16.gmra.mrb[56].mxu0 %vm956_vm0, %v2244_v31 }
  0x97   : > { %1286 = vmatprep.mubr.bf16.mxu1 %v2245_v32  ;;  %2077 = vmatprep.mubr.msk.bf16.mxu0 %vm956_vm0, %v2247_v33 }
  0x9e   : > { %1287 = vmatmul.mubr.bf16.gmra.mrb[60].mxu1 %v2248_v34  ;;  %2078 = vmatmul.mubr.msk.bf16.gmra.mrb[60].mxu0 %vm956_vm0, %v2249_v35 }
  0x9f   : > { %1294 = vmatprep.mubr.bf16.mxu1 %v2250_v36  ;;  %2081 = vmatprep.mubr.msk.bf16.mxu0 %vm956_vm0, %v2252_v37 }
  0xa6   : > { %1295 = vmatmul.mubr.bf16.gmra.mrb[64].mxu1 %v2253_v38  ;;  %2082 = vmatmul.mubr.msk.bf16.gmra.mrb[64].mxu0 %vm956_vm0, %v2254_v39 }
  0xa7   : > { %1302 = vmatprep.mubr.bf16.mxu1 %v2255_v40  ;;  %2085 = vmatprep.mubr.msk.bf16.mxu0 %vm956_vm0, %v2257_v41 }
  0xae   : > { %1303 = vmatmul.mubr.bf16.gmra.mrb[68].mxu1 %v2258_v42  ;;  %2086 = vmatmul.mubr.msk.bf16.gmra.mrb[68].mxu0 %vm956_vm0, %v2259_v43 }
  0xaf   : > { %1310 = vmatprep.mubr.bf16.mxu1 %v2260_v44  ;;  %2089 = vmatprep.mubr.msk.bf16.mxu0 %vm956_vm0, %v2262_v45 }
  0xb6   : > { %1311 = vmatmul.mubr.bf16.gmra.mrb[72].mxu1 %v2263_v46  ;;  %2090 = vmatmul.mubr.msk.bf16.gmra.mrb[72].mxu0 %vm956_vm0, %v2264_v47 }
  0xb7   : > { %1318 = vmatprep.mubr.bf16.mxu1 %v2265_v48  ;;  %2093 = vmatprep.mubr.msk.bf16.mxu0 %vm956_vm0, %v2267_v49 }
  0xbe   : > { %1319 = vmatmul.mubr.bf16.gmra.mrb[76].mxu1 %v2268_v50  ;;  %2094 = vmatmul.mubr.msk.bf16.gmra.mrb[76].mxu0 %vm956_vm0, %v2269_v51 }
  0xf9   : > { %v1901_v52 = vpop.f32.mrb[0].mxu1  ;;  %v1829_v53 = vpop.f32.mrb[0].mxu0 }
  0xfa   : > { %v1902_v54 = vpop.f32.mrb[1].mxu1  ;;  %v1830_v55 = vpop.f32.mrb[1].mxu0 }
  0xfb   : > { %v2518_v56 = vadd.f32 %v1902_v54, %v1901_v52  ;;  %v1904_v57 = vpop.f32.mrb[2].mxu1  ;;  %v1831_v58 = vadd.f32 %v1830_v55, %v1829_v53  ;;  %v1832_v59 = vpop.f32.mrb[2].mxu0 }
  0xfc   : > { %v1905_v60 = vpop.f32.mrb[3].mxu1  ;;  %v1833_v61 = vpop.f32.mrb[3].mxu0 }
  0xfd   : > { %v2520_v62 = vadd.f32 %v1905_v60, %v1904_v57  ;;  %v1834_v63 = vadd.f32 %v1833_v61, %v1832_v59 }
 0x101   : > { %v1907_v0 = vpop.f32.mrb[4].mxu1  ;;  %v1835_v1 = vpop.f32.mrb[4].mxu0 }
 0x102   : > { %v1908_v2 = vpop.f32.mrb[5].mxu1  ;;  %v1836_v3 = vpop.f32.mrb[5].mxu0 }
 0x103   : > { %v2522_v4 = vadd.f32 %v1908_v2, %v1907_v0  ;;  %v1910_v5 = vpop.f32.mrb[6].mxu1  ;;  %v1837_v6 = vadd.f32 %v1836_v3, %v1835_v1  ;;  %v1838_v7 = vpop.f32.mrb[6].mxu0 }
 0x104   : > { %v1911_v8 = vpop.f32.mrb[7].mxu1  ;;  %v1839_v9 = vpop.f32.mrb[7].mxu0 }
 0x105   : > { %v2524_v10 = vadd.f32 %v1911_v8, %v1910_v5  ;;  %v1840_v11 = vadd.f32 %v1839_v9, %v1838_v7 }
 0x109   : > { %v1913_v12 = vpop.f32.mrb[8].mxu1  ;;  %v1841_v13 = vpop.f32.mrb[8].mxu0 }
 0x10a   : > { %v1914_v14 = vpop.f32.mrb[9].mxu1  ;;  %v1842_v15 = vpop.f32.mrb[9].mxu0 }
 0x10b   : > { %v2526_v16 = vadd.f32 %v1914_v14, %v1913_v12  ;;  %v1916_v17 = vpop.f32.mrb[10].mxu1  ;;  %v1843_v18 = vadd.f32 %v1842_v15, %v1841_v13  ;;  %v1844_v19 = vpop.f32.mrb[10].mxu0 }
 0x10c   : > { %v1917_v20 = vpop.f32.mrb[11].mxu1  ;;  %v1845_v21 = vpop.f32.mrb[11].mxu0 }
 0x10d   : > { %v2528_v22 = vadd.f32 %v1917_v20, %v1916_v17  ;;  %v1846_v23 = vadd.f32 %v1845_v21, %v1844_v19 }
 0x111   : > { %v1919_v24 = vpop.f32.mrb[12].mxu1  ;;  %v1847_v25 = vpop.f32.mrb[12].mxu0 }
 0x112   : > { %v1920_v26 = vpop.f32.mrb[13].mxu1  ;;  %v1848_v27 = vpop.f32.mrb[13].mxu0 }
 0x113   : > { %v2530_v28 = vadd.f32 %v1920_v26, %v1919_v24  ;;  %v1922_v29 = vpop.f32.mrb[14].mxu1  ;;  %v1849_v30 = vadd.f32 %v1848_v27, %v1847_v25  ;;  %v1850_v31 = vpop.f32.mrb[14].mxu0 }
 0x114   : > { %v1923_v32 = vpop.f32.mrb[15].mxu1  ;;  %v1851_v33 = vpop.f32.mrb[15].mxu0 }
 0x115   : > { %v2532_v34 = vadd.f32 %v1923_v32, %v1922_v29  ;;  %v1852_v35 = vadd.f32 %v1851_v33, %v1850_v31 }
 0x119   : > { %v1941_v36 = vpop.f32.mrb[16].mxu1  ;;  %v1853_v37 = vpop.f32.mrb[16].mxu0 }
 0x11a   : > { %v1942_v38 = vpop.f32.mrb[17].mxu1  ;;  %v1854_v39 = vpop.f32.mrb[17].mxu0 }
 0x11b   : > { %v1943_v40 = vadd.f32 %v1942_v38, %v1941_v36  ;;  %v1944_v41 = vpop.f32.mrb[18].mxu1  ;;  %v1855_v42 = vadd.f32 %v1854_v39, %v1853_v37  ;;  %v1856_v43 = vpop.f32.mrb[18].mxu0 }
 0x11c   : > { %v1945_v44 = vpop.f32.mrb[19].mxu1  ;;  %v1857_v45 = vpop.f32.mrb[19].mxu0 }
 0x11d   : > { %v1946_v46 = vadd.f32 %v1945_v44, %v1944_v41  ;;  %v1858_v47 = vadd.f32 %v1857_v45, %v1856_v43  ;;  %v2534_v48 = vadd.f32 %v1943_v40, %v1831_v58 }
 0x11f   : > { %v2536_v49 = vadd.f32 %v1946_v46, %v1834_v63 }
 0x121   : > { %v1947_v50 = vpop.f32.mrb[20].mxu1  ;;  %v1859_v51 = vpop.f32.mrb[20].mxu0 }
 0x122   : > { %v1948_v52 = vpop.f32.mrb[21].mxu1  ;;  %v1860_v53 = vpop.f32.mrb[21].mxu0 }
 0x123   : > { %v1949_v54 = vadd.f32 %v1948_v52, %v1947_v50  ;;  %v1950_v55 = vpop.f32.mrb[22].mxu1  ;;  %v1861_v57 = vadd.f32 %v1860_v53, %v1859_v51  ;;  %v1862_v59 = vpop.f32.mrb[22].mxu0 }
 0x124   : > { %v1951_v60 = vpop.f32.mrb[23].mxu1  ;;  %v1863_v61 = vpop.f32.mrb[23].mxu0 }
 0x125   : > { %v1952_v0 = vadd.f32 %v1951_v60, %v1950_v55  ;;  %v1864_v1 = vadd.f32 %v1863_v61, %v1862_v59  ;;  %v2538_v2 = vadd.f32 %v1949_v54, %v1837_v6 }
 0x127   : > { %v2540_v3 = vadd.f32 %v1952_v0, %v1840_v11 }
 0x129   : > { %v1953_v58 = vpop.f32.mrb[24].mxu1  ;;  %v1865_v5 = vpop.f32.mrb[24].mxu0 }
 0x12a   : > { %v1954_v63 = vpop.f32.mrb[25].mxu1  ;;  %v1866_v7 = vpop.f32.mrb[25].mxu0 }
 0x12b   : > { %v1955_v8 = vadd.f32 %v1954_v63, %v1953_v58  ;;  %v1956_v9 = vpop.f32.mrb[26].mxu1  ;;  %v1867_v12 = vadd.f32 %v1866_v7, %v1865_v5  ;;  %v1868_v13 = vpop.f32.mrb[26].mxu0 }
 0x12c   : > { %v1957_v14 = vpop.f32.mrb[27].mxu1  ;;  %v1869_v15 = vpop.f32.mrb[27].mxu0 }
 0x12d   : > { %v1958_v17 = vadd.f32 %v1957_v14, %v1956_v9  ;;  %v1870_v19 = vadd.f32 %v1869_v15, %v1868_v13  ;;  %v2542_v20 = vadd.f32 %v1955_v8, %v1843_v18 }
 0x12f   : > { %v2544_v21 = vadd.f32 %v1958_v17, %v1846_v23 }
 0x131   : > { %v1959_v6 = vpop.f32.mrb[28].mxu1  ;;  %v1871_v24 = vpop.f32.mrb[28].mxu0 }
 0x132   : > { %v1960_v11 = vpop.f32.mrb[29].mxu1  ;;  %v1872_v25 = vpop.f32.mrb[29].mxu0 }
 0x133   : > { %v1961_v26 = vadd.f32 %v1960_v11, %v1959_v6  ;;  %v1962_v27 = vpop.f32.mrb[30].mxu1  ;;  %v1873_v29 = vadd.f32 %v1872_v25, %v1871_v24  ;;  %v1874_v31 = vpop.f32.mrb[30].mxu0 }
 0x134   : > { %v1963_v32 = vpop.f32.mrb[31].mxu1  ;;  %v1875_v33 = vpop.f32.mrb[31].mxu0 }
 0x135   : > { %v1964_v36 = vadd.f32 %v1963_v32, %v1962_v27  ;;  %v1876_v37 = vadd.f32 %v1875_v33, %v1874_v31  ;;  %v2546_v38 = vadd.f32 %v1961_v26, %v1849_v30 }
 0x137   : > { %v2548_v39 = vadd.f32 %v1964_v36, %v1852_v35 }
 0x139   : > { %v1965_v18 = vpop.f32.mrb[32].mxu1  ;;  %v1877_v40 = vpop.f32.mrb[32].mxu0 }
 0x13a   : > { %v1966_v23 = vpop.f32.mrb[33].mxu1  ;;  %v1878_v41 = vpop.f32.mrb[33].mxu0 }
 0x13b   : > { %v1967_v43 = vadd.f32 %v1966_v23, %v1965_v18  ;;  %v1968_v44 = vpop.f32.mrb[34].mxu1  ;;  %v2550_v45 = vadd.f32 %v1878_v41, %v1877_v40  ;;  %v1880_v46 = vpop.f32.mrb[34].mxu0 }
 0x13c   : > { %v1969_v50 = vpop.f32.mrb[35].mxu1  ;;  %v1881_v51 = vpop.f32.mrb[35].mxu0 }
 0x13d   : > { %v1970_v52 = vadd.f32 %v1969_v50, %v1968_v44  ;;  %v1882_v53 = vadd.f32 %v1881_v51, %v1880_v46  ;;  %v2552_v54 = vadd.f32 %v1967_v43, %v1855_v42 }
 0x13f   : > { %v2554_v55 = vadd.f32 %v1970_v52, %v1858_v47 }
 0x141   : > { %v1971_v30 = vpop.f32.mrb[36].mxu1  ;;  %v1883_v35 = vpop.f32.mrb[36].mxu0 }
 0x142   : > { %v1972_v59 = vpop.f32.mrb[37].mxu1  ;;  %v1884_v60 = vpop.f32.mrb[37].mxu0 }
 0x143   : > { %v1973_v61 = vadd.f32 %v1972_v59, %v1971_v30  ;;  %v1974_v0 = vpop.f32.mrb[38].mxu1  ;;  %v2556_v58 = vadd.f32 %v1884_v60, %v1883_v35  ;;  %v1886_v5 = vpop.f32.mrb[38].mxu0 }
 0x144   : > { %v1975_v63 = vpop.f32.mrb[39].mxu1  ;;  %v1887_v7 = vpop.f32.mrb[39].mxu0 }
 0x145   : > { %v1976_v8 = vadd.f32 %v1975_v63, %v1974_v0  ;;  %v1888_v9 = vadd.f32 %v1887_v7, %v1886_v5  ;;  %v2558_v13 = vadd.f32 %v1973_v61, %v1861_v57 }
 0x147   : > { %v2560_v14 = vadd.f32 %v1976_v8, %v1864_v1 }
 0x149   : > { %v1977_v42 = vpop.f32.mrb[40].mxu1  ;;  %v1889_v47 = vpop.f32.mrb[40].mxu0 }
 0x14a   : > { %v1978_v15 = vpop.f32.mrb[41].mxu1  ;;  %v1890_v17 = vpop.f32.mrb[41].mxu0 }
 0x14b   : > { %v1979_v6 = vadd.f32 %v1978_v15, %v1977_v42  ;;  %v1980_v24 = vpop.f32.mrb[42].mxu1  ;;  %v2562_v11 = vadd.f32 %v1890_v17, %v1889_v47  ;;  %v1892_v25 = vpop.f32.mrb[42].mxu0 }
 0x14c   : > { %v1981_v26 = vpop.f32.mrb[43].mxu1  ;;  %v1893_v27 = vpop.f32.mrb[43].mxu0 }
 0x14d   : > { %v1982_v31 = vadd.f32 %v1981_v26, %v1980_v24  ;;  %v2564_v32 = vadd.f32 %v1893_v27, %v1892_v25  ;;  %v2566_v33 = vadd.f32 %v1979_v6, %v1867_v12 }
 0x14f   : > { %v2568_v57 = vadd.f32 %v1982_v31, %v1870_v19 }
 0x151   : > { %v1983_v1 = vpop.f32.mrb[44].mxu1  ;;  %v1895_v36 = vpop.f32.mrb[44].mxu0 }
 0x152   : > { %v1984_v18 = vpop.f32.mrb[45].mxu1  ;;  %v1896_v40 = vpop.f32.mrb[45].mxu0 }
 0x153   : > { %v1985_v23 = vadd.f32 %v1984_v18, %v1983_v1  ;;  %v1986_v41 = vpop.f32.mrb[46].mxu1  ;;  %v2570_v43 = vadd.f32 %v1896_v40, %v1895_v36  ;;  %v1898_v44 = vpop.f32.mrb[46].mxu0 }
 0x154   : > { %v1987_v46 = vpop.f32.mrb[47].mxu1  ;;  %v1899_v50 = vpop.f32.mrb[47].mxu0 }
 0x155   : > { %v1988_v51 = vadd.f32 %v1987_v46, %v1986_v41  ;;  %v2572_v52 = vadd.f32 %v1899_v50, %v1898_v44  ;;  %v1257_v30 = vadd.f32 %v1985_v23, %v1873_v29 }
 0x157   : > { %v2574_v35 = vadd.f32 %v1988_v51, %v1876_v37 }
 0x159   : > { %v1989_v12 = vpop.f32.mrb[48].mxu1  ;;  %v2067_v19 = vpop.f32.mrb[48].mxu0 }
 0x15a   : > { %v2577_v59 = vadd.f32 %v2067_v19, %v2538_v2  ;;  %v1990_v60 = vpop.f32.mrb[49].mxu1  ;;  %v1361_v61 = vpop.f32.mrb[49].mxu0 }
 0x15b   : > { %v1991_v0 = vadd.f32 %v1990_v60, %v1989_v12  ;;  %v2580_v5 = vadd.f32 %v1361_v61, %v2534_v48  ;;  %v1992_v63 = vpop.f32.mrb[50].mxu1  ;;  %v2068_v7 = vpop.f32.mrb[50].mxu0 }
 0x15c   : > { %v2583_v8 = vadd.f32 %v2068_v7, %v2540_v3  ;;  %v1993_v42 = vpop.f32.mrb[51].mxu1  ;;  %v1364_v29 = vpop.f32.mrb[51].mxu0 }
 0x15d   : > { %v1994_v37 = vadd.f32 %v1993_v42, %v1992_v63  ;;  %v2586_v47 = vadd.f32 %v1364_v29, %v2536_v49  ;;  %v2589_v2 = vadd.f32 %v1991_v0, %v2550_v45 }
 0x15f   : > { %v2591_v15 = vadd.f32 %v1994_v37, %v1882_v53 }
 0x161   : > { %v1995_v17 = vpop.f32.mrb[52].mxu1  ;;  %v2071_v6 = vpop.f32.mrb[52].mxu0 }
 0x162   : > { %v2594_v48 = vadd.f32 %v2071_v6, %v2546_v38  ;;  %v1996_v24 = vpop.f32.mrb[53].mxu1  ;;  %v1377_v25 = vpop.f32.mrb[53].mxu0 }
 0x163   : > { %v1997_v3 = vadd.f32 %v1996_v24, %v1995_v17  ;;  %v2597_v26 = vadd.f32 %v1377_v25, %v2542_v20  ;;  %v1998_v27 = vpop.f32.mrb[54].mxu1  ;;  %v2072_v31 = vpop.f32.mrb[54].mxu0 }
 0x164   : > { %v2600_v49 = vadd.f32 %v2072_v31, %v2548_v39  ;;  %v1999_v45 = vpop.f32.mrb[55].mxu1  ;;  %v1380_v1 = vpop.f32.mrb[55].mxu0 }
 0x165   : > { %v2000_v53 = vadd.f32 %v1999_v45, %v1998_v27  ;;  %v2603_v36 = vadd.f32 %v1380_v1, %v2544_v21  ;;  %v1273_v38 = vadd.f32 %v1997_v3, %v2556_v58 }
 0x167   : > { %v1276_v18 = vadd.f32 %v2000_v53, %v1888_v9 }
 0x169   : > { %v2001_v40 = vpop.f32.mrb[56].mxu1  ;;  %v2075_v23 = vpop.f32.mrb[56].mxu0 }
 0x16a   : > { %v1402_v41 = vadd.f32 %v2075_v23, %v2558_v13  ;;  %v2002_v20 = vpop.f32.mrb[57].mxu1  ;;  %v1393_v44 = vpop.f32.mrb[57].mxu0 }
 0x16b   : > { %v2003_v46 = vadd.f32 %v2002_v20, %v2001_v40  ;;  %v1394_v50 = vadd.f32 %v1393_v44, %v2552_v54  ;;  %v2004_v39 = vpop.f32.mrb[58].mxu1  ;;  %v2076_v51 = vpop.f32.mrb[58].mxu0 }
 0x16c   : > { %v1494_v12 = vmax.f32 %v2577_v59, %v1402_v41  ;;  %v1405_v19 = vadd.f32 %v2076_v51, %v2560_v14  ;;  %v2005_v21 = vpop.f32.mrb[59].mxu1  ;;  %v1396_v60 = vpop.f32.mrb[59].mxu0 }
 0x16d   : > { %v1488_v58 = vmax.f32 %v2580_v5, %v1394_v50  ;;  %v2006_v9 = vadd.f32 %v2005_v21, %v2004_v39  ;;  %v1397_v61 = vadd.f32 %v1396_v60, %v2554_v55  ;;  %v1281_v13 = vadd.f32 %v2003_v46, %v2562_v11 }
 0x16e   : > { %v1497_v0 = vmax.f32 %v2583_v8, %v1405_v19 }
 0x16f   : > { %v1491_v63 = vmax.f32 %v2586_v47, %v1397_v61  ;;  %v1284_v54 = vadd.f32 %v2006_v9, %v2564_v32 }
 0x171   : > { %v2007_v7 = vpop.f32.mrb[60].mxu1  ;;  %v2079_v42 = vpop.f32.mrb[60].mxu0 }
 0x172   : > { %v1418_v59 = vadd.f32 %v2079_v42, %v1257_v30  ;;  %v2008_v29 = vpop.f32.mrb[61].mxu1  ;;  %v1409_v14 = vpop.f32.mrb[61].mxu0 }
 0x173   : > { %v2009_v37 = vadd.f32 %v2008_v29, %v2007_v7  ;;  %v1410_v17 = vadd.f32 %v1409_v14, %v2566_v33  ;;  %v2010_v5 = vpop.f32.mrb[62].mxu1  ;;  %v2080_v6 = vpop.f32.mrb[62].mxu0 }
 0x174   : > { %v1506_v55 = vmax.f32 %v2594_v48, %v1418_v59  ;;  %v1421_v11 = vadd.f32 %v2080_v6, %v2574_v35  ;;  %v2011_v24 = vpop.f32.mrb[63].mxu1  ;;  %v1412_v8 = vpop.f32.mrb[63].mxu0  ;;  %v1770_v6 = vld [vmem:[%s2659_s2] ss:$0 sm:$0xff] }
 0x175   : > { %v1500_v47 = vmax.f32 %v2597_v26, %v1410_v17  ;;  %v2012_v25 = vadd.f32 %v2011_v24, %v2010_v5  ;;  %v1413_v32 = vadd.f32 %v1412_v8, %v2568_v57  ;;  %v1289_v30 = vadd.f32 %v2009_v37, %v2570_v43 }
 0x176   : > { %v1509_v3 = vmax.f32 %v2600_v49, %v1421_v11 }
 0x177   : > { %v1503_v27 = vmax.f32 %v2603_v36, %v1413_v32  ;;  %v1292_v33 = vadd.f32 %v2012_v25, %v2572_v52 }
 0x179   : > { %v2013_v31 = vpop.f32.mrb[64].mxu1  ;;  %v2083_v45 = vpop.f32.mrb[64].mxu0 }
 0x17a   : > { %v1434_v48 = vadd.f32 %v2083_v45, %v1273_v38  ;;  %v2014_v1 = vpop.f32.mrb[65].mxu1  ;;  %v1425_v35 = vpop.f32.mrb[65].mxu0 }
 0x17b   : > { %v2015_v53 = vadd.f32 %v2014_v1, %v2013_v31  ;;  %v1426_v40 = vadd.f32 %v1425_v35, %v2589_v2  ;;  %v2016_v26 = vpop.f32.mrb[66].mxu1  ;;  %v2084_v23 = vpop.f32.mrb[66].mxu0 }
 0x17c   : > { %v1495_v41 = vmax.f32 %v1494_v12, %v1434_v48  ;;  %v1437_v57 = vadd.f32 %v2084_v23, %v1276_v18  ;;  %v2017_v20 = vpop.f32.mrb[67].mxu1  ;;  %v1428_v43 = vpop.f32.mrb[67].mxu0 }
 0x17d   : > { %v1489_v44 = vmax.f32 %v1488_v58, %v1426_v40  ;;  %v2018_v49 = vadd.f32 %v2017_v20, %v2016_v26  ;;  %v1429_v36 = vadd.f32 %v1428_v43, %v2591_v15  ;;  %v1297_v52 = vadd.f32 %v2015_v53, %v2518_v56 }
 0x17e   : > { %v1498_v46 = vmax.f32 %v1497_v0, %v1437_v57 }
 0x17f   : > { %v1492_v50 = vmax.f32 %v1491_v63, %v1429_v36  ;;  %v1300_v38 = vadd.f32 %v2018_v49, %v2520_v62 }
 0x181   : > { %v2019_v39 = vpop.f32.mrb[68].mxu1  ;;  %v2087_v51 = vpop.f32.mrb[68].mxu0 }
 0x182   : > { %v1450_v19 = vadd.f32 %v2087_v51, %v1289_v30  ;;  %v2020_v2 = vpop.f32.mrb[69].mxu1  ;;  %v1441_v21 = vpop.f32.mrb[69].mxu0 }
 0x183   : > { %v2021_v60 = vadd.f32 %v2020_v2, %v2019_v39  ;;  %v1442_v12 = vadd.f32 %v1441_v21, %v1281_v13  ;;  %v2022_v18 = vpop.f32.mrb[70].mxu1  ;;  %v2088_v9 = vpop.f32.mrb[70].mxu0 }
 0x184   : > { %v2629_v61 = vmax.f32 %v1506_v55, %v1450_v19  ;;  %v1453_v58 = vadd.f32 %v2088_v9, %v1292_v33  ;;  %v2023_v7 = vpop.f32.mrb[71].mxu1  ;;  %v1444_v15 = vpop.f32.mrb[71].mxu0 }
 0x185   : > { %v1501_v42 = vmax.f32 %v1500_v47, %v1442_v12  ;;  %v2024_v56 = vadd.f32 %v2023_v7, %v2022_v18  ;;  %v1445_v0 = vadd.f32 %v1444_v15, %v1284_v54  ;;  %v1305_v63 = vadd.f32 %v2021_v60, %v2522_v4 }
 0x186   : > { %v2632_v62 = vmax.f32 %v1509_v3, %v1453_v58 }
 0x187   : > { %v1504_v59 = vmax.f32 %v1503_v27, %v1445_v0  ;;  %v1308_v29 = vadd.f32 %v2024_v56, %v2524_v10 }
 0x189   : > { %v2025_v14 = vpop.f32.mrb[72].mxu1  ;;  %v2091_v37 = vpop.f32.mrb[72].mxu0 }
 0x18a   : > { %v1466_v13 = vadd.f32 %v2091_v37, %v1305_v63  ;;  %v2026_v17 = vpop.f32.mrb[73].mxu1  ;;  %v1457_v5 = vpop.f32.mrb[73].mxu0 }
 0x18b   : > { %v2027_v55 = vadd.f32 %v2026_v17, %v2025_v14  ;;  %v1458_v11 = vadd.f32 %v1457_v5, %v1297_v52  ;;  %v2028_v54 = vpop.f32.mrb[74].mxu1  ;;  %v2092_v24 = vpop.f32.mrb[74].mxu0 }
 0x18c   : > { %v1496_v4 = vmax.f32 %v1495_v41, %v1466_v13  ;;  %v1469_v8 = vadd.f32 %v2092_v24, %v1308_v29  ;;  %v2029_v47 = vpop.f32.mrb[75].mxu1  ;;  %v1460_v25 = vpop.f32.mrb[75].mxu0 }
 0x18d   : > { %v1490_v32 = vmax.f32 %v1489_v44, %v1458_v11  ;;  %v2030_v10 = vadd.f32 %v2029_v47, %v2028_v54  ;;  %v1461_v30 = vadd.f32 %v1460_v25, %v1300_v38  ;;  %v1313_v3 = vadd.f32 %v2027_v55, %v2526_v16 }
 0x18e   : > { %v1521_v27 = vadd.f32 %v1770_v6, %v1496_v4  ;;  %v1499_v33 = vmax.f32 %v1498_v46, %v1469_v8 }
 0x18f   : > { %v1519_v31 = vadd.f32 %v1770_v6, %v1490_v32  ;;  %v1493_v45 = vmax.f32 %v1492_v50, %v1461_v30  ;;  %v1316_v48 = vadd.f32 %v2030_v10, %v2528_v22 }
 0x190   : > { %v1522_v1 = vadd.f32 %v1770_v6, %v1499_v33  ;;  %v1529_v26 = vmax.f32 %v1521_v27, 0.0 }
 0x191   : > { %v1520_v35 = vadd.f32 %v1770_v6, %v1493_v45  ;;  %v2031_v53 = vpop.f32.mrb[76].mxu1  ;;  %v2095_v40 = vpop.f32.mrb[76].mxu0  ;;  %v1527_v20 = vmax.f32 %v1519_v31, 0.0 }
 0x192   : > { %v1530_v23 = vmax.f32 %v1522_v1, 0.0  ;;  %v2032_v41 = vpop.f32.mrb[77].mxu1  ;;  %v1473_v57 = vpop.f32.mrb[77].mxu0 }
 0x193   : > { %v1528_v16 = vmax.f32 %v1520_v35, 0.0  ;;  %v2033_v43 = vadd.f32 %v2032_v41, %v2031_v53  ;;  %v1474_v22 = vadd.f32 %v1473_v57, %v1313_v3  ;;  %v2034_v44 = vpop.f32.mrb[78].mxu1  ;;  %v2096_v49 = vpop.f32.mrb[78].mxu0 }
 0x194   : > { %v1798_v36 = vpack.c.bf16 %v1530_v23, %v1529_v26  ;;  %v2035_v52 = vpop.f32.mrb[79].mxu1  ;;  %v1476_v46 = vpop.f32.mrb[79].mxu0 }
 0x195   : > { %v1793_v50 = vpack.c.bf16 %v1528_v16, %v1527_v20  ;;  %v1321_v38 = vadd.f32 %v2033_v43, %v2530_v28  ;;  %v1502_v39 = vmax.f32 %v1501_v42, %v1474_v22  ;;  %v2036_v51 = vadd.f32 %v2035_v52, %v2034_v44 }
 0x196   : > { %1810 = vst [vmem:[%s2644_s21 + $0x8] sm:$0xff] %v1798_v36   ;;  %v1477_v19 = vadd.f32 %v1476_v46, %v1316_v48 }
 0x197   : > { %1794 = vst [vmem:[%s2644_s21] sm:$0xff] %v1793_v50   ;;  %v1482_v2 = vadd.f32 %v2095_v40, %v1321_v38  ;;  %v1324_v21 = vadd.f32 %v2036_v51, %v2532_v34  ;;  %v1523_v60 = vadd.f32 %v1770_v6, %v1502_v39 }
 0x198   : > { %v1505_v12 = vmax.f32 %v1504_v59, %v1477_v19 }
 0x199   : > { %v1508_v18 = vmax.f32 %v2629_v61, %v1482_v2  ;;  %v1485_v9 = vadd.f32 %v2096_v49, %v1324_v21  ;;  %v1531_v28 = vmax.f32 %v1523_v60, 0.0 }
 0x19a   : > { %v1524_v58 = vadd.f32 %v1770_v6, %v1505_v12 }
 0x19b   : > { %v1525_v7 = vadd.f32 %v1770_v6, %v1508_v18  ;;  %v1511_v15 = vmax.f32 %v2632_v62, %v1485_v9 }
 0x19c   : > { %v1532_v42 = vmax.f32 %v1524_v58, 0.0 }
 0x19d   : > { %v1526_v56 = vadd.f32 %v1770_v6, %v1511_v15  ;;  %v1533_v63 = vmax.f32 %v1525_v7, 0.0 }
 0x19e   : > { %v1803_v0 = vpack.c.bf16 %v1532_v42, %v1531_v28 }
 0x19f   : > { %v1534_v29 = vmax.f32 %v1526_v56, 0.0 }
 0x1a0   : > { %1811 = vst [vmem:[%s2644_s21 + $0x10] sm:$0xff] %v1803_v0  }
 0x1a1   : > { %v1808_v14 = vpack.c.bf16 %v1534_v29, %v1533_v63 }
 0x1a3   : > { %1812 = vst [vmem:[%s2644_s21 + $0x18] sm:$0xff] %v1808_v14  }
 0x1a4 PF: > { %s13_s12 = sadd.s32 1, %s2276_s12  }
 0x1a5   : > { %p10_p4 = scmp.ge.s32.totalorder %s13_s12, 4  }
 0x1a7   :  { %12 = sbr.rel (!%p10_p4) target bundleno = 1 (0x1), region = 62 }

// kernel: tinynet_forward.8
= control target key start
LH: loop header
LB: loop body
LE: loop exit
PB: predicated region body
PF: predicated region fallthrough
CT: control target
= control target key end

     0   :  { %s1881_s12 = smov 0   ;;  %s2163_s0 = inlined_call_operand.vmem [shape: bf16[2,4,16,1152], index: 0, kind: input, shape index: {}]   ;;  %s2164_s1 = inlined_call_operand.vmem [shape: bf16[1152,128], index: 1, kind: input, shape index: {}]   ;;  %s2165_s2 = inlined_call_operand.vmem [shape: f32[1,128], index: 2, kind: input, shape index: {}]   ;;  %s2166_s3 = inlined_call_operand.vmem [shape: bf16[2,16,128], index: 3, kind: output, shape index: {}]  }
   0x1 LB: > { %s1379_s13 = sadd.s32 4294967295, %s1859_s12   ;;  %p1383_p0 = scmp.ge.s32.totalorder %s1859_s12, 1  ;;  %s1859_s12 = sphi %s1881_s12, %s13_s12  }
   0x2   : > { %p137_p1 = scmp.lt.s32.totalorder %s1859_s12, 3 }
   0x4   : > { %p138_p2 = pnand %p1383_p0, %p137_p1 }
   0x5   : > { %v1729_v0 = vld [vmem:[%s2164_s1 + $0x40] sm:$0xff] (!%p138_p2)   ;;  %v1733_v4 = vld [vmem:[%s2164_s1 + $0x48] sm:$0xff] (!%p138_p2)   ;;  %v1737_v8 = vld [vmem:[%s2164_s1 + $0x50] sm:$0xff] (!%p138_p2)   ;;  %p161_p3 = scmp.lt.s32.totalorder (!%p138_p2), %s1379_s13, 1 }
   0x6   : > { %141 = sbr.rel (%p138_p2) target bundleno = 333 (0x14d), region = 32  ;;  %v1730_v1 = vld [vmem:[%s2164_s1 + $0xc0] sm:$0xff] (!%p138_p2)   ;;  %1508 = vmatprep.subr.bf16.mxu0 (!%p138_p2), %v1729_v0  ;;  %v1734_v5 = vld [vmem:[%s2164_s1 + $0xc8] sm:$0xff] (!%p138_p2)   ;;  %v1738_v9 = vld [vmem:[%s2164_s1 + $0xd0] sm:$0xff] (!%p138_p2)  }
   0x7   : > { %v1731_v2 = vld [vmem:[%s2164_s1] sm:$0xff] (!%p138_p2)   ;;  %1548 = vmatprep.subr.bf16.mxu1 (!%p138_p2), %v1730_v1  ;;  %v1735_v6 = vld [vmem:[%s2164_s1 + $0x8] sm:$0xff] (!%p138_p2)   ;;  %v1739_v10 = vld [vmem:[%s2164_s1 + $0x10] sm:$0xff] (!%p138_p2)  }
   0x8   : > { %v1732_v3 = vld [vmem:[%s2164_s1 + $0x80] sm:$0xff] (!%p138_p2)   ;;  %1509 = vmatpush3.bf16.msra.mxu0 (!%p138_p2), %v1731_v2  ;;  %v1736_v7 = vld [vmem:[%s2164_s1 + $0x88] sm:$0xff] (!%p138_p2)   ;;  %v1740_v11 = vld [vmem:[%s2164_s1 + $0x90] sm:$0xff] (!%p138_p2)  }
   0x9   : > { %1549 = vmatpush3.bf16.msra.mxu1 (!%p138_p2), %v1732_v3  ;;  %1510 = vmatprep.subr.bf16.mxu0 (!%p138_p2), %v1733_v4  ;;  %v1741_v12 = vld [vmem:[%s2164_s1 + $0x58] sm:$0xff] (!%p138_p2)   ;;  %v1745_v16 = vld [vmem:[%s2164_s1 + $0x60] sm:$0xff] (!%p138_p2)   ;;  %v1749_v20 = vld [vmem:[%s2164_s1 + $0x68] sm:$0xff] (!%p138_p2)  }
   0xa   : > { %1550 = vmatprep.subr.bf16.mxu1 (!%p138_p2), %v1734_v5  ;;  %v1742_v13 = vld [vmem:[%s2164_s1 + $0xd8] sm:$0xff] (!%p138_p2)   ;;  %v1746_v17 = vld [vmem:[%s2164_s1 + $0xe0] sm:$0xff] (!%p138_p2)   ;;  %v1750_v21 = vld [vmem:[%s2164_s1 + $0xe8] sm:$0xff] (!%p138_p2)  }
   0xb   : > { %v1743_v14 = vld [vmem:[%s2164_s1 + $0x18] sm:$0xff] (!%p138_p2)   ;;  %v1747_v18 = vld [vmem:[%s2164_s1 + $0x20] sm:$0xff] (!%p138_p2)   ;;  %v1751_v22 = vld [vmem:[%s2164_s1 + $0x28] sm:$0xff] (!%p138_p2)  }
   0xc   : > { %1511 = vmatpush3.bf16.msra.mxu0 (!%p138_p2), %v1735_v6  ;;  %v1744_v15 = vld [vmem:[%s2164_s1 + $0x98] sm:$0xff] (!%p138_p2)   ;;  %v1748_v19 = vld [vmem:[%s2164_s1 + $0xa0] sm:$0xff] (!%p138_p2)   ;;  %v1752_v23 = vld [vmem:[%s2164_s1 + $0xa8] sm:$0xff] (!%p138_p2)  }
   0xd   : > { %1551 = vmatpush3.bf16.msra.mxu1 %v1736_v7  ;;  %1512 = vmatprep.subr.bf16.mxu0 %v1737_v8  ;;  %s2168_s13 = smov (!%p161_p3, %s1379_s13), 1  ;;  %v1753_v24 = vld [vmem:[%s2164_s1 + $0x70] sm:$0xff]   ;;  %v1757_v28 = vld [vmem:[%s2164_s1 + $0x78] sm:$0xff]   ;;  %v1767_v36 = vld [vmem:[%s2164_s1 + $0x140] sm:$0xff]  }
   0xe   : > { %1552 = vmatprep.subr.bf16.mxu1 %v1738_v9  ;;  %v1754_v25 = vld [vmem:[%s2164_s1 + $0xf0] sm:$0xff]   ;;  %s1720_s16 = smul.u32 288, %s2168_s13  ;;  %v1758_v29 = vld [vmem:[%s2164_s1 + $0xf8] sm:$0xff]   ;;  %v1768_v37 = vld [vmem:[%s2164_s1 + $0x1c0] sm:$0xff]  }
   0xf   : > { %v1755_v26 = vld [vmem:[%s2164_s1 + $0x30] sm:$0xff]   ;;  %v1759_v30 = vld [vmem:[%s2164_s1 + $0x38] sm:$0xff]   ;;  %v1769_v38 = vld [vmem:[%s2164_s1 + $0x100] sm:$0xff]  }
  0x10   : > { %1513 = vmatpush3.bf16.msra.mxu0 %v1739_v10  ;;  %v1756_v27 = vld [vmem:[%s2164_s1 + $0xb0] sm:$0xff]   ;;  %s1989_s27 = scalar_lea.vmem %s2163_s0, %s1720_s16  ;;  %v1760_v31 = vld [vmem:[%s2164_s1 + $0xb8] sm:$0xff]   ;;  %v1770_v39 = vld [vmem:[%s2164_s1 + $0x180] sm:$0xff]   ;;  %s1500_s16 = sshll.u32 %s2168_s13, 3 }
  0x11   : > { %1553 = vmatpush3.bf16.msra.mxu1 %v1740_v11  ;;  %1514 = vmatprep.subr.bf16.mxu0 %v1741_v12  ;;  %v1761_v32 = vld [vmem:[%s1989_s27] ss:$36 sps:$4 sm:$0xff]   ;;  %v1764_v34 = vld [vmem:[%s1989_s27 + $0x8] ss:$36 sps:$4 sm:$0xff]   ;;  %v1777_v45 = vld [vmem:[%s1989_s27 + $0x54] ss:$36 sps:$4 sm:$0xff]   ;;  %s170_s19 = scalar_lea.vmem %s2166_s3, %s1500_s16 }
  0x12   : > { %1554 = vmatprep.subr.bf16.mxu1 %v1742_v13  ;;  %v1763_v33 = vld [vmem:[%s1989_s27 + $0x4] ss:$36 sps:$4 sm:$0xff]   ;;  %v1766_v35 = vld [vmem:[%s1989_s27 + $0xc] ss:$36 sps:$4 sm:$0xff]   ;;  %v1785_v52 = vld [vmem:[%s2164_s1 + $0x158] sm:$0xff]  }
  0x13   : > { %1004 = vmatprep.mubr.bf16.mxu0 %v1763_v33  ;;  %1069 = vmatprep.mubr.bf16.mxu1 %v1766_v35  ;;  %v1771_v40 = vld [vmem:[%s2164_s1 + $0x148] sm:$0xff]   ;;  %v1780_v47 = vld [vmem:[%s1989_s27 + $0x50] ss:$36 sps:$4 sm:$0xff]   ;;  %v1786_v53 = vld [vmem:[%s2164_s1 + $0x1d8] sm:$0xff]  }
  0x14   : > { %1515 = vmatpush3.bf16.msra.mxu0 %v1743_v14  ;;  %v1772_v41 = vld [vmem:[%s2164_s1 + $0x1c8] sm:$0xff]   ;;  %v1781_v48 = vld [vmem:[%s2164_s1 + $0x150] sm:$0xff]   ;;  %v1787_v54 = vld [vmem:[%s2164_s1 + $0x118] sm:$0xff]  }
  0x15   : > { %1555 = vmatpush3.bf16.msra.mxu1 %v1744_v15  ;;  %1516 = vmatprep.subr.bf16.mxu0 %v1745_v16  ;;  %v1773_v42 = vld [vmem:[%s2164_s1 + $0x108] sm:$0xff]   ;;  %v1782_v49 = vld [vmem:[%s2164_s1 + $0x1d0] sm:$0xff]   ;;  %v1788_v55 = vld [vmem:[%s2164_s1 + $0x198] sm:$0xff]  }
  0x16   : > { %1556 = vmatprep.subr.bf16.mxu1 %v1746_v17  ;;  %v1774_v43 = vld [vmem:[%s2164_s1 + $0x188] sm:$0xff]   ;;  %v1783_v50 = vld [vmem:[%s2164_s1 + $0x110] sm:$0xff]   ;;  %v1791_v57 = vld [vmem:[%s1989_s27 + $0x9c] ss:$36 sps:$4 sm:$0xff]  }
  0x17   : > { %v1775_v44 = vld [vmem:[%s1989_s27 + $0x4c] ss:$36 sps:$4 sm:$0xff]   ;;  %v1789_v56 = vld [vmem:[%s1989_s27 + $0x94] ss:$36 sps:$4 sm:$0xff]   ;;  %v1795_v60 = vld [vmem:[%s2164_s1 + $0x160] sm:$0xff]  }
  0x18   : > { %1517 = vmatpush3.bf16.msra.mxu0 %v1747_v18  ;;  %v1779_v46 = vld [vmem:[%s1989_s27 + $0x48] ss:$36 sps:$4 sm:$0xff]   ;;  %v1784_v51 = vld [vmem:[%s2164_s1 + $0x190] sm:$0xff]   ;;  %v1794_v59 = vld [vmem:[%s1989_s27 + $0x98] ss:$36 sps:$4 sm:$0xff]  }
  0x19   : > { %1557 = vmatpush3.bf16.msra.mxu1 %v1748_v19  ;;  %1518 = vmatprep.subr.bf16.mxu0 %v1749_v20  ;;  %v1793_v58 = vld [vmem:[%s1989_s27 + $0x90] ss:$36 sps:$4 sm:$0xff]   ;;  %v1796_v61 = vld [vmem:[%s2164_s1 + $0x1e0] sm:$0xff]   ;;  %v1799_v0 = vld [vmem:[%s2164_s1 + $0x168] sm:$0xff]  }
  0x1a   : > { %1558 = vmatprep.subr.bf16.mxu1 %v1750_v21  ;;  %v1797_v62 = vld [vmem:[%s2164_s1 + $0x120] sm:$0xff]   ;;  %v1800_v1 = vld [vmem:[%s2164_s1 + $0x1e8] sm:$0xff]   ;;  %v1807_v6 = vld [vmem:[%s1989_s27 + $0xd8] ss:$36 sps:$4 sm:$0xff]  }
  0x1b   : > { %v1798_v63 = vld [vmem:[%s2164_s1 + $0x1a0] sm:$0xff]   ;;  %v1801_v2 = vld [vmem:[%s2164_s1 + $0x128] sm:$0xff]   ;;  %v1809_v8 = vld [vmem:[%s2164_s1 + $0x170] sm:$0xff]  }
  0x1c   : > { %1519 = vmatpush3.bf16.msra.mxu0 %v1751_v22  ;;  %v1802_v3 = vld [vmem:[%s2164_s1 + $0x1a8] sm:$0xff]   ;;  %v1803_v4 = vld [vmem:[%s1989_s27 + $0xdc] ss:$36 sps:$4 sm:$0xff]   ;;  %v1810_v9 = vld [vmem:[%s2164_s1 + $0x1f0] sm:$0xff]  }
  0x1d   : > { %1559 = vmatpush3.bf16.msra.mxu1 %v1752_v23  ;;  %1520 = vmatprep.subr.bf16.mxu0 %v1753_v24  ;;  %v1805_v5 = vld [vmem:[%s1989_s27 + $0xe4] ss:$36 sps:$4 sm:$0xff]   ;;  %v1811_v10 = vld [vmem:[%s2164_s1 + $0x130] sm:$0xff]   ;;  %v1813_v12 = vld [vmem:[%s2164_s1 + $0x178] sm:$0xff]  }
  0x1e   : > { %1560 = vmatprep.subr.bf16.mxu1 %v1754_v25  ;;  %v1808_v7 = vld [vmem:[%s1989_s27 + $0xe0] ss:$36 sps:$4 sm:$0xff]   ;;  %v1812_v11 = vld [vmem:[%s2164_s1 + $0x1b0] sm:$0xff]   ;;  %v1814_v13 = vld [vmem:[%s2164_s1 + $0x1f8] sm:$0xff]  }
  0x1f   : > { %v1815_v14 = vld [vmem:[%s2164_s1 + $0x138] sm:$0xff]   ;;  %v1817_v16 = vld [vmem:[%s1989_s27 + $0x10] ss:$36 sps:$4 sm:$0xff]   ;;  %v1823_v20 = vld [vmem:[%s2164_s1 + $0x200] sm:$0xff]  }
  0x20   : > { %1521 = vmatpush3.bf16.msra.mxu0 %v1755_v26  ;;  %v1816_v15 = vld [vmem:[%s2164_s1 + $0x1b8] sm:$0xff]   ;;  %v1824_v21 = vld [vmem:[%s2164_s1 + $0x208] sm:$0xff]   ;;  %v1830_v25 = vld [vmem:[%s1989_s27 + $0x60] ss:$36 sps:$4 sm:$0xff]  }
  0x21   : > { %1561 = vmatpush3.bf16.msra.mxu1 %v1756_v27  ;;  %1522 = vmatprep.subr.bf16.mxu0 %v1757_v28  ;;  %v1819_v17 = vld [vmem:[%s1989_s27 + $0x14] ss:$36 sps:$4 sm:$0xff]   ;;  %v1822_v19 = vld [vmem:[%s1989_s27 + $0x1c] ss:$36 sps:$4 sm:$0xff]   ;;  %v1827_v23 = vld [vmem:[%s1989_s27 + $0x64] ss:$36 sps:$4 sm:$0xff]  }
  0x22   : > { %1562 = vmatprep.subr.bf16.mxu1 %v1758_v29  ;;  %v1820_v18 = vld [vmem:[%s1989_s27 + $0x18] ss:$36 sps:$4 sm:$0xff]   ;;  %v1831_v26 = vld [vmem:[%s2164_s1 + $0x210] sm:$0xff]   ;;  %v1833_v27 = vld [vmem:[%s1989_s27 + $0xa4] ss:$36 sps:$4 sm:$0xff]  }
  0x23   : > { %v1825_v22 = vld [vmem:[%s1989_s27 + $0x5c] ss:$36 sps:$4 sm:$0xff]   ;;  %v1835_v28 = vld [vmem:[%s1989_s27 + $0xac] ss:$36 sps:$4 sm:$0xff]  }
  0x24   : > { %1523 = vmatpush3.bf16.msra.mxu0 %v1759_v30  ;;  %v1829_v24 = vld [vmem:[%s1989_s27 + $0x58] ss:$36 sps:$4 sm:$0xff]   ;;  %v1837_v30 = vld [vmem:[%s1989_s27 + $0xa0] ss:$36 sps:$4 sm:$0xff]   ;;  %v1841_v33 = vld [vmem:[%s1989_s27 + $0xec] ss:$36 sps:$4 sm:$0xff]  }
  0x25   : > { %1563 = vmatpush3.bf16.msra.mxu1 %v1760_v31  ;;  %1588 = vmatprep.subr.bf16.mxu0 %v1767_v36  ;;  %v1832_v29 = vld [vmem:[%s2164_s1 + $0x218] sm:$0xff]   ;;  %v1838_v31 = vld [vmem:[%s1989_s27 + $0xa8] ss:$36 sps:$4 sm:$0xff]  }
  0x26   : > { %1628 = vmatprep.subr.bf16.mxu1 %v1768_v37  ;;  %v1840_v35 = vld [vmem:[%s2164_s1 + $0x228] sm:$0xff]   ;;  %v1847_v37 = vld [vmem:[%s2164_s1 + $0x230] sm:$0xff]  }
  0x27   : > { %1005 = vmatmul.mubr.bf16.vlgmr.msra.gmra.mrb[0].mxu0 %v1761_v32  ;;  %v1839_v32 = vld [vmem:[%s2164_s1 + $0x220] sm:$0xff]   ;;  %v1845_v36 = vld [vmem:[%s1989_s27 + $0xe8] ss:$36 sps:$4 sm:$0xff]  }
  0x28   : > { %1070 = vmatmul.mubr.bf16.vlgmr.msra.gmra.mrb[0].mxu1 %v1764_v34  ;;  %1589 = vmatpush3.bf16.msra.mxu0 %v1769_v38  ;;  %v1843_v34 = vld [vmem:[%s1989_s27 + $0xf4] ss:$36 sps:$4 sm:$0xff]  }
  0x29   : > { %1629 = vmatpush3.bf16.msra.mxu1 %v1770_v39  ;;  %1590 = vmatprep.subr.bf16.mxu0 %v1771_v40  ;;  %v1846_v38 = vld [vmem:[%s1989_s27 + $0xf0] ss:$36 sps:$4 sm:$0xff]   ;;  %v1849_v39 = vld [vmem:[%s1989_s27 + $0x20] ss:$36 sps:$4 sm:$0xff]  }
  0x2a   : > { %1630 = vmatprep.subr.bf16.mxu1 %v1772_v41  ;;  %1012 = vmatprep.mubr.bf16.mxu0 %v1775_v44  ;;  %v1850_v40 = vld [vmem:[%s1989_s27 + $0xb0] ss:$36 sps:$4 sm:$0xff]   ;;  %v1848_v41 = vld [vmem:[%s2164_s1 + $0x238] sm:$0xff]  }
  0x2b   : > { %1077 = vmatprep.mubr.bf16.mxu1 %v1777_v45 }
  0x2c   : > { %1591 = vmatpush3.bf16.msra.mxu0 %v1773_v42  ;;  %v1851_v42 = vld [vmem:[%s1989_s27 + $0x68] ss:$36 sps:$4 sm:$0xff]  }
  0x2d   : > { %1631 = vmatpush3.bf16.msra.mxu1 %v1774_v43  ;;  %1592 = vmatprep.subr.bf16.mxu0 %v1781_v48  ;;  %v1852_v43 = vld [vmem:[%s1989_s27 + $0xf8] ss:$36 sps:$4 sm:$0xff]  }
  0x2e   : > { %1632 = vmatprep.subr.bf16.mxu1 %v1782_v49 }
  0x2f   : > { %1013 = vmatmul.mubr.bf16.gmra.mrb[4].mxu0 %v1779_v46 }
  0x30   : > { %1078 = vmatmul.mubr.bf16.gmra.mrb[4].mxu1 %v1780_v47  ;;  %1593 = vmatpush3.bf16.msra.mxu0 %v1783_v50 }
  0x31   : > { %1633 = vmatpush3.bf16.msra.mxu1 %v1784_v51  ;;  %1594 = vmatprep.subr.bf16.mxu0 %v1785_v52 }
  0x32   : > { %1634 = vmatprep.subr.bf16.mxu1 %v1786_v53  ;;  %1020 = vmatprep.mubr.bf16.mxu0 %v1789_v56 }
  0x33   : > { %1085 = vmatprep.mubr.bf16.mxu1 %v1791_v57 }
  0x34   : > { %1595 = vmatpush3.bf16.msra.mxu0 %v1787_v54 }
  0x35   : > { %1635 = vmatpush3.bf16.msra.mxu1 %v1788_v55  ;;  %1596 = vmatprep.subr.bf16.mxu0 %v1795_v60 }
  0x36   : > { %1636 = vmatprep.subr.bf16.mxu1 %v1796_v61 }
  0x37   : > { %1021 = vmatmul.mubr.bf16.gmra.mrb[8].mxu0 %v1793_v58 }
  0x38   : > { %1086 = vmatmul.mubr.bf16.gmra.mrb[8].mxu1 %v1794_v59  ;;  %1597 = vmatpush3.bf16.msra.mxu0 %v1797_v62 }
  0x39   : > { %1637 = vmatpush3.bf16.msra.mxu1 %v1798_v63  ;;  %1598 = vmatprep.subr.bf16.mxu0 %v1799_v0 }
  0x3a   : > { %1638 = vmatprep.subr.bf16.mxu1 %v1800_v1  ;;  %1028 = vmatprep.mubr.bf16.mxu0 %v1803_v4 }
  0x3b   : > { %1093 = vmatprep.mubr.bf16.mxu1 %v1805_v5 }
  0x3c   : > { %1599 = vmatpush3.bf16.msra.mxu0 %v1801_v2 }
  0x3d   : > { %1639 = vmatpush3.bf16.msra.mxu1 %v1802_v3  ;;  %1600 = vmatprep.subr.bf16.mxu0 %v1809_v8 }
  0x3e   : > { %1640 = vmatprep.subr.bf16.mxu1 %v1810_v9 }
  0x3f   : > { %1029 = vmatmul.mubr.bf16.gmra.mrb[12].mxu0 %v1807_v6 }
  0x40   : > { %1094 = vmatmul.mubr.bf16.gmra.mrb[12].mxu1 %v1808_v7  ;;  %1601 = vmatpush3.bf16.msra.mxu0 %v1811_v10 }
  0x41   : > { %1641 = vmatpush3.bf16.msra.mxu1 %v1812_v11  ;;  %1602 = vmatprep.subr.bf16.mxu0 %v1813_v12 }
  0x42   : > { %1642 = vmatprep.subr.bf16.mxu1 %v1814_v13  ;;  %1134 = vmatprep.mubr.bf16.mxu0 %v1819_v17 }
  0x43   : > { %1199 = vmatprep.mubr.bf16.mxu1 %v1822_v19 }
  0x44   : > { %1603 = vmatpush3.bf16.msra.mxu0 %v1815_v14 }
  0x45   : > { %1643 = vmatpush3.bf16.msra.mxu1 %v1816_v15  ;;  %1680 = vmatprep.subr.bf16.mxu0 %v1823_v20 }
  0x46   : > { %1704 = vmatprep.subr.bf16.mxu1 %v1823_v20 }
  0x47   : > { %1135 = vmatmul.mubr.bf16.vlgmr.msra.gmra.mrb[16].mxu0 %v1817_v16 }
  0x48   : > { %1200 = vmatmul.mubr.bf16.vlgmr.msra.gmra.mrb[16].mxu1 %v1820_v18  ;;  %1681 = vmatpush3.bf16.msra.mxu0 %v1823_v20 }
  0x49   : > { %1712 = vmatpush3.bf16.msra.mxu1 %v1823_v20  ;;  %1682 = vmatprep.subr.bf16.mxu0 %v1824_v21 }
  0x4a   : > { %1705 = vmatprep.subr.bf16.mxu1 %v1824_v21  ;;  %1142 = vmatprep.mubr.bf16.mxu0 %v1825_v22 }
  0x4b   : > { %1207 = vmatprep.mubr.bf16.mxu1 %v1827_v23 }
  0x4c   : > { %1683 = vmatpush3.bf16.msra.mxu0 %v1824_v21 }
  0x4d   : > { %1713 = vmatpush3.bf16.msra.mxu1 %v1824_v21  ;;  %1684 = vmatprep.subr.bf16.mxu0 %v1831_v26 }
  0x4e   : > { %1706 = vmatprep.subr.bf16.mxu1 %v1831_v26 }
  0x4f   : > { %1143 = vmatmul.mubr.bf16.gmra.mrb[20].mxu0 %v1829_v24 }
  0x50   : > { %1208 = vmatmul.mubr.bf16.gmra.mrb[20].mxu1 %v1830_v25  ;;  %1150 = vmatprep.mubr.bf16.mxu0 %v1833_v27 }
  0x51   : > { %1685 = vmatpush3.bf16.msra.mxu0 %v1831_v26  ;;  %1215 = vmatprep.mubr.bf16.mxu1 %v1835_v28 }
  0x52   : > { %1714 = vmatpush3.bf16.msra.mxu1 %v1831_v26  ;;  %1686 = vmatprep.subr.bf16.mxu0 %v1832_v29 }
  0x53   : > { %1707 = vmatprep.subr.bf16.mxu1 %v1832_v29 }
  0x55   : > { %1687 = vmatpush3.bf16.msra.mxu0 %v1832_v29 }
  0x56   : > { %1715 = vmatpush3.bf16.msra.mxu1 %v1832_v29  ;;  %1688 = vmatprep.subr.bf16.mxu0 %v1839_v32 }
  0x57   : > { %1151 = vmatmul.mubr.bf16.gmra.mrb[24].mxu0 %v1837_v30  ;;  %1708 = vmatprep.subr.bf16.mxu1 %v1839_v32 }
  0x58   : > { %1216 = vmatmul.mubr.bf16.gmra.mrb[24].mxu1 %v1838_v31  ;;  %1158 = vmatprep.mubr.bf16.mxu0 %v1841_v33 }
  0x59   : > { %1689 = vmatpush3.bf16.msra.mxu0 %v1839_v32  ;;  %1223 = vmatprep.mubr.bf16.mxu1 %v1843_v34 }
  0x5a   : > { %1716 = vmatpush3.bf16.msra.mxu1 %v1839_v32  ;;  %1690 = vmatprep.subr.bf16.mxu0 %v1840_v35 }
  0x5b   : > { %1709 = vmatprep.subr.bf16.mxu1 %v1840_v35 }
  0x5d   : > { %1691 = vmatpush3.bf16.msra.mxu0 %v1840_v35 }
  0x5e   : > { %1717 = vmatpush3.bf16.msra.mxu1 %v1840_v35  ;;  %1692 = vmatprep.subr.bf16.mxu0 %v1847_v37 }
  0x5f   : > { %1159 = vmatmul.mubr.bf16.gmra.mrb[28].mxu0 %v1845_v36  ;;  %1710 = vmatprep.subr.bf16.mxu1 %v1847_v37 }
  0x60   : > { %1224 = vmatmul.mubr.bf16.gmra.mrb[28].mxu1 %v1846_v38  ;;  %1696 = vmatprep.mubr.bf16.mxu0 %v1849_v39 }
  0x61   : > { %1693 = vmatpush3.bf16.msra.mxu0 %v1847_v37  ;;  %1700 = vmatprep.mubr.bf16.mxu1 %v1850_v40 }
  0x62   : > { %1718 = vmatpush3.bf16.msra.mxu1 %v1847_v37  ;;  %1694 = vmatprep.subr.bf16.mxu0 %v1848_v41 }
  0x63   : > { %1711 = vmatprep.subr.bf16.mxu1 %v1848_v41 }
  0x65   : > { %1695 = vmatpush3.bf16.msra.mxu0 %v1848_v41 }
  0x66   : > { %1719 = vmatpush3.bf16.msra.mxu1 %v1848_v41 }
  0x68   : > { %1697 = vmatmul.mubr.bf16.vlgmr.msra.gmra.mrb[32].mxu0 %v1851_v42 }
  0x69   : > { %1701 = vmatmul.mubr.bf16.vlgmr.msra.gmra.mrb[32].mxu1 %v1852_v43 }
  0xfa   : > { %v1524_v44 = vpop.f32.mrb[0].mxu0 }
  0xfb   : > { %v1564_v45 = vpop.f32.mrb[0].mxu1  ;;  %v1525_v46 = vpop.f32.mrb[1].mxu0 }
  0xfc   : > { %v1526_v47 = vadd.f32 %v1525_v46, %v1524_v44  ;;  %v1565_v48 = vpop.f32.mrb[1].mxu1  ;;  %v1527_v49 = vpop.f32.mrb[2].mxu0 }
  0xfd   : > { %v1566_v50 = vadd.f32 %v1565_v48, %v1564_v45  ;;  %v1567_v51 = vpop.f32.mrb[2].mxu1  ;;  %v1528_v52 = vpop.f32.mrb[3].mxu0 }
  0xfe   : > { %v1529_v53 = vadd.f32 %v1528_v52, %v1527_v49  ;;  %v1568_v54 = vpop.f32.mrb[3].mxu1 }
  0xff   : > { %v1072_v55 = vadd.f32 %v1566_v50, %v1526_v47  ;;  %v1569_v56 = vadd.f32 %v1568_v54, %v1567_v51 }
 0x101   : > { %v1075_v57 = vadd.f32 %v1569_v56, %v1529_v53 }
 0x102   : > { %v1530_v58 = vpop.f32.mrb[4].mxu0 }
 0x103   : > { %v1570_v59 = vpop.f32.mrb[4].mxu1  ;;  %v1531_v60 = vpop.f32.mrb[5].mxu0 }
 0x104   : > { %v1532_v61 = vadd.f32 %v1531_v60, %v1530_v58  ;;  %v1571_v62 = vpop.f32.mrb[5].mxu1  ;;  %v1533_v63 = vpop.f32.mrb[6].mxu0 }
 0x105   : > { %v1572_v0 = vadd.f32 %v1571_v62, %v1570_v59  ;;  %v1573_v1 = vpop.f32.mrb[6].mxu1  ;;  %v1534_v2 = vpop.f32.mrb[7].mxu0 }
 0x106   : > { %v1535_v3 = vadd.f32 %v1534_v2, %v1533_v63  ;;  %v1574_v4 = vpop.f32.mrb[7].mxu1 }
 0x107   : > { %v1080_v5 = vadd.f32 %v1572_v0, %v1532_v61  ;;  %v1575_v6 = vadd.f32 %v1574_v4, %v1573_v1 }
 0x109   : > { %v1083_v7 = vadd.f32 %v1575_v6, %v1535_v3 }
 0x10a   : > { %v1536_v8 = vpop.f32.mrb[8].mxu0 }
 0x10b   : > { %v1576_v9 = vpop.f32.mrb[8].mxu1  ;;  %v1537_v10 = vpop.f32.mrb[9].mxu0 }
 0x10c   : > { %v1538_v11 = vadd.f32 %v1537_v10, %v1536_v8  ;;  %v1577_v12 = vpop.f32.mrb[9].mxu1  ;;  %v1539_v13 = vpop.f32.mrb[10].mxu0 }
 0x10d   : > { %v1578_v14 = vadd.f32 %v1577_v12, %v1576_v9  ;;  %v1579_v15 = vpop.f32.mrb[10].mxu1  ;;  %v1540_v16 = vpop.f32.mrb[11].mxu0 }
 0x10e   : > { %v1541_v17 = vadd.f32 %v1540_v16, %v1539_v13  ;;  %v1580_v18 = vpop.f32.mrb[11].mxu1 }
 0x10f   : > { %v1088_v19 = vadd.f32 %v1578_v14, %v1538_v11  ;;  %v1581_v20 = vadd.f32 %v1580_v18, %v1579_v15 }
 0x111   : > { %v1091_v21 = vadd.f32 %v1581_v20, %v1541_v17 }
 0x112   : > { %v1542_v22 = vpop.f32.mrb[12].mxu0 }
 0x113   : > { %v1582_v23 = vpop.f32.mrb[12].mxu1  ;;  %v1543_v24 = vpop.f32.mrb[13].mxu0 }
 0x114   : > { %v1583_v25 = vpop.f32.mrb[13].mxu1  ;;  %v1544_v26 = vadd.f32 %v1543_v24, %v1542_v22  ;;  %v1545_v28 = vpop.f32.mrb[14].mxu0 }
 0x115   : > { %v1584_v27 = vadd.f32 %v1583_v25, %v1582_v23  ;;  %v1585_v29 = vpop.f32.mrb[14].mxu1  ;;  %v1546_v30 = vpop.f32.mrb[15].mxu0 }
 0x116   : > { %v1586_v31 = vpop.f32.mrb[15].mxu1  ;;  %v1547_v33 = vadd.f32 %v1546_v30, %v1545_v28 }
 0x117   : > { %v1096_v32 = vadd.f32 %v1584_v27, %v1544_v26  ;;  %v1587_v34 = vadd.f32 %v1586_v31, %v1585_v29 }
 0x119   : > { %v1099_v35 = vadd.f32 %v1587_v34, %v1547_v33 }
 0x11a   : > { %v1604_v36 = vpop.f32.mrb[16].mxu0 }
 0x11b   : > { %v1605_v37 = vpop.f32.mrb[17].mxu0  ;;  %v1644_v38 = vpop.f32.mrb[16].mxu1 }
 0x11c   : > { %v1606_v39 = vadd.f32 %v1605_v37, %v1604_v36  ;;  %v1607_v40 = vpop.f32.mrb[18].mxu0  ;;  %v1645_v41 = vpop.f32.mrb[17].mxu1 }
 0x11d   : > { %v1608_v42 = vpop.f32.mrb[19].mxu0  ;;  %v1646_v44 = vadd.f32 %v1645_v41, %v1644_v38  ;;  %v1647_v45 = vpop.f32.mrb[18].mxu1 }
 0x11e   : > { %v1137_v43 = vadd.f32 %v1606_v39, %v1072_v55  ;;  %v1609_v46 = vadd.f32 %v1608_v42, %v1607_v40  ;;  %v1648_v47 = vpop.f32.mrb[19].mxu1 }
 0x11f   : > { %v1649_v49 = vadd.f32 %v1648_v47, %v1647_v45 }
 0x120   : > { %v1140_v48 = vadd.f32 %v1609_v46, %v1075_v57  ;;  %v1202_v50 = vadd.f32 %v1646_v44, %v1137_v43 }
 0x122   : > { %v1610_v51 = vpop.f32.mrb[20].mxu0  ;;  %v1205_v52 = vadd.f32 %v1649_v49, %v1140_v48 }
 0x123   : > { %v1611_v53 = vpop.f32.mrb[21].mxu0  ;;  %v1650_v54 = vpop.f32.mrb[20].mxu1 }
 0x124   : > { %v1612_v56 = vadd.f32 %v1611_v53, %v1610_v51  ;;  %v1613_v58 = vpop.f32.mrb[22].mxu0  ;;  %v1651_v59 = vpop.f32.mrb[21].mxu1 }
 0x125   : > { %v1614_v60 = vpop.f32.mrb[23].mxu0  ;;  %v1652_v62 = vadd.f32 %v1651_v59, %v1650_v54  ;;  %v1653_v63 = vpop.f32.mrb[22].mxu1 }
 0x126   : > { %v1145_v61 = vadd.f32 %v1612_v56, %v1080_v5  ;;  %v1615_v0 = vadd.f32 %v1614_v60, %v1613_v58  ;;  %v1654_v55 = vpop.f32.mrb[23].mxu1  ;;  %v1495_v58 = vld [vmem:[%s2165_s2] ss:$0 sm:$0xff] }
 0x127   : > { %v1655_v2 = vadd.f32 %v1654_v55, %v1653_v63 }
 0x128   : > { %v1148_v1 = vadd.f32 %v1615_v0, %v1083_v7  ;;  %v1210_v3 = vadd.f32 %v1652_v62, %v1145_v61 }
 0x12a   : > { %v1616_v4 = vpop.f32.mrb[24].mxu0  ;;  %v1213_v57 = vadd.f32 %v1655_v2, %v1148_v1 }
 0x12b   : > { %v1617_v6 = vpop.f32.mrb[25].mxu0  ;;  %v1656_v8 = vpop.f32.mrb[24].mxu1 }
 0x12c   : > { %v1618_v9 = vadd.f32 %v1617_v6, %v1616_v4  ;;  %v1619_v10 = vpop.f32.mrb[26].mxu0  ;;  %v1657_v11 = vpop.f32.mrb[25].mxu1 }
 0x12d   : > { %v1620_v12 = vpop.f32.mrb[27].mxu0  ;;  %v1658_v14 = vadd.f32 %v1657_v11, %v1656_v8  ;;  %v1659_v15 = vpop.f32.mrb[26].mxu1 }
 0x12e   : > { %v1153_v13 = vadd.f32 %v1618_v9, %v1088_v19  ;;  %v1621_v16 = vadd.f32 %v1620_v12, %v1619_v10  ;;  %v1660_v5 = vpop.f32.mrb[27].mxu1 }
 0x12f   : > { %v1661_v18 = vadd.f32 %v1660_v5, %v1659_v15 }
 0x130   : > { %v1156_v17 = vadd.f32 %v1621_v16, %v1091_v21  ;;  %v1218_v20 = vadd.f32 %v1658_v14, %v1153_v13 }
 0x132   : > { %v1622_v22 = vpop.f32.mrb[28].mxu0  ;;  %v1221_v7 = vadd.f32 %v1661_v18, %v1156_v17 }
 0x133   : > { %v1623_v23 = vpop.f32.mrb[29].mxu0  ;;  %v1662_v24 = vpop.f32.mrb[28].mxu1 }
 0x134   : > { %v1624_v25 = vadd.f32 %v1623_v23, %v1622_v22  ;;  %v1625_v26 = vpop.f32.mrb[30].mxu0  ;;  %v1663_v27 = vpop.f32.mrb[29].mxu1 }
 0x135   : > { %v1626_v28 = vpop.f32.mrb[31].mxu0  ;;  %v1664_v30 = vadd.f32 %v1663_v27, %v1662_v24  ;;  %v1665_v31 = vpop.f32.mrb[30].mxu1 }
 0x136   : > { %v1161_v29 = vadd.f32 %v1624_v25, %v1096_v32  ;;  %v1627_v33 = vadd.f32 %v1626_v28, %v1625_v26  ;;  %v1666_v19 = vpop.f32.mrb[31].mxu1 }
 0x137   : > { %v1667_v36 = vadd.f32 %v1666_v19, %v1665_v31 }
 0x138   : > { %v1164_v34 = vadd.f32 %v1627_v33, %v1099_v35  ;;  %v1226_v37 = vadd.f32 %v1664_v30, %v1161_v29 }
 0x13a   : > { %v1229_v38 = vadd.f32 %v1667_v36, %v1164_v34 }
 0x13b   : > { %v1698_v21 = vpop.f32.mrb[32].mxu0 }
 0x13c   : > { %v1275_v39 = vadd.f32 %v1698_v21, %v1210_v3  ;;  %v1702_v40 = vpop.f32.mrb[32].mxu1  ;;  %v1266_v41 = vpop.f32.mrb[33].mxu0 }
 0x13d   : > { %v1291_v42 = vadd.f32 %v1702_v40, %v1226_v37  ;;  %v1267_v43 = vadd.f32 %v1266_v41, %v1202_v50  ;;  %v1282_v44 = vpop.f32.mrb[33].mxu1  ;;  %v1699_v45 = vpop.f32.mrb[34].mxu0 }
 0x13e   : > { %v1283_v46 = vadd.f32 %v1282_v44, %v1218_v20  ;;  %v1278_v47 = vadd.f32 %v1699_v45, %v1213_v57  ;;  %v1703_v32 = vpop.f32.mrb[34].mxu1  ;;  %v1269_v48 = vpop.f32.mrb[35].mxu0 }
 0x13f   : > { %v1298_v49 = vmax.f32 %v1275_v39, %v1291_v42  ;;  %v1294_v51 = vadd.f32 %v1703_v32, %v1229_v38  ;;  %v1270_v53 = vadd.f32 %v1269_v48, %v1205_v52  ;;  %v1285_v35 = vpop.f32.mrb[35].mxu1 }
 0x140   : > { %v1297_v54 = vmax.f32 %v1267_v43, %v1283_v46  ;;  %v1286_v56 = vadd.f32 %v1285_v35, %v1221_v7 }
 0x141   : > { %v1301_v59 = vmax.f32 %v1278_v47, %v1294_v51 }
 0x142   : > { %v1299_v60 = vmax.f32 %v1297_v54, %v1298_v49  ;;  %v1300_v50 = vmax.f32 %v1270_v53, %v1286_v56 }
 0x144   : > { %v1310_v61 = vadd.f32 %v1495_v58, %v1299_v60  ;;  %v1302_v62 = vmax.f32 %v1300_v50, %v1301_v59 }
 0x146   : > { %v1311_v63 = vadd.f32 %v1495_v58, %v1302_v62  ;;  %v1312_v0 = vmax.f32 %v1310_v61, 0.0 }
 0x148   : > { %v1313_v55 = vmax.f32 %v1311_v63, 0.0 }
 0x14a   : > { %v1506_v52 = vpack.c.bf16 %v1313_v55, %v1312_v0 }
 0x14c   : > { %1507 = vst [vmem:[%s170_s19] sm:$0xff] %v1506_v52  }
 0x14d PF: > { %s13_s12 = sadd.s32 1, %s1859_s12  }
 0x14e   : > { %p10_p4 = scmp.ge.s32.totalorder %s13_s12, 4  }
 0x150   :  { %12 = sbr.rel (!%p10_p4) target bundleno = 1 (0x1), region = 62 }

// kernel: tinynet_forward.9
= control target key start
LH: loop header
LB: loop body
LE: loop exit
PB: predicated region body
PF: predicated region fallthrough
CT: control target
= control target key end

     0   :  { %v537_v36 = vlaneseq  ;;  %v5934_v37 = vmov 1966171168   ;;  %s7853_s0 = inlined_call_operand.vmem [shape: bf16[2,2048], index: 0, kind: input, shape index: {}]   ;;  %s7854_s1 = inlined_call_operand.vmem [shape: bf16[2048,512], index: 1, kind: input, shape index: {}]   ;;  %s7855_s2 = inlined_call_operand.vmem [shape: f32[1,512], index: 2, kind: input, shape index: {}]   ;;  %s7856_s3 = inlined_call_operand.vmem [shape: bf16[512,256], index: 3, kind: input, shape index: {}]   ;;  %s7857_s4 = inlined_call_operand.vmem [shape: f32[1,256], index: 4, kind: input, shape index: {}]   ;;  %s7858_s5 = inlined_call_operand.hbm [shape: f32[2,256], index: 5, kind: output, shape index: {}]  }
   0x1   :  { %v5044_v0 = vld [vmem:[%s7854_s1 + $0x4] ss:$16 sps:$4 sm:$0xff]   ;;  %v5048_v2 = vld [vmem:[%s7854_s1] ss:$16 sps:$4 sm:$0xff]   ;;  %v561_v38 = vunpack.c.l.s4 %v5934_v37 }
   0x2   :  { %v5046_v1 = vld [vmem:[%s7854_s1 + $0x204] ss:$16 sps:$4 sm:$0xff]   ;;  %3233 = vmatprep.subr.bf16.mxu1 %v5044_v0  ;;  %v5049_v3 = vld [vmem:[%s7854_s1 + $0x200] ss:$16 sps:$4 sm:$0xff]   ;;  %v6083_v42 = vshrl.u32 %v537_v36, 7 }
   0x3   :  { %3274 = vmatprep.subr.bf16.mxu0 %v5046_v1  ;;  %v5050_v4 = vld [vmem:[%s7854_s1 + $0x24] ss:$16 sps:$4 sm:$0xff]   ;;  %3234 = vmatpush1.bf16.msra.mxu1 %v5048_v2  ;;  %v5054_v6 = vld [vmem:[%s7854_s1 + $0x20] ss:$16 sps:$4 sm:$0xff]   ;;  %v562_v43 = vunpack.c.0.s8 %v561_v38  ;;  %v5167_v36 = vld [vmem:[%s7854_s1 + $0x88] ss:$16 sps:$4 sm:$0xff]  }
   0x4   :  { %3275 = vmatpush1.bf16.msra.mxu0 %v5049_v3  ;;  %v5052_v5 = vld [vmem:[%s7854_s1 + $0x224] ss:$16 sps:$4 sm:$0xff]   ;;  %3235 = vmatprep.subr.bf16.mxu1 %v5050_v4  ;;  %v5055_v7 = vld [vmem:[%s7854_s1 + $0x220] ss:$16 sps:$4 sm:$0xff]   ;;  %v5175_v38 = vld [vmem:[%s7854_s1 + $0xac] ss:$16 sps:$4 sm:$0xff]  }
   0x5   :  { %3276 = vmatprep.subr.bf16.mxu0 %v5052_v5  ;;  %v5056_v8 = vld [vmem:[%s7854_s1 + $0x44] ss:$16 sps:$4 sm:$0xff]   ;;  %v5060_v10 = vld [vmem:[%s7854_s1 + $0x40] ss:$16 sps:$4 sm:$0xff]   ;;  %v6101_v49 = vsub.s32 %v562_v43, %v6083_v42  ;;  %v5181_v43 = vld [vmem:[%s7854_s1 + $0xcc] ss:$16 sps:$4 sm:$0xff]  }
   0x6   :  { %v5058_v9 = vld [vmem:[%s7854_s1 + $0x244] ss:$16 sps:$4 sm:$0xff]   ;;  %v5061_v11 = vld [vmem:[%s7854_s1 + $0x240] ss:$16 sps:$4 sm:$0xff]  }
   0x7   :  { %3236 = vmatpush1.bf16.msra.mxu1 %v5054_v6  ;;  %v5062_v12 = vld [vmem:[%s7854_s1 + $0x64] ss:$16 sps:$4 sm:$0xff]   ;;  %v5066_v14 = vld [vmem:[%s7854_s1 + $0x60] ss:$16 sps:$4 sm:$0xff]  }
   0x8   :  { %3277 = vmatpush1.bf16.msra.mxu0 %v5055_v7  ;;  %3237 = vmatprep.subr.bf16.mxu1 %v5056_v8  ;;  %v5064_v13 = vld [vmem:[%s7854_s1 + $0x264] ss:$16 sps:$4 sm:$0xff]   ;;  %v5067_v15 = vld [vmem:[%s7854_s1 + $0x260] ss:$16 sps:$4 sm:$0xff]  }
   0x9   :  { %3278 = vmatprep.subr.bf16.mxu0 %v5058_v9  ;;  %v5068_v16 = vld [vmem:[%s7854_s1 + $0x84] ss:$16 sps:$4 sm:$0xff]   ;;  %v5072_v18 = vld [vmem:[%s7854_s1 + $0x80] ss:$16 sps:$4 sm:$0xff]  }
   0xa   :  { %v5070_v17 = vld [vmem:[%s7854_s1 + $0x284] ss:$16 sps:$4 sm:$0xff]   ;;  %v5073_v19 = vld [vmem:[%s7854_s1 + $0x280] ss:$16 sps:$4 sm:$0xff]  }
   0xb   :  { %3238 = vmatpush1.bf16.msra.mxu1 %v5060_v10  ;;  %v5074_v20 = vld [vmem:[%s7854_s1 + $0xa4] ss:$16 sps:$4 sm:$0xff]   ;;  %v5078_v22 = vld [vmem:[%s7854_s1 + $0xa0] ss:$16 sps:$4 sm:$0xff]  }
   0xc   :  { %3279 = vmatpush1.bf16.msra.mxu0 %v5061_v11  ;;  %3239 = vmatprep.subr.bf16.mxu1 %v5062_v12  ;;  %v5076_v21 = vld [vmem:[%s7854_s1 + $0x2a4] ss:$16 sps:$4 sm:$0xff]   ;;  %v5079_v23 = vld [vmem:[%s7854_s1 + $0x2a0] ss:$16 sps:$4 sm:$0xff]  }
   0xd   :  { %3280 = vmatprep.subr.bf16.mxu0 %v5064_v13  ;;  %v5080_v24 = vld [vmem:[%s7854_s1 + $0xc4] ss:$16 sps:$4 sm:$0xff]   ;;  %v5084_v26 = vld [vmem:[%s7854_s1 + $0xc0] ss:$16 sps:$4 sm:$0xff]  }
   0xe   :  { %v5082_v25 = vld [vmem:[%s7854_s1 + $0x2c4] ss:$16 sps:$4 sm:$0xff]   ;;  %v5085_v27 = vld [vmem:[%s7854_s1 + $0x2c0] ss:$16 sps:$4 sm:$0xff]  }
   0xf   :  { %3240 = vmatpush1.bf16.msra.mxu1 %v5066_v14  ;;  %v5086_v28 = vld [vmem:[%s7854_s1 + $0xe4] ss:$16 sps:$4 sm:$0xff]   ;;  %v5090_v30 = vld [vmem:[%s7854_s1 + $0xe0] ss:$16 sps:$4 sm:$0xff]  }
  0x10   :  { %3281 = vmatpush1.bf16.msra.mxu0 %v5067_v15  ;;  %3241 = vmatprep.subr.bf16.mxu1 %v5068_v16  ;;  %v5088_v29 = vld [vmem:[%s7854_s1 + $0x2e4] ss:$16 sps:$4 sm:$0xff]   ;;  %v5091_v31 = vld [vmem:[%s7854_s1 + $0x2e0] ss:$16 sps:$4 sm:$0xff]   ;;  %v5145_v15 = vld [vmem:[%s7854_s1 + $0xc] ss:$16 sps:$4 sm:$0xff]  }
  0x11   :  { %3282 = vmatprep.subr.bf16.mxu0 %v5070_v17  ;;  %v5092_v32 = vld [vmem:[%s7854_s1 + $0x104] ss:$16 sps:$4 sm:$0xff]   ;;  %v5096_v34 = vld [vmem:[%s7854_s1 + $0x100] ss:$16 sps:$4 sm:$0xff]  }
  0x12   :  { %v5094_v33 = vld [vmem:[%s7854_s1 + $0x304] ss:$16 sps:$4 sm:$0xff]   ;;  %v5097_v35 = vld [vmem:[%s7854_s1 + $0x300] ss:$16 sps:$4 sm:$0xff]  }
  0x13   :  { %3242 = vmatpush1.bf16.msra.mxu1 %v5072_v18  ;;  %v5098_v39 = vld [vmem:[%s7854_s1 + $0x124] ss:$16 sps:$4 sm:$0xff]   ;;  %v5102_v41 = vld [vmem:[%s7854_s1 + $0x120] ss:$16 sps:$4 sm:$0xff]  }
  0x14   :  { %3283 = vmatpush1.bf16.msra.mxu0 %v5073_v19  ;;  %3243 = vmatprep.subr.bf16.mxu1 %v5074_v20  ;;  %v5100_v40 = vld [vmem:[%s7854_s1 + $0x324] ss:$16 sps:$4 sm:$0xff]   ;;  %v5103_v44 = vld [vmem:[%s7854_s1 + $0x320] ss:$16 sps:$4 sm:$0xff]   ;;  %v5143_v19 = vld [vmem:[%s7854_s1 + $0x8] ss:$16 sps:$4 sm:$0xff]  }
  0x15   :  { %3284 = vmatprep.subr.bf16.mxu0 %v5076_v21  ;;  %v5104_v45 = vld [vmem:[%s7854_s1 + $0x144] ss:$16 sps:$4 sm:$0xff]   ;;  %v5108_v47 = vld [vmem:[%s7854_s1 + $0x140] ss:$16 sps:$4 sm:$0xff]   ;;  %v5151_v21 = vld [vmem:[%s7854_s1 + $0x2c] ss:$16 sps:$4 sm:$0xff]  }
  0x16   :  { %v5106_v46 = vld [vmem:[%s7854_s1 + $0x344] ss:$16 sps:$4 sm:$0xff]   ;;  %v5109_v48 = vld [vmem:[%s7854_s1 + $0x340] ss:$16 sps:$4 sm:$0xff]  }
  0x17   :  { %3244 = vmatpush1.bf16.msra.mxu1 %v5078_v22  ;;  %v5110_v50 = vld [vmem:[%s7854_s1 + $0x164] ss:$16 sps:$4 sm:$0xff]   ;;  %v5114_v53 = vld [vmem:[%s7854_s1 + $0x160] ss:$16 sps:$4 sm:$0xff]  }
  0x18   :  { %3285 = vmatpush1.bf16.msra.mxu0 %v5079_v23  ;;  %3245 = vmatprep.subr.bf16.mxu1 %v5080_v24  ;;  %v5112_v51 = vld [vmem:[%s7854_s1 + $0x364] ss:$16 sps:$4 sm:$0xff]   ;;  %v5115_v55 = vld [vmem:[%s7854_s1 + $0x360] ss:$16 sps:$4 sm:$0xff]   ;;  %v5149_v24 = vld [vmem:[%s7854_s1 + $0x28] ss:$16 sps:$4 sm:$0xff]  }
  0x19   :  { %3286 = vmatprep.subr.bf16.mxu0 %v5082_v25  ;;  %v21_v52 = vld [vmem:[%s7853_s0] sm:$0xff] }
  0x1a   :  { %v566_v54 = vrot.slane %v21_v52, %v6101_v49  ;;  %v5116_v56 = vld [vmem:[%s7854_s1 + $0x184] ss:$16 sps:$4 sm:$0xff]   ;;  %v5120_v59 = vld [vmem:[%s7854_s1 + $0x180] ss:$16 sps:$4 sm:$0xff]   ;;  %v559_v5 = vcombine.high %v21_v52, %v21_v52  ;;  %v5193_v52 = vld [vmem:[%s7854_s1 + $0x10c] ss:$16 sps:$4 sm:$0xff]  }
  0x1b   :  { %3246 = vmatpush1.bf16.msra.mxu1 %v5084_v26  ;;  %v5118_v57 = vld [vmem:[%s7854_s1 + $0x384] ss:$16 sps:$4 sm:$0xff]   ;;  %v5121_v61 = vld [vmem:[%s7854_s1 + $0x380] ss:$16 sps:$4 sm:$0xff]   ;;  %v5157_v26 = vld [vmem:[%s7854_s1 + $0x4c] ss:$16 sps:$4 sm:$0xff]  }
  0x1c   :  { %3287 = vmatpush1.bf16.msra.mxu0 %v5085_v27  ;;  %3247 = vmatprep.subr.bf16.mxu1 %v5086_v28  ;;  %v574_v58 = vcombine.high %v566_v54, %v566_v54  ;;  %v5122_v62 = vld [vmem:[%s7854_s1 + $0x1a4] ss:$16 sps:$4 sm:$0xff]   ;;  %v5126_v1 = vld [vmem:[%s7854_s1 + $0x1a0] ss:$16 sps:$4 sm:$0xff]   ;;  %v6166_v10 = vrot.slane %v559_v5, %v6101_v49  ;;  %v6172_v12 = vrot.slane %v566_v54, %v6101_v49  ;;  %v5155_v28 = vld [vmem:[%s7854_s1 + $0x48] ss:$16 sps:$4 sm:$0xff]  }
  0x1d   :  { %3288 = vmatprep.subr.bf16.mxu0 %v5088_v29  ;;  %v5124_v63 = vld [vmem:[%s7854_s1 + $0x3a4] ss:$16 sps:$4 sm:$0xff]   ;;  %v5127_v2 = vld [vmem:[%s7854_s1 + $0x3a0] ss:$16 sps:$4 sm:$0xff]   ;;  %v5191_v54 = vld [vmem:[%s7854_s1 + $0x108] ss:$16 sps:$4 sm:$0xff]  }
  0x1e   :  { %v596_v60 = vrot.slane %v574_v58, %v6101_v49  ;;  %v5128_v3 = vld [vmem:[%s7854_s1 + $0x1c4] ss:$16 sps:$4 sm:$0xff]   ;;  %v5132_v6 = vld [vmem:[%s7854_s1 + $0x1c0] ss:$16 sps:$4 sm:$0xff]   ;;  %v575_v16 = vcombine.high %v6166_v10, %v6166_v10  ;;  %v6190_v18 = vcombine.high %v6172_v12, %v6172_v12  ;;  %v5197_v58 = vld [vmem:[%s7854_s1 + $0x128] ss:$16 sps:$4 sm:$0xff]  }
  0x1f   :  { %3248 = vmatpush1.bf16.msra.mxu1 %v5090_v30  ;;  %v5130_v4 = vld [vmem:[%s7854_s1 + $0x3c4] ss:$16 sps:$4 sm:$0xff]   ;;  %v5133_v7 = vld [vmem:[%s7854_s1 + $0x3c0] ss:$16 sps:$4 sm:$0xff]   ;;  %v5163_v30 = vld [vmem:[%s7854_s1 + $0x6c] ss:$16 sps:$4 sm:$0xff]  }
  0x20   :  { %3289 = vmatpush1.bf16.msra.mxu0 %v5091_v31  ;;  %3249 = vmatprep.subr.bf16.mxu1 %v5092_v32  ;;  %v6138_v0 = vcombine.high %v596_v60, %v596_v60  ;;  %v5134_v8 = vld [vmem:[%s7854_s1 + $0x1e4] ss:$16 sps:$4 sm:$0xff]   ;;  %v5138_v11 = vld [vmem:[%s7854_s1 + $0x1e0] ss:$16 sps:$4 sm:$0xff]   ;;  %v6202_v22 = vrot.slane %v575_v16, %v6101_v49  ;;  %v5161_v32 = vld [vmem:[%s7854_s1 + $0x68] ss:$16 sps:$4 sm:$0xff]  }
  0x21   :  { %3290 = vmatprep.subr.bf16.mxu0 %v5094_v33  ;;  %3265 = vmatprep.mubr.bf16.mxu1 %v596_v60  ;;  %v5136_v9 = vld [vmem:[%s7854_s1 + $0x3e4] ss:$16 sps:$4 sm:$0xff]   ;;  %v5139_v13 = vld [vmem:[%s7854_s1 + $0x3e0] ss:$16 sps:$4 sm:$0xff]   ;;  %v5217_v5 = vld [vmem:[%s7854_s1 + $0x18c] ss:$16 sps:$4 sm:$0xff]  }
  0x22   :  { %3306 = vmatprep.mubr.bf16.mxu0 %v6138_v0  ;;  %v5142_v14 = vld [vmem:[%s7854_s1 + $0x404] ss:$16 sps:$4 sm:$0xff]   ;;  %v5140_v17 = vld [vmem:[%s7854_s1 + $0x400] ss:$16 sps:$4 sm:$0xff]  }
  0x23   :  { %3250 = vmatpush1.bf16.msra.mxu1 %v5096_v34  ;;  %v5148_v20 = vld [vmem:[%s7854_s1 + $0x424] ss:$16 sps:$4 sm:$0xff]   ;;  %v5146_v23 = vld [vmem:[%s7854_s1 + $0x420] ss:$16 sps:$4 sm:$0xff]   ;;  %v5169_v34 = vld [vmem:[%s7854_s1 + $0x8c] ss:$16 sps:$4 sm:$0xff]  }
  0x24   :  { %3291 = vmatpush1.bf16.msra.mxu0 %v5097_v35  ;;  %3251 = vmatprep.subr.bf16.mxu1 %v5098_v39  ;;  %v5154_v25 = vld [vmem:[%s7854_s1 + $0x444] ss:$16 sps:$4 sm:$0xff]   ;;  %v5152_v27 = vld [vmem:[%s7854_s1 + $0x440] ss:$16 sps:$4 sm:$0xff]  }
  0x25   :  { %3292 = vmatprep.subr.bf16.mxu0 %v5100_v40  ;;  %v5160_v29 = vld [vmem:[%s7854_s1 + $0x464] ss:$16 sps:$4 sm:$0xff]   ;;  %v5158_v31 = vld [vmem:[%s7854_s1 + $0x460] ss:$16 sps:$4 sm:$0xff]   ;;  %v5173_v40 = vld [vmem:[%s7854_s1 + $0xa8] ss:$16 sps:$4 sm:$0xff]  }
  0x26   :  { %v5166_v33 = vld [vmem:[%s7854_s1 + $0x484] ss:$16 sps:$4 sm:$0xff]   ;;  %v5164_v35 = vld [vmem:[%s7854_s1 + $0x480] ss:$16 sps:$4 sm:$0xff]  }
  0x27   :  { %3252 = vmatpush1.bf16.msra.mxu1 %v5102_v41  ;;  %v5172_v37 = vld [vmem:[%s7854_s1 + $0x4a4] ss:$16 sps:$4 sm:$0xff]   ;;  %v5170_v39 = vld [vmem:[%s7854_s1 + $0x4a0] ss:$16 sps:$4 sm:$0xff]  }
  0x28   :  { %3293 = vmatpush1.bf16.msra.mxu0 %v5103_v44  ;;  %3253 = vmatprep.subr.bf16.mxu1 %v5104_v45  ;;  %v5178_v41 = vld [vmem:[%s7854_s1 + $0x4c4] ss:$16 sps:$4 sm:$0xff]   ;;  %v5176_v44 = vld [vmem:[%s7854_s1 + $0x4c0] ss:$16 sps:$4 sm:$0xff]   ;;  %v5179_v45 = vld [vmem:[%s7854_s1 + $0xc8] ss:$16 sps:$4 sm:$0xff]  }
  0x29   :  { %3294 = vmatprep.subr.bf16.mxu0 %v5106_v46  ;;  %v5184_v46 = vld [vmem:[%s7854_s1 + $0x4e4] ss:$16 sps:$4 sm:$0xff]   ;;  %v5224_v16 = vld [vmem:[%s7854_s1 + $0x5c0] ss:$16 sps:$4 sm:$0xff]  }
  0x2b   :  { %3254 = vmatpush1.bf16.msra.mxu1 %v5108_v47  ;;  %v5187_v47 = vld [vmem:[%s7854_s1 + $0xec] ss:$16 sps:$4 sm:$0xff]  }
  0x2c   :  { %3295 = vmatpush1.bf16.msra.mxu0 %v5109_v48  ;;  %3255 = vmatprep.subr.bf16.mxu1 %v5110_v50  ;;  %v5182_v48 = vld [vmem:[%s7854_s1 + $0x4e0] ss:$16 sps:$4 sm:$0xff]   ;;  %v5185_v50 = vld [vmem:[%s7854_s1 + $0xe8] ss:$16 sps:$4 sm:$0xff]  }
  0x2d   :  { %3296 = vmatprep.subr.bf16.mxu0 %v5112_v51  ;;  %v5190_v51 = vld [vmem:[%s7854_s1 + $0x504] ss:$16 sps:$4 sm:$0xff]  }
  0x2f   :  { %3256 = vmatpush1.bf16.msra.mxu1 %v5114_v53  ;;  %v5188_v53 = vld [vmem:[%s7854_s1 + $0x500] ss:$16 sps:$4 sm:$0xff]  }
  0x30   :  { %3297 = vmatpush1.bf16.msra.mxu0 %v5115_v55  ;;  %3257 = vmatprep.subr.bf16.mxu1 %v5116_v56  ;;  %v5196_v55 = vld [vmem:[%s7854_s1 + $0x524] ss:$16 sps:$4 sm:$0xff]   ;;  %v5199_v56 = vld [vmem:[%s7854_s1 + $0x12c] ss:$16 sps:$4 sm:$0xff]  }
  0x31   :  { %3298 = vmatprep.subr.bf16.mxu0 %v5118_v57  ;;  %v5194_v57 = vld [vmem:[%s7854_s1 + $0x520] ss:$16 sps:$4 sm:$0xff]  }
  0x33   :  { %3258 = vmatpush1.bf16.msra.mxu1 %v5120_v59  ;;  %v5202_v59 = vld [vmem:[%s7854_s1 + $0x544] ss:$16 sps:$4 sm:$0xff]  }
  0x34   :  { %3299 = vmatpush1.bf16.msra.mxu0 %v5121_v61  ;;  %3259 = vmatprep.subr.bf16.mxu1 %v5122_v62  ;;  %v5200_v61 = vld [vmem:[%s7854_s1 + $0x540] ss:$16 sps:$4 sm:$0xff]   ;;  %v5203_v62 = vld [vmem:[%s7854_s1 + $0x148] ss:$16 sps:$4 sm:$0xff]  }
  0x35   :  { %3300 = vmatprep.subr.bf16.mxu0 %v5124_v63  ;;  %v5208_v63 = vld [vmem:[%s7854_s1 + $0x564] ss:$16 sps:$4 sm:$0xff]  }
  0x37   :  { %3260 = vmatpush1.bf16.msra.mxu1 %v5126_v1  ;;  %v5211_v1 = vld [vmem:[%s7854_s1 + $0x16c] ss:$16 sps:$4 sm:$0xff]  }
  0x38   :  { %3301 = vmatpush1.bf16.msra.mxu0 %v5127_v2  ;;  %3261 = vmatprep.subr.bf16.mxu1 %v5128_v3  ;;  %v5206_v2 = vld [vmem:[%s7854_s1 + $0x560] ss:$16 sps:$4 sm:$0xff]   ;;  %v5209_v3 = vld [vmem:[%s7854_s1 + $0x168] ss:$16 sps:$4 sm:$0xff]  }
  0x39   :  { %3302 = vmatprep.subr.bf16.mxu0 %v5130_v4  ;;  %v5214_v4 = vld [vmem:[%s7854_s1 + $0x584] ss:$16 sps:$4 sm:$0xff]  }
  0x3b   :  { %3262 = vmatpush1.bf16.msra.mxu1 %v5132_v6  ;;  %v5212_v6 = vld [vmem:[%s7854_s1 + $0x580] ss:$16 sps:$4 sm:$0xff]  }
  0x3c   :  { %3303 = vmatpush1.bf16.msra.mxu0 %v5133_v7  ;;  %3263 = vmatprep.subr.bf16.mxu1 %v5134_v8  ;;  %v5215_v7 = vld [vmem:[%s7854_s1 + $0x188] ss:$16 sps:$4 sm:$0xff]   ;;  %v5220_v8 = vld [vmem:[%s7854_s1 + $0x5a4] ss:$16 sps:$4 sm:$0xff]  }
  0x3d   :  { %3304 = vmatprep.subr.bf16.mxu0 %v5136_v9  ;;  %v5223_v9 = vld [vmem:[%s7854_s1 + $0x1ac] ss:$16 sps:$4 sm:$0xff]  }
  0x3f   :  { %3264 = vmatpush1.bf16.msra.mxu1 %v5138_v11  ;;  %v5218_v11 = vld [vmem:[%s7854_s1 + $0x5a0] ss:$16 sps:$4 sm:$0xff]  }
  0x40   :  { %3305 = vmatpush1.bf16.msra.mxu0 %v5139_v13  ;;  %3561 = vmatprep.subr.bf16.mxu1 %v5145_v15  ;;  %v5221_v13 = vld [vmem:[%s7854_s1 + $0x1a8] ss:$16 sps:$4 sm:$0xff]   ;;  %v5229_v15 = vld [vmem:[%s7854_s1 + $0x1cc] ss:$16 sps:$4 sm:$0xff]  }
  0x41   :  { %3315 = vmatprep.subr.bf16.mxu0 %v5142_v14  ;;  %v5226_v14 = vld [vmem:[%s7854_s1 + $0x5c4] ss:$16 sps:$4 sm:$0xff]  }
  0x42   :  { %3266 = vmatmul.mubr.bf16.vlgmr.msra.gmra.mrb[0].mxu1 %v6172_v12 }
  0x43   :  { %3307 = vmatmul.mubr.bf16.vlgmr.msra.gmra.mrb[0].mxu0 %v6190_v18  ;;  %3562 = vmatpush1.bf16.msra.mxu1 %v5143_v19  ;;  %v5232_v19 = vld [vmem:[%s7854_s1 + $0x5e4] ss:$16 sps:$4 sm:$0xff]  }
  0x44   :  { %3316 = vmatpush1.bf16.msra.mxu0 %v5140_v17  ;;  %3563 = vmatprep.subr.bf16.mxu1 %v5151_v21  ;;  %v5227_v17 = vld [vmem:[%s7854_s1 + $0x1c8] ss:$16 sps:$4 sm:$0xff]   ;;  %v5230_v21 = vld [vmem:[%s7854_s1 + $0x5e0] ss:$16 sps:$4 sm:$0xff]  }
  0x45   :  { %3317 = vmatprep.subr.bf16.mxu0 %v5148_v20  ;;  %3347 = vmatprep.mubr.bf16.mxu0 %v6202_v22  ;;  %v5235_v20 = vld [vmem:[%s7854_s1 + $0x1ec] ss:$16 sps:$4 sm:$0xff]  }
  0x46   :  { %3593 = vmatprep.mubr.bf16.mxu1 %v596_v60  ;;  %v5205_v60 = vld [vmem:[%s7854_s1 + $0x14c] ss:$16 sps:$4 sm:$0xff]  }
  0x47   :  { %3564 = vmatpush1.bf16.msra.mxu1 %v5149_v24  ;;  %v5239_v24 = vld [vmem:[%s7854_s1 + $0x604] ss:$16 sps:$4 sm:$0xff]  }
  0x48   :  { %3318 = vmatpush1.bf16.msra.mxu0 %v5146_v23  ;;  %3565 = vmatprep.subr.bf16.mxu1 %v5157_v26  ;;  %v5233_v23 = vld [vmem:[%s7854_s1 + $0x1e8] ss:$16 sps:$4 sm:$0xff]   ;;  %v5237_v26 = vld [vmem:[%s7854_s1 + $0x600] ss:$16 sps:$4 sm:$0xff]  }
  0x49   :  { %3319 = vmatprep.subr.bf16.mxu0 %v5154_v25  ;;  %v5242_v25 = vld [vmem:[%s7854_s1 + $0x20c] ss:$16 sps:$4 sm:$0xff]  }
  0x4b   :  { %3566 = vmatpush1.bf16.msra.mxu1 %v5155_v28  ;;  %v5240_v28 = vld [vmem:[%s7854_s1 + $0x208] ss:$16 sps:$4 sm:$0xff]  }
  0x4c   :  { %3320 = vmatpush1.bf16.msra.mxu0 %v5152_v27  ;;  %3567 = vmatprep.subr.bf16.mxu1 %v5163_v30  ;;  %v6392_v27 = vrot.slane %v6166_v10, %v6101_v49  ;;  %v5248_v30 = vld [vmem:[%s7854_s1 + $0x22c] ss:$16 sps:$4 sm:$0xff]   ;;  %v6405_v10 = vcombine.high %v6202_v22, %v6202_v22 }
  0x4d   :  { %3321 = vmatprep.subr.bf16.mxu0 %v5160_v29  ;;  %v5245_v29 = vld [vmem:[%s7854_s1 + $0x624] ss:$16 sps:$4 sm:$0xff]  }
  0x4f   :  { %3568 = vmatpush1.bf16.msra.mxu1 %v5161_v32  ;;  %v5246_v32 = vld [vmem:[%s7854_s1 + $0x228] ss:$16 sps:$4 sm:$0xff]  }
  0x50   :  { %3322 = vmatpush1.bf16.msra.mxu0 %v5158_v31  ;;  %3569 = vmatprep.subr.bf16.mxu1 %v5169_v34  ;;  %v5243_v31 = vld [vmem:[%s7854_s1 + $0x620] ss:$16 sps:$4 sm:$0xff]  }
  0x51   :  { %3323 = vmatprep.subr.bf16.mxu0 %v5166_v33  ;;  %v5251_v33 = vld [vmem:[%s7854_s1 + $0x644] ss:$16 sps:$4 sm:$0xff]   ;;  %v5249_v34 = vld [vmem:[%s7854_s1 + $0x640] ss:$16 sps:$4 sm:$0xff]  }
  0x53   :  { %3570 = vmatpush1.bf16.msra.mxu1 %v5167_v36  ;;  %v5257_v36 = vld [vmem:[%s7854_s1 + $0x664] ss:$16 sps:$4 sm:$0xff]  }
  0x54   :  { %3324 = vmatpush1.bf16.msra.mxu0 %v5164_v35  ;;  %3571 = vmatprep.subr.bf16.mxu1 %v5175_v38  ;;  %v5252_v35 = vld [vmem:[%s7854_s1 + $0x248] ss:$16 sps:$4 sm:$0xff]  }
  0x55   :  { %3325 = vmatprep.subr.bf16.mxu0 %v5172_v37  ;;  %v5255_v37 = vld [vmem:[%s7854_s1 + $0x660] ss:$16 sps:$4 sm:$0xff]   ;;  %v5258_v38 = vld [vmem:[%s7854_s1 + $0x268] ss:$16 sps:$4 sm:$0xff]  }
  0x57   :  { %3572 = vmatpush1.bf16.msra.mxu1 %v5173_v40  ;;  %v5266_v40 = vld [vmem:[%s7854_s1 + $0x28c] ss:$16 sps:$4 sm:$0xff]  }
  0x58   :  { %3326 = vmatpush1.bf16.msra.mxu0 %v5170_v39  ;;  %3573 = vmatprep.subr.bf16.mxu1 %v5181_v43  ;;  %v5263_v39 = vld [vmem:[%s7854_s1 + $0x684] ss:$16 sps:$4 sm:$0xff]   ;;  %v5264_v43 = vld [vmem:[%s7854_s1 + $0x288] ss:$16 sps:$4 sm:$0xff]  }
  0x59   :  { %3327 = vmatprep.subr.bf16.mxu0 %v5178_v41  ;;  %v5261_v41 = vld [vmem:[%s7854_s1 + $0x680] ss:$16 sps:$4 sm:$0xff]  }
  0x5b   :  { %3574 = vmatpush1.bf16.msra.mxu1 %v5179_v45  ;;  %v5272_v45 = vld [vmem:[%s7854_s1 + $0x2ac] ss:$16 sps:$4 sm:$0xff]  }
  0x5c   :  { %3328 = vmatpush1.bf16.msra.mxu0 %v5176_v44  ;;  %3575 = vmatprep.subr.bf16.mxu1 %v5187_v47  ;;  %v5269_v44 = vld [vmem:[%s7854_s1 + $0x6a4] ss:$16 sps:$4 sm:$0xff]   ;;  %v5270_v47 = vld [vmem:[%s7854_s1 + $0x2a8] ss:$16 sps:$4 sm:$0xff]  }
  0x5d   :  { %3329 = vmatprep.subr.bf16.mxu0 %v5184_v46  ;;  %v5267_v46 = vld [vmem:[%s7854_s1 + $0x6a0] ss:$16 sps:$4 sm:$0xff]  }
  0x5f   :  { %3576 = vmatpush1.bf16.msra.mxu1 %v5185_v50  ;;  %v5278_v50 = vld [vmem:[%s7854_s1 + $0x2cc] ss:$16 sps:$4 sm:$0xff]  }
  0x60   :  { %3330 = vmatpush1.bf16.msra.mxu0 %v5182_v48  ;;  %3577 = vmatprep.subr.bf16.mxu1 %v5193_v52  ;;  %v5275_v48 = vld [vmem:[%s7854_s1 + $0x6c4] ss:$16 sps:$4 sm:$0xff]   ;;  %v5276_v52 = vld [vmem:[%s7854_s1 + $0x2c8] ss:$16 sps:$4 sm:$0xff]  }
  0x61   :  { %3331 = vmatprep.subr.bf16.mxu0 %v5190_v51  ;;  %v5273_v51 = vld [vmem:[%s7854_s1 + $0x6c0] ss:$16 sps:$4 sm:$0xff]  }
  0x63   :  { %3578 = vmatpush1.bf16.msra.mxu1 %v5191_v54  ;;  %v5284_v54 = vld [vmem:[%s7854_s1 + $0x2ec] ss:$16 sps:$4 sm:$0xff]  }
  0x64   :  { %3332 = vmatpush1.bf16.msra.mxu0 %v5188_v53  ;;  %3579 = vmatprep.subr.bf16.mxu1 %v5199_v56  ;;  %v5281_v53 = vld [vmem:[%s7854_s1 + $0x6e4] ss:$16 sps:$4 sm:$0xff]   ;;  %v5282_v56 = vld [vmem:[%s7854_s1 + $0x2e8] ss:$16 sps:$4 sm:$0xff]  }
  0x65   :  { %3333 = vmatprep.subr.bf16.mxu0 %v5196_v55  ;;  %v5279_v55 = vld [vmem:[%s7854_s1 + $0x6e0] ss:$16 sps:$4 sm:$0xff]  }
  0x67   :  { %3580 = vmatpush1.bf16.msra.mxu1 %v5197_v58  ;;  %v5290_v58 = vld [vmem:[%s7854_s1 + $0x30c] ss:$16 sps:$4 sm:$0xff]  }
  0x68   :  { %3334 = vmatpush1.bf16.msra.mxu0 %v5194_v57  ;;  %3581 = vmatprep.subr.bf16.mxu1 %v5205_v60  ;;  %v5287_v57 = vld [vmem:[%s7854_s1 + $0x704] ss:$16 sps:$4 sm:$0xff]   ;;  %v5288_v60 = vld [vmem:[%s7854_s1 + $0x308] ss:$16 sps:$4 sm:$0xff]  }
  0x69   :  { %3335 = vmatprep.subr.bf16.mxu0 %v5202_v59  ;;  %v5285_v59 = vld [vmem:[%s7854_s1 + $0x700] ss:$16 sps:$4 sm:$0xff]  }
  0x6b   :  { %3582 = vmatpush1.bf16.msra.mxu1 %v5203_v62  ;;  %v5296_v62 = vld [vmem:[%s7854_s1 + $0x32c] ss:$16 sps:$4 sm:$0xff]  }
  0x6c   :  { %3336 = vmatpush1.bf16.msra.mxu0 %v5200_v61  ;;  %3583 = vmatprep.subr.bf16.mxu1 %v5211_v1  ;;  %v5293_v61 = vld [vmem:[%s7854_s1 + $0x724] ss:$16 sps:$4 sm:$0xff]   ;;  %v5294_v1 = vld [vmem:[%s7854_s1 + $0x328] ss:$16 sps:$4 sm:$0xff]  }
  0x6d   :  { %3337 = vmatprep.subr.bf16.mxu0 %v5208_v63  ;;  %v5291_v63 = vld [vmem:[%s7854_s1 + $0x720] ss:$16 sps:$4 sm:$0xff]  }
  0x6f   :  { %3584 = vmatpush1.bf16.msra.mxu1 %v5209_v3  ;;  %v5302_v3 = vld [vmem:[%s7854_s1 + $0x34c] ss:$16 sps:$4 sm:$0xff]  }
  0x70   :  { %3338 = vmatpush1.bf16.msra.mxu0 %v5206_v2  ;;  %3585 = vmatprep.subr.bf16.mxu1 %v5217_v5  ;;  %v5299_v2 = vld [vmem:[%s7854_s1 + $0x744] ss:$16 sps:$4 sm:$0xff]   ;;  %v5300_v5 = vld [vmem:[%s7854_s1 + $0x348] ss:$16 sps:$4 sm:$0xff]  }
  0x71   :  { %3339 = vmatprep.subr.bf16.mxu0 %v5214_v4  ;;  %v5297_v4 = vld [vmem:[%s7854_s1 + $0x740] ss:$16 sps:$4 sm:$0xff]  }
  0x73   :  { %3586 = vmatpush1.bf16.msra.mxu1 %v5215_v7  ;;  %v5308_v7 = vld [vmem:[%s7854_s1 + $0x36c] ss:$16 sps:$4 sm:$0xff]  }
  0x74   :  { %3340 = vmatpush1.bf16.msra.mxu0 %v5212_v6  ;;  %3587 = vmatprep.subr.bf16.mxu1 %v5223_v9  ;;  %v5305_v6 = vld [vmem:[%s7854_s1 + $0x764] ss:$16 sps:$4 sm:$0xff]   ;;  %v5306_v9 = vld [vmem:[%s7854_s1 + $0x368] ss:$16 sps:$4 sm:$0xff]  }
  0x75   :  { %3341 = vmatprep.subr.bf16.mxu0 %v5220_v8  ;;  %v5303_v8 = vld [vmem:[%s7854_s1 + $0x760] ss:$16 sps:$4 sm:$0xff]  }
  0x77   :  { %3588 = vmatpush1.bf16.msra.mxu1 %v5221_v13  ;;  %v5314_v13 = vld [vmem:[%s7854_s1 + $0x38c] ss:$16 sps:$4 sm:$0xff]  }
  0x78   :  { %3342 = vmatpush1.bf16.msra.mxu0 %v5218_v11  ;;  %3589 = vmatprep.subr.bf16.mxu1 %v5229_v15  ;;  %v5311_v11 = vld [vmem:[%s7854_s1 + $0x784] ss:$16 sps:$4 sm:$0xff]   ;;  %v5312_v15 = vld [vmem:[%s7854_s1 + $0x388] ss:$16 sps:$4 sm:$0xff]  }
  0x79   :  { %3343 = vmatprep.subr.bf16.mxu0 %v5226_v14  ;;  %v5309_v14 = vld [vmem:[%s7854_s1 + $0x780] ss:$16 sps:$4 sm:$0xff]  }
  0x7b   :  { %3590 = vmatpush1.bf16.msra.mxu1 %v5227_v17  ;;  %v5320_v17 = vld [vmem:[%s7854_s1 + $0x3ac] ss:$16 sps:$4 sm:$0xff]  }
  0x7c   :  { %3344 = vmatpush1.bf16.msra.mxu0 %v5224_v16  ;;  %3591 = vmatprep.subr.bf16.mxu1 %v5235_v20  ;;  %v5317_v16 = vld [vmem:[%s7854_s1 + $0x7a4] ss:$16 sps:$4 sm:$0xff]   ;;  %v5318_v20 = vld [vmem:[%s7854_s1 + $0x3a8] ss:$16 sps:$4 sm:$0xff]  }
  0x7d   :  { %3345 = vmatprep.subr.bf16.mxu0 %v5232_v19  ;;  %v5315_v19 = vld [vmem:[%s7854_s1 + $0x7a0] ss:$16 sps:$4 sm:$0xff]  }
  0x7f   :  { %3592 = vmatpush1.bf16.msra.mxu1 %v5233_v23  ;;  %v5326_v23 = vld [vmem:[%s7854_s1 + $0x3cc] ss:$16 sps:$4 sm:$0xff]  }
  0x80   :  { %3346 = vmatpush1.bf16.msra.mxu0 %v5230_v21  ;;  %3602 = vmatprep.subr.bf16.mxu1 %v5242_v25  ;;  %v5323_v21 = vld [vmem:[%s7854_s1 + $0x7c4] ss:$16 sps:$4 sm:$0xff]   ;;  %v5321_v25 = vld [vmem:[%s7854_s1 + $0x7c0] ss:$16 sps:$4 sm:$0xff]  }
  0x81   :  { %3356 = vmatprep.subr.bf16.mxu0 %v5239_v24  ;;  %v6570_v24 = vld [vmem:[%s7853_s0 + $0x8] sm:$0xff] }
  0x82   :  { %3594 = vmatmul.mubr.bf16.vlgmr.msra.gmra.mrb[4].mxu1 %v6172_v12  ;;  %v5254_v12 = vld [vmem:[%s7854_s1 + $0x24c] ss:$16 sps:$4 sm:$0xff]  }
  0x83   :  { %3348 = vmatmul.mubr.bf16.vlgmr.msra.gmra.mrb[0].mxu0 %v6392_v27  ;;  %3603 = vmatpush1.bf16.msra.mxu1 %v5240_v28  ;;  %v5329_v28 = vld [vmem:[%s7854_s1 + $0x7e4] ss:$16 sps:$4 sm:$0xff]  }
  0x84   :  { %3357 = vmatpush1.bf16.msra.mxu0 %v5237_v26  ;;  %3604 = vmatprep.subr.bf16.mxu1 %v5248_v30  ;;  %v5324_v26 = vld [vmem:[%s7854_s1 + $0x3c8] ss:$16 sps:$4 sm:$0xff]   ;;  %v6586_v30 = vrot.slane %v6570_v24, %v6101_v49 }
  0x85   :  { %3358 = vmatprep.subr.bf16.mxu0 %v5245_v29  ;;  %3388 = vmatprep.mubr.bf16.mxu0 %v6405_v10  ;;  %v5332_v29 = vld [vmem:[%s7854_s1 + $0x3ec] ss:$16 sps:$4 sm:$0xff]  }
  0x86   :  { %3634 = vmatprep.mubr.bf16.mxu1 %v6138_v0  ;;  %v5260_v0 = vld [vmem:[%s7854_s1 + $0x26c] ss:$16 sps:$4 sm:$0xff]  }
  0x87   :  { %3605 = vmatpush1.bf16.msra.mxu1 %v5246_v32  ;;  %v5330_v32 = vld [vmem:[%s7854_s1 + $0x3e8] ss:$16 sps:$4 sm:$0xff]  }
  0x88   :  { %3359 = vmatpush1.bf16.msra.mxu0 %v5243_v31  ;;  %3606 = vmatprep.subr.bf16.mxu1 %v5254_v12  ;;  %v5327_v31 = vld [vmem:[%s7854_s1 + $0x7e0] ss:$16 sps:$4 sm:$0xff]   ;;  %v5338_v12 = vld [vmem:[%s7854_s1 + $0x40c] ss:$16 sps:$4 sm:$0xff]  }
  0x89   :  { %3360 = vmatprep.subr.bf16.mxu0 %v5251_v33  ;;  %v5335_v33 = vld [vmem:[%s7854_s1 + $0x804] ss:$16 sps:$4 sm:$0xff]  }
  0x8b   :  { %3607 = vmatpush1.bf16.msra.mxu1 %v5252_v35  ;;  %v5333_v35 = vld [vmem:[%s7854_s1 + $0x800] ss:$16 sps:$4 sm:$0xff]  }
  0x8c   :  { %3361 = vmatpush1.bf16.msra.mxu0 %v5249_v34  ;;  %3608 = vmatprep.subr.bf16.mxu1 %v5260_v0  ;;  %v623_v34 = vcombine.high %v6586_v30, %v6586_v30  ;;  %v5336_v0 = vld [vmem:[%s7854_s1 + $0x408] ss:$16 sps:$4 sm:$0xff]  }
  0x8d   :  { %3362 = vmatprep.subr.bf16.mxu0 %v5257_v36  ;;  %v6607_v36 = vcombine.high %v6392_v27, %v6392_v27 }
  0x8f   :  { %3609 = vmatpush1.bf16.msra.mxu1 %v5258_v38  ;;  %v5344_v38 = vld [vmem:[%s7854_s1 + $0x42c] ss:$16 sps:$4 sm:$0xff]  }
  0x90   :  { %3363 = vmatpush1.bf16.msra.mxu0 %v5255_v37  ;;  %3610 = vmatprep.subr.bf16.mxu1 %v5266_v40  ;;  %v5341_v37 = vld [vmem:[%s7854_s1 + $0x824] ss:$16 sps:$4 sm:$0xff]   ;;  %v5339_v40 = vld [vmem:[%s7854_s1 + $0x820] ss:$16 sps:$4 sm:$0xff]  }
  0x91   :  { %3364 = vmatprep.subr.bf16.mxu0 %v5263_v39  ;;  %v6619_v39 = vrot.slane %v623_v34, %v6101_v49  ;;  %v5422_v34 = vld [vmem:[%s7854_s1 + $0x5cc] ss:$16 sps:$4 sm:$0xff]  }
  0x93   :  { %3611 = vmatpush1.bf16.msra.mxu1 %v5264_v43  ;;  %v5347_v43 = vld [vmem:[%s7854_s1 + $0x844] ss:$16 sps:$4 sm:$0xff]  }
  0x94   :  { %3365 = vmatpush1.bf16.msra.mxu0 %v5261_v41  ;;  %3612 = vmatprep.subr.bf16.mxu1 %v5272_v45  ;;  %v5342_v41 = vld [vmem:[%s7854_s1 + $0x428] ss:$16 sps:$4 sm:$0xff]  }
  0x95   :  { %3366 = vmatprep.subr.bf16.mxu0 %v5269_v44  ;;  %v5345_v44 = vld [vmem:[%s7854_s1 + $0x840] ss:$16 sps:$4 sm:$0xff]   ;;  %v5348_v45 = vld [vmem:[%s7854_s1 + $0x448] ss:$16 sps:$4 sm:$0xff]  }
  0x97   :  { %3613 = vmatpush1.bf16.msra.mxu1 %v5270_v47  ;;  %v5351_v47 = vld [vmem:[%s7854_s1 + $0x860] ss:$16 sps:$4 sm:$0xff]  }
  0x98   :  { %3367 = vmatpush1.bf16.msra.mxu0 %v5267_v46  ;;  %3614 = vmatprep.subr.bf16.mxu1 %v5278_v50  ;;  %v5353_v46 = vld [vmem:[%s7854_s1 + $0x864] ss:$16 sps:$4 sm:$0xff]  }
  0x99   :  { %3368 = vmatprep.subr.bf16.mxu0 %v5275_v48  ;;  %v5354_v48 = vld [vmem:[%s7854_s1 + $0x468] ss:$16 sps:$4 sm:$0xff]   ;;  %v5359_v50 = vld [vmem:[%s7854_s1 + $0x884] ss:$16 sps:$4 sm:$0xff]  }
  0x9b   :  { %3615 = vmatpush1.bf16.msra.mxu1 %v5276_v52  ;;  %v5357_v52 = vld [vmem:[%s7854_s1 + $0x880] ss:$16 sps:$4 sm:$0xff]  }
  0x9c   :  { %3369 = vmatpush1.bf16.msra.mxu0 %v5273_v51  ;;  %3616 = vmatprep.subr.bf16.mxu1 %v5284_v54  ;;  %v5362_v51 = vld [vmem:[%s7854_s1 + $0x48c] ss:$16 sps:$4 sm:$0xff]   ;;  %v5365_v54 = vld [vmem:[%s7854_s1 + $0x8a4] ss:$16 sps:$4 sm:$0xff]  }
  0x9d   :  { %3370 = vmatprep.subr.bf16.mxu0 %v5281_v53  ;;  %v5360_v53 = vld [vmem:[%s7854_s1 + $0x488] ss:$16 sps:$4 sm:$0xff]  }
  0x9f   :  { %3617 = vmatpush1.bf16.msra.mxu1 %v5282_v56  ;;  %v5363_v56 = vld [vmem:[%s7854_s1 + $0x8a0] ss:$16 sps:$4 sm:$0xff]  }
  0xa0   :  { %3371 = vmatpush1.bf16.msra.mxu0 %v5279_v55  ;;  %3618 = vmatprep.subr.bf16.mxu1 %v5290_v58  ;;  %v5368_v55 = vld [vmem:[%s7854_s1 + $0x4ac] ss:$16 sps:$4 sm:$0xff]   ;;  %v5371_v58 = vld [vmem:[%s7854_s1 + $0x8c4] ss:$16 sps:$4 sm:$0xff]  }
  0xa1   :  { %3372 = vmatprep.subr.bf16.mxu0 %v5287_v57  ;;  %v5366_v57 = vld [vmem:[%s7854_s1 + $0x4a8] ss:$16 sps:$4 sm:$0xff]  }
  0xa3   :  { %3619 = vmatpush1.bf16.msra.mxu1 %v5288_v60  ;;  %v5369_v60 = vld [vmem:[%s7854_s1 + $0x8c0] ss:$16 sps:$4 sm:$0xff]  }
  0xa4   :  { %3373 = vmatpush1.bf16.msra.mxu0 %v5285_v59  ;;  %3620 = vmatprep.subr.bf16.mxu1 %v5296_v62  ;;  %v5374_v59 = vld [vmem:[%s7854_s1 + $0x4cc] ss:$16 sps:$4 sm:$0xff]   ;;  %v5377_v62 = vld [vmem:[%s7854_s1 + $0x8e4] ss:$16 sps:$4 sm:$0xff]  }
  0xa5   :  { %3374 = vmatprep.subr.bf16.mxu0 %v5293_v61  ;;  %v5372_v61 = vld [vmem:[%s7854_s1 + $0x4c8] ss:$16 sps:$4 sm:$0xff]  }
  0xa7   :  { %3621 = vmatpush1.bf16.msra.mxu1 %v5294_v1  ;;  %v5375_v1 = vld [vmem:[%s7854_s1 + $0x8e0] ss:$16 sps:$4 sm:$0xff]  }
  0xa8   :  { %3375 = vmatpush1.bf16.msra.mxu0 %v5291_v63  ;;  %3622 = vmatprep.subr.bf16.mxu1 %v5302_v3  ;;  %v5380_v63 = vld [vmem:[%s7854_s1 + $0x4ec] ss:$16 sps:$4 sm:$0xff]   ;;  %v5383_v3 = vld [vmem:[%s7854_s1 + $0x904] ss:$16 sps:$4 sm:$0xff]  }
  0xa9   :  { %3376 = vmatprep.subr.bf16.mxu0 %v5299_v2  ;;  %v5378_v2 = vld [vmem:[%s7854_s1 + $0x4e8] ss:$16 sps:$4 sm:$0xff]  }
  0xab   :  { %3623 = vmatpush1.bf16.msra.mxu1 %v5300_v5  ;;  %v5381_v5 = vld [vmem:[%s7854_s1 + $0x900] ss:$16 sps:$4 sm:$0xff]  }
  0xac   :  { %3377 = vmatpush1.bf16.msra.mxu0 %v5297_v4  ;;  %3624 = vmatprep.subr.bf16.mxu1 %v5308_v7  ;;  %v5386_v4 = vld [vmem:[%s7854_s1 + $0x50c] ss:$16 sps:$4 sm:$0xff]   ;;  %v5389_v7 = vld [vmem:[%s7854_s1 + $0x924] ss:$16 sps:$4 sm:$0xff]  }
  0xad   :  { %3378 = vmatprep.subr.bf16.mxu0 %v5305_v6  ;;  %v5384_v6 = vld [vmem:[%s7854_s1 + $0x508] ss:$16 sps:$4 sm:$0xff]  }
  0xaf   :  { %3625 = vmatpush1.bf16.msra.mxu1 %v5306_v9  ;;  %v5387_v9 = vld [vmem:[%s7854_s1 + $0x920] ss:$16 sps:$4 sm:$0xff]  }
  0xb0   :  { %3379 = vmatpush1.bf16.msra.mxu0 %v5303_v8  ;;  %3626 = vmatprep.subr.bf16.mxu1 %v5314_v13  ;;  %v5392_v8 = vld [vmem:[%s7854_s1 + $0x52c] ss:$16 sps:$4 sm:$0xff]   ;;  %v5395_v13 = vld [vmem:[%s7854_s1 + $0x944] ss:$16 sps:$4 sm:$0xff]  }
  0xb1   :  { %3380 = vmatprep.subr.bf16.mxu0 %v5311_v11  ;;  %v5390_v11 = vld [vmem:[%s7854_s1 + $0x528] ss:$16 sps:$4 sm:$0xff]  }
  0xb3   :  { %3627 = vmatpush1.bf16.msra.mxu1 %v5312_v15  ;;  %v5393_v15 = vld [vmem:[%s7854_s1 + $0x940] ss:$16 sps:$4 sm:$0xff]  }
  0xb4   :  { %3381 = vmatpush1.bf16.msra.mxu0 %v5309_v14  ;;  %3628 = vmatprep.subr.bf16.mxu1 %v5320_v17  ;;  %v5398_v14 = vld [vmem:[%s7854_s1 + $0x54c] ss:$16 sps:$4 sm:$0xff]   ;;  %v5401_v17 = vld [vmem:[%s7854_s1 + $0x964] ss:$16 sps:$4 sm:$0xff]  }
  0xb5   :  { %3382 = vmatprep.subr.bf16.mxu0 %v5317_v16  ;;  %v5396_v16 = vld [vmem:[%s7854_s1 + $0x548] ss:$16 sps:$4 sm:$0xff]  }
  0xb7   :  { %3629 = vmatpush1.bf16.msra.mxu1 %v5318_v20  ;;  %v5399_v20 = vld [vmem:[%s7854_s1 + $0x960] ss:$16 sps:$4 sm:$0xff]  }
  0xb8   :  { %3383 = vmatpush1.bf16.msra.mxu0 %v5315_v19  ;;  %3630 = vmatprep.subr.bf16.mxu1 %v5326_v23  ;;  %v5404_v19 = vld [vmem:[%s7854_s1 + $0x56c] ss:$16 sps:$4 sm:$0xff]   ;;  %v5407_v23 = vld [vmem:[%s7854_s1 + $0x984] ss:$16 sps:$4 sm:$0xff]  }
  0xb9   :  { %3384 = vmatprep.subr.bf16.mxu0 %v5323_v21  ;;  %v5402_v21 = vld [vmem:[%s7854_s1 + $0x568] ss:$16 sps:$4 sm:$0xff]  }
  0xbb   :  { %3631 = vmatpush1.bf16.msra.mxu1 %v5324_v26  ;;  %v5405_v26 = vld [vmem:[%s7854_s1 + $0x980] ss:$16 sps:$4 sm:$0xff]  }
  0xbc   :  { %3385 = vmatpush1.bf16.msra.mxu0 %v5321_v25  ;;  %3632 = vmatprep.subr.bf16.mxu1 %v5332_v29  ;;  %v5410_v25 = vld [vmem:[%s7854_s1 + $0x58c] ss:$16 sps:$4 sm:$0xff]   ;;  %v5413_v29 = vld [vmem:[%s7854_s1 + $0x9a4] ss:$16 sps:$4 sm:$0xff]  }
  0xbd   :  { %3386 = vmatprep.subr.bf16.mxu0 %v5329_v28  ;;  %v5408_v28 = vld [vmem:[%s7854_s1 + $0x588] ss:$16 sps:$4 sm:$0xff]  }
  0xbf   :  { %3633 = vmatpush1.bf16.msra.mxu1 %v5330_v32  ;;  %v5411_v32 = vld [vmem:[%s7854_s1 + $0x9a0] ss:$16 sps:$4 sm:$0xff]  }
  0xc0   :  { %3387 = vmatpush1.bf16.msra.mxu0 %v5327_v31  ;;  %3643 = vmatprep.subr.bf16.mxu1 %v5338_v12  ;;  %v5416_v31 = vld [vmem:[%s7854_s1 + $0x5ac] ss:$16 sps:$4 sm:$0xff]   ;;  %v5419_v12 = vld [vmem:[%s7854_s1 + $0x9c4] ss:$16 sps:$4 sm:$0xff]  }
  0xc1   :  { %3397 = vmatprep.subr.bf16.mxu0 %v5335_v33  ;;  %v5414_v33 = vld [vmem:[%s7854_s1 + $0x5a8] ss:$16 sps:$4 sm:$0xff]  }
  0xc2   :  { %3635 = vmatmul.mubr.bf16.vlgmr.msra.gmra.mrb[4].mxu1 %v6190_v18  ;;  %v5350_v18 = vld [vmem:[%s7854_s1 + $0x44c] ss:$16 sps:$4 sm:$0xff]  }
  0xc3   :  { %3389 = vmatmul.mubr.bf16.vlgmr.msra.gmra.mrb[0].mxu0 %v6607_v36  ;;  %3644 = vmatpush1.bf16.msra.mxu1 %v5336_v0  ;;  %v5420_v0 = vld [vmem:[%s7854_s1 + $0x5c8] ss:$16 sps:$4 sm:$0xff]  }
  0xc4   :  { %3398 = vmatpush1.bf16.msra.mxu0 %v5333_v35  ;;  %3645 = vmatprep.subr.bf16.mxu1 %v5344_v38  ;;  %v5417_v35 = vld [vmem:[%s7854_s1 + $0x9c0] ss:$16 sps:$4 sm:$0xff]   ;;  %v5428_v38 = vld [vmem:[%s7854_s1 + $0x5ec] ss:$16 sps:$4 sm:$0xff]  }
  0xc5   :  { %3399 = vmatprep.subr.bf16.mxu0 %v5341_v37  ;;  %3429 = vmatprep.mubr.bf16.mxu0 %v6619_v39  ;;  %v5425_v37 = vld [vmem:[%s7854_s1 + $0x9e4] ss:$16 sps:$4 sm:$0xff]  }
  0xc6   :  { %3675 = vmatprep.mubr.bf16.mxu1 %v6202_v22  ;;  %v5356_v22 = vld [vmem:[%s7854_s1 + $0x46c] ss:$16 sps:$4 sm:$0xff]  }
  0xc7   :  { %3646 = vmatpush1.bf16.msra.mxu1 %v5342_v41  ;;  %v5426_v41 = vld [vmem:[%s7854_s1 + $0x5e8] ss:$16 sps:$4 sm:$0xff]  }
  0xc8   :  { %3400 = vmatpush1.bf16.msra.mxu0 %v5339_v40  ;;  %3647 = vmatprep.subr.bf16.mxu1 %v5350_v18  ;;  %v5423_v40 = vld [vmem:[%s7854_s1 + $0x9e0] ss:$16 sps:$4 sm:$0xff]   ;;  %v5434_v18 = vld [vmem:[%s7854_s1 + $0x60c] ss:$16 sps:$4 sm:$0xff]  }
  0xc9   :  { %3401 = vmatprep.subr.bf16.mxu0 %v5347_v43  ;;  %v5431_v43 = vld [vmem:[%s7854_s1 + $0xa04] ss:$16 sps:$4 sm:$0xff]  }
  0xcb   :  { %3648 = vmatpush1.bf16.msra.mxu1 %v5348_v45  ;;  %v6810_v45 = vrot.slane %v6586_v30, %v6101_v49  ;;  %v6823_v30 = vcombine.high %v6619_v39, %v6619_v39 }
  0xcc   :  { %3402 = vmatpush1.bf16.msra.mxu0 %v5345_v44  ;;  %3649 = vmatprep.subr.bf16.mxu1 %v5356_v22  ;;  %v5429_v44 = vld [vmem:[%s7854_s1 + $0xa00] ss:$16 sps:$4 sm:$0xff]   ;;  %v5437_v22 = vld [vmem:[%s7854_s1 + $0xa24] ss:$16 sps:$4 sm:$0xff]  }
  0xcd   :  { %3403 = vmatprep.subr.bf16.mxu0 %v5353_v46  ;;  %v5432_v46 = vld [vmem:[%s7854_s1 + $0x608] ss:$16 sps:$4 sm:$0xff]  }
  0xcf   :  { %3650 = vmatpush1.bf16.msra.mxu1 %v5354_v48  ;;  %v5435_v48 = vld [vmem:[%s7854_s1 + $0xa20] ss:$16 sps:$4 sm:$0xff]  }
  0xd0   :  { %3404 = vmatpush1.bf16.msra.mxu0 %v5351_v47  ;;  %3651 = vmatprep.subr.bf16.mxu1 %v5362_v51  ;;  %v5440_v47 = vld [vmem:[%s7854_s1 + $0x62c] ss:$16 sps:$4 sm:$0xff]   ;;  %v5443_v51 = vld [vmem:[%s7854_s1 + $0xa44] ss:$16 sps:$4 sm:$0xff]  }
  0xd1   :  { %3405 = vmatprep.subr.bf16.mxu0 %v5359_v50  ;;  %v5438_v50 = vld [vmem:[%s7854_s1 + $0x628] ss:$16 sps:$4 sm:$0xff]  }
  0xd3   :  { %3652 = vmatpush1.bf16.msra.mxu1 %v5360_v53  ;;  %v5444_v53 = vld [vmem:[%s7854_s1 + $0x648] ss:$16 sps:$4 sm:$0xff]  }
  0xd4   :  { %3406 = vmatpush1.bf16.msra.mxu0 %v5357_v52  ;;  %3653 = vmatprep.subr.bf16.mxu1 %v5368_v55  ;;  %v5441_v52 = vld [vmem:[%s7854_s1 + $0xa40] ss:$16 sps:$4 sm:$0xff]  }
  0xd5   :  { %3407 = vmatprep.subr.bf16.mxu0 %v5365_v54  ;;  %v5449_v54 = vld [vmem:[%s7854_s1 + $0xa64] ss:$16 sps:$4 sm:$0xff]   ;;  %v5447_v55 = vld [vmem:[%s7854_s1 + $0xa60] ss:$16 sps:$4 sm:$0xff]  }
  0xd7   :  { %3654 = vmatpush1.bf16.msra.mxu1 %v5366_v57  ;;  %v5455_v57 = vld [vmem:[%s7854_s1 + $0xa84] ss:$16 sps:$4 sm:$0xff]  }
  0xd8   :  { %3408 = vmatpush1.bf16.msra.mxu0 %v5363_v56  ;;  %3655 = vmatprep.subr.bf16.mxu1 %v5374_v59  ;;  %v5450_v56 = vld [vmem:[%s7854_s1 + $0x668] ss:$16 sps:$4 sm:$0xff]   ;;  %v5453_v59 = vld [vmem:[%s7854_s1 + $0xa80] ss:$16 sps:$4 sm:$0xff]  }
  0xd9   :  { %3409 = vmatprep.subr.bf16.mxu0 %v5371_v58  ;;  %v5458_v58 = vld [vmem:[%s7854_s1 + $0x68c] ss:$16 sps:$4 sm:$0xff]  }
  0xdb   :  { %3656 = vmatpush1.bf16.msra.mxu1 %v5372_v61  ;;  %v5461_v61 = vld [vmem:[%s7854_s1 + $0xaa4] ss:$16 sps:$4 sm:$0xff]  }
  0xdc   :  { %3410 = vmatpush1.bf16.msra.mxu0 %v5369_v60  ;;  %3657 = vmatprep.subr.bf16.mxu1 %v5380_v63  ;;  %v5456_v60 = vld [vmem:[%s7854_s1 + $0x688] ss:$16 sps:$4 sm:$0xff]   ;;  %v5459_v63 = vld [vmem:[%s7854_s1 + $0xaa0] ss:$16 sps:$4 sm:$0xff]  }
  0xdd   :  { %3411 = vmatprep.subr.bf16.mxu0 %v5377_v62  ;;  %v5464_v62 = vld [vmem:[%s7854_s1 + $0x6ac] ss:$16 sps:$4 sm:$0xff]  }
  0xdf   :  { %3658 = vmatpush1.bf16.msra.mxu1 %v5378_v2  ;;  %v5467_v2 = vld [vmem:[%s7854_s1 + $0xac4] ss:$16 sps:$4 sm:$0xff]  }
  0xe0   :  { %3412 = vmatpush1.bf16.msra.mxu0 %v5375_v1  ;;  %3659 = vmatprep.subr.bf16.mxu1 %v5386_v4  ;;  %v5462_v1 = vld [vmem:[%s7854_s1 + $0x6a8] ss:$16 sps:$4 sm:$0xff]  }
  0xe1   :  { %3413 = vmatprep.subr.bf16.mxu0 %v5383_v3  ;;  %v5470_v3 = vld [vmem:[%s7854_s1 + $0x6cc] ss:$16 sps:$4 sm:$0xff]  }
  0xe3   :  { %3660 = vmatpush1.bf16.msra.mxu1 %v5384_v6 }
  0xe4   :  { %3414 = vmatpush1.bf16.msra.mxu0 %v5381_v5  ;;  %3661 = vmatprep.subr.bf16.mxu1 %v5392_v8  ;;  %v5468_v8 = vld [vmem:[%s7854_s1 + $0x6c8] ss:$16 sps:$4 sm:$0xff]  }
  0xe5   :  { %3415 = vmatprep.subr.bf16.mxu0 %v5389_v7  ;;  %v5465_v7 = vld [vmem:[%s7854_s1 + $0xac0] ss:$16 sps:$4 sm:$0xff]  }
  0xe7   :  { %3662 = vmatpush1.bf16.msra.mxu1 %v5390_v11  ;;  %v5473_v11 = vld [vmem:[%s7854_s1 + $0xae4] ss:$16 sps:$4 sm:$0xff]  }
  0xe8   :  { %3416 = vmatpush1.bf16.msra.mxu0 %v5387_v9  ;;  %3663 = vmatprep.subr.bf16.mxu1 %v5398_v14  ;;  %v5471_v14 = vld [vmem:[%s7854_s1 + $0xae0] ss:$16 sps:$4 sm:$0xff]  }
  0xe9   :  { %3417 = vmatprep.subr.bf16.mxu0 %v5395_v13  ;;  %v5476_v13 = vld [vmem:[%s7854_s1 + $0x6ec] ss:$16 sps:$4 sm:$0xff]  }
  0xeb   :  { %3664 = vmatpush1.bf16.msra.mxu1 %v5396_v16  ;;  %v5479_v16 = vld [vmem:[%s7854_s1 + $0xb04] ss:$16 sps:$4 sm:$0xff]  }
  0xec   :  { %3418 = vmatpush1.bf16.msra.mxu0 %v5393_v15  ;;  %3665 = vmatprep.subr.bf16.mxu1 %v5404_v19  ;;  %v5474_v15 = vld [vmem:[%s7854_s1 + $0x6e8] ss:$16 sps:$4 sm:$0xff]   ;;  %v5477_v19 = vld [vmem:[%s7854_s1 + $0xb00] ss:$16 sps:$4 sm:$0xff]  }
  0xed   :  { %3419 = vmatprep.subr.bf16.mxu0 %v5401_v17  ;;  %v5482_v17 = vld [vmem:[%s7854_s1 + $0x70c] ss:$16 sps:$4 sm:$0xff]  }
  0xef   :  { %3666 = vmatpush1.bf16.msra.mxu1 %v5402_v21  ;;  %v5485_v21 = vld [vmem:[%s7854_s1 + $0xb24] ss:$16 sps:$4 sm:$0xff]  }
  0xf0   :  { %3420 = vmatpush1.bf16.msra.mxu0 %v5399_v20  ;;  %3667 = vmatprep.subr.bf16.mxu1 %v5410_v25  ;;  %v5480_v20 = vld [vmem:[%s7854_s1 + $0x708] ss:$16 sps:$4 sm:$0xff]   ;;  %v5483_v25 = vld [vmem:[%s7854_s1 + $0xb20] ss:$16 sps:$4 sm:$0xff]  }
  0xf1   :  { %3421 = vmatprep.subr.bf16.mxu0 %v5407_v23  ;;  %v5488_v23 = vld [vmem:[%s7854_s1 + $0x72c] ss:$16 sps:$4 sm:$0xff]  }
  0xf3   :  { %3668 = vmatpush1.bf16.msra.mxu1 %v5408_v28  ;;  %v5491_v28 = vld [vmem:[%s7854_s1 + $0xb44] ss:$16 sps:$4 sm:$0xff]  }
  0xf4   :  { %3422 = vmatpush1.bf16.msra.mxu0 %v5405_v26  ;;  %3669 = vmatprep.subr.bf16.mxu1 %v5416_v31  ;;  %v5486_v26 = vld [vmem:[%s7854_s1 + $0x728] ss:$16 sps:$4 sm:$0xff]   ;;  %v5489_v31 = vld [vmem:[%s7854_s1 + $0xb40] ss:$16 sps:$4 sm:$0xff]  }
  0xf5   :  { %3423 = vmatprep.subr.bf16.mxu0 %v5413_v29  ;;  %v5494_v29 = vld [vmem:[%s7854_s1 + $0x74c] ss:$16 sps:$4 sm:$0xff]  }
  0xf7   :  { %3670 = vmatpush1.bf16.msra.mxu1 %v5414_v33  ;;  %v5497_v33 = vld [vmem:[%s7854_s1 + $0xb64] ss:$16 sps:$4 sm:$0xff]  }
  0xf8   :  { %3424 = vmatpush1.bf16.msra.mxu0 %v5411_v32  ;;  %3671 = vmatprep.subr.bf16.mxu1 %v5422_v34  ;;  %v5492_v32 = vld [vmem:[%s7854_s1 + $0x748] ss:$16 sps:$4 sm:$0xff]   ;;  %v5495_v34 = vld [vmem:[%s7854_s1 + $0xb60] ss:$16 sps:$4 sm:$0xff]  }
  0xf9   :  { %3425 = vmatprep.subr.bf16.mxu0 %v5419_v12  ;;  %v5500_v12 = vld [vmem:[%s7854_s1 + $0x76c] ss:$16 sps:$4 sm:$0xff]  }
  0xfb   :  { %3672 = vmatpush1.bf16.msra.mxu1 %v5420_v0  ;;  %v5503_v0 = vld [vmem:[%s7854_s1 + $0xb84] ss:$16 sps:$4 sm:$0xff]  }
  0xfc   :  { %3426 = vmatpush1.bf16.msra.mxu0 %v5417_v35  ;;  %3673 = vmatprep.subr.bf16.mxu1 %v5428_v38  ;;  %v5498_v35 = vld [vmem:[%s7854_s1 + $0x768] ss:$16 sps:$4 sm:$0xff]   ;;  %v5501_v38 = vld [vmem:[%s7854_s1 + $0xb80] ss:$16 sps:$4 sm:$0xff]  }
  0xfd   :  { %3427 = vmatprep.subr.bf16.mxu0 %v5425_v37  ;;  %v5506_v37 = vld [vmem:[%s7854_s1 + $0x78c] ss:$16 sps:$4 sm:$0xff]  }
  0xff   :  { %3674 = vmatpush1.bf16.msra.mxu1 %v5426_v41  ;;  %v5509_v41 = vld [vmem:[%s7854_s1 + $0xba4] ss:$16 sps:$4 sm:$0xff]  }
 0x100   :  { %3428 = vmatpush1.bf16.msra.mxu0 %v5423_v40  ;;  %3684 = vmatprep.subr.bf16.mxu1 %v5434_v18  ;;  %v5504_v40 = vld [vmem:[%s7854_s1 + $0x788] ss:$16 sps:$4 sm:$0xff]   ;;  %v5507_v18 = vld [vmem:[%s7854_s1 + $0xba0] ss:$16 sps:$4 sm:$0xff]  }
 0x101   :  { %3438 = vmatprep.subr.bf16.mxu0 %v5431_v43  ;;  %v5512_v43 = vld [vmem:[%s7854_s1 + $0x7ac] ss:$16 sps:$4 sm:$0xff]  }
 0x102   :  { %3676 = vmatmul.mubr.bf16.vlgmr.msra.gmra.mrb[4].mxu1 %v6392_v27  ;;  %v5446_v27 = vld [vmem:[%s7854_s1 + $0x64c] ss:$16 sps:$4 sm:$0xff]  }
 0x103   :  { %3430 = vmatmul.mubr.bf16.vlgmr.msra.gmra.mrb[0].mxu0 %v6810_v45  ;;  %3685 = vmatpush1.bf16.msra.mxu1 %v5432_v46  ;;  %v5515_v46 = vld [vmem:[%s7854_s1 + $0xbc4] ss:$16 sps:$4 sm:$0xff]  }
 0x104   :  { %3439 = vmatpush1.bf16.msra.mxu0 %v5429_v44  ;;  %3686 = vmatprep.subr.bf16.mxu1 %v5440_v47  ;;  %v5510_v44 = vld [vmem:[%s7854_s1 + $0x7a8] ss:$16 sps:$4 sm:$0xff]   ;;  %v608_v47 = vcombine.high %v6570_v24, %v6570_v24  ;;  %v5524_v24 = vld [vmem:[%s7854_s1 + $0x7ec] ss:$16 sps:$4 sm:$0xff]  }
 0x105   :  { %3440 = vmatprep.subr.bf16.mxu0 %v5437_v22  ;;  %3470 = vmatprep.mubr.bf16.mxu0 %v6823_v30  ;;  %v5518_v22 = vld [vmem:[%s7854_s1 + $0x7cc] ss:$16 sps:$4 sm:$0xff]  }
 0x106   :  { %3716 = vmatprep.mubr.bf16.mxu1 %v6405_v10  ;;  %v5452_v10 = vld [vmem:[%s7854_s1 + $0x66c] ss:$16 sps:$4 sm:$0xff]  }
 0x107   :  { %3687 = vmatpush1.bf16.msra.mxu1 %v5438_v50  ;;  %v5516_v50 = vld [vmem:[%s7854_s1 + $0x7c8] ss:$16 sps:$4 sm:$0xff]  }
 0x108   :  { %3441 = vmatpush1.bf16.msra.mxu0 %v5435_v48  ;;  %3688 = vmatprep.subr.bf16.mxu1 %v5446_v27  ;;  %v5513_v48 = vld [vmem:[%s7854_s1 + $0xbc0] ss:$16 sps:$4 sm:$0xff]   ;;  %v7004_v27 = vrot.slane %v608_v47, %v6101_v49 }
 0x109   :  { %3442 = vmatprep.subr.bf16.mxu0 %v5443_v51  ;;  %v5521_v51 = vld [vmem:[%s7854_s1 + $0xbe4] ss:$16 sps:$4 sm:$0xff]  }
 0x10b   :  { %3689 = vmatpush1.bf16.msra.mxu1 %v5444_v53  ;;  %v5522_v53 = vld [vmem:[%s7854_s1 + $0x7e8] ss:$16 sps:$4 sm:$0xff]  }
 0x10c   :  { %3443 = vmatpush1.bf16.msra.mxu0 %v5441_v52  ;;  %3690 = vmatprep.subr.bf16.mxu1 %v5452_v10  ;;  %v5519_v52 = vld [vmem:[%s7854_s1 + $0xbe0] ss:$16 sps:$4 sm:$0xff]   ;;  %v5530_v10 = vld [vmem:[%s7854_s1 + $0x80c] ss:$16 sps:$4 sm:$0xff]  }
 0x10d   :  { %3444 = vmatprep.subr.bf16.mxu0 %v5449_v54  ;;  %v5527_v54 = vld [vmem:[%s7854_s1 + $0xc04] ss:$16 sps:$4 sm:$0xff]  }
 0x10f   :  { %3691 = vmatpush1.bf16.msra.mxu1 %v5450_v56  ;;  %v5528_v56 = vld [vmem:[%s7854_s1 + $0x808] ss:$16 sps:$4 sm:$0xff]  }
 0x110   :  { %3445 = vmatpush1.bf16.msra.mxu0 %v5447_v55  ;;  %3692 = vmatprep.subr.bf16.mxu1 %v5458_v58  ;;  %v5525_v55 = vld [vmem:[%s7854_s1 + $0xc00] ss:$16 sps:$4 sm:$0xff]   ;;  %v7028_v58 = vcombine.high %v6810_v45, %v6810_v45 }
 0x111   :  { %3446 = vmatprep.subr.bf16.mxu0 %v5455_v57  ;;  %v624_v57 = vcombine.high %v7004_v27, %v7004_v27 }
 0x113   :  { %3693 = vmatpush1.bf16.msra.mxu1 %v5456_v60  ;;  %v5536_v60 = vld [vmem:[%s7854_s1 + $0x82c] ss:$16 sps:$4 sm:$0xff]  }
 0x114   :  { %3447 = vmatpush1.bf16.msra.mxu0 %v5453_v59  ;;  %3694 = vmatprep.subr.bf16.mxu1 %v5464_v62  ;;  %v5533_v59 = vld [vmem:[%s7854_s1 + $0xc24] ss:$16 sps:$4 sm:$0xff]   ;;  %v5534_v62 = vld [vmem:[%s7854_s1 + $0x828] ss:$16 sps:$4 sm:$0xff]  }
 0x115   :  { %3448 = vmatprep.subr.bf16.mxu0 %v5461_v61  ;;  %v6889_v4 = vpop.f32.mrb[0].mxu1  ;;  %v5531_v61 = vld [vmem:[%s7854_s1 + $0xc20] ss:$16 sps:$4 sm:$0xff]  }
 0x116   :  { %v6891_v5 = vpop.f32.mrb[1].mxu1 }
 0x117   :  { %v3271_v6 = vpop.f32.mrb[2].mxu1  ;;  %3695 = vmatpush1.bf16.msra.mxu1 %v5462_v1  ;;  %v5539_v1 = vld [vmem:[%s7854_s1 + $0xc44] ss:$16 sps:$4 sm:$0xff]  }
 0x118   :  { %3449 = vmatpush1.bf16.msra.mxu0 %v5459_v63  ;;  %v3272_v9 = vpop.f32.mrb[3].mxu1  ;;  %3696 = vmatprep.subr.bf16.mxu1 %v5470_v3  ;;  %v7043_v63 = vrot.slane %v624_v57, %v6101_v49  ;;  %v5537_v3 = vld [vmem:[%s7854_s1 + $0xc40] ss:$16 sps:$4 sm:$0xff]   ;;  %v5545_v6 = vld [vmem:[%s7854_s1 + $0xc64] ss:$16 sps:$4 sm:$0xff]  }
 0x119   :  { %3450 = vmatprep.subr.bf16.mxu0 %v5467_v2  ;;  %v5542_v2 = vld [vmem:[%s7854_s1 + $0x84c] ss:$16 sps:$4 sm:$0xff]   ;;  %v5551_v9 = vld [vmem:[%s7854_s1 + $0xc84] ss:$16 sps:$4 sm:$0xff]  }
 0x11b   :  { %3697 = vmatpush1.bf16.msra.mxu1 %v5468_v8  ;;  %v5543_v8 = vld [vmem:[%s7854_s1 + $0xc60] ss:$16 sps:$4 sm:$0xff]  }
 0x11c   :  { %3451 = vmatpush1.bf16.msra.mxu0 %v5465_v7  ;;  %3698 = vmatprep.subr.bf16.mxu1 %v5476_v13  ;;  %v5548_v7 = vld [vmem:[%s7854_s1 + $0x86c] ss:$16 sps:$4 sm:$0xff]   ;;  %v5549_v13 = vld [vmem:[%s7854_s1 + $0xc80] ss:$16 sps:$4 sm:$0xff]  }
 0x11d   :  { %3452 = vmatprep.subr.bf16.mxu0 %v5473_v11  ;;  %v5554_v11 = vld [vmem:[%s7854_s1 + $0x88c] ss:$16 sps:$4 sm:$0xff]  }
 0x11f   :  { %3699 = vmatpush1.bf16.msra.mxu1 %v5474_v15  ;;  %v5557_v15 = vld [vmem:[%s7854_s1 + $0xca4] ss:$16 sps:$4 sm:$0xff]  }
 0x120   :  { %3453 = vmatpush1.bf16.msra.mxu0 %v5471_v14  ;;  %3700 = vmatprep.subr.bf16.mxu1 %v5482_v17  ;;  %v5552_v14 = vld [vmem:[%s7854_s1 + $0x888] ss:$16 sps:$4 sm:$0xff]   ;;  %v5555_v17 = vld [vmem:[%s7854_s1 + $0xca0] ss:$16 sps:$4 sm:$0xff]  }
 0x121   :  { %3454 = vmatprep.subr.bf16.mxu0 %v5479_v16  ;;  %v5560_v16 = vld [vmem:[%s7854_s1 + $0x8ac] ss:$16 sps:$4 sm:$0xff]  }
 0x123   :  { %3701 = vmatpush1.bf16.msra.mxu1 %v5480_v20  ;;  %v5563_v20 = vld [vmem:[%s7854_s1 + $0xcc4] ss:$16 sps:$4 sm:$0xff]  }
 0x124   :  { %3455 = vmatpush1.bf16.msra.mxu0 %v5477_v19  ;;  %3702 = vmatprep.subr.bf16.mxu1 %v5488_v23  ;;  %v5558_v19 = vld [vmem:[%s7854_s1 + $0x8a8] ss:$16 sps:$4 sm:$0xff]   ;;  %v5561_v23 = vld [vmem:[%s7854_s1 + $0xcc0] ss:$16 sps:$4 sm:$0xff]  }
 0x125   :  { %3456 = vmatprep.subr.bf16.mxu0 %v5485_v21  ;;  %v5566_v21 = vld [vmem:[%s7854_s1 + $0x8cc] ss:$16 sps:$4 sm:$0xff]  }
 0x127   :  { %3703 = vmatpush1.bf16.msra.mxu1 %v5486_v26  ;;  %v5569_v26 = vld [vmem:[%s7854_s1 + $0xce4] ss:$16 sps:$4 sm:$0xff]  }
 0x128   :  { %3457 = vmatpush1.bf16.msra.mxu0 %v5483_v25  ;;  %3704 = vmatprep.subr.bf16.mxu1 %v5494_v29  ;;  %v5564_v25 = vld [vmem:[%s7854_s1 + $0x8c8] ss:$16 sps:$4 sm:$0xff]  }
 0x129   :  { %3458 = vmatprep.subr.bf16.mxu0 %v5491_v28  ;;  %v5572_v28 = vld [vmem:[%s7854_s1 + $0x8ec] ss:$16 sps:$4 sm:$0xff]  }
 0x12b   :  { %3705 = vmatpush1.bf16.msra.mxu1 %v5492_v32 }
 0x12c   :  { %3459 = vmatpush1.bf16.msra.mxu0 %v5489_v31  ;;  %3706 = vmatprep.subr.bf16.mxu1 %v5500_v12 }
 0x12d   :  { %3460 = vmatprep.subr.bf16.mxu0 %v5497_v33 }
 0x12f   :  { %3707 = vmatpush1.bf16.msra.mxu1 %v5498_v35 }
 0x130   :  { %3461 = vmatpush1.bf16.msra.mxu0 %v5495_v34  ;;  %3708 = vmatprep.subr.bf16.mxu1 %v5506_v37 }
 0x131   :  { %3462 = vmatprep.subr.bf16.mxu0 %v5503_v0 }
 0x133   :  { %3709 = vmatpush1.bf16.msra.mxu1 %v5504_v40 }
 0x134   :  { %3463 = vmatpush1.bf16.msra.mxu0 %v5501_v38  ;;  %3710 = vmatprep.subr.bf16.mxu1 %v5512_v43 }
 0x135   :  { %3464 = vmatprep.subr.bf16.mxu0 %v5509_v41 }
 0x137   :  { %3711 = vmatpush1.bf16.msra.mxu1 %v5510_v44 }
 0x138   :  { %3465 = vmatpush1.bf16.msra.mxu0 %v5507_v18  ;;  %3712 = vmatprep.subr.bf16.mxu1 %v5518_v22 }
 0x139   :  { %3466 = vmatprep.subr.bf16.mxu0 %v5515_v46 }
 0x13b   :  { %3713 = vmatpush1.bf16.msra.mxu1 %v5516_v50 }
 0x13c   :  { %3467 = vmatpush1.bf16.msra.mxu0 %v5513_v48  ;;  %3714 = vmatprep.subr.bf16.mxu1 %v5524_v24 }
 0x13d   :  { %3468 = vmatprep.subr.bf16.mxu0 %v5521_v51 }
 0x13f   :  { %3715 = vmatpush1.bf16.msra.mxu1 %v5522_v53 }
 0x140   :  { %3469 = vmatpush1.bf16.msra.mxu0 %v5519_v52  ;;  %3725 = vmatprep.subr.bf16.mxu1 %v5530_v10 }
 0x141   :  { %3479 = vmatprep.subr.bf16.mxu0 %v5527_v54 }
 0x142   :  { %3717 = vmatmul.mubr.bf16.vlgmr.msra.gmra.mrb[4].mxu1 %v6607_v36  ;;  %v5540_v36 = vld [vmem:[%s7854_s1 + $0x848] ss:$16 sps:$4 sm:$0xff]  }
 0x143   :  { %3471 = vmatmul.mubr.bf16.vlgmr.msra.gmra.mrb[0].mxu0 %v7028_v58  ;;  %3726 = vmatpush1.bf16.msra.mxu1 %v5528_v56 }
 0x144   :  { %3480 = vmatpush1.bf16.msra.mxu0 %v5525_v55  ;;  %3727 = vmatprep.subr.bf16.mxu1 %v5536_v60 }
 0x145   :  { %3481 = vmatprep.subr.bf16.mxu0 %v5533_v59  ;;  %3511 = vmatprep.mubr.bf16.mxu0 %v7043_v63 }
 0x146   :  { %3757 = vmatprep.mubr.bf16.mxu1 %v6619_v39  ;;  %v5546_v39 = vld [vmem:[%s7854_s1 + $0x868] ss:$16 sps:$4 sm:$0xff]  }
 0x147   :  { %3728 = vmatpush1.bf16.msra.mxu1 %v5534_v62 }
 0x148   :  { %3482 = vmatpush1.bf16.msra.mxu0 %v5531_v61  ;;  %3729 = vmatprep.subr.bf16.mxu1 %v5542_v2 }
 0x149   :  { %3483 = vmatprep.subr.bf16.mxu0 %v5539_v1 }
 0x14b   :  { %3730 = vmatpush1.bf16.msra.mxu1 %v5540_v36 }
 0x14c   :  { %3484 = vmatpush1.bf16.msra.mxu0 %v5537_v3  ;;  %3731 = vmatprep.subr.bf16.mxu1 %v5548_v7 }
 0x14d   :  { %3485 = vmatprep.subr.bf16.mxu0 %v5545_v6 }
 0x14f   :  { %3732 = vmatpush1.bf16.msra.mxu1 %v5546_v39 }
 0x150   :  { %3486 = vmatpush1.bf16.msra.mxu0 %v5543_v8  ;;  %3733 = vmatprep.subr.bf16.mxu1 %v5554_v11 }
 0x151   :  { %3487 = vmatprep.subr.bf16.mxu0 %v5551_v9 }
 0x153   :  { %3734 = vmatpush1.bf16.msra.mxu1 %v5552_v14 }
 0x154   :  { %3488 = vmatpush1.bf16.msra.mxu0 %v5549_v13  ;;  %3735 = vmatprep.subr.bf16.mxu1 %v5560_v16 }
 0x155   :  { %3489 = vmatprep.subr.bf16.mxu0 %v5557_v15 }
 0x157   :  { %3736 = vmatpush1.bf16.msra.mxu1 %v5558_v19 }
 0x158   :  { %3490 = vmatpush1.bf16.msra.mxu0 %v5555_v17  ;;  %3737 = vmatprep.subr.bf16.mxu1 %v5566_v21 }
 0x159   :  { %3491 = vmatprep.subr.bf16.mxu0 %v5563_v20 }
 0x15a   :  { %10 = vsyncpa [#allocation3], 0  ;;  %v5567_v29 = vld [vmem:[%s7854_s1 + $0xce0] ss:$16 sps:$4 sm:$0xff]   ;;  %v5570_v31 = vld [vmem:[%s7854_s1 + $0x8e8] ss:$16 sps:$4 sm:$0xff]   ;;  %v7225_v36 = vrot.slane %v7004_v27, %v6101_v49  ;;  %v7241_v27 = vcombine.high %v7043_v63, %v7043_v63 }
 0x15b   :  { %3738 = vmatpush1.bf16.msra.mxu1 %v5564_v25  ;;  %v5575_v32 = vld [vmem:[%s7854_s1 + $0xd04] ss:$16 sps:$4 sm:$0xff]   ;;  %v5578_v33 = vld [vmem:[%s7854_s1 + $0x90c] ss:$16 sps:$4 sm:$0xff]   ;;  %v5573_v12 = vld [vmem:[%s7854_s1 + $0xd00] ss:$16 sps:$4 sm:$0xff]  }
 0x15c   :  { %3492 = vmatpush1.bf16.msra.mxu0 %v5561_v23  ;;  %3739 = vmatprep.subr.bf16.mxu1 %v5572_v28  ;;  %v5576_v34 = vld [vmem:[%s7854_s1 + $0x908] ss:$16 sps:$4 sm:$0xff]   ;;  %v5581_v35 = vld [vmem:[%s7854_s1 + $0xd24] ss:$16 sps:$4 sm:$0xff]   ;;  %v5584_v0 = vld [vmem:[%s7854_s1 + $0x92c] ss:$16 sps:$4 sm:$0xff]  }
 0x15d   :  { %3493 = vmatprep.subr.bf16.mxu0 %v5569_v26  ;;  %v5579_v37 = vld [vmem:[%s7854_s1 + $0xd20] ss:$16 sps:$4 sm:$0xff]   ;;  %v5582_v38 = vld [vmem:[%s7854_s1 + $0x928] ss:$16 sps:$4 sm:$0xff]   ;;  %v5587_v40 = vld [vmem:[%s7854_s1 + $0xd44] ss:$16 sps:$4 sm:$0xff]  }
 0x15e   :  { %v5590_v41 = vld [vmem:[%s7854_s1 + $0x94c] ss:$16 sps:$4 sm:$0xff]   ;;  %v5585_v43 = vld [vmem:[%s7854_s1 + $0xd40] ss:$16 sps:$4 sm:$0xff]   ;;  %v5588_v18 = vld [vmem:[%s7854_s1 + $0x948] ss:$16 sps:$4 sm:$0xff]  }
 0x15f   :  { %3740 = vmatpush1.bf16.msra.mxu1 %v5570_v31  ;;  %v5593_v44 = vld [vmem:[%s7854_s1 + $0xd64] ss:$16 sps:$4 sm:$0xff]   ;;  %v5596_v46 = vld [vmem:[%s7854_s1 + $0x96c] ss:$16 sps:$4 sm:$0xff]   ;;  %v5591_v22 = vld [vmem:[%s7854_s1 + $0xd60] ss:$16 sps:$4 sm:$0xff]  }
 0x160   :  { %3494 = vmatpush1.bf16.msra.mxu0 %v5567_v29  ;;  %3741 = vmatprep.subr.bf16.mxu1 %v5578_v33  ;;  %v5594_v47 = vld [vmem:[%s7854_s1 + $0x968] ss:$16 sps:$4 sm:$0xff]   ;;  %v5599_v48 = vld [vmem:[%s7854_s1 + $0xd84] ss:$16 sps:$4 sm:$0xff]   ;;  %v5602_v50 = vld [vmem:[%s7854_s1 + $0x98c] ss:$16 sps:$4 sm:$0xff]  }
 0x161   :  { %3495 = vmatprep.subr.bf16.mxu0 %v5575_v32  ;;  %v5597_v51 = vld [vmem:[%s7854_s1 + $0xd80] ss:$16 sps:$4 sm:$0xff]   ;;  %v5600_v24 = vld [vmem:[%s7854_s1 + $0x988] ss:$16 sps:$4 sm:$0xff]   ;;  %v5605_v52 = vld [vmem:[%s7854_s1 + $0xda4] ss:$16 sps:$4 sm:$0xff]  }
 0x162   :  { %v5608_v53 = vld [vmem:[%s7854_s1 + $0x9ac] ss:$16 sps:$4 sm:$0xff]   ;;  %v5603_v54 = vld [vmem:[%s7854_s1 + $0xda0] ss:$16 sps:$4 sm:$0xff]   ;;  %v5606_v10 = vld [vmem:[%s7854_s1 + $0x9a8] ss:$16 sps:$4 sm:$0xff]  }
 0x163   :  { %3742 = vmatpush1.bf16.msra.mxu1 %v5576_v34  ;;  %v5611_v55 = vld [vmem:[%s7854_s1 + $0xdc4] ss:$16 sps:$4 sm:$0xff]   ;;  %v5614_v56 = vld [vmem:[%s7854_s1 + $0x9cc] ss:$16 sps:$4 sm:$0xff]   ;;  %v5609_v57 = vld [vmem:[%s7854_s1 + $0xdc0] ss:$16 sps:$4 sm:$0xff]  }
 0x164   :  { %3496 = vmatpush1.bf16.msra.mxu0 %v5573_v12  ;;  %3743 = vmatprep.subr.bf16.mxu1 %v5584_v0  ;;  %v5612_v59 = vld [vmem:[%s7854_s1 + $0x9c8] ss:$16 sps:$4 sm:$0xff]   ;;  %v5617_v60 = vld [vmem:[%s7854_s1 + $0xde4] ss:$16 sps:$4 sm:$0xff]   ;;  %v5620_v61 = vld [vmem:[%s7854_s1 + $0x9ec] ss:$16 sps:$4 sm:$0xff]  }
 0x165   :  { %3497 = vmatprep.subr.bf16.mxu0 %v5581_v35  ;;  %v5615_v62 = vld [vmem:[%s7854_s1 + $0xde0] ss:$16 sps:$4 sm:$0xff]   ;;  %v5618_v1 = vld [vmem:[%s7854_s1 + $0x9e8] ss:$16 sps:$4 sm:$0xff]   ;;  %v5624_v2 = vld [vmem:[%s7854_s1 + $0xe04] ss:$16 sps:$4 sm:$0xff]  }
 0x166   :  { %v5627_v3 = vld [vmem:[%s7854_s1 + $0xa0c] ss:$16 sps:$4 sm:$0xff]   ;;  %v5622_v6 = vld [vmem:[%s7854_s1 + $0xe00] ss:$16 sps:$4 sm:$0xff]   ;;  %v5625_v7 = vld [vmem:[%s7854_s1 + $0xa08] ss:$16 sps:$4 sm:$0xff]  }
 0x167   :  { %3744 = vmatpush1.bf16.msra.mxu1 %v5582_v38  ;;  %v5630_v8 = vld [vmem:[%s7854_s1 + $0xe24] ss:$16 sps:$4 sm:$0xff]   ;;  %v5633_v49 = vld [vmem:[%s7854_s1 + $0xa2c] ss:$16 sps:$4 sm:$0xff]   ;;  %v5628_v39 = vld [vmem:[%s7854_s1 + $0xe20] ss:$16 sps:$4 sm:$0xff]  }
 0x168   :  { %3498 = vmatpush1.bf16.msra.mxu0 %v5579_v37  ;;  %3745 = vmatprep.subr.bf16.mxu1 %v5590_v41  ;;  %v5631_v9 = vld [vmem:[%s7854_s1 + $0xa28] ss:$16 sps:$4 sm:$0xff]   ;;  %v5636_v11 = vld [vmem:[%s7854_s1 + $0xe44] ss:$16 sps:$4 sm:$0xff]   ;;  %v5634_v13 = vld [vmem:[%s7854_s1 + $0xe40] ss:$16 sps:$4 sm:$0xff]  }
 0x169   :  { %3499 = vmatprep.subr.bf16.mxu0 %v5587_v40  ;;  %v5637_v14 = vld [vmem:[%s7854_s1 + $0xa48] ss:$16 sps:$4 sm:$0xff]   ;;  %v5642_v15 = vld [vmem:[%s7854_s1 + $0xe64] ss:$16 sps:$4 sm:$0xff]   ;;  %v5640_v16 = vld [vmem:[%s7854_s1 + $0xe60] ss:$16 sps:$4 sm:$0xff]  }
 0x16a   :  { %v5643_v17 = vld [vmem:[%s7854_s1 + $0xa68] ss:$16 sps:$4 sm:$0xff]   ;;  %v5648_v19 = vld [vmem:[%s7854_s1 + $0xe84] ss:$16 sps:$4 sm:$0xff]   ;;  %v5651_v20 = vld [vmem:[%s7854_s1 + $0xa8c] ss:$16 sps:$4 sm:$0xff]  }
 0x16b   :  { %3746 = vmatpush1.bf16.msra.mxu1 %v5588_v18  ;;  %v5646_v21 = vld [vmem:[%s7854_s1 + $0xe80] ss:$16 sps:$4 sm:$0xff]   ;;  %v5649_v23 = vld [vmem:[%s7854_s1 + $0xa88] ss:$16 sps:$4 sm:$0xff]   ;;  %v5654_v25 = vld [vmem:[%s7854_s1 + $0xea4] ss:$16 sps:$4 sm:$0xff]  }
 0x16c   :  { %3500 = vmatpush1.bf16.msra.mxu0 %v5585_v43  ;;  %3747 = vmatprep.subr.bf16.mxu1 %v5596_v46  ;;  %v5657_v26 = vld [vmem:[%s7854_s1 + $0xaac] ss:$16 sps:$4 sm:$0xff]   ;;  %v5652_v28 = vld [vmem:[%s7854_s1 + $0xea0] ss:$16 sps:$4 sm:$0xff]   ;;  %v5655_v29 = vld [vmem:[%s7854_s1 + $0xaa8] ss:$16 sps:$4 sm:$0xff]  }
 0x16d   :  { %3501 = vmatprep.subr.bf16.mxu0 %v5593_v44  ;;  %v5660_v31 = vld [vmem:[%s7854_s1 + $0xec4] ss:$16 sps:$4 sm:$0xff]   ;;  %v5663_v32 = vld [vmem:[%s7854_s1 + $0xacc] ss:$16 sps:$4 sm:$0xff]   ;;  %v5658_v33 = vld [vmem:[%s7854_s1 + $0xec0] ss:$16 sps:$4 sm:$0xff]  }
 0x16e   :  { %v5661_v12 = vld [vmem:[%s7854_s1 + $0xac8] ss:$16 sps:$4 sm:$0xff]   ;;  %v5666_v34 = vld [vmem:[%s7854_s1 + $0xee4] ss:$16 sps:$4 sm:$0xff]   ;;  %v5669_v35 = vld [vmem:[%s7854_s1 + $0xaec] ss:$16 sps:$4 sm:$0xff]  }
 0x16f   :  { %3748 = vmatpush1.bf16.msra.mxu1 %v5594_v47  ;;  %v5664_v0 = vld [vmem:[%s7854_s1 + $0xee0] ss:$16 sps:$4 sm:$0xff]   ;;  %v5667_v37 = vld [vmem:[%s7854_s1 + $0xae8] ss:$16 sps:$4 sm:$0xff]   ;;  %v5672_v38 = vld [vmem:[%s7854_s1 + $0xf04] ss:$16 sps:$4 sm:$0xff]  }
 0x170   :  { %3502 = vmatpush1.bf16.msra.mxu0 %v5591_v22  ;;  %3749 = vmatprep.subr.bf16.mxu1 %v5602_v50  ;;  %v5675_v40 = vld [vmem:[%s7854_s1 + $0xb0c] ss:$16 sps:$4 sm:$0xff]   ;;  %v5670_v41 = vld [vmem:[%s7854_s1 + $0xf00] ss:$16 sps:$4 sm:$0xff]   ;;  %v5673_v43 = vld [vmem:[%s7854_s1 + $0xb08] ss:$16 sps:$4 sm:$0xff]  }
 0x171   :  { %3503 = vmatprep.subr.bf16.mxu0 %v5599_v48  ;;  %v5678_v18 = vld [vmem:[%s7854_s1 + $0xf24] ss:$16 sps:$4 sm:$0xff]   ;;  %v5681_v44 = vld [vmem:[%s7854_s1 + $0xb2c] ss:$16 sps:$4 sm:$0xff]   ;;  %v5676_v46 = vld [vmem:[%s7854_s1 + $0xf20] ss:$16 sps:$4 sm:$0xff]  }
 0x172   :  { %v5679_v22 = vld [vmem:[%s7854_s1 + $0xb28] ss:$16 sps:$4 sm:$0xff]   ;;  %v5684_v47 = vld [vmem:[%s7854_s1 + $0xf44] ss:$16 sps:$4 sm:$0xff]   ;;  %v5687_v48 = vld [vmem:[%s7854_s1 + $0xb4c] ss:$16 sps:$4 sm:$0xff]  }
 0x173   :  { %3750 = vmatpush1.bf16.msra.mxu1 %v5600_v24  ;;  %v5682_v50 = vld [vmem:[%s7854_s1 + $0xf40] ss:$16 sps:$4 sm:$0xff]   ;;  %v5690_v24 = vld [vmem:[%s7854_s1 + $0xf64] ss:$16 sps:$4 sm:$0xff]   ;;  %s5935_s16 = smov [#allocation2]  }
 0x174   :  { %3504 = vmatpush1.bf16.msra.mxu0 %v5597_v51  ;;  %3751 = vmatprep.subr.bf16.mxu1 %v5608_v53  ;;  %v5685_v51 = vld [vmem:[%s7854_s1 + $0xb48] ss:$16 sps:$4 sm:$0xff]   ;;  %v5688_v53 = vld [vmem:[%s7854_s1 + $0xf60] ss:$16 sps:$4 sm:$0xff]   ;;  %s4393_s17 = sshll.u32 %s5935_s16, 4  ;;  %s4394_s17 = int_to_ptr.vmem [resolvable:$true] %s4393_s17 }
 0x175   :  { %3505 = vmatprep.subr.bf16.mxu0 %v5605_v52  ;;  %v5693_v52 = vld [vmem:[%s7854_s1 + $0xb6c] ss:$16 sps:$4 sm:$0xff]   ;;  %s5910_s18 = scalar_lea.vmem %s4394_s17, 64  ;;  %p5915_p1 = scmp.lt.s32.totalorder %s4394_s17, %s4394_s17 }
 0x176   :  { %p5911_p0 = scmp.ne.s32.totalorder %s4394_s17, %s5910_s18  ;;  %p5916_p2 = scmp.lt.s32.totalorder %s5910_s18, %s5910_s18 }
 0x177   :  { %3752 = vmatpush1.bf16.msra.mxu1 %v5606_v10  ;;  %v5696_v10 = vld [vmem:[%s7854_s1 + $0xf84] ss:$16 sps:$4 sm:$0xff]  }
 0x178   :  { %3506 = vmatpush1.bf16.msra.mxu0 %v5603_v54  ;;  %3753 = vmatprep.subr.bf16.mxu1 %v5614_v56  ;;  %v5691_v54 = vld [vmem:[%s7854_s1 + $0xb68] ss:$16 sps:$4 sm:$0xff]   ;;  %v5694_v56 = vld [vmem:[%s7854_s1 + $0xf80] ss:$16 sps:$4 sm:$0xff]   ;;  %p5917_p3 = por %p5916_p2, %p5915_p1 }
 0x179   :  { %3507 = vmatprep.subr.bf16.mxu0 %v5611_v55  ;;  %v5699_v55 = vld [vmem:[%s7854_s1 + $0xb8c] ss:$16 sps:$4 sm:$0xff]  }
 0x17a   :  { %p5918_p4 = pnand %p5917_p3, %p5911_p0 }
 0x17b   :  { %3754 = vmatpush1.bf16.msra.mxu1 %v5612_v59  ;;  %v5702_v59 = vld [vmem:[%s7854_s1 + $0xfa4] ss:$16 sps:$4 sm:$0xff]  }
 0x17c   :  { %3508 = vmatpush1.bf16.msra.mxu0 %v5609_v57  ;;  %3755 = vmatprep.subr.bf16.mxu1 %v5620_v61  ;;  %v5697_v57 = vld [vmem:[%s7854_s1 + $0xb88] ss:$16 sps:$4 sm:$0xff]   ;;  %v5700_v61 = vld [vmem:[%s7854_s1 + $0xfa0] ss:$16 sps:$4 sm:$0xff]  }
 0x17d   :  { %3509 = vmatprep.subr.bf16.mxu0 %v5617_v60  ;;  %v5705_v60 = vld [vmem:[%s7854_s1 + $0xbac] ss:$16 sps:$4 sm:$0xff]  }
 0x17f   :  { %3756 = vmatpush1.bf16.msra.mxu1 %v5618_v1  ;;  %v5708_v1 = vld [vmem:[%s7854_s1 + $0xfc4] ss:$16 sps:$4 sm:$0xff]  }
 0x180   :  { %3510 = vmatpush1.bf16.msra.mxu0 %v5615_v62  ;;  %3766 = vmatprep.subr.bf16.mxu1 %v5627_v3  ;;  %v5703_v62 = vld [vmem:[%s7854_s1 + $0xba8] ss:$16 sps:$4 sm:$0xff]   ;;  %v5706_v3 = vld [vmem:[%s7854_s1 + $0xfc0] ss:$16 sps:$4 sm:$0xff]  }
 0x181   :  { %3520 = vmatprep.subr.bf16.mxu0 %v5624_v2  ;;  %v5711_v2 = vld [vmem:[%s7854_s1 + $0xbcc] ss:$16 sps:$4 sm:$0xff]  }
 0x182   :  { %3758 = vmatmul.mubr.bf16.vlgmr.msra.gmra.mrb[4].mxu1 %v6810_v45  ;;  %v5639_v45 = vld [vmem:[%s7854_s1 + $0xa4c] ss:$16 sps:$4 sm:$0xff]  }
 0x183   :  { %3512 = vmatmul.mubr.bf16.vlgmr.msra.gmra.mrb[0].mxu0 %v7225_v36  ;;  %3767 = vmatpush1.bf16.msra.mxu1 %v5625_v7  ;;  %v5714_v7 = vld [vmem:[%s7854_s1 + $0xfe4] ss:$16 sps:$4 sm:$0xff]  }
 0x184   :  { %3521 = vmatpush1.bf16.msra.mxu0 %v5622_v6  ;;  %3768 = vmatprep.subr.bf16.mxu1 %v5633_v49  ;;  %v5709_v6 = vld [vmem:[%s7854_s1 + $0xbc8] ss:$16 sps:$4 sm:$0xff]   ;;  %v5712_v49 = vld [vmem:[%s7854_s1 + $0xfe0] ss:$16 sps:$4 sm:$0xff]  }
 0x185   :  { %3522 = vmatprep.subr.bf16.mxu0 %v5630_v8  ;;  %3552 = vmatprep.mubr.bf16.mxu0 %v7241_v27  ;;  %v5717_v8 = vld [vmem:[%s7854_s1 + $0xbec] ss:$16 sps:$4 sm:$0xff]  }
 0x186   :  { %3798 = vmatprep.mubr.bf16.mxu1 %v6823_v30  ;;  %v5645_v30 = vld [vmem:[%s7854_s1 + $0xa6c] ss:$16 sps:$4 sm:$0xff]  }
 0x187   :  { %3769 = vmatpush1.bf16.msra.mxu1 %v5631_v9  ;;  %v5720_v9 = vld [vmem:[%s7854_s1 + $0xc0c] ss:$16 sps:$4 sm:$0xff]  }
 0x188   :  { %3523 = vmatpush1.bf16.msra.mxu0 %v5628_v39  ;;  %3770 = vmatprep.subr.bf16.mxu1 %v5639_v45  ;;  %v5715_v39 = vld [vmem:[%s7854_s1 + $0xbe8] ss:$16 sps:$4 sm:$0xff]  }
 0x189   :  { %3524 = vmatprep.subr.bf16.mxu0 %v5636_v11  ;;  %v7426_v11 = vcombine.high %v7225_v36, %v7225_v36  ;;  %v5718_v45 = vld [vmem:[%s7854_s1 + $0xc08] ss:$16 sps:$4 sm:$0xff]  }
 0x18b   :  { %3771 = vmatpush1.bf16.msra.mxu1 %v5637_v14  ;;  %v5814_v14 = vld [vmem:[%s7856_s3] ss:$8 sps:$4 sm:$0xff]  }
 0x18c   :  { %3525 = vmatpush1.bf16.msra.mxu0 %v5634_v13  ;;  %3772 = vmatprep.subr.bf16.mxu1 %v5645_v30  ;;  %v5723_v13 = vld [vmem:[%s7854_s1 + $0xc2c] ss:$16 sps:$4 sm:$0xff]   ;;  %v5721_v30 = vld [vmem:[%s7854_s1 + $0xc28] ss:$16 sps:$4 sm:$0xff]  }
 0x18d   :  { %3526 = vmatprep.subr.bf16.mxu0 %v5642_v15  ;;  %v5816_v15 = vld [vmem:[%s7856_s3 + $0x4] ss:$8 sps:$4 sm:$0xff]  }
 0x18f   :  { %3773 = vmatpush1.bf16.msra.mxu1 %v5643_v17  ;;  %v5817_v17 = vld [vmem:[%s7856_s3 + $0x10] ss:$8 sps:$4 sm:$0xff]  }
 0x190   :  { %3527 = vmatpush1.bf16.msra.mxu0 %v5640_v16  ;;  %3774 = vmatprep.subr.bf16.mxu1 %v5651_v20  ;;  %v5819_v16 = vld [vmem:[%s7856_s3 + $0x14] ss:$8 sps:$4 sm:$0xff]  }
 0x191   :  { %3528 = vmatprep.subr.bf16.mxu0 %v5648_v19  ;;  %v5724_v19 = vld [vmem:[%s7854_s1 + $0xc48] ss:$16 sps:$4 sm:$0xff]   ;;  %v5729_v20 = vld [vmem:[%s7854_s1 + $0xc6c] ss:$16 sps:$4 sm:$0xff]  }
 0x193   :  { %3775 = vmatpush1.bf16.msra.mxu1 %v5649_v23  ;;  %v5825_v23 = vld [vmem:[%s7856_s3 + $0x34] ss:$8 sps:$4 sm:$0xff]  }
 0x194   :  { %3529 = vmatpush1.bf16.msra.mxu0 %v5646_v21  ;;  %3776 = vmatprep.subr.bf16.mxu1 %v5657_v26  ;;  %v5820_v21 = vld [vmem:[%s7856_s3 + $0x20] ss:$8 sps:$4 sm:$0xff]   ;;  %v5732_v26 = vld [vmem:[%s7854_s1 + $0xc8c] ss:$16 sps:$4 sm:$0xff]  }
 0x195   :  { %3530 = vmatprep.subr.bf16.mxu0 %v5654_v25  ;;  %v5727_v25 = vld [vmem:[%s7854_s1 + $0xc68] ss:$16 sps:$4 sm:$0xff]  }
 0x197   :  { %3777 = vmatpush1.bf16.msra.mxu1 %v5655_v29  ;;  %v5828_v29 = vld [vmem:[%s7856_s3 + $0x44] ss:$8 sps:$4 sm:$0xff]  }
 0x198   :  { %3531 = vmatpush1.bf16.msra.mxu0 %v5652_v28  ;;  %3778 = vmatprep.subr.bf16.mxu1 %v5663_v32  ;;  %v5823_v28 = vld [vmem:[%s7856_s3 + $0x30] ss:$8 sps:$4 sm:$0xff]   ;;  %v5735_v32 = vld [vmem:[%s7854_s1 + $0xcac] ss:$16 sps:$4 sm:$0xff]  }
 0x199   :  { %3532 = vmatprep.subr.bf16.mxu0 %v5660_v31  ;;  %v5730_v31 = vld [vmem:[%s7854_s1 + $0xc88] ss:$16 sps:$4 sm:$0xff]  }
 0x19b   :  { %3779 = vmatpush1.bf16.msra.mxu1 %v5661_v12  ;;  %v5831_v12 = vld [vmem:[%s7856_s3 + $0x54] ss:$8 sps:$4 sm:$0xff]  }
 0x19c   :  { %3533 = vmatpush1.bf16.msra.mxu0 %v5658_v33  ;;  %3780 = vmatprep.subr.bf16.mxu1 %v5669_v35  ;;  %v5826_v33 = vld [vmem:[%s7856_s3 + $0x40] ss:$8 sps:$4 sm:$0xff]   ;;  %v5738_v35 = vld [vmem:[%s7854_s1 + $0xccc] ss:$16 sps:$4 sm:$0xff]  }
 0x19d   :  { %3534 = vmatprep.subr.bf16.mxu0 %v5666_v34  ;;  %v5733_v34 = vld [vmem:[%s7854_s1 + $0xca8] ss:$16 sps:$4 sm:$0xff]  }
 0x19f   :  { %3781 = vmatpush1.bf16.msra.mxu1 %v5667_v37  ;;  %v5834_v37 = vld [vmem:[%s7856_s3 + $0x64] ss:$8 sps:$4 sm:$0xff]  }
 0x1a0   :  { %3535 = vmatpush1.bf16.msra.mxu0 %v5664_v0  ;;  %3782 = vmatprep.subr.bf16.mxu1 %v5675_v40  ;;  %v5829_v0 = vld [vmem:[%s7856_s3 + $0x50] ss:$8 sps:$4 sm:$0xff]   ;;  %v5741_v40 = vld [vmem:[%s7854_s1 + $0xcec] ss:$16 sps:$4 sm:$0xff]  }
 0x1a1   :  { %3536 = vmatprep.subr.bf16.mxu0 %v5672_v38  ;;  %v5736_v38 = vld [vmem:[%s7854_s1 + $0xcc8] ss:$16 sps:$4 sm:$0xff]  }
 0x1a3   :  { %3783 = vmatpush1.bf16.msra.mxu1 %v5673_v43  ;;  %v5837_v43 = vld [vmem:[%s7856_s3 + $0x74] ss:$8 sps:$4 sm:$0xff]  }
 0x1a4   :  { %3537 = vmatpush1.bf16.msra.mxu0 %v5670_v41  ;;  %3784 = vmatprep.subr.bf16.mxu1 %v5681_v44  ;;  %v5832_v41 = vld [vmem:[%s7856_s3 + $0x60] ss:$8 sps:$4 sm:$0xff]   ;;  %v5744_v44 = vld [vmem:[%s7854_s1 + $0xd0c] ss:$16 sps:$4 sm:$0xff]  }
 0x1a5   :  { %3538 = vmatprep.subr.bf16.mxu0 %v5678_v18  ;;  %v5739_v18 = vld [vmem:[%s7854_s1 + $0xce8] ss:$16 sps:$4 sm:$0xff]  }
 0x1a7   :  { %3785 = vmatpush1.bf16.msra.mxu1 %v5679_v22  ;;  %v5840_v22 = vld [vmem:[%s7856_s3 + $0x84] ss:$8 sps:$4 sm:$0xff]  }
 0x1a8   :  { %3539 = vmatpush1.bf16.msra.mxu0 %v5676_v46  ;;  %3786 = vmatprep.subr.bf16.mxu1 %v5687_v48  ;;  %v5835_v46 = vld [vmem:[%s7856_s3 + $0x70] ss:$8 sps:$4 sm:$0xff]   ;;  %v5747_v48 = vld [vmem:[%s7854_s1 + $0xd2c] ss:$16 sps:$4 sm:$0xff]  }
 0x1a9   :  { %3540 = vmatprep.subr.bf16.mxu0 %v5684_v47  ;;  %v5742_v47 = vld [vmem:[%s7854_s1 + $0xd08] ss:$16 sps:$4 sm:$0xff]  }
 0x1ab   :  { %3787 = vmatpush1.bf16.msra.mxu1 %v5685_v51  ;;  %v5843_v51 = vld [vmem:[%s7856_s3 + $0x94] ss:$8 sps:$4 sm:$0xff]  }
 0x1ac   :  { %3541 = vmatpush1.bf16.msra.mxu0 %v5682_v50  ;;  %3788 = vmatprep.subr.bf16.mxu1 %v5693_v52  ;;  %v5838_v50 = vld [vmem:[%s7856_s3 + $0x80] ss:$8 sps:$4 sm:$0xff]   ;;  %v5750_v52 = vld [vmem:[%s7854_s1 + $0xd4c] ss:$16 sps:$4 sm:$0xff]  }
 0x1ad   :  { %3542 = vmatprep.subr.bf16.mxu0 %v5690_v24  ;;  %v5745_v24 = vld [vmem:[%s7854_s1 + $0xd28] ss:$16 sps:$4 sm:$0xff]  }
 0x1af   :  { %3789 = vmatpush1.bf16.msra.mxu1 %v5691_v54  ;;  %v5846_v54 = vld [vmem:[%s7856_s3 + $0xa4] ss:$8 sps:$4 sm:$0xff]  }
 0x1b0   :  { %3543 = vmatpush1.bf16.msra.mxu0 %v5688_v53  ;;  %3790 = vmatprep.subr.bf16.mxu1 %v5699_v55  ;;  %v5841_v53 = vld [vmem:[%s7856_s3 + $0x90] ss:$8 sps:$4 sm:$0xff]   ;;  %v5753_v55 = vld [vmem:[%s7854_s1 + $0xd6c] ss:$16 sps:$4 sm:$0xff]  }
 0x1b1   :  { %3544 = vmatprep.subr.bf16.mxu0 %v5696_v10  ;;  %v5748_v10 = vld [vmem:[%s7854_s1 + $0xd48] ss:$16 sps:$4 sm:$0xff]  }
 0x1b3   :  { %3791 = vmatpush1.bf16.msra.mxu1 %v5697_v57  ;;  %v5849_v57 = vld [vmem:[%s7856_s3 + $0xb4] ss:$8 sps:$4 sm:$0xff]  }
 0x1b4   :  { %3545 = vmatpush1.bf16.msra.mxu0 %v5694_v56  ;;  %3792 = vmatprep.subr.bf16.mxu1 %v5705_v60  ;;  %v5844_v56 = vld [vmem:[%s7856_s3 + $0xa0] ss:$8 sps:$4 sm:$0xff]   ;;  %v5756_v60 = vld [vmem:[%s7854_s1 + $0xd8c] ss:$16 sps:$4 sm:$0xff]  }
 0x1b5   :  { %3546 = vmatprep.subr.bf16.mxu0 %v5702_v59  ;;  %v5751_v59 = vld [vmem:[%s7854_s1 + $0xd68] ss:$16 sps:$4 sm:$0xff]  }
 0x1b7   :  { %3793 = vmatpush1.bf16.msra.mxu1 %v5703_v62  ;;  %v5852_v62 = vld [vmem:[%s7856_s3 + $0xc4] ss:$8 sps:$4 sm:$0xff]  }
 0x1b8   :  { %3547 = vmatpush1.bf16.msra.mxu0 %v5700_v61  ;;  %3794 = vmatprep.subr.bf16.mxu1 %v5711_v2  ;;  %v5847_v61 = vld [vmem:[%s7856_s3 + $0xb0] ss:$8 sps:$4 sm:$0xff]   ;;  %v5759_v2 = vld [vmem:[%s7854_s1 + $0xdac] ss:$16 sps:$4 sm:$0xff]  }
 0x1b9   :  { %3548 = vmatprep.subr.bf16.mxu0 %v5708_v1  ;;  %v5754_v1 = vld [vmem:[%s7854_s1 + $0xd88] ss:$16 sps:$4 sm:$0xff]  }
 0x1bb   :  { %3795 = vmatpush1.bf16.msra.mxu1 %v5709_v6  ;;  %v5855_v6 = vld [vmem:[%s7856_s3 + $0xd4] ss:$8 sps:$4 sm:$0xff]  }
 0x1bc   :  { %3549 = vmatpush1.bf16.msra.mxu0 %v5706_v3  ;;  %3796 = vmatprep.subr.bf16.mxu1 %v5717_v8  ;;  %v5850_v3 = vld [vmem:[%s7856_s3 + $0xc0] ss:$8 sps:$4 sm:$0xff]   ;;  %v5762_v8 = vld [vmem:[%s7854_s1 + $0xdcc] ss:$16 sps:$4 sm:$0xff]  }
 0x1bd   :  { %3550 = vmatprep.subr.bf16.mxu0 %v5714_v7  ;;  %v5757_v7 = vld [vmem:[%s7854_s1 + $0xda8] ss:$16 sps:$4 sm:$0xff]  }
 0x1bf   :  { %3797 = vmatpush1.bf16.msra.mxu1 %v5715_v39  ;;  %v5760_v39 = vld [vmem:[%s7854_s1 + $0xdc8] ss:$16 sps:$4 sm:$0xff]  }
 0x1c0   :  { %3551 = vmatpush1.bf16.msra.mxu0 %v5712_v49  ;;  %3807 = vmatprep.subr.bf16.mxu1 %v5720_v9  ;;  %v5853_v49 = vld [vmem:[%s7856_s3 + $0xd0] ss:$8 sps:$4 sm:$0xff]   ;;  %v5765_v9 = vld [vmem:[%s7854_s1 + $0xdec] ss:$16 sps:$4 sm:$0xff]  }
 0x1c1   :  { %4293 = vmatprep.subr.bf16.mxu0 %v5816_v15  ;;  %v5771_v15 = vld [vmem:[%s7854_s1 + $0xe2c] ss:$16 sps:$4 sm:$0xff]  }
 0x1c2   :  { %3799 = vmatmul.mubr.bf16.vlgmr.msra.gmra.mrb[4].mxu1 %v7028_v58  ;;  %v5726_v58 = vld [vmem:[%s7854_s1 + $0xc4c] ss:$16 sps:$4 sm:$0xff]  }
 0x1c3   :  { %3553 = vmatmul.mubr.bf16.vlgmr.msra.gmra.mrb[0].mxu0 %v7426_v11  ;;  %3808 = vmatpush1.bf16.msra.mxu1 %v5718_v45  ;;  %v5763_v45 = vld [vmem:[%s7854_s1 + $0xde8] ss:$16 sps:$4 sm:$0xff]  }
 0x1c4   :  { %3839 = vmatprep.mubr.bf16.mxu1 %v7043_v63  ;;  %3809 = vmatprep.subr.bf16.mxu1 %v5723_v13  ;;  %v5822_v63 = vld [vmem:[%s7856_s3 + $0x24] ss:$8 sps:$4 sm:$0xff]  }
 0x1c5   :  { %4294 = vmatpush1.bf16.msra.mxu0 %v5814_v14  ;;  %v5768_v13 = vld [vmem:[%s7854_s1 + $0xe0c] ss:$16 sps:$4 sm:$0xff]   ;;  %v5766_v14 = vld [vmem:[%s7854_s1 + $0xe08] ss:$16 sps:$4 sm:$0xff]  }
 0x1c6   :  { %4295 = vmatprep.subr.bf16.mxu0 %v5819_v16  ;;  %v5774_v16 = vld [vmem:[%s7854_s1 + $0xe4c] ss:$16 sps:$4 sm:$0xff]  }
 0x1c7   :  { %3810 = vmatpush1.bf16.msra.mxu1 %v5721_v30  ;;  %v5769_v30 = vld [vmem:[%s7854_s1 + $0xe28] ss:$16 sps:$4 sm:$0xff]  }
 0x1c8   :  { %3811 = vmatprep.subr.bf16.mxu1 %v5726_v58  ;;  %v5772_v58 = vld [vmem:[%s7854_s1 + $0xe48] ss:$16 sps:$4 sm:$0xff]  }
 0x1c9   :  { %4296 = vmatpush1.bf16.msra.mxu0 %v5817_v17  ;;  %v5780_v17 = vld [vmem:[%s7854_s1 + $0xe8c] ss:$16 sps:$4 sm:$0xff]  }
 0x1ca   :  { %4297 = vmatprep.subr.bf16.mxu0 %v5822_v63  ;;  %v5778_v63 = vld [vmem:[%s7854_s1 + $0xe88] ss:$16 sps:$4 sm:$0xff]  }
 0x1cb   :  { %3812 = vmatpush1.bf16.msra.mxu1 %v5724_v19  ;;  %v5783_v19 = vld [vmem:[%s7854_s1 + $0xeac] ss:$16 sps:$4 sm:$0xff]  }
 0x1cc   :  { %3813 = vmatprep.subr.bf16.mxu1 %v5729_v20  ;;  %v5781_v20 = vld [vmem:[%s7854_s1 + $0xea8] ss:$16 sps:$4 sm:$0xff]  }
 0x1cd   :  { %4298 = vmatpush1.bf16.msra.mxu0 %v5820_v21  ;;  %v5786_v21 = vld [vmem:[%s7854_s1 + $0xecc] ss:$16 sps:$4 sm:$0xff]  }
 0x1ce   :  { %4299 = vmatprep.subr.bf16.mxu0 %v5825_v23  ;;  %v5858_v23 = vld [vmem:[%s7856_s3 + $0xe4] ss:$8 sps:$4 sm:$0xff]  }
 0x1cf   :  { %3814 = vmatpush1.bf16.msra.mxu1 %v5727_v25  ;;  %v5856_v25 = vld [vmem:[%s7856_s3 + $0xe0] ss:$8 sps:$4 sm:$0xff]  }
 0x1d0   :  { %3815 = vmatprep.subr.bf16.mxu1 %v5732_v26  ;;  %v5784_v26 = vld [vmem:[%s7854_s1 + $0xec8] ss:$16 sps:$4 sm:$0xff]  }
 0x1d1   :  { %4300 = vmatpush1.bf16.msra.mxu0 %v5823_v28  ;;  %v5789_v28 = vld [vmem:[%s7854_s1 + $0xeec] ss:$16 sps:$4 sm:$0xff]  }
 0x1d2   :  { %4301 = vmatprep.subr.bf16.mxu0 %v5828_v29  ;;  %v5861_v29 = vld [vmem:[%s7856_s3 + $0xf4] ss:$8 sps:$4 sm:$0xff]  }
 0x1d3   :  { %3816 = vmatpush1.bf16.msra.mxu1 %v5730_v31  ;;  %v5859_v31 = vld [vmem:[%s7856_s3 + $0xf0] ss:$8 sps:$4 sm:$0xff]  }
 0x1d4   :  { %3817 = vmatprep.subr.bf16.mxu1 %v5735_v32  ;;  %v5787_v32 = vld [vmem:[%s7854_s1 + $0xee8] ss:$16 sps:$4 sm:$0xff]  }
 0x1d5   :  { %4302 = vmatpush1.bf16.msra.mxu0 %v5826_v33  ;;  %v5792_v33 = vld [vmem:[%s7854_s1 + $0xf0c] ss:$16 sps:$4 sm:$0xff]  }
 0x1d6   :  { %4303 = vmatprep.subr.bf16.mxu0 %v5831_v12  ;;  %v5864_v12 = vld [vmem:[%s7856_s3 + $0x104] ss:$8 sps:$4 sm:$0xff]  }
 0x1d7   :  { %3818 = vmatpush1.bf16.msra.mxu1 %v5733_v34  ;;  %v5790_v34 = vld [vmem:[%s7854_s1 + $0xf08] ss:$16 sps:$4 sm:$0xff]  }
 0x1d8   :  { %3819 = vmatprep.subr.bf16.mxu1 %v5738_v35  ;;  %v5795_v35 = vld [vmem:[%s7854_s1 + $0xf2c] ss:$16 sps:$4 sm:$0xff]  }
 0x1d9   :  { %4304 = vmatpush1.bf16.msra.mxu0 %v5829_v0  ;;  %v5793_v0 = vld [vmem:[%s7854_s1 + $0xf28] ss:$16 sps:$4 sm:$0xff]  }
 0x1da   :  { %4305 = vmatprep.subr.bf16.mxu0 %v5834_v37  ;;  %v5798_v37 = vld [vmem:[%s7854_s1 + $0xf4c] ss:$16 sps:$4 sm:$0xff]  }
 0x1db   :  { %3820 = vmatpush1.bf16.msra.mxu1 %v5736_v38  ;;  %v5796_v38 = vld [vmem:[%s7854_s1 + $0xf48] ss:$16 sps:$4 sm:$0xff]  }
 0x1dc   :  { %3821 = vmatprep.subr.bf16.mxu1 %v5741_v40  ;;  %v5801_v40 = vld [vmem:[%s7854_s1 + $0xf6c] ss:$16 sps:$4 sm:$0xff]  }
 0x1dd   :  { %4306 = vmatpush1.bf16.msra.mxu0 %v5832_v41  ;;  %v5799_v41 = vld [vmem:[%s7854_s1 + $0xf68] ss:$16 sps:$4 sm:$0xff]  }
 0x1de   :  { %4307 = vmatprep.subr.bf16.mxu0 %v5837_v43  ;;  %v5804_v43 = vld [vmem:[%s7854_s1 + $0xf8c] ss:$16 sps:$4 sm:$0xff]  }
 0x1df   :  { %3822 = vmatpush1.bf16.msra.mxu1 %v5739_v18  ;;  %v5802_v18 = vld [vmem:[%s7854_s1 + $0xf88] ss:$16 sps:$4 sm:$0xff]  }
 0x1e0   :  { %3823 = vmatprep.subr.bf16.mxu1 %v5744_v44  ;;  %v5807_v44 = vld [vmem:[%s7854_s1 + $0xfac] ss:$16 sps:$4 sm:$0xff]  }
 0x1e1   :  { %4308 = vmatpush1.bf16.msra.mxu0 %v5835_v46  ;;  %v5805_v46 = vld [vmem:[%s7854_s1 + $0xfa8] ss:$16 sps:$4 sm:$0xff]  }
 0x1e2   :  { %4309 = vmatprep.subr.bf16.mxu0 %v5840_v22  ;;  %v5810_v22 = vld [vmem:[%s7854_s1 + $0xfcc] ss:$16 sps:$4 sm:$0xff]  }
 0x1e3   :  { %3824 = vmatpush1.bf16.msra.mxu1 %v5742_v47  ;;  %v5808_v47 = vld [vmem:[%s7854_s1 + $0xfc8] ss:$16 sps:$4 sm:$0xff]  }
 0x1e4   :  { %3825 = vmatprep.subr.bf16.mxu1 %v5747_v48  ;;  %v5813_v48 = vld [vmem:[%s7854_s1 + $0xfec] ss:$16 sps:$4 sm:$0xff]  }
 0x1e5   :  { %4310 = vmatpush1.bf16.msra.mxu0 %v5838_v50  ;;  %v5811_v50 = vld [vmem:[%s7854_s1 + $0xfe8] ss:$16 sps:$4 sm:$0xff]  }
 0x1e6   :  { %4311 = vmatprep.subr.bf16.mxu0 %v5843_v51  ;;  %v539_v51 = vsub.s32 0, %v6083_v42 }
 0x1e7   :  { %3826 = vmatpush1.bf16.msra.mxu1 %v5745_v24  ;;  %v7726_v24 = vld [vmem:[%s7855_s2] sm:$0xf] }
 0x1e8   :  { %3827 = vmatprep.subr.bf16.mxu1 %v5750_v52  ;;  %v543_v52 = vsub.s32 1, %v6083_v42 }
 0x1e9   :  { %4312 = vmatpush1.bf16.msra.mxu0 %v5841_v53  ;;  %v540_v53 = vrot.slane %v7726_v24, %v539_v51 }
 0x1ea   :  { %4313 = vmatprep.subr.bf16.mxu0 %v5846_v54  ;;  %v544_v54 = vrot.slane %v7726_v24, %v543_v52 }
 0x1eb   :  { %3828 = vmatpush1.bf16.msra.mxu1 %v5748_v10  ;;  %v3268_v10 = vadd.f32 %v6889_v4, %v540_v53  ;;  %v5867_v4 = vld [vmem:[%s7856_s3 + $0x114] ss:$8 sps:$4 sm:$0xff]  }
 0x1ec   :  { %3829 = vmatprep.subr.bf16.mxu1 %v5753_v55 }
 0x1ed   :  { %4314 = vmatpush1.bf16.msra.mxu0 %v5844_v56 }
 0x1ee   :  { %4315 = vmatprep.subr.bf16.mxu0 %v5849_v57 }
 0x1ef   :  { %3830 = vmatpush1.bf16.msra.mxu1 %v5751_v59 }
 0x1f0   :  { %3831 = vmatprep.subr.bf16.mxu1 %v5756_v60 }
 0x1f1   :  { %4316 = vmatpush1.bf16.msra.mxu0 %v5847_v61 }
 0x1f2   :  { %4317 = vmatprep.subr.bf16.mxu0 %v5852_v62 }
 0x1f3   :  { %3832 = vmatpush1.bf16.msra.mxu1 %v5754_v1 }
 0x1f4   :  { %3833 = vmatprep.subr.bf16.mxu1 %v5759_v2 }
 0x1f5   :  { %4318 = vmatpush1.bf16.msra.mxu0 %v5850_v3  ;;  %v5862_v3 = vld [vmem:[%s7856_s3 + $0x100] ss:$8 sps:$4 sm:$0xff]  }
 0x1f6   :  { %4319 = vmatprep.subr.bf16.mxu0 %v5855_v6 }
 0x1f7   :  { %3834 = vmatpush1.bf16.msra.mxu1 %v5757_v7  ;;  %v5870_v7 = vld [vmem:[%s7856_s3 + $0x124] ss:$8 sps:$4 sm:$0xff]  }
 0x1f8   :  { %3835 = vmatprep.subr.bf16.mxu1 %v5762_v8  ;;  %v5868_v8 = vld [vmem:[%s7856_s3 + $0x120] ss:$8 sps:$4 sm:$0xff]  }
 0x1f9   :  { %4320 = vmatpush1.bf16.msra.mxu0 %v5853_v49  ;;  %v5873_v49 = vld [vmem:[%s7856_s3 + $0x134] ss:$8 sps:$4 sm:$0xff]  }
 0x1fa   :  { %4321 = vmatprep.subr.bf16.mxu0 %v5858_v23  ;;  %v5895_v23 = vld [vmem:[%s7856_s3 + $0x1b0] ss:$8 sps:$4 sm:$0xff]  }
 0x1fb   :  { %3836 = vmatpush1.bf16.msra.mxu1 %v5760_v39  ;;  %v5871_v39 = vld [vmem:[%s7856_s3 + $0x130] ss:$8 sps:$4 sm:$0xff]  }
 0x1fc   :  { %3837 = vmatprep.subr.bf16.mxu1 %v5765_v9  ;;  %v5876_v9 = vld [vmem:[%s7856_s3 + $0x144] ss:$8 sps:$4 sm:$0xff]  }
 0x1fd   :  { %4322 = vmatpush1.bf16.msra.mxu0 %v5856_v25  ;;  %v5900_v25 = vld [vmem:[%s7856_s3 + $0x1c4] ss:$8 sps:$4 sm:$0xff]  }
 0x1fe   :  { %4323 = vmatprep.subr.bf16.mxu0 %v5861_v29  ;;  %v5901_v29 = vld [vmem:[%s7856_s3 + $0x1d0] ss:$8 sps:$4 sm:$0xff]  }
 0x1ff   :  { %3838 = vmatpush1.bf16.msra.mxu1 %v5763_v45  ;;  %v5874_v45 = vld [vmem:[%s7856_s3 + $0x140] ss:$8 sps:$4 sm:$0xff]  }
 0x200   :  { %3848 = vmatprep.subr.bf16.mxu1 %v5768_v13  ;;  %v5879_v13 = vld [vmem:[%s7856_s3 + $0x154] ss:$8 sps:$4 sm:$0xff]  }
 0x201   :  { %4324 = vmatpush1.bf16.msra.mxu0 %v5859_v31  ;;  %v5906_v31 = vld [vmem:[%s7856_s3 + $0x1e4] ss:$8 sps:$4 sm:$0xff]  }
 0x202   :  { %3840 = vmatmul.mubr.bf16.vlgmr.msra.gmra.mrb[4].mxu1 %v7225_v36  ;;  %v5777_v36 = vld [vmem:[%s7854_s1 + $0xe6c] ss:$16 sps:$4 sm:$0xff]   ;;  %4334 = vmatprep.subr.bf16.mxu0 %v5864_v12  ;;  %v5907_v12 = vld [vmem:[%s7856_s3 + $0x1f0] ss:$8 sps:$4 sm:$0xff]  }
 0x203   :  { %3849 = vmatpush1.bf16.msra.mxu1 %v5766_v14  ;;  %3880 = vmatprep.mubr.bf16.mxu1 %v7241_v27  ;;  %v5775_v27 = vld [vmem:[%s7854_s1 + $0xe68] ss:$16 sps:$4 sm:$0xff]  }
 0x204   :  { %3850 = vmatprep.subr.bf16.mxu1 %v5771_v15  ;;  %v5877_v14 = vld [vmem:[%s7856_s3 + $0x150] ss:$8 sps:$4 sm:$0xff]   ;;  %v5882_v15 = vld [vmem:[%s7856_s3 + $0x164] ss:$8 sps:$4 sm:$0xff]  }
 0x207   :  { %3851 = vmatpush1.bf16.msra.mxu1 %v5769_v30  ;;  %v5880_v30 = vld [vmem:[%s7856_s3 + $0x160] ss:$8 sps:$4 sm:$0xff]  }
 0x208   :  { %3852 = vmatprep.subr.bf16.mxu1 %v5774_v16  ;;  %v5885_v16 = vld [vmem:[%s7856_s3 + $0x174] ss:$8 sps:$4 sm:$0xff]  }
 0x20b   :  { %3853 = vmatpush1.bf16.msra.mxu1 %v5772_v58  ;;  %v5883_v58 = vld [vmem:[%s7856_s3 + $0x170] ss:$8 sps:$4 sm:$0xff]  }
 0x20c   :  { %3854 = vmatprep.subr.bf16.mxu1 %v5777_v36  ;;  %v5888_v36 = vld [vmem:[%s7856_s3 + $0x184] ss:$8 sps:$4 sm:$0xff]  }
 0x20f   :  { %3855 = vmatpush1.bf16.msra.mxu1 %v5775_v27  ;;  %v5886_v27 = vld [vmem:[%s7856_s3 + $0x180] ss:$8 sps:$4 sm:$0xff]  }
 0x210   :  { %3856 = vmatprep.subr.bf16.mxu1 %v5780_v17  ;;  %v5891_v17 = vld [vmem:[%s7856_s3 + $0x194] ss:$8 sps:$4 sm:$0xff]  }
 0x213   :  { %3857 = vmatpush1.bf16.msra.mxu1 %v5778_v63  ;;  %v5889_v63 = vld [vmem:[%s7856_s3 + $0x190] ss:$8 sps:$4 sm:$0xff]  }
 0x214   :  { %3858 = vmatprep.subr.bf16.mxu1 %v5783_v19  ;;  %v5894_v19 = vld [vmem:[%s7856_s3 + $0x1a4] ss:$8 sps:$4 sm:$0xff]  }
 0x217   :  { %3859 = vmatpush1.bf16.msra.mxu1 %v5781_v20  ;;  %v5892_v20 = vld [vmem:[%s7856_s3 + $0x1a0] ss:$8 sps:$4 sm:$0xff]  }
 0x218   :  { %3860 = vmatprep.subr.bf16.mxu1 %v5786_v21  ;;  %v5897_v21 = vld [vmem:[%s7856_s3 + $0x1b4] ss:$8 sps:$4 sm:$0xff]  }
 0x21b   :  { %3861 = vmatpush1.bf16.msra.mxu1 %v5784_v26  ;;  %v5898_v26 = vld [vmem:[%s7856_s3 + $0x1c0] ss:$8 sps:$4 sm:$0xff]  }
 0x21c   :  { %3862 = vmatprep.subr.bf16.mxu1 %v5789_v28  ;;  %v5903_v28 = vld [vmem:[%s7856_s3 + $0x1d4] ss:$8 sps:$4 sm:$0xff]  }
 0x21f   :  { %3863 = vmatpush1.bf16.msra.mxu1 %v5787_v32  ;;  %v5904_v32 = vld [vmem:[%s7856_s3 + $0x1e0] ss:$8 sps:$4 sm:$0xff]  }
 0x220   :  { %3864 = vmatprep.subr.bf16.mxu1 %v5792_v33  ;;  %v5909_v33 = vld [vmem:[%s7856_s3 + $0x1f4] ss:$8 sps:$4 sm:$0xff]  }
 0x223   :  { %3865 = vmatpush1.bf16.msra.mxu1 %v5790_v34  ;;  %v547_v34 = vsub.s32 2, %v6083_v42 }
 0x224   :  { %3866 = vmatprep.subr.bf16.mxu1 %v5795_v35  ;;  %v551_v35 = vsub.s32 3, %v6083_v42 }
 0x227   :  { %3867 = vmatpush1.bf16.msra.mxu1 %v5793_v0  ;;  %v548_v0 = vrot.slane %v7726_v24, %v547_v34 }
 0x228   :  { %3868 = vmatprep.subr.bf16.mxu1 %v5798_v37  ;;  %v552_v37 = vrot.slane %v7726_v24, %v551_v35 }
 0x22b   :  { %3869 = vmatpush1.bf16.msra.mxu1 %v5796_v38 }
 0x22c   :  { %3870 = vmatprep.subr.bf16.mxu1 %v5801_v40 }
 0x22f   :  { %3871 = vmatpush1.bf16.msra.mxu1 %v5799_v41 }
 0x230   :  { %3872 = vmatprep.subr.bf16.mxu1 %v5804_v43 }
 0x233   :  { %3873 = vmatpush1.bf16.msra.mxu1 %v5802_v18 }
 0x234   :  { %3874 = vmatprep.subr.bf16.mxu1 %v5807_v44 }
 0x237   :  { %3875 = vmatpush1.bf16.msra.mxu1 %v5805_v46 }
 0x238   :  { %3876 = vmatprep.subr.bf16.mxu1 %v5810_v22 }
 0x23b   :  { %3877 = vmatpush1.bf16.msra.mxu1 %v5808_v47 }
 0x23c   :  { %3878 = vmatprep.subr.bf16.mxu1 %v5813_v48 }
 0x23f   :  { %3879 = vmatpush1.bf16.msra.mxu1 %v5811_v50  ;;  %v3961_v50 = vld [vmem:[%s7857_s4] sm:$0x3] }
 0x240   :  { %v3966_v53 = vrot.slane %v3961_v50, %v539_v51  ;;  %v3970_v24 = vrot.slane %v3961_v50, %v543_v52 }
 0x242   :  { %3881 = vmatmul.mubr.bf16.vlgmr.msra.gmra.mrb[4].mxu1 %v7426_v11  ;;  %v3270_v11 = vadd.f32 %v6891_v5, %v544_v54  ;;  %v5865_v5 = vld [vmem:[%s7856_s3 + $0x110] ss:$8 sps:$4 sm:$0xff]  }
 0x296   :  { %v3554_v55 = vpop.f32.mrb[0].mxu0 }
 0x297   :  { %v4979_v56 = vadd.f32 %v3554_v55, %v3268_v10  ;;  %v3556_v57 = vpop.f32.mrb[1].mxu0 }
 0x298   :  { %v4981_v59 = vadd.f32 %v3556_v57, %v3270_v11  ;;  %v3558_v60 = vpop.f32.mrb[2].mxu0 }
 0x299   :  { %v3889_v61 = vmax.f32 %v4979_v56, 0.0  ;;  %v3559_v62 = vpop.f32.mrb[3].mxu0 }
 0x29a   :  { %v3890_v1 = vmax.f32 %v4981_v59, 0.0 }
 0x29b   :  { %v3893_v6 = vpack.c.bf16 %v3889_v61, %v3889_v61 }
 0x29c   :  { %v3894_v2 = vpack.c.bf16 %v3890_v1, %v3890_v1 }
 0x29e   :  { %4325 = vmatprep.mubr.bf16.mxu0 %v3894_v2 }
 0x29f   :  { %4326 = vmatmul.mubr.bf16.vlgmr.msra.gmra.mrb[4].mxu0 %v3893_v6 }
 0x2a0   :  { %4335 = vmatpush1.bf16.msra.mxu0 %v5862_v3 }
 0x2a1   :  { %4336 = vmatprep.subr.bf16.mxu0 %v5867_v4 }
 0x2a4   :  { %4337 = vmatpush1.bf16.msra.mxu0 %v5865_v5 }
 0x2a5   :  { %4338 = vmatprep.subr.bf16.mxu0 %v5870_v7 }
 0x2a8   :  { %4339 = vmatpush1.bf16.msra.mxu0 %v5868_v8 }
 0x2a9   :  { %4340 = vmatprep.subr.bf16.mxu0 %v5873_v49 }
 0x2ac   :  { %4341 = vmatpush1.bf16.msra.mxu0 %v5871_v39 }
 0x2ad   :  { %4342 = vmatprep.subr.bf16.mxu0 %v5876_v9 }
 0x2b0   :  { %4343 = vmatpush1.bf16.msra.mxu0 %v5874_v45 }
 0x2b1   :  { %4344 = vmatprep.subr.bf16.mxu0 %v5879_v13 }
 0x2b4   :  { %4345 = vmatpush1.bf16.msra.mxu0 %v5877_v14 }
 0x2b5   :  { %4346 = vmatprep.subr.bf16.mxu0 %v5882_v15 }
 0x2b8   :  { %4347 = vmatpush1.bf16.msra.mxu0 %v5880_v30 }
 0x2b9   :  { %4348 = vmatprep.subr.bf16.mxu0 %v5885_v16 }
 0x2bc   :  { %4349 = vmatpush1.bf16.msra.mxu0 %v5883_v58 }
 0x2bd   :  { %4350 = vmatprep.subr.bf16.mxu0 %v5888_v36 }
 0x2c0   :  { %4351 = vmatpush1.bf16.msra.mxu0 %v5886_v27 }
 0x2c1   :  { %4352 = vmatprep.subr.bf16.mxu0 %v5891_v17 }
 0x2c4   :  { %4353 = vmatpush1.bf16.msra.mxu0 %v5889_v63 }
 0x2c5   :  { %4354 = vmatprep.subr.bf16.mxu0 %v5894_v19 }
 0x2c8   :  { %4355 = vmatpush1.bf16.msra.mxu0 %v5892_v20 }
 0x2c9   :  { %4356 = vmatprep.subr.bf16.mxu0 %v5897_v21 }
 0x2cc   :  { %4357 = vmatpush1.bf16.msra.mxu0 %v5895_v23 }
 0x2cd   :  { %4358 = vmatprep.subr.bf16.mxu0 %v5900_v25 }
 0x2d0   :  { %4359 = vmatpush1.bf16.msra.mxu0 %v5898_v26 }
 0x2d1   :  { %4360 = vmatprep.subr.bf16.mxu0 %v5903_v28 }
 0x2d4   :  { %4361 = vmatpush1.bf16.msra.mxu0 %v5901_v29 }
 0x2d5   :  { %4362 = vmatprep.subr.bf16.mxu0 %v5906_v31 }
 0x2d8   :  { %4363 = vmatpush1.bf16.msra.mxu0 %v5904_v32 }
 0x2d9   :  { %4364 = vmatprep.subr.bf16.mxu0 %v5909_v33 }
 0x2dc   :  { %4365 = vmatpush1.bf16.msra.mxu0 %v5907_v12 }
 0x315   :  { %v3882_v38 = vpop.f32.mrb[4].mxu1 }
 0x316   :  { %v4982_v40 = vadd.f32 %v3882_v38, %v548_v0  ;;  %v3884_v41 = vpop.f32.mrb[5].mxu1 }
 0x317   :  { %v4983_v43 = vadd.f32 %v3884_v41, %v552_v37  ;;  %v3886_v18 = vpop.f32.mrb[6].mxu1 }
 0x318   :  { %v3891_v44 = vmax.f32 %v4982_v40, 0.0  ;;  %v3887_v46 = vpop.f32.mrb[7].mxu1 }
 0x319   :  { %v3892_v22 = vmax.f32 %v4983_v43, 0.0 }
 0x31a   :  { %v3895_v48 = vpack.c.bf16 %v3891_v44, %v3891_v44 }
 0x31b   :  { %v3896_v47 = vpack.c.bf16 %v3892_v22, %v3892_v22 }
 0x31d   :  { %4366 = vmatprep.mubr.bf16.mxu0 %v3896_v47 }
 0x31e   :  { %4367 = vmatmul.mubr.bf16.vlgmr.msra.gmra.mrb[4].mxu0 %v3895_v48 }
 0x3f1   :  { %v4368_v54 = vpop.f32.mrb[4].mxu0 }
 0x3f2   :  { %v4984_v10 = vadd.f32 %v4368_v54, %v3966_v53  ;;  %v4370_v11 = vpop.f32.mrb[5].mxu0 }
 0x3f3   :  { %v4985_v55 = vadd.f32 %v4370_v11, %v3970_v24  ;;  %v4372_v56 = vpop.f32.mrb[6].mxu0 }
 0x3f4   :  { %v4373_v57 = vpop.f32.mrb[7].mxu0 }
 0x3f5   :  { %v4377_v59 = vcombine.low %v4984_v10, %v4985_v55 }
 0x3f7   :  { %4977 = vst.sshfl [vmem:[#allocation2] sm:$0x33 pattern:$0x76325410] %v4377_v59 }
 0x3f8   :  { %5921 = shalt.err (!%p5918_p4)
}
 0x3f9   :  { %s5922_s20 = scalar_lea.hbm %s7858_s5, 64 }
 0x3fa   :  { %p5923_p5 = scmp.ne.s32.totalorder %s7858_s5, %s5922_s20  ;;  %p5926_p6 = scmp.lt.u32.totalorder %s5922_s20, %s7858_s5 }
 0x3fc   :  { %p5928_p7 = pnand %p5926_p6, %p5923_p5 }
 0x3fe   :  { %5931 = shalt.err (!%p5928_p7)
}
 0x3ff   :  { %4396 = dma.vmem_to_hbm [thread:$0]  %s4394_s17, 64, %s7858_s5, [#allocation3]  }
 0x400   :  { %5932 = dma.done.wait [#allocation3], 64  }
 0x401   :  { %5933 = vsyncadd [#allocation3], 4294967232 }
 0x402   :  { %4400 = vsyncpa [#allocation3], 1 }

</bundles_post_ra>
